<compile_context>
chip_gen: v7x
topology: tpu7x:2x2x1
jax: 0.10.0
libtpu: 0.0.40
codegen_flags: <defaults>
</compile_context>

<pallas_src>
import functools

import jax
import jax.numpy as jnp
from jax.experimental import pallas as pl
from jax.experimental.pallas import tpu as pltpu


# ----------------------------------------------------------------------------
# Pallas kernel
# ----------------------------------------------------------------------------
def _make_encoder_kernel(num_layer, T, H, input_size, batch):
    L2 = 2 * num_layer
    rep = input_size // L2            # bidirec=True path of the PyTorch code
    n_fixed = 9                       # 4 data/state operands + 5 (folded) attn params
    n_in = n_fixed + 3 * num_layer

    def sigmoid(x):                   # explicit form; lowers to exp on the EUP
        return 1.0 / (1.0 + jnp.exp(-x))

    def kernel(*refs):
        assert len(refs) == n_in + 2, len(refs)
        inp_tm_ref, inp_perm_ref, h0_ref, c0_ref = refs[0:4]
        w1hc_ref, w1x_ref, b12_ref, w3_ref, b3_ref = refs[4:n_fixed]
        lstm_refs = refs[n_fixed:n_in]          # per layer: wih_cat, whh_bd, b_cat
        iw_ref, ie_ref = refs[n_in], refs[n_in + 1]

        B = batch

        # ---- loop-invariant loads / precomputation (hoisted out of the T loop) ----
        inp_tm = inp_tm_ref[...]                              # (T, B, IS)
        inp_flat = inp_perm_ref[...].reshape(B * input_size, T)
        # time-invariant attention term with Linear1∘Linear2 folded:
        #   inp.permute(0,2,1) @ (W1 @ W2)[2H:] + (b1 @ W2 + b2)
        inp_contrib = (jnp.dot(inp_flat, w1x_ref[...],
                               preferred_element_type=jnp.float32)
                       + b12_ref[...])                        # (B*IS, T)
        w1hc = w1hc_ref[...]                                  # (2H, T)  [hidden|cell rows]
        w3 = w3_ref[...]                                      # (1, 1, T)
        b3 = b3_ref[...]                                      # (1, 1)
        lstm_w = [(lstm_refs[3 * l][...], lstm_refs[3 * l + 1][...],
                   lstm_refs[3 * l + 2][...]) for l in range(num_layer)]

        # ---- recurrent state, carried as values ----
        h_st = h0_ref[...]                                    # (B, 2L, H)
        c_st = c0_ref[...]
        h_pieces = [h_st[:, j, :] for j in range(L2)]         # index = 2*l + d
        c_pieces = [c_st[:, j, :] for j in range(L2)]

        iw_steps = []
        ie_steps = []
        for t in range(T):                 # fully unrolled: T is a static constant
            # ---------------- input attention ----------------
            # single fused matmul for the hidden AND cell contributions
            hc_cat = jnp.concatenate([h_st, c_st], axis=2)    # (B, 2L, 2H)
            hc = jnp.dot(hc_cat.reshape(B * L2, 2 * H), w1hc,
                         preferred_element_type=jnp.float32).reshape(B, L2, T)
            # hidden.repeat(rep,1,1).permute(1,0,2): driving-series i uses state i % 2L
            hc_tiled = jnp.concatenate([hc] * rep, axis=1).reshape(B * input_size, T)
            y = jnp.tanh(hc_tiled + inp_contrib)              # == tanh((x@W1+b1)@W2+b2)
            # final Linear(T -> 1): VPU multiply + lane reduction instead of a
            # degenerate 1-lane MXU matmul.
            logits = jnp.sum(y.reshape(B, input_size, T) * w3, axis=2) + b3
            logits = logits - jnp.max(logits, axis=1, keepdims=True)
            e = jnp.exp(logits)
            attn = e / jnp.sum(e, axis=1, keepdims=True)      # softmax over IS
            iw_steps.append(attn)

            layer_in = attn * inp_tm[t]                       # weighted series (B, IS)

            # ------ stacked bidirectional LSTM, one step, fused directions ------
            new_h, new_c = [], []
            for l in range(num_layer):
                wih_cat, whh_bd, b_cat = lstm_w[l]
                h_cat = jnp.concatenate(
                    [h_pieces[2 * l], h_pieces[2 * l + 1]], axis=1)   # (B, 2H)
                # x-gates depend on the attention output; h-gates only on the
                # previous state -> keep them as two matmuls so the scheduler can
                # overlap the h matmul with the attention chain.
                gates = (jnp.dot(layer_in, wih_cat,
                                 preferred_element_type=jnp.float32)
                         + jnp.dot(h_cat, whh_bd,
                                   preferred_element_type=jnp.float32)
                         + b_cat)                             # (B, 8H) = 128 lanes
                sig = sigmoid(gates)                          # one EUP op, full vreg
                tnh = jnp.tanh(gates)                         # one EUP op, full vreg
                outs = []
                for d in range(2):
                    base = d * 4 * H                          # gate order i, f, g, o
                    i_g = sig[:, base:base + H]
                    f_g = sig[:, base + H:base + 2 * H]
                    g_g = tnh[:, base + 2 * H:base + 3 * H]
                    o_g = sig[:, base + 3 * H:base + 4 * H]
                    cp = c_pieces[2 * l + d]
                    cn = f_g * cp + i_g * g_g
                    hn = o_g * jnp.tanh(cn)
                    new_h.append(hn)
                    new_c.append(cn)
                    outs.append(hn)
                layer_in = jnp.concatenate(outs, axis=1)      # (B, 2H) next layer in
            h_pieces, c_pieces = new_h, new_c
            h_st = jnp.stack(new_h, axis=1)                   # (B, 2L, H)
            c_st = jnp.stack(new_c, axis=1)
            ie_steps.append(h_st)

        # one consolidated store per output (no per-step partial stores)
        iw_ref[...] = jnp.stack(iw_steps, axis=0)             # (T, B, IS)
        ie_ref[...] = jnp.stack(ie_steps, axis=0)             # (T, B, 2L, H)

    return kernel


# ----------------------------------------------------------------------------
# Wrapper: layout plumbing, weight pre-packing/composition, batch padding
# ----------------------------------------------------------------------------
def encoder_forward(input_data, params, *, T, hidden_size, input_size, num_layer):
    batch = input_data.shape[0]
    H = hidden_size
    L2 = 2 * num_layer
    # pad the batch (sublane) dimension to a multiple of 8: f32 min tile is (8, 128)
    B_pad = max(8, -(-batch // 8) * 8)

    def pad_batch(x, axis):
        if B_pad == batch:
            return x
        widths = [(0, 0)] * x.ndim
        widths[axis] = (0, B_pad - batch)
        return jnp.pad(x, widths)

    x_p = pad_batch(input_data.astype(jnp.float32), 0)        # (Bp, T, IS)
    inp_tm = jnp.transpose(x_p, (1, 0, 2))                    # (T, Bp, IS)
    inp_perm = jnp.transpose(x_p, (0, 2, 1))                  # (Bp, IS, T)
    h0_k = pad_batch(jnp.transpose(params["h0"], (1, 0, 2)), 0)   # (Bp, 2L, H)
    c0_k = pad_batch(jnp.transpose(params["c0"], (1, 0, 2)), 0)

    # fold Linear(2H+T -> T) ∘ Linear(T -> T) (no nonlinearity in between):
    #   y = (x @ W1 + b1) @ W2 + b2 = x @ (W1 @ W2) + (b1 @ W2 + b2)
    w12 = params["aw1"] @ params["aw2"]                       # (2H+T, T)
    b12 = params["ab1"] @ params["aw2"] + params["ab2"]        # (1, T)
    attn_args = [w12[:2 * H],                                 # rows [0:H] hidden, [H:2H] cell
                 w12[2 * H:],                                 # rows [2H:2H+T] inputs
                 b12,
                 params["aw3"].reshape(1, 1, T), params["ab3"]]

    lstm_args = []
    for l in range(num_layer):
        wih = params[f"wih{l}"]        # (2, in_l, 4H), pre-transposed (in, 4H)
        whh = params[f"whh{l}"]        # (2, H, 4H)
        b = params[f"lb{l}"]           # (2, 4H) == b_ih + b_hh
        wih_cat = jnp.concatenate([wih[0], wih[1]], axis=1)                 # (in_l, 8H)
        z = jnp.zeros((H, 4 * H), jnp.float32)
        whh_bd = jnp.concatenate(
            [jnp.concatenate([whh[0], z], axis=1),
             jnp.concatenate([z, whh[1]], axis=1)], axis=0)                 # (2H, 8H)
        b_cat = jnp.concatenate([b[0], b[1]], axis=0).reshape(1, 8 * H)     # (1, 8H)
        lstm_args += [wih_cat, whh_bd, b_cat]

    operands = [inp_tm, inp_perm, h0_k, c0_k] + attn_args + lstm_args

    kernel = _make_encoder_kernel(num_layer, T, H, input_size, B_pad)

    def full_spec(shape):
        nd = len(shape)
        return pl.BlockSpec(shape, lambda i, nd=nd: (0,) * nd)

    out_shape = [jax.ShapeDtypeStruct((T, B_pad, input_size), jnp.float32),
                 jax.ShapeDtypeStruct((T, B_pad, L2, H), jnp.float32)]
    out_specs = [full_spec(s.shape) for s in out_shape]
    in_specs = [full_spec(op.shape) for op in operands]

    iw_tb, ie_tb = pl.pallas_call(
        kernel,
        out_shape=out_shape,
        grid=(1,),
        in_specs=in_specs,
        out_specs=out_specs,
        compiler_params=pltpu.CompilerParams(dimension_semantics=("arbitrary",)),
    )(*operands)

    iw_tb = iw_tb[:, :batch]          # drop batch padding
    ie_tb = ie_tb[:, :batch]

    # back to PyTorch conventions:
    input_weighted = jnp.transpose(iw_tb, (1, 0, 2))                  # (B, T, IS)
    # input_encoded[:, t, :] = hidden.view(B, 2L*H) with hidden laid out (2L, B, H)
    ie_lbk = jnp.transpose(ie_tb, (0, 2, 1, 3))                       # (T, 2L, B, H)
    input_encoded = jnp.transpose(ie_lbk.reshape(T, batch, L2 * H), (1, 0, 2))
    return input_weighted, input_encoded


# ----------------------------------------------------------------------------
# Pure-JAX reference (mirrors the PyTorch forward exactly) for validation
# ----------------------------------------------------------------------------
def encoder_reference(input_data, p, *, T, hidden_size, input_size, num_layer):
    batch = input_data.shape[0]
    H = hidden_size
    L2 = 2 * num_layer
    rep = input_size // L2
    h = p["h0"]   # (2L, B, H)
    c = p["c0"]
    inp_perm = jnp.transpose(input_data, (0, 2, 1))
    iw, ie = [], []
    for t in range(T):
        hid = jnp.transpose(jnp.tile(h, (rep, 1, 1)), (1, 0, 2))
        cel = jnp.transpose(jnp.tile(c, (rep, 1, 1)), (1, 0, 2))
        x = jnp.concatenate([hid, cel, inp_perm], axis=2).reshape(batch * input_size, -1)
        y = x @ p["aw1"] + p["ab1"]
        y = y @ p["aw2"] + p["ab2"]
        y = jnp.tanh(y) @ p["aw3"].T + p["ab3"]
        attn = jax.nn.softmax(y.reshape(batch, input_size), axis=1)
        iw.append(attn)
        layer_in = attn * input_data[:, t, :]
        h_new, c_new = [], []
        for l in range(num_layer):
            outs = []
            for d in range(2):
                idx = 2 * l + d
                gates = (layer_in @ p[f"wih{l}"][d] + h[idx] @ p[f"whh{l}"][d]
                         + p[f"lb{l}"][d])
                i_g = jax.nn.sigmoid(gates[:, 0:H])
                f_g = jax.nn.sigmoid(gates[:, H:2 * H])
                g_g = jnp.tanh(gates[:, 2 * H:3 * H])
                o_g = jax.nn.sigmoid(gates[:, 3 * H:4 * H])
                cn = f_g * c[idx] + i_g * g_g
                hn = o_g * jnp.tanh(cn)
                h_new.append(hn)
                c_new.append(cn)
                outs.append(hn)
            layer_in = jnp.concatenate(outs, axis=1)
        h = jnp.stack(h_new, axis=0)
        c = jnp.stack(c_new, axis=0)
        ie.append(h.reshape(batch, L2 * H))   # torch .view quirk: (2L,B,H) -> (B, 2L*H)
    return jnp.stack(iw, axis=1), jnp.stack(ie, axis=1)


# ----------------------------------------------------------------------------
# Deterministic parameter construction (synthetic, no checkpoint)
# ----------------------------------------------------------------------------
def torch_like_orthogonal(key, shape):
    rows = shape[0]
    cols = 1
    for s in shape[1:]:
        cols *= s
    n, m = (rows, cols) if rows >= cols else (cols, rows)
    a = jax.random.normal(key, (n, m), dtype=jnp.float32)
    q, r = jnp.linalg.qr(a)
    q = q * jnp.sign(jnp.diagonal(r))
    if rows < cols:
        q = q.T
    return q.reshape(shape)


def init_params(key, *, batch, T, input_size, hidden_size, num_layer):
    H = hidden_size
    L2 = 2 * num_layer
    ks = jax.random.split(key, 8 + 4 * num_layer)
    u = lambda k, shape, bound: jax.random.uniform(k, shape, jnp.float32, -bound, bound)

    p = {}
    # initial states (torch orthogonal_ on (2L, B, H))
    p["h0"] = torch_like_orthogonal(ks[0], (L2, batch, H))
    p["c0"] = torch_like_orthogonal(ks[1], (L2, batch, H))
    # attn_linear: Linear(2H+T -> T), Linear(T -> T), Tanh, Linear(T -> 1)
    # weights stored pre-transposed (in_features, out_features); last one as a row.
    bnd1 = 1.0 / (2 * H + T) ** 0.5
    bnd2 = 1.0 / T ** 0.5
    p["aw1"] = u(ks[2], (2 * H + T, T), bnd1)
    p["ab1"] = u(ks[3], (1, T), bnd1)
    p["aw2"] = u(ks[4], (T, T), bnd2)
    p["ab2"] = u(ks[5], (1, T), bnd2)
    p["aw3"] = u(ks[6], (1, T), bnd2)
    p["ab3"] = u(ks[7], (1, 1), bnd2)
    # bidirectional stacked LSTM; gate order i,f,g,o; weights pre-transposed,
    # biases combined (b_ih + b_hh folded into one tensor)
    kh = 1.0 / H ** 0.5
    for l in range(num_layer):
        in_l = input_size if l == 0 else 2 * H
        base = 8 + 4 * l
        p[f"wih{l}"] = u(ks[base], (2, in_l, 4 * H), kh)
        p[f"whh{l}"] = u(ks[base + 1], (2, H, 4 * H), kh)
        p[f"lb{l}"] = u(ks[base + 2], (2, 4 * H), kh) + u(ks[base + 3], (2, 4 * H), kh)
    return p


# ----------------------------------------------------------------------------
if __name__ == "__main__":
    batch, T, input_size, hidden_size, num_layer = 2, 8, 8, 16, 2
    # bidirec=True is the only configuration under which the PyTorch forward
    # shape-checks (input_size must equal rep * 2 * num_layer).
    # TODO(synk): nn.LSTM.flatten_parameters() is a cuDNN memory-layout no-op; not translated.

    key = jax.random.PRNGKey(0)
    k_params, k_x = jax.random.split(key)
    params = init_params(k_params, batch=batch, T=T, input_size=input_size,
                         hidden_size=hidden_size, num_layer=num_layer)
    x = jax.random.normal(k_x, (batch, T, input_size), dtype=jnp.float32)

    fwd = jax.jit(functools.partial(encoder_forward, T=T, hidden_size=hidden_size,
                                    input_size=input_size, num_layer=num_layer))
    input_weighted, input_encoded = fwd(x, params)
    jax.block_until_ready((input_weighted, input_encoded))

    assert input_weighted.shape == (batch, T, input_size)
    assert input_encoded.shape == (batch, T, 2 * num_layer * hidden_size)

    iw_ref, ie_ref = encoder_reference(x, params, T=T, hidden_size=hidden_size,
                                       input_size=input_size, num_layer=num_layer)
    err_iw = float(jnp.max(jnp.abs(input_weighted - iw_ref)))
    err_ie = float(jnp.max(jnp.abs(input_encoded - ie_ref)))
    assert err_iw < 1e-3 and err_ie < 1e-3, (err_iw, err_ie)

    print("KERNEL_OK")
</pallas_src>

<mosaic_0001>
module attributes {stable_mosaic.version = 11 : i64} {
  func.func @kernel(%arg0: i32, %arg1: memref<8x8x8xf32, #tpu.memory_space<vmem>>, %arg2: memref<8x8x8xf32, #tpu.memory_space<vmem>>, %arg3: memref<8x4x16xf32, #tpu.memory_space<vmem>>, %arg4: memref<8x4x16xf32, #tpu.memory_space<vmem>>, %arg5: memref<32x8xf32, #tpu.memory_space<vmem>>, %arg6: memref<8x8xf32, #tpu.memory_space<vmem>>, %arg7: memref<1x8xf32, #tpu.memory_space<vmem>>, %arg8: memref<1x1x8xf32, #tpu.memory_space<vmem>>, %arg9: memref<1x1xf32, #tpu.memory_space<vmem>>, %arg10: memref<8x128xf32, #tpu.memory_space<vmem>>, %arg11: memref<32x128xf32, #tpu.memory_space<vmem>>, %arg12: memref<1x128xf32, #tpu.memory_space<vmem>>, %arg13: memref<32x128xf32, #tpu.memory_space<vmem>>, %arg14: memref<32x128xf32, #tpu.memory_space<vmem>>, %arg15: memref<1x128xf32, #tpu.memory_space<vmem>>, %arg16: memref<8x8x8xf32, #tpu.memory_space<vmem>>, %arg17: memref<8x8x4x16xf32, #tpu.memory_space<vmem>>) attributes {dimension_semantics = [#tpu.dimension_semantics<arbitrary>], iteration_bounds = array<i64: 1>, scalar_prefetch = 0 : i64, scratch_operands = 0 : i64, tpu.core_type = #tpu.core_type<tc>, window_params = [{pipeline_mode = #tpu.pipeline_mode<synchronous>, transform_indices = @transform_0, window_bounds = array<i64: 8, 8, 8>}, {pipeline_mode = #tpu.pipeline_mode<synchronous>, transform_indices = @transform_1, window_bounds = array<i64: 8, 8, 8>}, {pipeline_mode = #tpu.pipeline_mode<synchronous>, transform_indices = @transform_2, window_bounds = array<i64: 8, 4, 16>}, {pipeline_mode = #tpu.pipeline_mode<synchronous>, transform_indices = @transform_3, window_bounds = array<i64: 8, 4, 16>}, {pipeline_mode = #tpu.pipeline_mode<synchronous>, transform_indices = @transform_4, window_bounds = array<i64: 32, 8>}, {pipeline_mode = #tpu.pipeline_mode<synchronous>, transform_indices = @transform_5, window_bounds = array<i64: 8, 8>}, {pipeline_mode = #tpu.pipeline_mode<synchronous>, transform_indices = @transform_6, window_bounds = array<i64: 1, 8>}, {pipeline_mode = #tpu.pipeline_mode<synchronous>, transform_indices = @transform_7, window_bounds = array<i64: 1, 1, 8>}, {pipeline_mode = #tpu.pipeline_mode<synchronous>, transform_indices = @transform_8, window_bounds = array<i64: 1, 1>}, {pipeline_mode = #tpu.pipeline_mode<synchronous>, transform_indices = @transform_9, window_bounds = array<i64: 8, 128>}, {pipeline_mode = #tpu.pipeline_mode<synchronous>, transform_indices = @transform_10, window_bounds = array<i64: 32, 128>}, {pipeline_mode = #tpu.pipeline_mode<synchronous>, transform_indices = @transform_11, window_bounds = array<i64: 1, 128>}, {pipeline_mode = #tpu.pipeline_mode<synchronous>, transform_indices = @transform_12, window_bounds = array<i64: 32, 128>}, {pipeline_mode = #tpu.pipeline_mode<synchronous>, transform_indices = @transform_13, window_bounds = array<i64: 32, 128>}, {pipeline_mode = #tpu.pipeline_mode<synchronous>, transform_indices = @transform_14, window_bounds = array<i64: 1, 128>}, {pipeline_mode = #tpu.pipeline_mode<synchronous>, transform_indices = @transform_15, window_bounds = array<i64: 8, 8, 8>}, {pipeline_mode = #tpu.pipeline_mode<synchronous>, transform_indices = @transform_16, window_bounds = array<i64: 8, 8, 4, 16>}]} {
    %c0 = arith.constant 0 : index
    %c0_0 = arith.constant 0 : index
    %c0_1 = arith.constant 0 : index
    %0 = vector.load %arg1[%c0, %c0_0, %c0_1] : memref<8x8x8xf32, #tpu.memory_space<vmem>>, vector<8x8x8xf32>
    %c0_2 = arith.constant 0 : index
    %c0_3 = arith.constant 0 : index
    %c0_4 = arith.constant 0 : index
    %1 = vector.load %arg2[%c0_2, %c0_3, %c0_4] : memref<8x8x8xf32, #tpu.memory_space<vmem>>, vector<8x8x8xf32>
    %2 = vector.shape_cast %1 : vector<8x8x8xf32> to vector<64x8xf32>
    %c0_5 = arith.constant 0 : index
    %c0_6 = arith.constant 0 : index
    %3 = vector.load %arg6[%c0_5, %c0_6] : memref<8x8xf32, #tpu.memory_space<vmem>>, vector<8x8xf32>
    %cst = arith.constant dense<0.000000e+00> : vector<64x8xf32>
    %4 = tpu.matmul %2, %3, %cst {dimension_numbers = #tpu.dot_dimension_numbers<[1], [0], [0], [1], [0, 0, 1, 1], [], []>} : vector<64x8xf32>, vector<8x8xf32>, vector<64x8xf32> -> vector<64x8xf32>
    %c0_7 = arith.constant 0 : index
    %c0_8 = arith.constant 0 : index
    %5 = vector.load %arg7[%c0_7, %c0_8] : memref<1x8xf32, #tpu.memory_space<vmem>>, vector<1x8xf32>
    %6 = vector.broadcast %5 : vector<1x8xf32> to vector<64x8xf32>
    %7 = arith.addf %4, %6 : vector<64x8xf32>
    %c0_9 = arith.constant 0 : index
    %c0_10 = arith.constant 0 : index
    %8 = vector.load %arg5[%c0_9, %c0_10] : memref<32x8xf32, #tpu.memory_space<vmem>>, vector<32x8xf32>
    %c0_11 = arith.constant 0 : index
    %c0_12 = arith.constant 0 : index
    %c0_13 = arith.constant 0 : index
    %9 = vector.load %arg8[%c0_11, %c0_12, %c0_13] : memref<1x1x8xf32, #tpu.memory_space<vmem>>, vector<1x1x8xf32>
    %c0_14 = arith.constant 0 : index
    %c0_15 = arith.constant 0 : index
    %10 = vector.load %arg9[%c0_14, %c0_15] : memref<1x1xf32, #tpu.memory_space<vmem>>, vector<1x1xf32>
    %c0_16 = arith.constant 0 : index
    %c0_17 = arith.constant 0 : index
    %11 = vector.load %arg10[%c0_16, %c0_17] : memref<8x128xf32, #tpu.memory_space<vmem>>, vector<8x128xf32>
    %c0_18 = arith.constant 0 : index
    %c0_19 = arith.constant 0 : index
    %12 = vector.load %arg11[%c0_18, %c0_19] : memref<32x128xf32, #tpu.memory_space<vmem>>, vector<32x128xf32>
    %c0_20 = arith.constant 0 : index
    %c0_21 = arith.constant 0 : index
    %13 = vector.load %arg12[%c0_20, %c0_21] : memref<1x128xf32, #tpu.memory_space<vmem>>, vector<1x128xf32>
    %c0_22 = arith.constant 0 : index
    %c0_23 = arith.constant 0 : index
    %14 = vector.load %arg13[%c0_22, %c0_23] : memref<32x128xf32, #tpu.memory_space<vmem>>, vector<32x128xf32>
    %c0_24 = arith.constant 0 : index
    %c0_25 = arith.constant 0 : index
    %15 = vector.load %arg14[%c0_24, %c0_25] : memref<32x128xf32, #tpu.memory_space<vmem>>, vector<32x128xf32>
    %c0_26 = arith.constant 0 : index
    %c0_27 = arith.constant 0 : index
    %16 = vector.load %arg15[%c0_26, %c0_27] : memref<1x128xf32, #tpu.memory_space<vmem>>, vector<1x128xf32>
    %c0_28 = arith.constant 0 : index
    %c0_29 = arith.constant 0 : index
    %c0_30 = arith.constant 0 : index
    %17 = vector.load %arg3[%c0_28, %c0_29, %c0_30] : memref<8x4x16xf32, #tpu.memory_space<vmem>>, vector<8x4x16xf32>
    %c0_31 = arith.constant 0 : index
    %c0_32 = arith.constant 0 : index
    %c0_33 = arith.constant 0 : index
    %18 = vector.load %arg4[%c0_31, %c0_32, %c0_33] : memref<8x4x16xf32, #tpu.memory_space<vmem>>, vector<8x4x16xf32>
    %19 = vector.extract_strided_slice %17 {offsets = [0, 0, 0], sizes = [8, 1, 16], strides = [1, 1, 1]} : vector<8x4x16xf32> to vector<8x1x16xf32>
    %20 = vector.shape_cast %19 : vector<8x1x16xf32> to vector<8x16xf32>
    %21 = vector.extract_strided_slice %17 {offsets = [0, 1, 0], sizes = [8, 1, 16], strides = [1, 1, 1]} : vector<8x4x16xf32> to vector<8x1x16xf32>
    %22 = vector.shape_cast %21 : vector<8x1x16xf32> to vector<8x16xf32>
    %23 = vector.extract_strided_slice %17 {offsets = [0, 2, 0], sizes = [8, 1, 16], strides = [1, 1, 1]} : vector<8x4x16xf32> to vector<8x1x16xf32>
    %24 = vector.shape_cast %23 : vector<8x1x16xf32> to vector<8x16xf32>
    %25 = vector.extract_strided_slice %17 {offsets = [0, 3, 0], sizes = [8, 1, 16], strides = [1, 1, 1]} : vector<8x4x16xf32> to vector<8x1x16xf32>
    %26 = vector.shape_cast %25 : vector<8x1x16xf32> to vector<8x16xf32>
    %27 = vector.extract_strided_slice %18 {offsets = [0, 0, 0], sizes = [8, 1, 16], strides = [1, 1, 1]} : vector<8x4x16xf32> to vector<8x1x16xf32>
    %28 = vector.shape_cast %27 : vector<8x1x16xf32> to vector<8x16xf32>
    %29 = vector.extract_strided_slice %18 {offsets = [0, 1, 0], sizes = [8, 1, 16], strides = [1, 1, 1]} : vector<8x4x16xf32> to vector<8x1x16xf32>
    %30 = vector.shape_cast %29 : vector<8x1x16xf32> to vector<8x16xf32>
    %31 = vector.extract_strided_slice %18 {offsets = [0, 2, 0], sizes = [8, 1, 16], strides = [1, 1, 1]} : vector<8x4x16xf32> to vector<8x1x16xf32>
    %32 = vector.shape_cast %31 : vector<8x1x16xf32> to vector<8x16xf32>
    %33 = vector.extract_strided_slice %18 {offsets = [0, 3, 0], sizes = [8, 1, 16], strides = [1, 1, 1]} : vector<8x4x16xf32> to vector<8x1x16xf32>
    %34 = vector.shape_cast %33 : vector<8x1x16xf32> to vector<8x16xf32>
    %35 = tpu.concatenate %17, %18 in 2 : vector<8x4x16xf32>, vector<8x4x16xf32> -> vector<8x4x32xf32>
    %36 = vector.shape_cast %35 : vector<8x4x32xf32> to vector<32x32xf32>
    %cst_34 = arith.constant dense<0.000000e+00> : vector<32x8xf32>
    %37 = tpu.matmul %36, %8, %cst_34 {dimension_numbers = #tpu.dot_dimension_numbers<[1], [0], [0], [1], [0, 0, 1, 1], [], []>} : vector<32x32xf32>, vector<32x8xf32>, vector<32x8xf32> -> vector<32x8xf32>
    %38 = vector.shape_cast %37 : vector<32x8xf32> to vector<8x4x8xf32>
    %39 = tpu.concatenate %38, %38 in 1 : vector<8x4x8xf32>, vector<8x4x8xf32> -> vector<8x8x8xf32>
    %40 = vector.shape_cast %39 : vector<8x8x8xf32> to vector<64x8xf32>
    %41 = arith.addf %40, %7 : vector<64x8xf32>
    %42 = math.tanh %41 : vector<64x8xf32>
    %43 = vector.shape_cast %42 : vector<64x8xf32> to vector<8x8x8xf32>
    %44 = vector.broadcast %9 : vector<1x1x8xf32> to vector<8x8x8xf32>
    %45 = arith.mulf %43, %44 : vector<8x8x8xf32>
    %cst_35 = arith.constant dense<0.000000e+00> : vector<8x8xf32>
    %46 = vector.multi_reduction <add>, %45, %cst_35 [2] : vector<8x8x8xf32> to vector<8x8xf32>
    %47 = vector.broadcast %10 : vector<1x1xf32> to vector<8x8xf32>
    %48 = arith.addf %46, %47 : vector<8x8xf32>
    %cst_36 = arith.constant dense<0xFF800000> : vector<8xf32>
    %49 = vector.multi_reduction <maximumf>, %48, %cst_36 [1] : vector<8x8xf32> to vector<8xf32>
    %50 = vector.shape_cast %49 : vector<8xf32> to vector<8x1xf32>
    %51 = vector.broadcast %50 : vector<8x1xf32> to vector<8x8xf32>
    %52 = arith.subf %48, %51 : vector<8x8xf32>
    %53 = math.exp %52 : vector<8x8xf32>
    %cst_37 = arith.constant dense<0.000000e+00> : vector<8xf32>
    %54 = vector.multi_reduction <add>, %53, %cst_37 [1] : vector<8x8xf32> to vector<8xf32>
    %55 = vector.shape_cast %54 : vector<8xf32> to vector<8x1xf32>
    %56 = vector.broadcast %55 : vector<8x1xf32> to vector<8x8xf32>
    %57 = arith.divf %53, %56 : vector<8x8xf32>
    %58 = vector.extract_strided_slice %0 {offsets = [0, 0, 0], sizes = [1, 8, 8], strides = [1, 1, 1]} : vector<8x8x8xf32> to vector<1x8x8xf32>
    %59 = vector.shape_cast %58 : vector<1x8x8xf32> to vector<8x8xf32>
    %60 = arith.mulf %57, %59 : vector<8x8xf32>
    %61 = tpu.concatenate %20, %22 in 1 : vector<8x16xf32>, vector<8x16xf32> -> vector<8x32xf32>
    %cst_38 = arith.constant dense<0.000000e+00> : vector<8x128xf32>
    %62 = tpu.matmul %60, %11, %cst_38 {dimension_numbers = #tpu.dot_dimension_numbers<[1], [0], [0], [1], [0, 0, 1, 1], [], []>} : vector<8x8xf32>, vector<8x128xf32>, vector<8x128xf32> -> vector<8x128xf32>
    %cst_39 = arith.constant dense<0.000000e+00> : vector<8x128xf32>
    %63 = tpu.matmul %61, %12, %cst_39 {dimension_numbers = #tpu.dot_dimension_numbers<[1], [0], [0], [1], [0, 0, 1, 1], [], []>} : vector<8x32xf32>, vector<32x128xf32>, vector<8x128xf32> -> vector<8x128xf32>
    %64 = arith.addf %62, %63 : vector<8x128xf32>
    %65 = vector.broadcast %13 : vector<1x128xf32> to vector<8x128xf32>
    %66 = arith.addf %64, %65 : vector<8x128xf32>
    %cst_40 = arith.constant 0.000000e+00 : f32
    %67 = vector.broadcast %cst_40 : f32 to vector<8x128xf32>
    %68 = arith.subf %67, %66 : vector<8x128xf32>
    %69 = math.exp %68 : vector<8x128xf32>
    %cst_41 = arith.constant 1.000000e+00 : f32
    %70 = vector.broadcast %cst_41 : f32 to vector<8x128xf32>
    %71 = arith.addf %70, %69 : vector<8x128xf32>
    %cst_42 = arith.constant 1.000000e+00 : f32
    %72 = vector.broadcast %cst_42 : f32 to vector<8x128xf32>
    %73 = arith.divf %72, %71 : vector<8x128xf32>
    %74 = math.tanh %66 : vector<8x128xf32>
    %75 = vector.extract_strided_slice %73 {offsets = [0, 0], sizes = [8, 16], strides = [1, 1]} : vector<8x128xf32> to vector<8x16xf32>
    %76 = vector.extract_strided_slice %73 {offsets = [0, 16], sizes = [8, 16], strides = [1, 1]} : vector<8x128xf32> to vector<8x16xf32>
    %77 = vector.extract_strided_slice %74 {offsets = [0, 32], sizes = [8, 16], strides = [1, 1]} : vector<8x128xf32> to vector<8x16xf32>
    %78 = vector.extract_strided_slice %73 {offsets = [0, 48], sizes = [8, 16], strides = [1, 1]} : vector<8x128xf32> to vector<8x16xf32>
    %79 = arith.mulf %76, %28 : vector<8x16xf32>
    %80 = arith.mulf %75, %77 : vector<8x16xf32>
    %81 = arith.addf %79, %80 : vector<8x16xf32>
    %82 = math.tanh %81 : vector<8x16xf32>
    %83 = arith.mulf %78, %82 : vector<8x16xf32>
    %84 = vector.extract_strided_slice %73 {offsets = [0, 64], sizes = [8, 16], strides = [1, 1]} : vector<8x128xf32> to vector<8x16xf32>
    %85 = vector.extract_strided_slice %73 {offsets = [0, 80], sizes = [8, 16], strides = [1, 1]} : vector<8x128xf32> to vector<8x16xf32>
    %86 = vector.extract_strided_slice %74 {offsets = [0, 96], sizes = [8, 16], strides = [1, 1]} : vector<8x128xf32> to vector<8x16xf32>
    %87 = vector.extract_strided_slice %73 {offsets = [0, 112], sizes = [8, 16], strides = [1, 1]} : vector<8x128xf32> to vector<8x16xf32>
    %88 = arith.mulf %85, %30 : vector<8x16xf32>
    %89 = arith.mulf %84, %86 : vector<8x16xf32>
    %90 = arith.addf %88, %89 : vector<8x16xf32>
    %91 = math.tanh %90 : vector<8x16xf32>
    %92 = arith.mulf %87, %91 : vector<8x16xf32>
    %93 = tpu.concatenate %83, %92 in 1 : vector<8x16xf32>, vector<8x16xf32> -> vector<8x32xf32>
    %94 = tpu.concatenate %24, %26 in 1 : vector<8x16xf32>, vector<8x16xf32> -> vector<8x32xf32>
    %cst_43 = arith.constant dense<0.000000e+00> : vector<8x128xf32>
    %95 = tpu.matmul %93, %14, %cst_43 {dimension_numbers = #tpu.dot_dimension_numbers<[1], [0], [0], [1], [0, 0, 1, 1], [], []>} : vector<8x32xf32>, vector<32x128xf32>, vector<8x128xf32> -> vector<8x128xf32>
    %cst_44 = arith.constant dense<0.000000e+00> : vector<8x128xf32>
    %96 = tpu.matmul %94, %15, %cst_44 {dimension_numbers = #tpu.dot_dimension_numbers<[1], [0], [0], [1], [0, 0, 1, 1], [], []>} : vector<8x32xf32>, vector<32x128xf32>, vector<8x128xf32> -> vector<8x128xf32>
    %97 = arith.addf %95, %96 : vector<8x128xf32>
    %98 = vector.broadcast %16 : vector<1x128xf32> to vector<8x128xf32>
    %99 = arith.addf %97, %98 : vector<8x128xf32>
    %cst_45 = arith.constant 0.000000e+00 : f32
    %100 = vector.broadcast %cst_45 : f32 to vector<8x128xf32>
    %101 = arith.subf %100, %99 : vector<8x128xf32>
    %102 = math.exp %101 : vector<8x128xf32>
    %cst_46 = arith.constant 1.000000e+00 : f32
    %103 = vector.broadcast %cst_46 : f32 to vector<8x128xf32>
    %104 = arith.addf %103, %102 : vector<8x128xf32>
    %cst_47 = arith.constant 1.000000e+00 : f32
    %105 = vector.broadcast %cst_47 : f32 to vector<8x128xf32>
    %106 = arith.divf %105, %104 : vector<8x128xf32>
    %107 = math.tanh %99 : vector<8x128xf32>
    %108 = vector.extract_strided_slice %106 {offsets = [0, 0], sizes = [8, 16], strides = [1, 1]} : vector<8x128xf32> to vector<8x16xf32>
    %109 = vector.extract_strided_slice %106 {offsets = [0, 16], sizes = [8, 16], strides = [1, 1]} : vector<8x128xf32> to vector<8x16xf32>
    %110 = vector.extract_strided_slice %107 {offsets = [0, 32], sizes = [8, 16], strides = [1, 1]} : vector<8x128xf32> to vector<8x16xf32>
    %111 = vector.extract_strided_slice %106 {offsets = [0, 48], sizes = [8, 16], strides = [1, 1]} : vector<8x128xf32> to vector<8x16xf32>
    %112 = arith.mulf %109, %32 : vector<8x16xf32>
    %113 = arith.mulf %108, %110 : vector<8x16xf32>
    %114 = arith.addf %112, %113 : vector<8x16xf32>
    %115 = math.tanh %114 : vector<8x16xf32>
    %116 = arith.mulf %111, %115 : vector<8x16xf32>
    %117 = vector.extract_strided_slice %106 {offsets = [0, 64], sizes = [8, 16], strides = [1, 1]} : vector<8x128xf32> to vector<8x16xf32>
    %118 = vector.extract_strided_slice %106 {offsets = [0, 80], sizes = [8, 16], strides = [1, 1]} : vector<8x128xf32> to vector<8x16xf32>
    %119 = vector.extract_strided_slice %107 {offsets = [0, 96], sizes = [8, 16], strides = [1, 1]} : vector<8x128xf32> to vector<8x16xf32>
    %120 = vector.extract_strided_slice %106 {offsets = [0, 112], sizes = [8, 16], strides = [1, 1]} : vector<8x128xf32> to vector<8x16xf32>
    %121 = arith.mulf %118, %34 : vector<8x16xf32>
    %122 = arith.mulf %117, %119 : vector<8x16xf32>
    %123 = arith.addf %121, %122 : vector<8x16xf32>
    %124 = math.tanh %123 : vector<8x16xf32>
    %125 = arith.mulf %120, %124 : vector<8x16xf32>
    %126 = vector.shape_cast %83 : vector<8x16xf32> to vector<8x1x16xf32>
    %127 = vector.shape_cast %92 : vector<8x16xf32> to vector<8x1x16xf32>
    %128 = vector.shape_cast %116 : vector<8x16xf32> to vector<8x1x16xf32>
    %129 = vector.shape_cast %125 : vector<8x16xf32> to vector<8x1x16xf32>
    %130 = tpu.concatenate %126, %127, %128, %129 in 1 : vector<8x1x16xf32>, vector<8x1x16xf32>, vector<8x1x16xf32>, vector<8x1x16xf32> -> vector<8x4x16xf32>
    %131 = vector.shape_cast %81 : vector<8x16xf32> to vector<8x1x16xf32>
    %132 = vector.shape_cast %90 : vector<8x16xf32> to vector<8x1x16xf32>
    %133 = vector.shape_cast %114 : vector<8x16xf32> to vector<8x1x16xf32>
    %134 = vector.shape_cast %123 : vector<8x16xf32> to vector<8x1x16xf32>
    %135 = tpu.concatenate %131, %132, %133, %134 in 1 : vector<8x1x16xf32>, vector<8x1x16xf32>, vector<8x1x16xf32>, vector<8x1x16xf32> -> vector<8x4x16xf32>
    %136 = tpu.concatenate %130, %135 in 2 : vector<8x4x16xf32>, vector<8x4x16xf32> -> vector<8x4x32xf32>
    %137 = vector.shape_cast %136 : vector<8x4x32xf32> to vector<32x32xf32>
    %cst_48 = arith.constant dense<0.000000e+00> : vector<32x8xf32>
    %138 = tpu.matmul %137, %8, %cst_48 {dimension_numbers = #tpu.dot_dimension_numbers<[1], [0], [0], [1], [0, 0, 1, 1], [], []>} : vector<32x32xf32>, vector<32x8xf32>, vector<32x8xf32> -> vector<32x8xf32>
    %139 = vector.shape_cast %138 : vector<32x8xf32> to vector<8x4x8xf32>
    %140 = tpu.concatenate %139, %139 in 1 : vector<8x4x8xf32>, vector<8x4x8xf32> -> vector<8x8x8xf32>
    %141 = vector.shape_cast %140 : vector<8x8x8xf32> to vector<64x8xf32>
    %142 = arith.addf %141, %7 : vector<64x8xf32>
    %143 = math.tanh %142 : vector<64x8xf32>
    %144 = vector.shape_cast %143 : vector<64x8xf32> to vector<8x8x8xf32>
    %145 = vector.broadcast %9 : vector<1x1x8xf32> to vector<8x8x8xf32>
    %146 = arith.mulf %144, %145 : vector<8x8x8xf32>
    %cst_49 = arith.constant dense<0.000000e+00> : vector<8x8xf32>
    %147 = vector.multi_reduction <add>, %146, %cst_49 [2] : vector<8x8x8xf32> to vector<8x8xf32>
    %148 = vector.broadcast %10 : vector<1x1xf32> to vector<8x8xf32>
    %149 = arith.addf %147, %148 : vector<8x8xf32>
    %cst_50 = arith.constant dense<0xFF800000> : vector<8xf32>
    %150 = vector.multi_reduction <maximumf>, %149, %cst_50 [1] : vector<8x8xf32> to vector<8xf32>
    %151 = vector.shape_cast %150 : vector<8xf32> to vector<8x1xf32>
    %152 = vector.broadcast %151 : vector<8x1xf32> to vector<8x8xf32>
    %153 = arith.subf %149, %152 : vector<8x8xf32>
    %154 = math.exp %153 : vector<8x8xf32>
    %cst_51 = arith.constant dense<0.000000e+00> : vector<8xf32>
    %155 = vector.multi_reduction <add>, %154, %cst_51 [1] : vector<8x8xf32> to vector<8xf32>
    %156 = vector.shape_cast %155 : vector<8xf32> to vector<8x1xf32>
    %157 = vector.broadcast %156 : vector<8x1xf32> to vector<8x8xf32>
    %158 = arith.divf %154, %157 : vector<8x8xf32>
    %159 = vector.extract_strided_slice %0 {offsets = [1, 0, 0], sizes = [1, 8, 8], strides = [1, 1, 1]} : vector<8x8x8xf32> to vector<1x8x8xf32>
    %160 = vector.shape_cast %159 : vector<1x8x8xf32> to vector<8x8xf32>
    %161 = arith.mulf %158, %160 : vector<8x8xf32>
    %162 = tpu.concatenate %83, %92 in 1 : vector<8x16xf32>, vector<8x16xf32> -> vector<8x32xf32>
    %cst_52 = arith.constant dense<0.000000e+00> : vector<8x128xf32>
    %163 = tpu.matmul %161, %11, %cst_52 {dimension_numbers = #tpu.dot_dimension_numbers<[1], [0], [0], [1], [0, 0, 1, 1], [], []>} : vector<8x8xf32>, vector<8x128xf32>, vector<8x128xf32> -> vector<8x128xf32>
    %cst_53 = arith.constant dense<0.000000e+00> : vector<8x128xf32>
    %164 = tpu.matmul %162, %12, %cst_53 {dimension_numbers = #tpu.dot_dimension_numbers<[1], [0], [0], [1], [0, 0, 1, 1], [], []>} : vector<8x32xf32>, vector<32x128xf32>, vector<8x128xf32> -> vector<8x128xf32>
    %165 = arith.addf %163, %164 : vector<8x128xf32>
    %166 = vector.broadcast %13 : vector<1x128xf32> to vector<8x128xf32>
    %167 = arith.addf %165, %166 : vector<8x128xf32>
    %cst_54 = arith.constant 0.000000e+00 : f32
    %168 = vector.broadcast %cst_54 : f32 to vector<8x128xf32>
    %169 = arith.subf %168, %167 : vector<8x128xf32>
    %170 = math.exp %169 : vector<8x128xf32>
    %cst_55 = arith.constant 1.000000e+00 : f32
    %171 = vector.broadcast %cst_55 : f32 to vector<8x128xf32>
    %172 = arith.addf %171, %170 : vector<8x128xf32>
    %cst_56 = arith.constant 1.000000e+00 : f32
    %173 = vector.broadcast %cst_56 : f32 to vector<8x128xf32>
    %174 = arith.divf %173, %172 : vector<8x128xf32>
    %175 = math.tanh %167 : vector<8x128xf32>
    %176 = vector.extract_strided_slice %174 {offsets = [0, 0], sizes = [8, 16], strides = [1, 1]} : vector<8x128xf32> to vector<8x16xf32>
    %177 = vector.extract_strided_slice %174 {offsets = [0, 16], sizes = [8, 16], strides = [1, 1]} : vector<8x128xf32> to vector<8x16xf32>
    %178 = vector.extract_strided_slice %175 {offsets = [0, 32], sizes = [8, 16], strides = [1, 1]} : vector<8x128xf32> to vector<8x16xf32>
    %179 = vector.extract_strided_slice %174 {offsets = [0, 48], sizes = [8, 16], strides = [1, 1]} : vector<8x128xf32> to vector<8x16xf32>
    %180 = arith.mulf %177, %81 : vector<8x16xf32>
    %181 = arith.mulf %176, %178 : vector<8x16xf32>
    %182 = arith.addf %180, %181 : vector<8x16xf32>
    %183 = math.tanh %182 : vector<8x16xf32>
    %184 = arith.mulf %179, %183 : vector<8x16xf32>
    %185 = vector.extract_strided_slice %174 {offsets = [0, 64], sizes = [8, 16], strides = [1, 1]} : vector<8x128xf32> to vector<8x16xf32>
    %186 = vector.extract_strided_slice %174 {offsets = [0, 80], sizes = [8, 16], strides = [1, 1]} : vector<8x128xf32> to vector<8x16xf32>
    %187 = vector.extract_strided_slice %175 {offsets = [0, 96], sizes = [8, 16], strides = [1, 1]} : vector<8x128xf32> to vector<8x16xf32>
    %188 = vector.extract_strided_slice %174 {offsets = [0, 112], sizes = [8, 16], strides = [1, 1]} : vector<8x128xf32> to vector<8x16xf32>
    %189 = arith.mulf %186, %90 : vector<8x16xf32>
    %190 = arith.mulf %185, %187 : vector<8x16xf32>
    %191 = arith.addf %189, %190 : vector<8x16xf32>
    %192 = math.tanh %191 : vector<8x16xf32>
    %193 = arith.mulf %188, %192 : vector<8x16xf32>
    %194 = tpu.concatenate %184, %193 in 1 : vector<8x16xf32>, vector<8x16xf32> -> vector<8x32xf32>
    %195 = tpu.concatenate %116, %125 in 1 : vector<8x16xf32>, vector<8x16xf32> -> vector<8x32xf32>
    %cst_57 = arith.constant dense<0.000000e+00> : vector<8x128xf32>
    %196 = tpu.matmul %194, %14, %cst_57 {dimension_numbers = #tpu.dot_dimension_numbers<[1], [0], [0], [1], [0, 0, 1, 1], [], []>} : vector<8x32xf32>, vector<32x128xf32>, vector<8x128xf32> -> vector<8x128xf32>
    %cst_58 = arith.constant dense<0.000000e+00> : vector<8x128xf32>
    %197 = tpu.matmul %195, %15, %cst_58 {dimension_numbers = #tpu.dot_dimension_numbers<[1], [0], [0], [1], [0, 0, 1, 1], [], []>} : vector<8x32xf32>, vector<32x128xf32>, vector<8x128xf32> -> vector<8x128xf32>
    %198 = arith.addf %196, %197 : vector<8x128xf32>
    %199 = vector.broadcast %16 : vector<1x128xf32> to vector<8x128xf32>
    %200 = arith.addf %198, %199 : vector<8x128xf32>
    %cst_59 = arith.constant 0.000000e+00 : f32
    %201 = vector.broadcast %cst_59 : f32 to vector<8x128xf32>
    %202 = arith.subf %201, %200 : vector<8x128xf32>
    %203 = math.exp %202 : vector<8x128xf32>
    %cst_60 = arith.constant 1.000000e+00 : f32
    %204 = vector.broadcast %cst_60 : f32 to vector<8x128xf32>
    %205 = arith.addf %204, %203 : vector<8x128xf32>
    %cst_61 = arith.constant 1.000000e+00 : f32
    %206 = vector.broadcast %cst_61 : f32 to vector<8x128xf32>
    %207 = arith.divf %206, %205 : vector<8x128xf32>
    %208 = math.tanh %200 : vector<8x128xf32>
    %209 = vector.extract_strided_slice %207 {offsets = [0, 0], sizes = [8, 16], strides = [1, 1]} : vector<8x128xf32> to vector<8x16xf32>
    %210 = vector.extract_strided_slice %207 {offsets = [0, 16], sizes = [8, 16], strides = [1, 1]} : vector<8x128xf32> to vector<8x16xf32>
    %211 = vector.extract_strided_slice %208 {offsets = [0, 32], sizes = [8, 16], strides = [1, 1]} : vector<8x128xf32> to vector<8x16xf32>
    %212 = vector.extract_strided_slice %207 {offsets = [0, 48], sizes = [8, 16], strides = [1, 1]} : vector<8x128xf32> to vector<8x16xf32>
    %213 = arith.mulf %210, %114 : vector<8x16xf32>
    %214 = arith.mulf %209, %211 : vector<8x16xf32>
    %215 = arith.addf %213, %214 : vector<8x16xf32>
    %216 = math.tanh %215 : vector<8x16xf32>
    %217 = arith.mulf %212, %216 : vector<8x16xf32>
    %218 = vector.extract_strided_slice %207 {offsets = [0, 64], sizes = [8, 16], strides = [1, 1]} : vector<8x128xf32> to vector<8x16xf32>
    %219 = vector.extract_strided_slice %207 {offsets = [0, 80], sizes = [8, 16], strides = [1, 1]} : vector<8x128xf32> to vector<8x16xf32>
    %220 = vector.extract_strided_slice %208 {offsets = [0, 96], sizes = [8, 16], strides = [1, 1]} : vector<8x128xf32> to vector<8x16xf32>
    %221 = vector.extract_strided_slice %207 {offsets = [0, 112], sizes = [8, 16], strides = [1, 1]} : vector<8x128xf32> to vector<8x16xf32>
    %222 = arith.mulf %219, %123 : vector<8x16xf32>
    %223 = arith.mulf %218, %220 : vector<8x16xf32>
    %224 = arith.addf %222, %223 : vector<8x16xf32>
    %225 = math.tanh %224 : vector<8x16xf32>
    %226 = arith.mulf %221, %225 : vector<8x16xf32>
    %227 = vector.shape_cast %184 : vector<8x16xf32> to vector<8x1x16xf32>
    %228 = vector.shape_cast %193 : vector<8x16xf32> to vector<8x1x16xf32>
    %229 = vector.shape_cast %217 : vector<8x16xf32> to vector<8x1x16xf32>
    %230 = vector.shape_cast %226 : vector<8x16xf32> to vector<8x1x16xf32>
    %231 = tpu.concatenate %227, %228, %229, %230 in 1 : vector<8x1x16xf32>, vector<8x1x16xf32>, vector<8x1x16xf32>, vector<8x1x16xf32> -> vector<8x4x16xf32>
    %232 = vector.shape_cast %182 : vector<8x16xf32> to vector<8x1x16xf32>
    %233 = vector.shape_cast %191 : vector<8x16xf32> to vector<8x1x16xf32>
    %234 = vector.shape_cast %215 : vector<8x16xf32> to vector<8x1x16xf32>
    %235 = vector.shape_cast %224 : vector<8x16xf32> to vector<8x1x16xf32>
    %236 = tpu.concatenate %232, %233, %234, %235 in 1 : vector<8x1x16xf32>, vector<8x1x16xf32>, vector<8x1x16xf32>, vector<8x1x16xf32> -> vector<8x4x16xf32>
    %237 = tpu.concatenate %231, %236 in 2 : vector<8x4x16xf32>, vector<8x4x16xf32> -> vector<8x4x32xf32>
    %238 = vector.shape_cast %237 : vector<8x4x32xf32> to vector<32x32xf32>
    %cst_62 = arith.constant dense<0.000000e+00> : vector<32x8xf32>
    %239 = tpu.matmul %238, %8, %cst_62 {dimension_numbers = #tpu.dot_dimension_numbers<[1], [0], [0], [1], [0, 0, 1, 1], [], []>} : vector<32x32xf32>, vector<32x8xf32>, vector<32x8xf32> -> vector<32x8xf32>
    %240 = vector.shape_cast %239 : vector<32x8xf32> to vector<8x4x8xf32>
    %241 = tpu.concatenate %240, %240 in 1 : vector<8x4x8xf32>, vector<8x4x8xf32> -> vector<8x8x8xf32>
    %242 = vector.shape_cast %241 : vector<8x8x8xf32> to vector<64x8xf32>
    %243 = arith.addf %242, %7 : vector<64x8xf32>
    %244 = math.tanh %243 : vector<64x8xf32>
    %245 = vector.shape_cast %244 : vector<64x8xf32> to vector<8x8x8xf32>
    %246 = vector.broadcast %9 : vector<1x1x8xf32> to vector<8x8x8xf32>
    %247 = arith.mulf %245, %246 : vector<8x8x8xf32>
    %cst_63 = arith.constant dense<0.000000e+00> : vector<8x8xf32>
    %248 = vector.multi_reduction <add>, %247, %cst_63 [2] : vector<8x8x8xf32> to vector<8x8xf32>
    %249 = vector.broadcast %10 : vector<1x1xf32> to vector<8x8xf32>
    %250 = arith.addf %248, %249 : vector<8x8xf32>
    %cst_64 = arith.constant dense<0xFF800000> : vector<8xf32>
    %251 = vector.multi_reduction <maximumf>, %250, %cst_64 [1] : vector<8x8xf32> to vector<8xf32>
    %252 = vector.shape_cast %251 : vector<8xf32> to vector<8x1xf32>
    %253 = vector.broadcast %252 : vector<8x1xf32> to vector<8x8xf32>
    %254 = arith.subf %250, %253 : vector<8x8xf32>
    %255 = math.exp %254 : vector<8x8xf32>
    %cst_65 = arith.constant dense<0.000000e+00> : vector<8xf32>
    %256 = vector.multi_reduction <add>, %255, %cst_65 [1] : vector<8x8xf32> to vector<8xf32>
    %257 = vector.shape_cast %256 : vector<8xf32> to vector<8x1xf32>
    %258 = vector.broadcast %257 : vector<8x1xf32> to vector<8x8xf32>
    %259 = arith.divf %255, %258 : vector<8x8xf32>
    %260 = vector.extract_strided_slice %0 {offsets = [2, 0, 0], sizes = [1, 8, 8], strides = [1, 1, 1]} : vector<8x8x8xf32> to vector<1x8x8xf32>
    %261 = vector.shape_cast %260 : vector<1x8x8xf32> to vector<8x8xf32>
    %262 = arith.mulf %259, %261 : vector<8x8xf32>
    %263 = tpu.concatenate %184, %193 in 1 : vector<8x16xf32>, vector<8x16xf32> -> vector<8x32xf32>
    %cst_66 = arith.constant dense<0.000000e+00> : vector<8x128xf32>
    %264 = tpu.matmul %262, %11, %cst_66 {dimension_numbers = #tpu.dot_dimension_numbers<[1], [0], [0], [1], [0, 0, 1, 1], [], []>} : vector<8x8xf32>, vector<8x128xf32>, vector<8x128xf32> -> vector<8x128xf32>
    %cst_67 = arith.constant dense<0.000000e+00> : vector<8x128xf32>
    %265 = tpu.matmul %263, %12, %cst_67 {dimension_numbers = #tpu.dot_dimension_numbers<[1], [0], [0], [1], [0, 0, 1, 1], [], []>} : vector<8x32xf32>, vector<32x128xf32>, vector<8x128xf32> -> vector<8x128xf32>
    %266 = arith.addf %264, %265 : vector<8x128xf32>
    %267 = vector.broadcast %13 : vector<1x128xf32> to vector<8x128xf32>
    %268 = arith.addf %266, %267 : vector<8x128xf32>
    %cst_68 = arith.constant 0.000000e+00 : f32
    %269 = vector.broadcast %cst_68 : f32 to vector<8x128xf32>
    %270 = arith.subf %269, %268 : vector<8x128xf32>
    %271 = math.exp %270 : vector<8x128xf32>
    %cst_69 = arith.constant 1.000000e+00 : f32
    %272 = vector.broadcast %cst_69 : f32 to vector<8x128xf32>
    %273 = arith.addf %272, %271 : vector<8x128xf32>
    %cst_70 = arith.constant 1.000000e+00 : f32
    %274 = vector.broadcast %cst_70 : f32 to vector<8x128xf32>
    %275 = arith.divf %274, %273 : vector<8x128xf32>
    %276 = math.tanh %268 : vector<8x128xf32>
    %277 = vector.extract_strided_slice %275 {offsets = [0, 0], sizes = [8, 16], strides = [1, 1]} : vector<8x128xf32> to vector<8x16xf32>
    %278 = vector.extract_strided_slice %275 {offsets = [0, 16], sizes = [8, 16], strides = [1, 1]} : vector<8x128xf32> to vector<8x16xf32>
    %279 = vector.extract_strided_slice %276 {offsets = [0, 32], sizes = [8, 16], strides = [1, 1]} : vector<8x128xf32> to vector<8x16xf32>
    %280 = vector.extract_strided_slice %275 {offsets = [0, 48], sizes = [8, 16], strides = [1, 1]} : vector<8x128xf32> to vector<8x16xf32>
    %281 = arith.mulf %278, %182 : vector<8x16xf32>
    %282 = arith.mulf %277, %279 : vector<8x16xf32>
    %283 = arith.addf %281, %282 : vector<8x16xf32>
    %284 = math.tanh %283 : vector<8x16xf32>
    %285 = arith.mulf %280, %284 : vector<8x16xf32>
    %286 = vector.extract_strided_slice %275 {offsets = [0, 64], sizes = [8, 16], strides = [1, 1]} : vector<8x128xf32> to vector<8x16xf32>
    %287 = vector.extract_strided_slice %275 {offsets = [0, 80], sizes = [8, 16], strides = [1, 1]} : vector<8x128xf32> to vector<8x16xf32>
    %288 = vector.extract_strided_slice %276 {offsets = [0, 96], sizes = [8, 16], strides = [1, 1]} : vector<8x128xf32> to vector<8x16xf32>
    %289 = vector.extract_strided_slice %275 {offsets = [0, 112], sizes = [8, 16], strides = [1, 1]} : vector<8x128xf32> to vector<8x16xf32>
    %290 = arith.mulf %287, %191 : vector<8x16xf32>
    %291 = arith.mulf %286, %288 : vector<8x16xf32>
    %292 = arith.addf %290, %291 : vector<8x16xf32>
    %293 = math.tanh %292 : vector<8x16xf32>
    %294 = arith.mulf %289, %293 : vector<8x16xf32>
    %295 = tpu.concatenate %285, %294 in 1 : vector<8x16xf32>, vector<8x16xf32> -> vector<8x32xf32>
    %296 = tpu.concatenate %217, %226 in 1 : vector<8x16xf32>, vector<8x16xf32> -> vector<8x32xf32>
    %cst_71 = arith.constant dense<0.000000e+00> : vector<8x128xf32>
    %297 = tpu.matmul %295, %14, %cst_71 {dimension_numbers = #tpu.dot_dimension_numbers<[1], [0], [0], [1], [0, 0, 1, 1], [], []>} : vector<8x32xf32>, vector<32x128xf32>, vector<8x128xf32> -> vector<8x128xf32>
    %cst_72 = arith.constant dense<0.000000e+00> : vector<8x128xf32>
    %298 = tpu.matmul %296, %15, %cst_72 {dimension_numbers = #tpu.dot_dimension_numbers<[1], [0], [0], [1], [0, 0, 1, 1], [], []>} : vector<8x32xf32>, vector<32x128xf32>, vector<8x128xf32> -> vector<8x128xf32>
    %299 = arith.addf %297, %298 : vector<8x128xf32>
    %300 = vector.broadcast %16 : vector<1x128xf32> to vector<8x128xf32>
    %301 = arith.addf %299, %300 : vector<8x128xf32>
    %cst_73 = arith.constant 0.000000e+00 : f32
    %302 = vector.broadcast %cst_73 : f32 to vector<8x128xf32>
    %303 = arith.subf %302, %301 : vector<8x128xf32>
    %304 = math.exp %303 : vector<8x128xf32>
    %cst_74 = arith.constant 1.000000e+00 : f32
    %305 = vector.broadcast %cst_74 : f32 to vector<8x128xf32>
    %306 = arith.addf %305, %304 : vector<8x128xf32>
    %cst_75 = arith.constant 1.000000e+00 : f32
    %307 = vector.broadcast %cst_75 : f32 to vector<8x128xf32>
    %308 = arith.divf %307, %306 : vector<8x128xf32>
    %309 = math.tanh %301 : vector<8x128xf32>
    %310 = vector.extract_strided_slice %308 {offsets = [0, 0], sizes = [8, 16], strides = [1, 1]} : vector<8x128xf32> to vector<8x16xf32>
    %311 = vector.extract_strided_slice %308 {offsets = [0, 16], sizes = [8, 16], strides = [1, 1]} : vector<8x128xf32> to vector<8x16xf32>
    %312 = vector.extract_strided_slice %309 {offsets = [0, 32], sizes = [8, 16], strides = [1, 1]} : vector<8x128xf32> to vector<8x16xf32>
    %313 = vector.extract_strided_slice %308 {offsets = [0, 48], sizes = [8, 16], strides = [1, 1]} : vector<8x128xf32> to vector<8x16xf32>
    %314 = arith.mulf %311, %215 : vector<8x16xf32>
    %315 = arith.mulf %310, %312 : vector<8x16xf32>
    %316 = arith.addf %314, %315 : vector<8x16xf32>
    %317 = math.tanh %316 : vector<8x16xf32>
    %318 = arith.mulf %313, %317 : vector<8x16xf32>
    %319 = vector.extract_strided_slice %308 {offsets = [0, 64], sizes = [8, 16], strides = [1, 1]} : vector<8x128xf32> to vector<8x16xf32>
    %320 = vector.extract_strided_slice %308 {offsets = [0, 80], sizes = [8, 16], strides = [1, 1]} : vector<8x128xf32> to vector<8x16xf32>
    %321 = vector.extract_strided_slice %309 {offsets = [0, 96], sizes = [8, 16], strides = [1, 1]} : vector<8x128xf32> to vector<8x16xf32>
    %322 = vector.extract_strided_slice %308 {offsets = [0, 112], sizes = [8, 16], strides = [1, 1]} : vector<8x128xf32> to vector<8x16xf32>
    %323 = arith.mulf %320, %224 : vector<8x16xf32>
    %324 = arith.mulf %319, %321 : vector<8x16xf32>
    %325 = arith.addf %323, %324 : vector<8x16xf32>
    %326 = math.tanh %325 : vector<8x16xf32>
    %327 = arith.mulf %322, %326 : vector<8x16xf32>
    %328 = vector.shape_cast %285 : vector<8x16xf32> to vector<8x1x16xf32>
    %329 = vector.shape_cast %294 : vector<8x16xf32> to vector<8x1x16xf32>
    %330 = vector.shape_cast %318 : vector<8x16xf32> to vector<8x1x16xf32>
    %331 = vector.shape_cast %327 : vector<8x16xf32> to vector<8x1x16xf32>
    %332 = tpu.concatenate %328, %329, %330, %331 in 1 : vector<8x1x16xf32>, vector<8x1x16xf32>, vector<8x1x16xf32>, vector<8x1x16xf32> -> vector<8x4x16xf32>
    %333 = vector.shape_cast %283 : vector<8x16xf32> to vector<8x1x16xf32>
    %334 = vector.shape_cast %292 : vector<8x16xf32> to vector<8x1x16xf32>
    %335 = vector.shape_cast %316 : vector<8x16xf32> to vector<8x1x16xf32>
    %336 = vector.shape_cast %325 : vector<8x16xf32> to vector<8x1x16xf32>
    %337 = tpu.concatenate %333, %334, %335, %336 in 1 : vector<8x1x16xf32>, vector<8x1x16xf32>, vector<8x1x16xf32>, vector<8x1x16xf32> -> vector<8x4x16xf32>
    %338 = tpu.concatenate %332, %337 in 2 : vector<8x4x16xf32>, vector<8x4x16xf32> -> vector<8x4x32xf32>
    %339 = vector.shape_cast %338 : vector<8x4x32xf32> to vector<32x32xf32>
    %cst_76 = arith.constant dense<0.000000e+00> : vector<32x8xf32>
    %340 = tpu.matmul %339, %8, %cst_76 {dimension_numbers = #tpu.dot_dimension_numbers<[1], [0], [0], [1], [0, 0, 1, 1], [], []>} : vector<32x32xf32>, vector<32x8xf32>, vector<32x8xf32> -> vector<32x8xf32>
    %341 = vector.shape_cast %340 : vector<32x8xf32> to vector<8x4x8xf32>
    %342 = tpu.concatenate %341, %341 in 1 : vector<8x4x8xf32>, vector<8x4x8xf32> -> vector<8x8x8xf32>
    %343 = vector.shape_cast %342 : vector<8x8x8xf32> to vector<64x8xf32>
    %344 = arith.addf %343, %7 : vector<64x8xf32>
    %345 = math.tanh %344 : vector<64x8xf32>
    %346 = vector.shape_cast %345 : vector<64x8xf32> to vector<8x8x8xf32>
    %347 = vector.broadcast %9 : vector<1x1x8xf32> to vector<8x8x8xf32>
    %348 = arith.mulf %346, %347 : vector<8x8x8xf32>
    %cst_77 = arith.constant dense<0.000000e+00> : vector<8x8xf32>
    %349 = vector.multi_reduction <add>, %348, %cst_77 [2] : vector<8x8x8xf32> to vector<8x8xf32>
    %350 = vector.broadcast %10 : vector<1x1xf32> to vector<8x8xf32>
    %351 = arith.addf %349, %350 : vector<8x8xf32>
    %cst_78 = arith.constant dense<0xFF800000> : vector<8xf32>
    %352 = vector.multi_reduction <maximumf>, %351, %cst_78 [1] : vector<8x8xf32> to vector<8xf32>
    %353 = vector.shape_cast %352 : vector<8xf32> to vector<8x1xf32>
    %354 = vector.broadcast %353 : vector<8x1xf32> to vector<8x8xf32>
    %355 = arith.subf %351, %354 : vector<8x8xf32>
    %356 = math.exp %355 : vector<8x8xf32>
    %cst_79 = arith.constant dense<0.000000e+00> : vector<8xf32>
    %357 = vector.multi_reduction <add>, %356, %cst_79 [1] : vector<8x8xf32> to vector<8xf32>
    %358 = vector.shape_cast %357 : vector<8xf32> to vector<8x1xf32>
    %359 = vector.broadcast %358 : vector<8x1xf32> to vector<8x8xf32>
    %360 = arith.divf %356, %359 : vector<8x8xf32>
    %361 = vector.extract_strided_slice %0 {offsets = [3, 0, 0], sizes = [1, 8, 8], strides = [1, 1, 1]} : vector<8x8x8xf32> to vector<1x8x8xf32>
    %362 = vector.shape_cast %361 : vector<1x8x8xf32> to vector<8x8xf32>
    %363 = arith.mulf %360, %362 : vector<8x8xf32>
    %364 = tpu.concatenate %285, %294 in 1 : vector<8x16xf32>, vector<8x16xf32> -> vector<8x32xf32>
    %cst_80 = arith.constant dense<0.000000e+00> : vector<8x128xf32>
    %365 = tpu.matmul %363, %11, %cst_80 {dimension_numbers = #tpu.dot_dimension_numbers<[1], [0], [0], [1], [0, 0, 1, 1], [], []>} : vector<8x8xf32>, vector<8x128xf32>, vector<8x128xf32> -> vector<8x128xf32>
    %cst_81 = arith.constant dense<0.000000e+00> : vector<8x128xf32>
    %366 = tpu.matmul %364, %12, %cst_81 {dimension_numbers = #tpu.dot_dimension_numbers<[1], [0], [0], [1], [0, 0, 1, 1], [], []>} : vector<8x32xf32>, vector<32x128xf32>, vector<8x128xf32> -> vector<8x128xf32>
    %367 = arith.addf %365, %366 : vector<8x128xf32>
    %368 = vector.broadcast %13 : vector<1x128xf32> to vector<8x128xf32>
    %369 = arith.addf %367, %368 : vector<8x128xf32>
    %cst_82 = arith.constant 0.000000e+00 : f32
    %370 = vector.broadcast %cst_82 : f32 to vector<8x128xf32>
    %371 = arith.subf %370, %369 : vector<8x128xf32>
    %372 = math.exp %371 : vector<8x128xf32>
    %cst_83 = arith.constant 1.000000e+00 : f32
    %373 = vector.broadcast %cst_83 : f32 to vector<8x128xf32>
    %374 = arith.addf %373, %372 : vector<8x128xf32>
    %cst_84 = arith.constant 1.000000e+00 : f32
    %375 = vector.broadcast %cst_84 : f32 to vector<8x128xf32>
    %376 = arith.divf %375, %374 : vector<8x128xf32>
    %377 = math.tanh %369 : vector<8x128xf32>
    %378 = vector.extract_strided_slice %376 {offsets = [0, 0], sizes = [8, 16], strides = [1, 1]} : vector<8x128xf32> to vector<8x16xf32>
    %379 = vector.extract_strided_slice %376 {offsets = [0, 16], sizes = [8, 16], strides = [1, 1]} : vector<8x128xf32> to vector<8x16xf32>
    %380 = vector.extract_strided_slice %377 {offsets = [0, 32], sizes = [8, 16], strides = [1, 1]} : vector<8x128xf32> to vector<8x16xf32>
    %381 = vector.extract_strided_slice %376 {offsets = [0, 48], sizes = [8, 16], strides = [1, 1]} : vector<8x128xf32> to vector<8x16xf32>
    %382 = arith.mulf %379, %283 : vector<8x16xf32>
    %383 = arith.mulf %378, %380 : vector<8x16xf32>
    %384 = arith.addf %382, %383 : vector<8x16xf32>
    %385 = math.tanh %384 : vector<8x16xf32>
    %386 = arith.mulf %381, %385 : vector<8x16xf32>
    %387 = vector.extract_strided_slice %376 {offsets = [0, 64], sizes = [8, 16], strides = [1, 1]} : vector<8x128xf32> to vector<8x16xf32>
    %388 = vector.extract_strided_slice %376 {offsets = [0, 80], sizes = [8, 16], strides = [1, 1]} : vector<8x128xf32> to vector<8x16xf32>
    %389 = vector.extract_strided_slice %377 {offsets = [0, 96], sizes = [8, 16], strides = [1, 1]} : vector<8x128xf32> to vector<8x16xf32>
    %390 = vector.extract_strided_slice %376 {offsets = [0, 112], sizes = [8, 16], strides = [1, 1]} : vector<8x128xf32> to vector<8x16xf32>
    %391 = arith.mulf %388, %292 : vector<8x16xf32>
    %392 = arith.mulf %387, %389 : vector<8x16xf32>
    %393 = arith.addf %391, %392 : vector<8x16xf32>
    %394 = math.tanh %393 : vector<8x16xf32>
    %395 = arith.mulf %390, %394 : vector<8x16xf32>
    %396 = tpu.concatenate %386, %395 in 1 : vector<8x16xf32>, vector<8x16xf32> -> vector<8x32xf32>
    %397 = tpu.concatenate %318, %327 in 1 : vector<8x16xf32>, vector<8x16xf32> -> vector<8x32xf32>
    %cst_85 = arith.constant dense<0.000000e+00> : vector<8x128xf32>
    %398 = tpu.matmul %396, %14, %cst_85 {dimension_numbers = #tpu.dot_dimension_numbers<[1], [0], [0], [1], [0, 0, 1, 1], [], []>} : vector<8x32xf32>, vector<32x128xf32>, vector<8x128xf32> -> vector<8x128xf32>
    %cst_86 = arith.constant dense<0.000000e+00> : vector<8x128xf32>
    %399 = tpu.matmul %397, %15, %cst_86 {dimension_numbers = #tpu.dot_dimension_numbers<[1], [0], [0], [1], [0, 0, 1, 1], [], []>} : vector<8x32xf32>, vector<32x128xf32>, vector<8x128xf32> -> vector<8x128xf32>
    %400 = arith.addf %398, %399 : vector<8x128xf32>
    %401 = vector.broadcast %16 : vector<1x128xf32> to vector<8x128xf32>
    %402 = arith.addf %400, %401 : vector<8x128xf32>
    %cst_87 = arith.constant 0.000000e+00 : f32
    %403 = vector.broadcast %cst_87 : f32 to vector<8x128xf32>
    %404 = arith.subf %403, %402 : vector<8x128xf32>
    %405 = math.exp %404 : vector<8x128xf32>
    %cst_88 = arith.constant 1.000000e+00 : f32
    %406 = vector.broadcast %cst_88 : f32 to vector<8x128xf32>
    %407 = arith.addf %406, %405 : vector<8x128xf32>
    %cst_89 = arith.constant 1.000000e+00 : f32
    %408 = vector.broadcast %cst_89 : f32 to vector<8x128xf32>
    %409 = arith.divf %408, %407 : vector<8x128xf32>
    %410 = math.tanh %402 : vector<8x128xf32>
    %411 = vector.extract_strided_slice %409 {offsets = [0, 0], sizes = [8, 16], strides = [1, 1]} : vector<8x128xf32> to vector<8x16xf32>
    %412 = vector.extract_strided_slice %409 {offsets = [0, 16], sizes = [8, 16], strides = [1, 1]} : vector<8x128xf32> to vector<8x16xf32>
    %413 = vector.extract_strided_slice %410 {offsets = [0, 32], sizes = [8, 16], strides = [1, 1]} : vector<8x128xf32> to vector<8x16xf32>
    %414 = vector.extract_strided_slice %409 {offsets = [0, 48], sizes = [8, 16], strides = [1, 1]} : vector<8x128xf32> to vector<8x16xf32>
    %415 = arith.mulf %412, %316 : vector<8x16xf32>
    %416 = arith.mulf %411, %413 : vector<8x16xf32>
    %417 = arith.addf %415, %416 : vector<8x16xf32>
    %418 = math.tanh %417 : vector<8x16xf32>
    %419 = arith.mulf %414, %418 : vector<8x16xf32>
    %420 = vector.extract_strided_slice %409 {offsets = [0, 64], sizes = [8, 16], strides = [1, 1]} : vector<8x128xf32> to vector<8x16xf32>
    %421 = vector.extract_strided_slice %409 {offsets = [0, 80], sizes = [8, 16], strides = [1, 1]} : vector<8x128xf32> to vector<8x16xf32>
    %422 = vector.extract_strided_slice %410 {offsets = [0, 96], sizes = [8, 16], strides = [1, 1]} : vector<8x128xf32> to vector<8x16xf32>
    %423 = vector.extract_strided_slice %409 {offsets = [0, 112], sizes = [8, 16], strides = [1, 1]} : vector<8x128xf32> to vector<8x16xf32>
    %424 = arith.mulf %421, %325 : vector<8x16xf32>
    %425 = arith.mulf %420, %422 : vector<8x16xf32>
    %426 = arith.addf %424, %425 : vector<8x16xf32>
    %427 = math.tanh %426 : vector<8x16xf32>
    %428 = arith.mulf %423, %427 : vector<8x16xf32>
    %429 = vector.shape_cast %386 : vector<8x16xf32> to vector<8x1x16xf32>
    %430 = vector.shape_cast %395 : vector<8x16xf32> to vector<8x1x16xf32>
    %431 = vector.shape_cast %419 : vector<8x16xf32> to vector<8x1x16xf32>
    %432 = vector.shape_cast %428 : vector<8x16xf32> to vector<8x1x16xf32>
    %433 = tpu.concatenate %429, %430, %431, %432 in 1 : vector<8x1x16xf32>, vector<8x1x16xf32>, vector<8x1x16xf32>, vector<8x1x16xf32> -> vector<8x4x16xf32>
    %434 = vector.shape_cast %384 : vector<8x16xf32> to vector<8x1x16xf32>
    %435 = vector.shape_cast %393 : vector<8x16xf32> to vector<8x1x16xf32>
    %436 = vector.shape_cast %417 : vector<8x16xf32> to vector<8x1x16xf32>
    %437 = vector.shape_cast %426 : vector<8x16xf32> to vector<8x1x16xf32>
    %438 = tpu.concatenate %434, %435, %436, %437 in 1 : vector<8x1x16xf32>, vector<8x1x16xf32>, vector<8x1x16xf32>, vector<8x1x16xf32> -> vector<8x4x16xf32>
    %439 = tpu.concatenate %433, %438 in 2 : vector<8x4x16xf32>, vector<8x4x16xf32> -> vector<8x4x32xf32>
    %440 = vector.shape_cast %439 : vector<8x4x32xf32> to vector<32x32xf32>
    %cst_90 = arith.constant dense<0.000000e+00> : vector<32x8xf32>
    %441 = tpu.matmul %440, %8, %cst_90 {dimension_numbers = #tpu.dot_dimension_numbers<[1], [0], [0], [1], [0, 0, 1, 1], [], []>} : vector<32x32xf32>, vector<32x8xf32>, vector<32x8xf32> -> vector<32x8xf32>
    %442 = vector.shape_cast %441 : vector<32x8xf32> to vector<8x4x8xf32>
    %443 = tpu.concatenate %442, %442 in 1 : vector<8x4x8xf32>, vector<8x4x8xf32> -> vector<8x8x8xf32>
    %444 = vector.shape_cast %443 : vector<8x8x8xf32> to vector<64x8xf32>
    %445 = arith.addf %444, %7 : vector<64x8xf32>
    %446 = math.tanh %445 : vector<64x8xf32>
    %447 = vector.shape_cast %446 : vector<64x8xf32> to vector<8x8x8xf32>
    %448 = vector.broadcast %9 : vector<1x1x8xf32> to vector<8x8x8xf32>
    %449 = arith.mulf %447, %448 : vector<8x8x8xf32>
    %cst_91 = arith.constant dense<0.000000e+00> : vector<8x8xf32>
    %450 = vector.multi_reduction <add>, %449, %cst_91 [2] : vector<8x8x8xf32> to vector<8x8xf32>
    %451 = vector.broadcast %10 : vector<1x1xf32> to vector<8x8xf32>
    %452 = arith.addf %450, %451 : vector<8x8xf32>
    %cst_92 = arith.constant dense<0xFF800000> : vector<8xf32>
    %453 = vector.multi_reduction <maximumf>, %452, %cst_92 [1] : vector<8x8xf32> to vector<8xf32>
    %454 = vector.shape_cast %453 : vector<8xf32> to vector<8x1xf32>
    %455 = vector.broadcast %454 : vector<8x1xf32> to vector<8x8xf32>
    %456 = arith.subf %452, %455 : vector<8x8xf32>
    %457 = math.exp %456 : vector<8x8xf32>
    %cst_93 = arith.constant dense<0.000000e+00> : vector<8xf32>
    %458 = vector.multi_reduction <add>, %457, %cst_93 [1] : vector<8x8xf32> to vector<8xf32>
    %459 = vector.shape_cast %458 : vector<8xf32> to vector<8x1xf32>
    %460 = vector.broadcast %459 : vector<8x1xf32> to vector<8x8xf32>
    %461 = arith.divf %457, %460 : vector<8x8xf32>
    %462 = vector.extract_strided_slice %0 {offsets = [4, 0, 0], sizes = [1, 8, 8], strides = [1, 1, 1]} : vector<8x8x8xf32> to vector<1x8x8xf32>
    %463 = vector.shape_cast %462 : vector<1x8x8xf32> to vector<8x8xf32>
    %464 = arith.mulf %461, %463 : vector<8x8xf32>
    %465 = tpu.concatenate %386, %395 in 1 : vector<8x16xf32>, vector<8x16xf32> -> vector<8x32xf32>
    %cst_94 = arith.constant dense<0.000000e+00> : vector<8x128xf32>
    %466 = tpu.matmul %464, %11, %cst_94 {dimension_numbers = #tpu.dot_dimension_numbers<[1], [0], [0], [1], [0, 0, 1, 1], [], []>} : vector<8x8xf32>, vector<8x128xf32>, vector<8x128xf32> -> vector<8x128xf32>
    %cst_95 = arith.constant dense<0.000000e+00> : vector<8x128xf32>
    %467 = tpu.matmul %465, %12, %cst_95 {dimension_numbers = #tpu.dot_dimension_numbers<[1], [0], [0], [1], [0, 0, 1, 1], [], []>} : vector<8x32xf32>, vector<32x128xf32>, vector<8x128xf32> -> vector<8x128xf32>
    %468 = arith.addf %466, %467 : vector<8x128xf32>
    %469 = vector.broadcast %13 : vector<1x128xf32> to vector<8x128xf32>
    %470 = arith.addf %468, %469 : vector<8x128xf32>
    %cst_96 = arith.constant 0.000000e+00 : f32
    %471 = vector.broadcast %cst_96 : f32 to vector<8x128xf32>
    %472 = arith.subf %471, %470 : vector<8x128xf32>
    %473 = math.exp %472 : vector<8x128xf32>
    %cst_97 = arith.constant 1.000000e+00 : f32
    %474 = vector.broadcast %cst_97 : f32 to vector<8x128xf32>
    %475 = arith.addf %474, %473 : vector<8x128xf32>
    %cst_98 = arith.constant 1.000000e+00 : f32
    %476 = vector.broadcast %cst_98 : f32 to vector<8x128xf32>
    %477 = arith.divf %476, %475 : vector<8x128xf32>
    %478 = math.tanh %470 : vector<8x128xf32>
    %479 = vector.extract_strided_slice %477 {offsets = [0, 0], sizes = [8, 16], strides = [1, 1]} : vector<8x128xf32> to vector<8x16xf32>
    %480 = vector.extract_strided_slice %477 {offsets = [0, 16], sizes = [8, 16], strides = [1, 1]} : vector<8x128xf32> to vector<8x16xf32>
    %481 = vector.extract_strided_slice %478 {offsets = [0, 32], sizes = [8, 16], strides = [1, 1]} : vector<8x128xf32> to vector<8x16xf32>
    %482 = vector.extract_strided_slice %477 {offsets = [0, 48], sizes = [8, 16], strides = [1, 1]} : vector<8x128xf32> to vector<8x16xf32>
    %483 = arith.mulf %480, %384 : vector<8x16xf32>
    %484 = arith.mulf %479, %481 : vector<8x16xf32>
    %485 = arith.addf %483, %484 : vector<8x16xf32>
    %486 = math.tanh %485 : vector<8x16xf32>
    %487 = arith.mulf %482, %486 : vector<8x16xf32>
    %488 = vector.extract_strided_slice %477 {offsets = [0, 64], sizes = [8, 16], strides = [1, 1]} : vector<8x128xf32> to vector<8x16xf32>
    %489 = vector.extract_strided_slice %477 {offsets = [0, 80], sizes = [8, 16], strides = [1, 1]} : vector<8x128xf32> to vector<8x16xf32>
    %490 = vector.extract_strided_slice %478 {offsets = [0, 96], sizes = [8, 16], strides = [1, 1]} : vector<8x128xf32> to vector<8x16xf32>
    %491 = vector.extract_strided_slice %477 {offsets = [0, 112], sizes = [8, 16], strides = [1, 1]} : vector<8x128xf32> to vector<8x16xf32>
    %492 = arith.mulf %489, %393 : vector<8x16xf32>
    %493 = arith.mulf %488, %490 : vector<8x16xf32>
    %494 = arith.addf %492, %493 : vector<8x16xf32>
    %495 = math.tanh %494 : vector<8x16xf32>
    %496 = arith.mulf %491, %495 : vector<8x16xf32>
    %497 = tpu.concatenate %487, %496 in 1 : vector<8x16xf32>, vector<8x16xf32> -> vector<8x32xf32>
    %498 = tpu.concatenate %419, %428 in 1 : vector<8x16xf32>, vector<8x16xf32> -> vector<8x32xf32>
    %cst_99 = arith.constant dense<0.000000e+00> : vector<8x128xf32>
    %499 = tpu.matmul %497, %14, %cst_99 {dimension_numbers = #tpu.dot_dimension_numbers<[1], [0], [0], [1], [0, 0, 1, 1], [], []>} : vector<8x32xf32>, vector<32x128xf32>, vector<8x128xf32> -> vector<8x128xf32>
    %cst_100 = arith.constant dense<0.000000e+00> : vector<8x128xf32>
    %500 = tpu.matmul %498, %15, %cst_100 {dimension_numbers = #tpu.dot_dimension_numbers<[1], [0], [0], [1], [0, 0, 1, 1], [], []>} : vector<8x32xf32>, vector<32x128xf32>, vector<8x128xf32> -> vector<8x128xf32>
    %501 = arith.addf %499, %500 : vector<8x128xf32>
    %502 = vector.broadcast %16 : vector<1x128xf32> to vector<8x128xf32>
    %503 = arith.addf %501, %502 : vector<8x128xf32>
    %cst_101 = arith.constant 0.000000e+00 : f32
    %504 = vector.broadcast %cst_101 : f32 to vector<8x128xf32>
    %505 = arith.subf %504, %503 : vector<8x128xf32>
    %506 = math.exp %505 : vector<8x128xf32>
    %cst_102 = arith.constant 1.000000e+00 : f32
    %507 = vector.broadcast %cst_102 : f32 to vector<8x128xf32>
    %508 = arith.addf %507, %506 : vector<8x128xf32>
    %cst_103 = arith.constant 1.000000e+00 : f32
    %509 = vector.broadcast %cst_103 : f32 to vector<8x128xf32>
    %510 = arith.divf %509, %508 : vector<8x128xf32>
    %511 = math.tanh %503 : vector<8x128xf32>
    %512 = vector.extract_strided_slice %510 {offsets = [0, 0], sizes = [8, 16], strides = [1, 1]} : vector<8x128xf32> to vector<8x16xf32>
    %513 = vector.extract_strided_slice %510 {offsets = [0, 16], sizes = [8, 16], strides = [1, 1]} : vector<8x128xf32> to vector<8x16xf32>
    %514 = vector.extract_strided_slice %511 {offsets = [0, 32], sizes = [8, 16], strides = [1, 1]} : vector<8x128xf32> to vector<8x16xf32>
    %515 = vector.extract_strided_slice %510 {offsets = [0, 48], sizes = [8, 16], strides = [1, 1]} : vector<8x128xf32> to vector<8x16xf32>
    %516 = arith.mulf %513, %417 : vector<8x16xf32>
    %517 = arith.mulf %512, %514 : vector<8x16xf32>
    %518 = arith.addf %516, %517 : vector<8x16xf32>
    %519 = math.tanh %518 : vector<8x16xf32>
    %520 = arith.mulf %515, %519 : vector<8x16xf32>
    %521 = vector.extract_strided_slice %510 {offsets = [0, 64], sizes = [8, 16], strides = [1, 1]} : vector<8x128xf32> to vector<8x16xf32>
    %522 = vector.extract_strided_slice %510 {offsets = [0, 80], sizes = [8, 16], strides = [1, 1]} : vector<8x128xf32> to vector<8x16xf32>
    %523 = vector.extract_strided_slice %511 {offsets = [0, 96], sizes = [8, 16], strides = [1, 1]} : vector<8x128xf32> to vector<8x16xf32>
    %524 = vector.extract_strided_slice %510 {offsets = [0, 112], sizes = [8, 16], strides = [1, 1]} : vector<8x128xf32> to vector<8x16xf32>
    %525 = arith.mulf %522, %426 : vector<8x16xf32>
    %526 = arith.mulf %521, %523 : vector<8x16xf32>
    %527 = arith.addf %525, %526 : vector<8x16xf32>
    %528 = math.tanh %527 : vector<8x16xf32>
    %529 = arith.mulf %524, %528 : vector<8x16xf32>
    %530 = vector.shape_cast %487 : vector<8x16xf32> to vector<8x1x16xf32>
    %531 = vector.shape_cast %496 : vector<8x16xf32> to vector<8x1x16xf32>
    %532 = vector.shape_cast %520 : vector<8x16xf32> to vector<8x1x16xf32>
    %533 = vector.shape_cast %529 : vector<8x16xf32> to vector<8x1x16xf32>
    %534 = tpu.concatenate %530, %531, %532, %533 in 1 : vector<8x1x16xf32>, vector<8x1x16xf32>, vector<8x1x16xf32>, vector<8x1x16xf32> -> vector<8x4x16xf32>
    %535 = vector.shape_cast %485 : vector<8x16xf32> to vector<8x1x16xf32>
    %536 = vector.shape_cast %494 : vector<8x16xf32> to vector<8x1x16xf32>
    %537 = vector.shape_cast %518 : vector<8x16xf32> to vector<8x1x16xf32>
    %538 = vector.shape_cast %527 : vector<8x16xf32> to vector<8x1x16xf32>
    %539 = tpu.concatenate %535, %536, %537, %538 in 1 : vector<8x1x16xf32>, vector<8x1x16xf32>, vector<8x1x16xf32>, vector<8x1x16xf32> -> vector<8x4x16xf32>
    %540 = tpu.concatenate %534, %539 in 2 : vector<8x4x16xf32>, vector<8x4x16xf32> -> vector<8x4x32xf32>
    %541 = vector.shape_cast %540 : vector<8x4x32xf32> to vector<32x32xf32>
    %cst_104 = arith.constant dense<0.000000e+00> : vector<32x8xf32>
    %542 = tpu.matmul %541, %8, %cst_104 {dimension_numbers = #tpu.dot_dimension_numbers<[1], [0], [0], [1], [0, 0, 1, 1], [], []>} : vector<32x32xf32>, vector<32x8xf32>, vector<32x8xf32> -> vector<32x8xf32>
    %543 = vector.shape_cast %542 : vector<32x8xf32> to vector<8x4x8xf32>
    %544 = tpu.concatenate %543, %543 in 1 : vector<8x4x8xf32>, vector<8x4x8xf32> -> vector<8x8x8xf32>
    %545 = vector.shape_cast %544 : vector<8x8x8xf32> to vector<64x8xf32>
    %546 = arith.addf %545, %7 : vector<64x8xf32>
    %547 = math.tanh %546 : vector<64x8xf32>
    %548 = vector.shape_cast %547 : vector<64x8xf32> to vector<8x8x8xf32>
    %549 = vector.broadcast %9 : vector<1x1x8xf32> to vector<8x8x8xf32>
    %550 = arith.mulf %548, %549 : vector<8x8x8xf32>
    %cst_105 = arith.constant dense<0.000000e+00> : vector<8x8xf32>
    %551 = vector.multi_reduction <add>, %550, %cst_105 [2] : vector<8x8x8xf32> to vector<8x8xf32>
    %552 = vector.broadcast %10 : vector<1x1xf32> to vector<8x8xf32>
    %553 = arith.addf %551, %552 : vector<8x8xf32>
    %cst_106 = arith.constant dense<0xFF800000> : vector<8xf32>
    %554 = vector.multi_reduction <maximumf>, %553, %cst_106 [1] : vector<8x8xf32> to vector<8xf32>
    %555 = vector.shape_cast %554 : vector<8xf32> to vector<8x1xf32>
    %556 = vector.broadcast %555 : vector<8x1xf32> to vector<8x8xf32>
    %557 = arith.subf %553, %556 : vector<8x8xf32>
    %558 = math.exp %557 : vector<8x8xf32>
    %cst_107 = arith.constant dense<0.000000e+00> : vector<8xf32>
    %559 = vector.multi_reduction <add>, %558, %cst_107 [1] : vector<8x8xf32> to vector<8xf32>
    %560 = vector.shape_cast %559 : vector<8xf32> to vector<8x1xf32>
    %561 = vector.broadcast %560 : vector<8x1xf32> to vector<8x8xf32>
    %562 = arith.divf %558, %561 : vector<8x8xf32>
    %563 = vector.extract_strided_slice %0 {offsets = [5, 0, 0], sizes = [1, 8, 8], strides = [1, 1, 1]} : vector<8x8x8xf32> to vector<1x8x8xf32>
    %564 = vector.shape_cast %563 : vector<1x8x8xf32> to vector<8x8xf32>
    %565 = arith.mulf %562, %564 : vector<8x8xf32>
    %566 = tpu.concatenate %487, %496 in 1 : vector<8x16xf32>, vector<8x16xf32> -> vector<8x32xf32>
    %cst_108 = arith.constant dense<0.000000e+00> : vector<8x128xf32>
    %567 = tpu.matmul %565, %11, %cst_108 {dimension_numbers = #tpu.dot_dimension_numbers<[1], [0], [0], [1], [0, 0, 1, 1], [], []>} : vector<8x8xf32>, vector<8x128xf32>, vector<8x128xf32> -> vector<8x128xf32>
    %cst_109 = arith.constant dense<0.000000e+00> : vector<8x128xf32>
    %568 = tpu.matmul %566, %12, %cst_109 {dimension_numbers = #tpu.dot_dimension_numbers<[1], [0], [0], [1], [0, 0, 1, 1], [], []>} : vector<8x32xf32>, vector<32x128xf32>, vector<8x128xf32> -> vector<8x128xf32>
    %569 = arith.addf %567, %568 : vector<8x128xf32>
    %570 = vector.broadcast %13 : vector<1x128xf32> to vector<8x128xf32>
    %571 = arith.addf %569, %570 : vector<8x128xf32>
    %cst_110 = arith.constant 0.000000e+00 : f32
    %572 = vector.broadcast %cst_110 : f32 to vector<8x128xf32>
    %573 = arith.subf %572, %571 : vector<8x128xf32>
    %574 = math.exp %573 : vector<8x128xf32>
    %cst_111 = arith.constant 1.000000e+00 : f32
    %575 = vector.broadcast %cst_111 : f32 to vector<8x128xf32>
    %576 = arith.addf %575, %574 : vector<8x128xf32>
    %cst_112 = arith.constant 1.000000e+00 : f32
    %577 = vector.broadcast %cst_112 : f32 to vector<8x128xf32>
    %578 = arith.divf %577, %576 : vector<8x128xf32>
    %579 = math.tanh %571 : vector<8x128xf32>
    %580 = vector.extract_strided_slice %578 {offsets = [0, 0], sizes = [8, 16], strides = [1, 1]} : vector<8x128xf32> to vector<8x16xf32>
    %581 = vector.extract_strided_slice %578 {offsets = [0, 16], sizes = [8, 16], strides = [1, 1]} : vector<8x128xf32> to vector<8x16xf32>
    %582 = vector.extract_strided_slice %579 {offsets = [0, 32], sizes = [8, 16], strides = [1, 1]} : vector<8x128xf32> to vector<8x16xf32>
    %583 = vector.extract_strided_slice %578 {offsets = [0, 48], sizes = [8, 16], strides = [1, 1]} : vector<8x128xf32> to vector<8x16xf32>
    %584 = arith.mulf %581, %485 : vector<8x16xf32>
    %585 = arith.mulf %580, %582 : vector<8x16xf32>
    %586 = arith.addf %584, %585 : vector<8x16xf32>
    %587 = math.tanh %586 : vector<8x16xf32>
    %588 = arith.mulf %583, %587 : vector<8x16xf32>
    %589 = vector.extract_strided_slice %578 {offsets = [0, 64], sizes = [8, 16], strides = [1, 1]} : vector<8x128xf32> to vector<8x16xf32>
    %590 = vector.extract_strided_slice %578 {offsets = [0, 80], sizes = [8, 16], strides = [1, 1]} : vector<8x128xf32> to vector<8x16xf32>
    %591 = vector.extract_strided_slice %579 {offsets = [0, 96], sizes = [8, 16], strides = [1, 1]} : vector<8x128xf32> to vector<8x16xf32>
    %592 = vector.extract_strided_slice %578 {offsets = [0, 112], sizes = [8, 16], strides = [1, 1]} : vector<8x128xf32> to vector<8x16xf32>
    %593 = arith.mulf %590, %494 : vector<8x16xf32>
    %594 = arith.mulf %589, %591 : vector<8x16xf32>
    %595 = arith.addf %593, %594 : vector<8x16xf32>
    %596 = math.tanh %595 : vector<8x16xf32>
    %597 = arith.mulf %592, %596 : vector<8x16xf32>
    %598 = tpu.concatenate %588, %597 in 1 : vector<8x16xf32>, vector<8x16xf32> -> vector<8x32xf32>
    %599 = tpu.concatenate %520, %529 in 1 : vector<8x16xf32>, vector<8x16xf32> -> vector<8x32xf32>
    %cst_113 = arith.constant dense<0.000000e+00> : vector<8x128xf32>
    %600 = tpu.matmul %598, %14, %cst_113 {dimension_numbers = #tpu.dot_dimension_numbers<[1], [0], [0], [1], [0, 0, 1, 1], [], []>} : vector<8x32xf32>, vector<32x128xf32>, vector<8x128xf32> -> vector<8x128xf32>
    %cst_114 = arith.constant dense<0.000000e+00> : vector<8x128xf32>
    %601 = tpu.matmul %599, %15, %cst_114 {dimension_numbers = #tpu.dot_dimension_numbers<[1], [0], [0], [1], [0, 0, 1, 1], [], []>} : vector<8x32xf32>, vector<32x128xf32>, vector<8x128xf32> -> vector<8x128xf32>
    %602 = arith.addf %600, %601 : vector<8x128xf32>
    %603 = vector.broadcast %16 : vector<1x128xf32> to vector<8x128xf32>
    %604 = arith.addf %602, %603 : vector<8x128xf32>
    %cst_115 = arith.constant 0.000000e+00 : f32
    %605 = vector.broadcast %cst_115 : f32 to vector<8x128xf32>
    %606 = arith.subf %605, %604 : vector<8x128xf32>
    %607 = math.exp %606 : vector<8x128xf32>
    %cst_116 = arith.constant 1.000000e+00 : f32
    %608 = vector.broadcast %cst_116 : f32 to vector<8x128xf32>
    %609 = arith.addf %608, %607 : vector<8x128xf32>
    %cst_117 = arith.constant 1.000000e+00 : f32
    %610 = vector.broadcast %cst_117 : f32 to vector<8x128xf32>
    %611 = arith.divf %610, %609 : vector<8x128xf32>
    %612 = math.tanh %604 : vector<8x128xf32>
    %613 = vector.extract_strided_slice %611 {offsets = [0, 0], sizes = [8, 16], strides = [1, 1]} : vector<8x128xf32> to vector<8x16xf32>
    %614 = vector.extract_strided_slice %611 {offsets = [0, 16], sizes = [8, 16], strides = [1, 1]} : vector<8x128xf32> to vector<8x16xf32>
    %615 = vector.extract_strided_slice %612 {offsets = [0, 32], sizes = [8, 16], strides = [1, 1]} : vector<8x128xf32> to vector<8x16xf32>
    %616 = vector.extract_strided_slice %611 {offsets = [0, 48], sizes = [8, 16], strides = [1, 1]} : vector<8x128xf32> to vector<8x16xf32>
    %617 = arith.mulf %614, %518 : vector<8x16xf32>
    %618 = arith.mulf %613, %615 : vector<8x16xf32>
    %619 = arith.addf %617, %618 : vector<8x16xf32>
    %620 = math.tanh %619 : vector<8x16xf32>
    %621 = arith.mulf %616, %620 : vector<8x16xf32>
    %622 = vector.extract_strided_slice %611 {offsets = [0, 64], sizes = [8, 16], strides = [1, 1]} : vector<8x128xf32> to vector<8x16xf32>
    %623 = vector.extract_strided_slice %611 {offsets = [0, 80], sizes = [8, 16], strides = [1, 1]} : vector<8x128xf32> to vector<8x16xf32>
    %624 = vector.extract_strided_slice %612 {offsets = [0, 96], sizes = [8, 16], strides = [1, 1]} : vector<8x128xf32> to vector<8x16xf32>
    %625 = vector.extract_strided_slice %611 {offsets = [0, 112], sizes = [8, 16], strides = [1, 1]} : vector<8x128xf32> to vector<8x16xf32>
    %626 = arith.mulf %623, %527 : vector<8x16xf32>
    %627 = arith.mulf %622, %624 : vector<8x16xf32>
    %628 = arith.addf %626, %627 : vector<8x16xf32>
    %629 = math.tanh %628 : vector<8x16xf32>
    %630 = arith.mulf %625, %629 : vector<8x16xf32>
    %631 = vector.shape_cast %588 : vector<8x16xf32> to vector<8x1x16xf32>
    %632 = vector.shape_cast %597 : vector<8x16xf32> to vector<8x1x16xf32>
    %633 = vector.shape_cast %621 : vector<8x16xf32> to vector<8x1x16xf32>
    %634 = vector.shape_cast %630 : vector<8x16xf32> to vector<8x1x16xf32>
    %635 = tpu.concatenate %631, %632, %633, %634 in 1 : vector<8x1x16xf32>, vector<8x1x16xf32>, vector<8x1x16xf32>, vector<8x1x16xf32> -> vector<8x4x16xf32>
    %636 = vector.shape_cast %586 : vector<8x16xf32> to vector<8x1x16xf32>
    %637 = vector.shape_cast %595 : vector<8x16xf32> to vector<8x1x16xf32>
    %638 = vector.shape_cast %619 : vector<8x16xf32> to vector<8x1x16xf32>
    %639 = vector.shape_cast %628 : vector<8x16xf32> to vector<8x1x16xf32>
    %640 = tpu.concatenate %636, %637, %638, %639 in 1 : vector<8x1x16xf32>, vector<8x1x16xf32>, vector<8x1x16xf32>, vector<8x1x16xf32> -> vector<8x4x16xf32>
    %641 = tpu.concatenate %635, %640 in 2 : vector<8x4x16xf32>, vector<8x4x16xf32> -> vector<8x4x32xf32>
    %642 = vector.shape_cast %641 : vector<8x4x32xf32> to vector<32x32xf32>
    %cst_118 = arith.constant dense<0.000000e+00> : vector<32x8xf32>
    %643 = tpu.matmul %642, %8, %cst_118 {dimension_numbers = #tpu.dot_dimension_numbers<[1], [0], [0], [1], [0, 0, 1, 1], [], []>} : vector<32x32xf32>, vector<32x8xf32>, vector<32x8xf32> -> vector<32x8xf32>
    %644 = vector.shape_cast %643 : vector<32x8xf32> to vector<8x4x8xf32>
    %645 = tpu.concatenate %644, %644 in 1 : vector<8x4x8xf32>, vector<8x4x8xf32> -> vector<8x8x8xf32>
    %646 = vector.shape_cast %645 : vector<8x8x8xf32> to vector<64x8xf32>
    %647 = arith.addf %646, %7 : vector<64x8xf32>
    %648 = math.tanh %647 : vector<64x8xf32>
    %649 = vector.shape_cast %648 : vector<64x8xf32> to vector<8x8x8xf32>
    %650 = vector.broadcast %9 : vector<1x1x8xf32> to vector<8x8x8xf32>
    %651 = arith.mulf %649, %650 : vector<8x8x8xf32>
    %cst_119 = arith.constant dense<0.000000e+00> : vector<8x8xf32>
    %652 = vector.multi_reduction <add>, %651, %cst_119 [2] : vector<8x8x8xf32> to vector<8x8xf32>
    %653 = vector.broadcast %10 : vector<1x1xf32> to vector<8x8xf32>
    %654 = arith.addf %652, %653 : vector<8x8xf32>
    %cst_120 = arith.constant dense<0xFF800000> : vector<8xf32>
    %655 = vector.multi_reduction <maximumf>, %654, %cst_120 [1] : vector<8x8xf32> to vector<8xf32>
    %656 = vector.shape_cast %655 : vector<8xf32> to vector<8x1xf32>
    %657 = vector.broadcast %656 : vector<8x1xf32> to vector<8x8xf32>
    %658 = arith.subf %654, %657 : vector<8x8xf32>
    %659 = math.exp %658 : vector<8x8xf32>
    %cst_121 = arith.constant dense<0.000000e+00> : vector<8xf32>
    %660 = vector.multi_reduction <add>, %659, %cst_121 [1] : vector<8x8xf32> to vector<8xf32>
    %661 = vector.shape_cast %660 : vector<8xf32> to vector<8x1xf32>
    %662 = vector.broadcast %661 : vector<8x1xf32> to vector<8x8xf32>
    %663 = arith.divf %659, %662 : vector<8x8xf32>
    %664 = vector.extract_strided_slice %0 {offsets = [6, 0, 0], sizes = [1, 8, 8], strides = [1, 1, 1]} : vector<8x8x8xf32> to vector<1x8x8xf32>
    %665 = vector.shape_cast %664 : vector<1x8x8xf32> to vector<8x8xf32>
    %666 = arith.mulf %663, %665 : vector<8x8xf32>
    %667 = tpu.concatenate %588, %597 in 1 : vector<8x16xf32>, vector<8x16xf32> -> vector<8x32xf32>
    %cst_122 = arith.constant dense<0.000000e+00> : vector<8x128xf32>
    %668 = tpu.matmul %666, %11, %cst_122 {dimension_numbers = #tpu.dot_dimension_numbers<[1], [0], [0], [1], [0, 0, 1, 1], [], []>} : vector<8x8xf32>, vector<8x128xf32>, vector<8x128xf32> -> vector<8x128xf32>
    %cst_123 = arith.constant dense<0.000000e+00> : vector<8x128xf32>
    %669 = tpu.matmul %667, %12, %cst_123 {dimension_numbers = #tpu.dot_dimension_numbers<[1], [0], [0], [1], [0, 0, 1, 1], [], []>} : vector<8x32xf32>, vector<32x128xf32>, vector<8x128xf32> -> vector<8x128xf32>
    %670 = arith.addf %668, %669 : vector<8x128xf32>
    %671 = vector.broadcast %13 : vector<1x128xf32> to vector<8x128xf32>
    %672 = arith.addf %670, %671 : vector<8x128xf32>
    %cst_124 = arith.constant 0.000000e+00 : f32
    %673 = vector.broadcast %cst_124 : f32 to vector<8x128xf32>
    %674 = arith.subf %673, %672 : vector<8x128xf32>
    %675 = math.exp %674 : vector<8x128xf32>
    %cst_125 = arith.constant 1.000000e+00 : f32
    %676 = vector.broadcast %cst_125 : f32 to vector<8x128xf32>
    %677 = arith.addf %676, %675 : vector<8x128xf32>
    %cst_126 = arith.constant 1.000000e+00 : f32
    %678 = vector.broadcast %cst_126 : f32 to vector<8x128xf32>
    %679 = arith.divf %678, %677 : vector<8x128xf32>
    %680 = math.tanh %672 : vector<8x128xf32>
    %681 = vector.extract_strided_slice %679 {offsets = [0, 0], sizes = [8, 16], strides = [1, 1]} : vector<8x128xf32> to vector<8x16xf32>
    %682 = vector.extract_strided_slice %679 {offsets = [0, 16], sizes = [8, 16], strides = [1, 1]} : vector<8x128xf32> to vector<8x16xf32>
    %683 = vector.extract_strided_slice %680 {offsets = [0, 32], sizes = [8, 16], strides = [1, 1]} : vector<8x128xf32> to vector<8x16xf32>
    %684 = vector.extract_strided_slice %679 {offsets = [0, 48], sizes = [8, 16], strides = [1, 1]} : vector<8x128xf32> to vector<8x16xf32>
    %685 = arith.mulf %682, %586 : vector<8x16xf32>
    %686 = arith.mulf %681, %683 : vector<8x16xf32>
    %687 = arith.addf %685, %686 : vector<8x16xf32>
    %688 = math.tanh %687 : vector<8x16xf32>
    %689 = arith.mulf %684, %688 : vector<8x16xf32>
    %690 = vector.extract_strided_slice %679 {offsets = [0, 64], sizes = [8, 16], strides = [1, 1]} : vector<8x128xf32> to vector<8x16xf32>
    %691 = vector.extract_strided_slice %679 {offsets = [0, 80], sizes = [8, 16], strides = [1, 1]} : vector<8x128xf32> to vector<8x16xf32>
    %692 = vector.extract_strided_slice %680 {offsets = [0, 96], sizes = [8, 16], strides = [1, 1]} : vector<8x128xf32> to vector<8x16xf32>
    %693 = vector.extract_strided_slice %679 {offsets = [0, 112], sizes = [8, 16], strides = [1, 1]} : vector<8x128xf32> to vector<8x16xf32>
    %694 = arith.mulf %691, %595 : vector<8x16xf32>
    %695 = arith.mulf %690, %692 : vector<8x16xf32>
    %696 = arith.addf %694, %695 : vector<8x16xf32>
    %697 = math.tanh %696 : vector<8x16xf32>
    %698 = arith.mulf %693, %697 : vector<8x16xf32>
    %699 = tpu.concatenate %689, %698 in 1 : vector<8x16xf32>, vector<8x16xf32> -> vector<8x32xf32>
    %700 = tpu.concatenate %621, %630 in 1 : vector<8x16xf32>, vector<8x16xf32> -> vector<8x32xf32>
    %cst_127 = arith.constant dense<0.000000e+00> : vector<8x128xf32>
    %701 = tpu.matmul %699, %14, %cst_127 {dimension_numbers = #tpu.dot_dimension_numbers<[1], [0], [0], [1], [0, 0, 1, 1], [], []>} : vector<8x32xf32>, vector<32x128xf32>, vector<8x128xf32> -> vector<8x128xf32>
    %cst_128 = arith.constant dense<0.000000e+00> : vector<8x128xf32>
    %702 = tpu.matmul %700, %15, %cst_128 {dimension_numbers = #tpu.dot_dimension_numbers<[1], [0], [0], [1], [0, 0, 1, 1], [], []>} : vector<8x32xf32>, vector<32x128xf32>, vector<8x128xf32> -> vector<8x128xf32>
    %703 = arith.addf %701, %702 : vector<8x128xf32>
    %704 = vector.broadcast %16 : vector<1x128xf32> to vector<8x128xf32>
    %705 = arith.addf %703, %704 : vector<8x128xf32>
    %cst_129 = arith.constant 0.000000e+00 : f32
    %706 = vector.broadcast %cst_129 : f32 to vector<8x128xf32>
    %707 = arith.subf %706, %705 : vector<8x128xf32>
    %708 = math.exp %707 : vector<8x128xf32>
    %cst_130 = arith.constant 1.000000e+00 : f32
    %709 = vector.broadcast %cst_130 : f32 to vector<8x128xf32>
    %710 = arith.addf %709, %708 : vector<8x128xf32>
    %cst_131 = arith.constant 1.000000e+00 : f32
    %711 = vector.broadcast %cst_131 : f32 to vector<8x128xf32>
    %712 = arith.divf %711, %710 : vector<8x128xf32>
    %713 = math.tanh %705 : vector<8x128xf32>
    %714 = vector.extract_strided_slice %712 {offsets = [0, 0], sizes = [8, 16], strides = [1, 1]} : vector<8x128xf32> to vector<8x16xf32>
    %715 = vector.extract_strided_slice %712 {offsets = [0, 16], sizes = [8, 16], strides = [1, 1]} : vector<8x128xf32> to vector<8x16xf32>
    %716 = vector.extract_strided_slice %713 {offsets = [0, 32], sizes = [8, 16], strides = [1, 1]} : vector<8x128xf32> to vector<8x16xf32>
    %717 = vector.extract_strided_slice %712 {offsets = [0, 48], sizes = [8, 16], strides = [1, 1]} : vector<8x128xf32> to vector<8x16xf32>
    %718 = arith.mulf %715, %619 : vector<8x16xf32>
    %719 = arith.mulf %714, %716 : vector<8x16xf32>
    %720 = arith.addf %718, %719 : vector<8x16xf32>
    %721 = math.tanh %720 : vector<8x16xf32>
    %722 = arith.mulf %717, %721 : vector<8x16xf32>
    %723 = vector.extract_strided_slice %712 {offsets = [0, 64], sizes = [8, 16], strides = [1, 1]} : vector<8x128xf32> to vector<8x16xf32>
    %724 = vector.extract_strided_slice %712 {offsets = [0, 80], sizes = [8, 16], strides = [1, 1]} : vector<8x128xf32> to vector<8x16xf32>
    %725 = vector.extract_strided_slice %713 {offsets = [0, 96], sizes = [8, 16], strides = [1, 1]} : vector<8x128xf32> to vector<8x16xf32>
    %726 = vector.extract_strided_slice %712 {offsets = [0, 112], sizes = [8, 16], strides = [1, 1]} : vector<8x128xf32> to vector<8x16xf32>
    %727 = arith.mulf %724, %628 : vector<8x16xf32>
    %728 = arith.mulf %723, %725 : vector<8x16xf32>
    %729 = arith.addf %727, %728 : vector<8x16xf32>
    %730 = math.tanh %729 : vector<8x16xf32>
    %731 = arith.mulf %726, %730 : vector<8x16xf32>
    %732 = vector.shape_cast %689 : vector<8x16xf32> to vector<8x1x16xf32>
    %733 = vector.shape_cast %698 : vector<8x16xf32> to vector<8x1x16xf32>
    %734 = vector.shape_cast %722 : vector<8x16xf32> to vector<8x1x16xf32>
    %735 = vector.shape_cast %731 : vector<8x16xf32> to vector<8x1x16xf32>
    %736 = tpu.concatenate %732, %733, %734, %735 in 1 : vector<8x1x16xf32>, vector<8x1x16xf32>, vector<8x1x16xf32>, vector<8x1x16xf32> -> vector<8x4x16xf32>
    %737 = vector.shape_cast %687 : vector<8x16xf32> to vector<8x1x16xf32>
    %738 = vector.shape_cast %696 : vector<8x16xf32> to vector<8x1x16xf32>
    %739 = vector.shape_cast %720 : vector<8x16xf32> to vector<8x1x16xf32>
    %740 = vector.shape_cast %729 : vector<8x16xf32> to vector<8x1x16xf32>
    %741 = tpu.concatenate %737, %738, %739, %740 in 1 : vector<8x1x16xf32>, vector<8x1x16xf32>, vector<8x1x16xf32>, vector<8x1x16xf32> -> vector<8x4x16xf32>
    %742 = tpu.concatenate %736, %741 in 2 : vector<8x4x16xf32>, vector<8x4x16xf32> -> vector<8x4x32xf32>
    %743 = vector.shape_cast %742 : vector<8x4x32xf32> to vector<32x32xf32>
    %cst_132 = arith.constant dense<0.000000e+00> : vector<32x8xf32>
    %744 = tpu.matmul %743, %8, %cst_132 {dimension_numbers = #tpu.dot_dimension_numbers<[1], [0], [0], [1], [0, 0, 1, 1], [], []>} : vector<32x32xf32>, vector<32x8xf32>, vector<32x8xf32> -> vector<32x8xf32>
    %745 = vector.shape_cast %744 : vector<32x8xf32> to vector<8x4x8xf32>
    %746 = tpu.concatenate %745, %745 in 1 : vector<8x4x8xf32>, vector<8x4x8xf32> -> vector<8x8x8xf32>
    %747 = vector.shape_cast %746 : vector<8x8x8xf32> to vector<64x8xf32>
    %748 = arith.addf %747, %7 : vector<64x8xf32>
    %749 = math.tanh %748 : vector<64x8xf32>
    %750 = vector.shape_cast %749 : vector<64x8xf32> to vector<8x8x8xf32>
    %751 = vector.broadcast %9 : vector<1x1x8xf32> to vector<8x8x8xf32>
    %752 = arith.mulf %750, %751 : vector<8x8x8xf32>
    %cst_133 = arith.constant dense<0.000000e+00> : vector<8x8xf32>
    %753 = vector.multi_reduction <add>, %752, %cst_133 [2] : vector<8x8x8xf32> to vector<8x8xf32>
    %754 = vector.broadcast %10 : vector<1x1xf32> to vector<8x8xf32>
    %755 = arith.addf %753, %754 : vector<8x8xf32>
    %cst_134 = arith.constant dense<0xFF800000> : vector<8xf32>
    %756 = vector.multi_reduction <maximumf>, %755, %cst_134 [1] : vector<8x8xf32> to vector<8xf32>
    %757 = vector.shape_cast %756 : vector<8xf32> to vector<8x1xf32>
    %758 = vector.broadcast %757 : vector<8x1xf32> to vector<8x8xf32>
    %759 = arith.subf %755, %758 : vector<8x8xf32>
    %760 = math.exp %759 : vector<8x8xf32>
    %cst_135 = arith.constant dense<0.000000e+00> : vector<8xf32>
    %761 = vector.multi_reduction <add>, %760, %cst_135 [1] : vector<8x8xf32> to vector<8xf32>
    %762 = vector.shape_cast %761 : vector<8xf32> to vector<8x1xf32>
    %763 = vector.broadcast %762 : vector<8x1xf32> to vector<8x8xf32>
    %764 = arith.divf %760, %763 : vector<8x8xf32>
    %765 = vector.extract_strided_slice %0 {offsets = [7, 0, 0], sizes = [1, 8, 8], strides = [1, 1, 1]} : vector<8x8x8xf32> to vector<1x8x8xf32>
    %766 = vector.shape_cast %765 : vector<1x8x8xf32> to vector<8x8xf32>
    %767 = arith.mulf %764, %766 : vector<8x8xf32>
    %768 = tpu.concatenate %689, %698 in 1 : vector<8x16xf32>, vector<8x16xf32> -> vector<8x32xf32>
    %cst_136 = arith.constant dense<0.000000e+00> : vector<8x128xf32>
    %769 = tpu.matmul %767, %11, %cst_136 {dimension_numbers = #tpu.dot_dimension_numbers<[1], [0], [0], [1], [0, 0, 1, 1], [], []>} : vector<8x8xf32>, vector<8x128xf32>, vector<8x128xf32> -> vector<8x128xf32>
    %cst_137 = arith.constant dense<0.000000e+00> : vector<8x128xf32>
    %770 = tpu.matmul %768, %12, %cst_137 {dimension_numbers = #tpu.dot_dimension_numbers<[1], [0], [0], [1], [0, 0, 1, 1], [], []>} : vector<8x32xf32>, vector<32x128xf32>, vector<8x128xf32> -> vector<8x128xf32>
    %771 = arith.addf %769, %770 : vector<8x128xf32>
    %772 = vector.broadcast %13 : vector<1x128xf32> to vector<8x128xf32>
    %773 = arith.addf %771, %772 : vector<8x128xf32>
    %cst_138 = arith.constant 0.000000e+00 : f32
    %774 = vector.broadcast %cst_138 : f32 to vector<8x128xf32>
    %775 = arith.subf %774, %773 : vector<8x128xf32>
    %776 = math.exp %775 : vector<8x128xf32>
    %cst_139 = arith.constant 1.000000e+00 : f32
    %777 = vector.broadcast %cst_139 : f32 to vector<8x128xf32>
    %778 = arith.addf %777, %776 : vector<8x128xf32>
    %cst_140 = arith.constant 1.000000e+00 : f32
    %779 = vector.broadcast %cst_140 : f32 to vector<8x128xf32>
    %780 = arith.divf %779, %778 : vector<8x128xf32>
    %781 = math.tanh %773 : vector<8x128xf32>
    %782 = vector.extract_strided_slice %780 {offsets = [0, 0], sizes = [8, 16], strides = [1, 1]} : vector<8x128xf32> to vector<8x16xf32>
    %783 = vector.extract_strided_slice %780 {offsets = [0, 16], sizes = [8, 16], strides = [1, 1]} : vector<8x128xf32> to vector<8x16xf32>
    %784 = vector.extract_strided_slice %781 {offsets = [0, 32], sizes = [8, 16], strides = [1, 1]} : vector<8x128xf32> to vector<8x16xf32>
    %785 = vector.extract_strided_slice %780 {offsets = [0, 48], sizes = [8, 16], strides = [1, 1]} : vector<8x128xf32> to vector<8x16xf32>
    %786 = arith.mulf %783, %687 : vector<8x16xf32>
    %787 = arith.mulf %782, %784 : vector<8x16xf32>
    %788 = arith.addf %786, %787 : vector<8x16xf32>
    %789 = math.tanh %788 : vector<8x16xf32>
    %790 = arith.mulf %785, %789 : vector<8x16xf32>
    %791 = vector.extract_strided_slice %780 {offsets = [0, 64], sizes = [8, 16], strides = [1, 1]} : vector<8x128xf32> to vector<8x16xf32>
    %792 = vector.extract_strided_slice %780 {offsets = [0, 80], sizes = [8, 16], strides = [1, 1]} : vector<8x128xf32> to vector<8x16xf32>
    %793 = vector.extract_strided_slice %781 {offsets = [0, 96], sizes = [8, 16], strides = [1, 1]} : vector<8x128xf32> to vector<8x16xf32>
    %794 = vector.extract_strided_slice %780 {offsets = [0, 112], sizes = [8, 16], strides = [1, 1]} : vector<8x128xf32> to vector<8x16xf32>
    %795 = arith.mulf %792, %696 : vector<8x16xf32>
    %796 = arith.mulf %791, %793 : vector<8x16xf32>
    %797 = arith.addf %795, %796 : vector<8x16xf32>
    %798 = math.tanh %797 : vector<8x16xf32>
    %799 = arith.mulf %794, %798 : vector<8x16xf32>
    %800 = tpu.concatenate %790, %799 in 1 : vector<8x16xf32>, vector<8x16xf32> -> vector<8x32xf32>
    %801 = tpu.concatenate %722, %731 in 1 : vector<8x16xf32>, vector<8x16xf32> -> vector<8x32xf32>
    %cst_141 = arith.constant dense<0.000000e+00> : vector<8x128xf32>
    %802 = tpu.matmul %800, %14, %cst_141 {dimension_numbers = #tpu.dot_dimension_numbers<[1], [0], [0], [1], [0, 0, 1, 1], [], []>} : vector<8x32xf32>, vector<32x128xf32>, vector<8x128xf32> -> vector<8x128xf32>
    %cst_142 = arith.constant dense<0.000000e+00> : vector<8x128xf32>
    %803 = tpu.matmul %801, %15, %cst_142 {dimension_numbers = #tpu.dot_dimension_numbers<[1], [0], [0], [1], [0, 0, 1, 1], [], []>} : vector<8x32xf32>, vector<32x128xf32>, vector<8x128xf32> -> vector<8x128xf32>
    %804 = arith.addf %802, %803 : vector<8x128xf32>
    %805 = vector.broadcast %16 : vector<1x128xf32> to vector<8x128xf32>
    %806 = arith.addf %804, %805 : vector<8x128xf32>
    %cst_143 = arith.constant 0.000000e+00 : f32
    %807 = vector.broadcast %cst_143 : f32 to vector<8x128xf32>
    %808 = arith.subf %807, %806 : vector<8x128xf32>
    %809 = math.exp %808 : vector<8x128xf32>
    %cst_144 = arith.constant 1.000000e+00 : f32
    %810 = vector.broadcast %cst_144 : f32 to vector<8x128xf32>
    %811 = arith.addf %810, %809 : vector<8x128xf32>
    %cst_145 = arith.constant 1.000000e+00 : f32
    %812 = vector.broadcast %cst_145 : f32 to vector<8x128xf32>
    %813 = arith.divf %812, %811 : vector<8x128xf32>
    %814 = math.tanh %806 : vector<8x128xf32>
    %815 = vector.extract_strided_slice %813 {offsets = [0, 0], sizes = [8, 16], strides = [1, 1]} : vector<8x128xf32> to vector<8x16xf32>
    %816 = vector.extract_strided_slice %813 {offsets = [0, 16], sizes = [8, 16], strides = [1, 1]} : vector<8x128xf32> to vector<8x16xf32>
    %817 = vector.extract_strided_slice %814 {offsets = [0, 32], sizes = [8, 16], strides = [1, 1]} : vector<8x128xf32> to vector<8x16xf32>
    %818 = vector.extract_strided_slice %813 {offsets = [0, 48], sizes = [8, 16], strides = [1, 1]} : vector<8x128xf32> to vector<8x16xf32>
    %819 = arith.mulf %816, %720 : vector<8x16xf32>
    %820 = arith.mulf %815, %817 : vector<8x16xf32>
    %821 = arith.addf %819, %820 : vector<8x16xf32>
    %822 = math.tanh %821 : vector<8x16xf32>
    %823 = arith.mulf %818, %822 : vector<8x16xf32>
    %824 = vector.extract_strided_slice %813 {offsets = [0, 64], sizes = [8, 16], strides = [1, 1]} : vector<8x128xf32> to vector<8x16xf32>
    %825 = vector.extract_strided_slice %813 {offsets = [0, 80], sizes = [8, 16], strides = [1, 1]} : vector<8x128xf32> to vector<8x16xf32>
    %826 = vector.extract_strided_slice %814 {offsets = [0, 96], sizes = [8, 16], strides = [1, 1]} : vector<8x128xf32> to vector<8x16xf32>
    %827 = vector.extract_strided_slice %813 {offsets = [0, 112], sizes = [8, 16], strides = [1, 1]} : vector<8x128xf32> to vector<8x16xf32>
    %828 = arith.mulf %825, %729 : vector<8x16xf32>
    %829 = arith.mulf %824, %826 : vector<8x16xf32>
    %830 = arith.addf %828, %829 : vector<8x16xf32>
    %831 = math.tanh %830 : vector<8x16xf32>
    %832 = arith.mulf %827, %831 : vector<8x16xf32>
    %833 = vector.shape_cast %790 : vector<8x16xf32> to vector<8x1x16xf32>
    %834 = vector.shape_cast %799 : vector<8x16xf32> to vector<8x1x16xf32>
    %835 = vector.shape_cast %823 : vector<8x16xf32> to vector<8x1x16xf32>
    %836 = vector.shape_cast %832 : vector<8x16xf32> to vector<8x1x16xf32>
    %837 = tpu.concatenate %833, %834, %835, %836 in 1 : vector<8x1x16xf32>, vector<8x1x16xf32>, vector<8x1x16xf32>, vector<8x1x16xf32> -> vector<8x4x16xf32>
    %838 = vector.shape_cast %57 : vector<8x8xf32> to vector<1x8x8xf32>
    %839 = vector.shape_cast %158 : vector<8x8xf32> to vector<1x8x8xf32>
    %840 = vector.shape_cast %259 : vector<8x8xf32> to vector<1x8x8xf32>
    %841 = vector.shape_cast %360 : vector<8x8xf32> to vector<1x8x8xf32>
    %842 = vector.shape_cast %461 : vector<8x8xf32> to vector<1x8x8xf32>
    %843 = vector.shape_cast %562 : vector<8x8xf32> to vector<1x8x8xf32>
    %844 = vector.shape_cast %663 : vector<8x8xf32> to vector<1x8x8xf32>
    %845 = vector.shape_cast %764 : vector<8x8xf32> to vector<1x8x8xf32>
    %846 = tpu.concatenate %838, %839, %840, %841, %842, %843, %844, %845 in 0 : vector<1x8x8xf32>, vector<1x8x8xf32>, vector<1x8x8xf32>, vector<1x8x8xf32>, vector<1x8x8xf32>, vector<1x8x8xf32>, vector<1x8x8xf32>, vector<1x8x8xf32> -> vector<8x8x8xf32>
    %c0_146 = arith.constant 0 : index
    %c0_147 = arith.constant 0 : index
    %c0_148 = arith.constant 0 : index
    %847 = vector.load %arg16[%c0_146, %c0_147, %c0_148] : memref<8x8x8xf32, #tpu.memory_space<vmem>>, vector<8x8x8xf32>
    tpu.vector_store %arg16[%c0_146, %c0_147, %c0_148], %846 {strides = array<i32>} : memref<8x8x8xf32, #tpu.memory_space<vmem>>, vector<8x8x8xf32>,
    %848 = vector.shape_cast %130 : vector<8x4x16xf32> to vector<1x8x4x16xf32>
    %849 = vector.shape_cast %231 : vector<8x4x16xf32> to vector<1x8x4x16xf32>
    %850 = vector.shape_cast %332 : vector<8x4x16xf32> to vector<1x8x4x16xf32>
    %851 = vector.shape_cast %433 : vector<8x4x16xf32> to vector<1x8x4x16xf32>
    %852 = vector.shape_cast %534 : vector<8x4x16xf32> to vector<1x8x4x16xf32>
    %853 = vector.shape_cast %635 : vector<8x4x16xf32> to vector<1x8x4x16xf32>
    %854 = vector.shape_cast %736 : vector<8x4x16xf32> to vector<1x8x4x16xf32>
    %855 = vector.shape_cast %837 : vector<8x4x16xf32> to vector<1x8x4x16xf32>
    %856 = tpu.concatenate %848, %849, %850, %851, %852, %853, %854, %855 in 0 : vector<1x8x4x16xf32>, vector<1x8x4x16xf32>, vector<1x8x4x16xf32>, vector<1x8x4x16xf32>, vector<1x8x4x16xf32>, vector<1x8x4x16xf32>, vector<1x8x4x16xf32>, vector<1x8x4x16xf32> -> vector<8x8x4x16xf32>
    %c0_149 = arith.constant 0 : index
    %c0_150 = arith.constant 0 : index
    %c0_151 = arith.constant 0 : index
    %c0_152 = arith.constant 0 : index
    %857 = vector.load %arg17[%c0_149, %c0_150, %c0_151, %c0_152] : memref<8x8x4x16xf32, #tpu.memory_space<vmem>>, vector<8x8x4x16xf32>
    tpu.vector_store %arg17[%c0_149, %c0_150, %c0_151, %c0_152], %856 {strides = array<i32>} : memref<8x8x4x16xf32, #tpu.memory_space<vmem>>, vector<8x8x4x16xf32>,
    return
  }
  func.func @transform_0(%arg0: i32) -> (i32, i32, i32) {
    %c0_i32 = arith.constant 0 : i32
    %c0_i32_0 = arith.constant 0 : i32
    %c0_i32_1 = arith.constant 0 : i32
    %c0_i32_2 = arith.constant 0 : i32
    return %c0_i32, %c0_i32_0, %c0_i32_1 : i32, i32, i32
  }
  func.func @transform_1(%arg0: i32) -> (i32, i32, i32) {
    %c0_i32 = arith.constant 0 : i32
    %c0_i32_0 = arith.constant 0 : i32
    %c0_i32_1 = arith.constant 0 : i32
    %c0_i32_2 = arith.constant 0 : i32
    return %c0_i32, %c0_i32_0, %c0_i32_1 : i32, i32, i32
  }
  func.func @transform_2(%arg0: i32) -> (i32, i32, i32) {
    %c0_i32 = arith.constant 0 : i32
    %c0_i32_0 = arith.constant 0 : i32
    %c0_i32_1 = arith.constant 0 : i32
    %c0_i32_2 = arith.constant 0 : i32
    return %c0_i32, %c0_i32_0, %c0_i32_1 : i32, i32, i32
  }
  func.func @transform_3(%arg0: i32) -> (i32, i32, i32) {
    %c0_i32 = arith.constant 0 : i32
    %c0_i32_0 = arith.constant 0 : i32
    %c0_i32_1 = arith.constant 0 : i32
    %c0_i32_2 = arith.constant 0 : i32
    return %c0_i32, %c0_i32_0, %c0_i32_1 : i32, i32, i32
  }
  func.func @transform_4(%arg0: i32) -> (i32, i32) {
    %c0_i32 = arith.constant 0 : i32
    %c0_i32_0 = arith.constant 0 : i32
    %c0_i32_1 = arith.constant 0 : i32
    return %c0_i32, %c0_i32_0 : i32, i32
  }
  func.func @transform_5(%arg0: i32) -> (i32, i32) {
    %c0_i32 = arith.constant 0 : i32
    %c0_i32_0 = arith.constant 0 : i32
    %c0_i32_1 = arith.constant 0 : i32
    return %c0_i32, %c0_i32_0 : i32, i32
  }
  func.func @transform_6(%arg0: i32) -> (i32, i32) {
    %c0_i32 = arith.constant 0 : i32
    %c0_i32_0 = arith.constant 0 : i32
    %c0_i32_1 = arith.constant 0 : i32
    return %c0_i32, %c0_i32_0 : i32, i32
  }
  func.func @transform_7(%arg0: i32) -> (i32, i32, i32) {
    %c0_i32 = arith.constant 0 : i32
    %c0_i32_0 = arith.constant 0 : i32
    %c0_i32_1 = arith.constant 0 : i32
    %c0_i32_2 = arith.constant 0 : i32
    return %c0_i32, %c0_i32_0, %c0_i32_1 : i32, i32, i32
  }
  func.func @transform_8(%arg0: i32) -> (i32, i32) {
    %c0_i32 = arith.constant 0 : i32
    %c0_i32_0 = arith.constant 0 : i32
    %c0_i32_1 = arith.constant 0 : i32
    return %c0_i32, %c0_i32_0 : i32, i32
  }
  func.func @transform_9(%arg0: i32) -> (i32, i32) {
    %c0_i32 = arith.constant 0 : i32
    %c0_i32_0 = arith.constant 0 : i32
    %c0_i32_1 = arith.constant 0 : i32
    return %c0_i32, %c0_i32_0 : i32, i32
  }
  func.func @transform_10(%arg0: i32) -> (i32, i32) {
    %c0_i32 = arith.constant 0 : i32
    %c0_i32_0 = arith.constant 0 : i32
    %c0_i32_1 = arith.constant 0 : i32
    return %c0_i32, %c0_i32_0 : i32, i32
  }
  func.func @transform_11(%arg0: i32) -> (i32, i32) {
    %c0_i32 = arith.constant 0 : i32
    %c0_i32_0 = arith.constant 0 : i32
    %c0_i32_1 = arith.constant 0 : i32
    return %c0_i32, %c0_i32_0 : i32, i32
  }
  func.func @transform_12(%arg0: i32) -> (i32, i32) {
    %c0_i32 = arith.constant 0 : i32
    %c0_i32_0 = arith.constant 0 : i32
    %c0_i32_1 = arith.constant 0 : i32
    return %c0_i32, %c0_i32_0 : i32, i32
  }
  func.func @transform_13(%arg0: i32) -> (i32, i32) {
    %c0_i32 = arith.constant 0 : i32
    %c0_i32_0 = arith.constant 0 : i32
    %c0_i32_1 = arith.constant 0 : i32
    return %c0_i32, %c0_i32_0 : i32, i32
  }
  func.func @transform_14(%arg0: i32) -> (i32, i32) {
    %c0_i32 = arith.constant 0 : i32
    %c0_i32_0 = arith.constant 0 : i32
    %c0_i32_1 = arith.constant 0 : i32
    return %c0_i32, %c0_i32_0 : i32, i32
  }
  func.func @transform_15(%arg0: i32) -> (i32, i32, i32) {
    %c0_i32 = arith.constant 0 : i32
    %c0_i32_0 = arith.constant 0 : i32
    %c0_i32_1 = arith.constant 0 : i32
    %c0_i32_2 = arith.constant 0 : i32
    return %c0_i32, %c0_i32_0, %c0_i32_1 : i32, i32, i32
  }
  func.func @transform_16(%arg0: i32) -> (i32, i32, i32, i32) {
    %c0_i32 = arith.constant 0 : i32
    %c0_i32_0 = arith.constant 0 : i32
    %c0_i32_1 = arith.constant 0 : i32
    %c0_i32_2 = arith.constant 0 : i32
    %c0_i32_3 = arith.constant 0 : i32
    return %c0_i32, %c0_i32_0, %c0_i32_1, %c0_i32_2 : i32, i32, i32, i32
  }
}

</mosaic_0001>

<bundles_post_ra>
// kernel: encoder_forward.1
= control target key start
LH: loop header
LB: loop body
LE: loop exit
PB: predicated region body
PF: predicated region fallthrough
CT: control target
= control target key end

     0   :  { %s16391_s26 = smov 16   ;;  %vm78_vm0 = vcmask 64512   ;;  %vm277_vm1 = vcmask 130048   ;;  %vm298_vm2 = vcmask 261120   ;;  %v16392_v59 = vmov 0   ;;  %s16396_s22 = smov 96   ;;  %s21204_s3 = inlined_call_operand.vmem [shape: f32[8,4,16], index: 3, kind: input, shape index: {}]   ;;  %s21205_s5 = inlined_call_operand.vmem [shape: f32[8,8], index: 5, kind: input, shape index: {}]   ;;  %s21206_s1 = inlined_call_operand.vmem [shape: f32[8,8,8], index: 1, kind: input, shape index: {}]   ;;  %s21207_s4 = inlined_call_operand.vmem [shape: f32[32,8], index: 4, kind: input, shape index: {}]   ;;  %s21208_s2 = inlined_call_operand.vmem [shape: f32[8,4,16], index: 2, kind: input, shape index: {}]   ;;  %s21209_s8 = inlined_call_operand.<no memory space> [shape: f32[1,1], index: 8, kind: input, shape index: {}]   ;;  %s21210_s6 = inlined_call_operand.vmem [shape: f32[1,8], index: 6, kind: input, shape index: {}]   ;;  %s21211_s7 = inlined_call_operand.vmem [shape: f32[1,1,8], index: 7, kind: input, shape index: {}]   ;;  %s21212_s0 = inlined_call_operand.vmem [shape: f32[8,8,8], index: 0, kind: input, shape index: {}]   ;;  %s21213_s10 = inlined_call_operand.vmem [shape: f32[32,128], index: 10, kind: input, shape index: {}]   ;;  %s21214_s9 = inlined_call_operand.vmem [shape: f32[8,128], index: 9, kind: input, shape index: {}]   ;;  %s21215_s11 = inlined_call_operand.vmem [shape: f32[1,128], index: 11, kind: input, shape index: {}]   ;;  %s21216_s13 = inlined_call_operand.vmem [shape: f32[32,128], index: 13, kind: input, shape index: {}]   ;;  %s21217_s12 = inlined_call_operand.vmem [shape: f32[32,128], index: 12, kind: input, shape index: {}]   ;;  %s21218_s14 = inlined_call_operand.vmem [shape: f32[1,128], index: 14, kind: input, shape index: {}]   ;;  %s21219_s16 = inlined_call_operand.vmem [shape: f32[8,8,4,16], index: 16, kind: output, shape index: {1}]   ;;  %s21220_s15 = inlined_call_operand.vmem [shape: f32[8,8,8], index: 15, kind: output, shape index: {0}]  }
   0x1   :  { %21335 = sst [smem:[#allocation66_spill]] %s21204_s3  ;;  %v70_v4 = vld [vmem:[%s21205_s5] sm:$0xff]  ;;  %v67_v8 = vld [vmem:[%s21206_s1 + $0x28] sm:$0xff]  ;;  %v68_v14 = vld [vmem:[%s21206_s1 + $0x30] sm:$0xff]  ;;  %15812 = vset.pattern.permute.xlu1 %v16392_v59  ;;  %v22_v60 = vstv %s21209_s8  ;;  %15813 = vset.pattern.permute.xlu0 %v16392_v59  ;;  %vm420_vm3 = vcmask 1043456   ;;  %vm542_vm4 = vcmask 1041409  }
   0x2   :  { %s21336_s23 = sld [smem:[#allocation66_spill]]  ;;  %15800 = vmatprep.subr.mxu1 %v70_v4  ;;  %v66_v7 = vld [vmem:[%s21206_s1 + $0x20] sm:$0xff]  ;;  %15162 = vmatprep.subr.mxu0 %v70_v4  ;;  %v209_v10 = vld [vmem:[%s21207_s4 + $0x8] sm:$0xff]  ;;  %v69_v16 = vld [vmem:[%s21206_s1 + $0x38] sm:$0xff]  ;;  %23 = vst [vmem:[#allocation2] sm:$0x1] %v22_v60 }
   0x3   :  { %15801 = vmatpush3.msra.mxu1 %v70_v4  ;;  %15170 = vmatprep.mubr.msk.f32.mxu1 %vm78_vm0, %v66_v7  ;;  %v208_v9 = vld [vmem:[%s21207_s4] sm:$0xff]  ;;  %v63_v15 = vld [vmem:[%s21206_s1 + $0x8] sm:$0xff]  ;;  %v210_v18 = vld [vmem:[%s21207_s4 + $0x10] sm:$0xff]  ;;  %vm544_vm5 = vcmask 1042434   ;;  %vm546_vm6 = vcmask 1043459   ;;  %vm548_vm7 = vcmask 1044484  }
   0x4   :  { %15171 = vmatmul.mubr.msk.f32.vlgmr.msra.gmra.mrb[0].mxu1 %vm78_vm0, %v67_v8  ;;  %v16546_v12 = vpack.c.bf16 %v209_v10, %v208_v9  ;;  %15163 = vmatpush3.msra.mxu0 %v70_v4  ;;  %v62_v13 = vld [vmem:[%s21206_s1] sm:$0xff]  ;;  %v211_v19 = vld [vmem:[%s21207_s4 + $0x18] sm:$0xff]  ;;  %v64_v21 = vld [vmem:[%s21206_s1 + $0x10] sm:$0xff]  ;;  %vm550_vm8 = vcmask 1045509   ;;  %vm552_vm9 = vcmask 1046534   ;;  %vm554_vm10 = vcmask 1047559  }
   0x5   :  { %15164 = vmatprep.mubr.msk.f32.mxu0 %vm78_vm0, %v62_v13  ;;  %15173 = vmatprep.mubr.msk.f32.mxu1 %vm78_vm0, %v68_v14  ;;  %v16579_v20 = vpack.c.bf16 %v211_v19, %v210_v18  ;;  %v65_v22 = vld [vmem:[%s21206_s1 + $0x18] sm:$0xff]  ;;  %v16600_v25 = vld [vmem:[%s21208_s2 + $0x8] sm:$0xf]  ;;  %v16605_v26 = vld [vmem:[%s21208_s2] sm:$0xf]  ;;  %vm16394_vm11 = vmmov 0  }
   0x6   :  { %21337 = vst [vmem:[#allocation3_spill] sm:$0xff] %v16546_v12  ;;  %15593 = vmatprep.subr.bf16.mxu1 %v16546_v12  ;;  %15165 = vmatmul.mubr.msk.f32.vlgmr.msra.gmra.mrb[0].mxu0 %vm78_vm0, %v63_v15  ;;  %v16610_v27 = vld [vmem:[%s21208_s2 + $0xc] sm:$0xf]  ;;  %v16615_v28 = vld [vmem:[%s21208_s2 + $0x4] sm:$0xf]  ;;  %s16397_s5 = smov 80  }
   0x7   :  { %15595 = vmatpush3.bf16.msra.mxu1 %v16546_v12  ;;  %21338 = vst [vmem:[#allocation4_spill] sm:$0xff] %v16579_v20  ;;  %15167 = vmatprep.mubr.msk.f32.mxu0 %vm78_vm0, %v64_v21  ;;  %v16628_v37 = vld [vmem:[%s21208_s2 + $0x14] sm:$0xf]  ;;  %v16633_v38 = vld [vmem:[%s21208_s2 + $0x10] sm:$0xf]  ;;  %s16398_s17 = smov 32  }
   0x8   :  { %v16489_v0 = vld [vmem:[%s21336_s23 + $0x8] sm:$0xf]  ;;  %v16494_v1 = vld [vmem:[%s21336_s23] sm:$0xf]  ;;  %v16503_v2 = vld [vmem:[%s21336_s23 + $0xc] sm:$0xf]  ;;  %15174 = vmatmul.mubr.msk.f32.gmra.mrb[2].mxu1 %vm78_vm0, %v69_v16  ;;  %15597 = vmatprep.subr.bf16.mxu1 %v16579_v20 }
   0x9   :  { %257 = vrot.lane.b32.xlu1 %v16489_v0, %s16391_s26  ;;  %253 = vrot.lane.b32.xlu0 %v16494_v1, %s16391_s26  ;;  %v16508_v3 = vld [vmem:[%s21336_s23 + $0x4] sm:$0xf]  ;;  %v16520_v5 = vld [vmem:[%s21336_s23 + $0x14] sm:$0xf]  ;;  %vm1193_vm12 = vcmask 1045504   ;;  %vm1773_vm13 = vcmask 1040384  }
   0xa   :  { %v16525_v6 = vld [vmem:[%s21336_s23 + $0x10] sm:$0xf]  ;;  %v16543_v11 = vld [vmem:[%s21336_s23 + $0x1c] sm:$0xf]  ;;  %v16567_v17 = vld [vmem:[%s21336_s23 + $0x18] sm:$0xf]  ;;  %15168 = vmatmul.mubr.msk.f32.gmra.mrb[2].mxu0 %vm78_vm0, %v65_v22 }
   0xb   :  { %15599 = vmatpush3.bf16.msra.mxu1 %v16579_v20  ;;  %v16644_v44 = vld [vmem:[%s21208_s2 + $0x1c] sm:$0xf]  ;;  %v16649_v45 = vld [vmem:[%s21208_s2 + $0x18] sm:$0xf]  ;;  %v14844_v61 = vld [vmem:[%s21210_s6] ss:$0 sm:$0xff] }
   0xc   :  { %vm1782_vm14 = vcmask 1041408   ;;  %vm1791_vm15 = vcmask 1042432  }
   0xd   :  { %259 = vrot.lane.b32.xlu1 %v16503_v2, %s16391_s26  ;;  %255 = vrot.lane.b32.xlu0 %v16508_v3, %s16391_s26 }
  0x11   :  { %263 = vrot.lane.b32.xlu1 %v16520_v5, %s16391_s26  ;;  %261 = vrot.lane.b32.xlu0 %v16525_v6, %s16391_s26 }
  0x15   :  { %267 = vrot.lane.b32.xlu1 %v16543_v11, %s16391_s26  ;;  %265 = vrot.lane.b32.xlu0 %v16567_v17, %s16391_s26 }
  0x7b   :  { %v258_v23 = vpop.permute.xlu1 %257  ;;  %v254_v24 = vpop.permute.xlu0 %253 }
  0x7c   :  { %v280_v31 = vsel %vm277_vm1, %v16600_v25, %v258_v23  ;;  %v278_v32 = vsel %vm277_vm1, %v16605_v26, %v254_v24 }
  0x7f   :  { %v260_v29 = vpop.permute.xlu1 %259  ;;  %v256_v30 = vpop.permute.xlu0 %255 }
  0x80   :  { %v281_v33 = vsel %vm277_vm1, %v16610_v27, %v260_v29  ;;  %v279_v34 = vsel %vm277_vm1, %v16615_v28, %v256_v30 }
  0x81   :  { %v295_v35 = vcombine.low %v280_v31, %v281_v33  ;;  %v294_v36 = vcombine.low %v278_v32, %v279_v34 }
  0x83   :  { %v264_v39 = vpop.permute.xlu1 %263  ;;  %v262_v40 = vpop.permute.xlu0 %261  ;;  %15184 = vmatprep.mubr.msk.f32.mxu1 %vm298_vm2, %v294_v36 }
  0x84   :  { %v283_v41 = vsel %vm277_vm1, %v16628_v37, %v264_v39  ;;  %v282_v42 = vsel %vm277_vm1, %v16633_v38, %v262_v40  ;;  %15185 = vmatmul.mubr.msk.f32.vlgmr.msra.gmra.mrb[4].mxu1 %vm298_vm2, %v295_v35 }
  0x85   :  { %v296_v43 = vcombine.low %v282_v42, %v283_v41 }
  0x87   :  { %v268_v46 = vpop.permute.xlu1 %267  ;;  %v266_v47 = vpop.permute.xlu0 %265  ;;  %15187 = vmatprep.mubr.msk.f32.mxu1 %vm298_vm2, %v296_v43 }
  0x88   :  { %v285_v48 = vsel %vm277_vm1, %v16644_v44, %v268_v46  ;;  %v284_v49 = vsel %vm277_vm1, %v16649_v45, %v266_v47 }
  0x89   :  { %v297_v50 = vcombine.low %v284_v49, %v285_v48  ;;  %v14861_v48 = vld [vmem:[%s21211_s7] ss:$0 sm:$0xff] }
  0x8b   :  { %15188 = vmatmul.mubr.msk.f32.gmra.mrb[6].mxu1 %vm298_vm2, %v297_v50 }
  0xd7   :  { %v15172_v51 = vpop.f32.mrb[0].mxu1 }
  0xd8   :  { %v189_v52 = vpop.f32.mrb[1].mxu1  ;;  %v16677_v29 = vadd.f32 %v15172_v51, %v14844_v61 }
  0xd9   :  { %v15166_v53 = vpop.f32.mrb[0].mxu0  ;;  %v16681_v36 = vadd.f32 %v14844_v61, %v189_v52 }
  0xda   :  { %v169_v55 = vpop.f32.mrb[1].mxu0  ;;  %v16665_v63 = vadd.f32 %v15166_v53, %v14844_v61 }
  0xdb   :  { %v15175_v54 = vpop.f32.mrb[2].mxu1  ;;  %v16669_v8 = vadd.f32 %v14844_v61, %v169_v55 }
  0xdc   :  { %v199_v56 = vpop.f32.mrb[3].mxu1  ;;  %v16684_v40 = vadd.f32 %v15175_v54, %v14844_v61 }
  0xdd   :  { %v15169_v57 = vpop.f32.mrb[2].mxu0  ;;  %v16679_v30 = vadd.f32 %v14844_v61, %v199_v56 }
  0xde   :  { %v179_v58 = vpop.f32.mrb[3].mxu0  ;;  %v16663_v62 = vadd.f32 %v15169_v57, %v14844_v61 }
  0xdf   :  { %v16667_v7 = vadd.f32 %v14844_v61, %v179_v58 }
 0x157   :  { %v15186_v4 = vpop.f32.mrb[4].mxu1 }
 0x158   :  { %v397_v9 = vcombine.high %v15186_v4, %v15186_v4  ;;  %v406_v10 = vcombine.low %v15186_v4, %v15186_v4  ;;  %v373_v13 = vpop.f32.mrb[5].mxu1 }
 0x159   :  { %v396_v14 = vcombine.high %v373_v13, %v373_v13  ;;  %v404_v15 = vcombine.low %v373_v13, %v373_v13 }
 0x15a   :  { %v423_v16 = vsel %vm420_vm3, %v15186_v4, %v406_v10  ;;  %v432_v18 = vadd.f32 %v397_v9, %v16663_v62 }
 0x15b   :  { %v421_v19 = vsel %vm420_vm3, %v373_v13, %v404_v15  ;;  %v430_v21 = vadd.f32 %v396_v14, %v16665_v63  ;;  %v431_v22 = vadd.f32 %v423_v16, %v16667_v7 }
 0x15c   :  { %15814 = vtanh.f32 %v432_v18  ;;  %v429_v23 = vadd.f32 %v421_v19, %v16669_v8 }
 0x15d   :  { %15816 = vtanh.f32 %v430_v21 }
 0x15e   :  { %v15189_v24 = vpop.f32.mrb[6].mxu1  ;;  %15818 = vtanh.f32 %v431_v22 }
 0x15f   :  { %v410_v31 = vcombine.low %v15189_v24, %v15189_v24  ;;  %v383_v32 = vpop.f32.mrb[7].mxu1  ;;  %15820 = vtanh.f32 %v429_v23  ;;  %v399_v33 = vcombine.high %v15189_v24, %v15189_v24  ;;  %v14862_v23 = vld [vmem:[#allocation2] ss:$0 sm:$0xff] }
 0x160   :  { %v398_v34 = vcombine.high %v383_v32, %v383_v32  ;;  %v408_v35 = vcombine.low %v383_v32, %v383_v32 }
 0x161   :  { %v427_v39 = vsel %vm420_vm3, %v15189_v24, %v410_v31  ;;  %v436_v47 = vadd.f32 %v399_v33, %v16684_v40  ;;  %v508_v33 = vlaneseq }
 0x162   :  { %v435_v41 = vadd.f32 %v427_v39, %v16679_v30  ;;  %v425_v42 = vsel %vm420_vm3, %v383_v32, %v408_v35  ;;  %v434_v43 = vadd.f32 %v398_v34, %v16677_v29 }
 0x163   :  { %v433_v46 = vadd.f32 %v425_v42, %v16681_v36  ;;  %v509_v39 = vand.u32 127, %v508_v33 }
 0x164   :  { %15822 = vtanh.f32 %v435_v41  ;;  %v16702_v41 = vshrl.u32 %v508_v33, 7 }
 0x165   :  { %15824 = vtanh.f32 %v433_v46 }
 0x166   :  { %v15815_v49 = vpop.eup %15814  ;;  %15826 = vtanh.f32 %v434_v43  ;;  %v16705_v46 = vsub.s32 %v509_v39, %v16702_v41 }
 0x167   :  { %v15817_v50 = vpop.eup %15816  ;;  %v454_v51 = vmul.f32 %v15815_v49, %v14861_v48  ;;  %15828 = vtanh.f32 %v436_v47 }
 0x168   :  { %v452_v52 = vmul.f32 %v15817_v50, %v14861_v48  ;;  %v15819_v53 = vpop.eup %15818 }
 0x169   :  { %v468_v54 = vsel %vm78_vm0, %v454_v51, 0.0  ;;  %v15821_v55 = vpop.eup %15820  ;;  %v453_v57 = vmul.f32 %v15819_v53, %v14861_v48 }
 0x16a   :  { %469 = vadd.xlane.f32.xlu0 %v468_v54  ;;  %v462_v56 = vsel %vm78_vm0, %v452_v52, 0.0  ;;  %v451_v59 = vmul.f32 %v15821_v55, %v14861_v48 }
 0x16b   :  { %463 = vadd.xlane.f32.xlu1 %v462_v56  ;;  %v465_v58 = vsel %vm78_vm0, %v453_v57, 0.0 }
 0x16c   :  { %v459_v13 = vsel %vm78_vm0, %v451_v59, 0.0 }
 0x16e   :  { %v15823_v60 = vpop.eup %15822  ;;  %466 = vadd.xlane.f32.xlu0 %v465_v58 }
 0x16f   :  { %v15825_v61 = vpop.eup %15824  ;;  %v457_v4 = vmul.f32 %v15823_v60, %v14861_v48 }
 0x170   :  { %v15827_v9 = vpop.eup %15826  ;;  %v455_v14 = vmul.f32 %v15825_v61, %v14861_v48 }
 0x171   :  { %v477_v10 = vsel %vm78_vm0, %v457_v4, 0.0  ;;  %v456_v15 = vmul.f32 %v15827_v9, %v14861_v48  ;;  %v15829_v16 = vpop.eup %15828 }
 0x172   :  { %478 = vadd.xlane.f32.xlu1 %v477_v10  ;;  %460 = vadd.xlane.f32.xlu0 %v459_v13  ;;  %v471_v18 = vsel %vm78_vm0, %v455_v14, 0.0  ;;  %v458_v21 = vmul.f32 %v15829_v16, %v14861_v48 }
 0x173   :  { %v474_v19 = vsel %vm78_vm0, %v456_v15, 0.0 }
 0x174   :  { %v480_v22 = vsel %vm78_vm0, %v458_v21, 0.0 }
 0x176   :  { %472 = vadd.xlane.f32.xlu1 %v471_v18  ;;  %475 = vadd.xlane.f32.xlu0 %v474_v19 }
 0x17a   :  { %481 = vadd.xlane.f32.xlu0 %v480_v22 }
 0x187   :  { %489 = vperm.xlu1 %15812, %v14862_v23   ;;  %v16734_v23 = vsub.s32 0, %v16702_v41 }
 0x1f7   :  { %v470_v24 = vpop.xlane.xlu0 %469 }
 0x1f8   :  { %v464_v31 = vpop.xlane.xlu1 %463 }
 0x1fb   :  { %v467_v32 = vpop.xlane.xlu0 %466 }
 0x1ff   :  { %v479_v34 = vpop.xlane.xlu1 %478  ;;  %v461_v35 = vpop.xlane.xlu0 %460 }
 0x203   :  { %v473_v42 = vpop.xlane.xlu1 %472  ;;  %v476_v43 = vpop.xlane.xlu0 %475 }
 0x207   :  { %v16707_v47 = vpop.permute.xlu1 %489  ;;  %v482_v51 = vpop.xlane.xlu0 %481 }
 0x208   :  { %v492_v48 = vadd.f32 %v16707_v47, %v461_v35  ;;  %v493_v49 = vadd.f32 %v16707_v47, %v464_v31  ;;  %v494_v50 = vadd.f32 %v16707_v47, %v467_v32  ;;  %v495_v52 = vadd.f32 %v16707_v47, %v470_v24 }
 0x209   :  { %v496_v53 = vadd.f32 %v16707_v47, %v473_v42  ;;  %v497_v54 = vadd.f32 %v16707_v47, %v476_v43  ;;  %v498_v58 = vadd.f32 %v16707_v47, %v479_v34  ;;  %v499_v59 = vadd.f32 %v16707_v47, %v482_v51 }
 0x20a   :  { %v513_v55 = vrot.slane %v492_v48, %v16705_v46  ;;  %v517_v56 = vrot.slane %v493_v49, %v16705_v46  ;;  %v521_v57 = vrot.slane %v494_v50, %v16705_v46  ;;  %v525_v60 = vrot.slane %v495_v52, %v16705_v46 }
 0x20b   :  { %v529_v4 = vrot.slane %v496_v53, %v16705_v46  ;;  %v533_v10 = vrot.slane %v497_v54, %v16705_v46  ;;  %v537_v14 = vrot.slane %v498_v58, %v16705_v46  ;;  %v541_v16 = vrot.slane %v499_v59, %v16705_v46 }
 0x20c   :  { %v543_v61 = vsel %vm542_vm4, %v517_v56, %v513_v55  ;;  %v16737_v24 = vsub.s32 1, %v16702_v41  ;;  %v16740_v31 = vsub.s32 2, %v16702_v41  ;;  %v16743_v32 = vsub.s32 3, %v16702_v41 }
 0x20d   :  { %v545_v9 = vsel %vm544_vm5, %v521_v57, %v543_v61  ;;  %v16749_v42 = vsub.s32 4, %v16702_v41  ;;  %v16753_v61 = vsub.s32 5, %v16702_v41 }
 0x20e   :  { %v547_v13 = vsel %vm546_vm6, %v525_v60, %v545_v9 }
 0x20f   :  { %v549_v15 = vsel %vm548_vm7, %v529_v4, %v547_v13  ;;  %v16757_v13 = vsub.s32 6, %v16702_v41 }
 0x210   :  { %v551_v18 = vsel %vm550_vm8, %v533_v10, %v549_v15 }
 0x211   :  { %v553_v19 = vsel %vm552_vm9, %v537_v14, %v551_v18 }
 0x212   :  { %v555_v21 = vsel %vm554_vm10, %v541_v16, %v553_v19 }
 0x213   :  { %v557_v22 = vsel %vm78_vm0, %v555_v21, -inf }
 0x214   :  { %558 = vmax.xlane.f32.xlu0 %v557_v22 }
 0x2a1   :  { %v559_v33 = vpop.xlane.xlu0 %558 }
 0x2a2   :  { %v564_v34 = vrot.slane %v559_v33, %v16734_v23  ;;  %v568_v35 = vrot.slane %v559_v33, %v16737_v24  ;;  %v572_v39 = vrot.slane %v559_v33, %v16740_v31  ;;  %v576_v43 = vrot.slane %v559_v33, %v16743_v32 }
 0x2a3   :  { %v580_v4 = vrot.slane %v559_v33, %v16749_v42  ;;  %v584_v14 = vrot.slane %v559_v33, %v16753_v61  ;;  %v588_v15 = vrot.slane %v559_v33, %v16757_v13 }
 0x2a4   :  { %v602_v51 = vsub.f32 %v493_v49, %v568_v35  ;;  %v601_v55 = vsub.f32 %v492_v48, %v564_v34  ;;  %v603_v56 = vsub.f32 %v494_v50, %v572_v39  ;;  %v604_v10 = vsub.f32 %v495_v52, %v576_v43 }
 0x2a5   :  { %v605_v48 = vsub.f32 %v496_v53, %v580_v4  ;;  %v16761_v50 = vsub.s32 7, %v16702_v41  ;;  %v606_v18 = vsub.f32 %v497_v54, %v584_v14  ;;  %v607_v22 = vsub.f32 %v498_v58, %v588_v15 }
 0x2a6   :  { %v611_v57 = vmul.f32 1.442695, %v602_v51  ;;  %v609_v60 = vmul.f32 1.442695, %v601_v55  ;;  %v613_v9 = vmul.f32 1.442695, %v603_v56 }
 0x2a7   :  { %v615_v49 = vmul.f32 1.442695, %v604_v10  ;;  %21339 = vst [vmem:[#allocation5_spill] sm:$0xff] %v16761_v50  ;;  %v617_v16 = vmul.f32 1.442695, %v605_v48  ;;  %v592_v21 = vrot.slane %v559_v33, %v16761_v50  ;;  %v54_v55 = vld [vmem:[%s21212_s0] sm:$0xff] }
 0x2a8   :  { %15830 = vpow2.f32 %v611_v57  ;;  %v619_v53 = vmul.f32 1.442695, %v606_v18  ;;  %v621_v35 = vmul.f32 1.442695, %v607_v22  ;;  %v761_v56 = vrot.slane %v54_v55, %v16734_v23 }
 0x2a9   :  { %15832 = vpow2.f32 %v609_v60  ;;  %v608_v54 = vsub.f32 %v499_v59, %v592_v21  ;;  %v768_v57 = vrot.slane %v54_v55, %v16737_v24  ;;  %v775_v60 = vrot.slane %v54_v55, %v16740_v31 }
 0x2aa   :  { %15834 = vpow2.f32 %v613_v9  ;;  %v782_v4 = vrot.slane %v54_v55, %v16743_v32  ;;  %v789_v9 = vrot.slane %v54_v55, %v16749_v42  ;;  %v796_v10 = vrot.slane %v54_v55, %v16753_v61 }
 0x2ab   :  { %15836 = vpow2.f32 %v615_v49  ;;  %v623_v43 = vmul.f32 1.442695, %v608_v54  ;;  %v803_v14 = vrot.slane %v54_v55, %v16757_v13  ;;  %v810_v49 = vrot.slane %v54_v55, %v16761_v50 }
 0x2ac   :  { %15838 = vpow2.f32 %v617_v16 }
 0x2ad   :  { %15840 = vpow2.f32 %v619_v53 }
 0x2ae   :  { %15842 = vpow2.f32 %v621_v35 }
 0x2af   :  { %15844 = vpow2.f32 %v623_v43 }
 0x2b2   :  { %v16764_v19 = vpop.eup %15830 }
 0x2b3   :  { %v16766_v52 = vpop.eup %15832  ;;  %637 = vperm.xlu1 %15812, %v16764_v19  }
 0x2b4   :  { %634 = vperm.xlu0 %15813, %v16766_v52   ;;  %v16771_v34 = vpop.eup %15834 }
 0x2b5   :  { %v16774_v39 = vpop.eup %15836 }
 0x2b6   :  { %v16777_v51 = vpop.eup %15838 }
 0x2b7   :  { %640 = vperm.xlu1 %15812, %v16771_v34   ;;  %v16780_v33 = vpop.eup %15840 }
 0x2b8   :  { %v16783_v58 = vpop.eup %15842  ;;  %763 = vbcast.lane.b32.xlu0 %v761_v56, 256 }
 0x2b9   :  { %v16786_v59 = vpop.eup %15844 }
 0x2bb   :  { %643 = vperm.xlu1 %15812, %v16774_v39  }
 0x2bc   :  { %770 = vbcast.lane.b32.xlu0 %v768_v57, 256 }
 0x2bf   :  { %646 = vperm.xlu1 %15812, %v16777_v51  }
 0x2c0   :  { %777 = vbcast.lane.b32.xlu0 %v775_v60, 256 }
 0x2c3   :  { %649 = vperm.xlu1 %15812, %v16780_v33  }
 0x2c4   :  { %784 = vbcast.lane.b32.xlu0 %v782_v4, 256 }
 0x2c7   :  { %652 = vperm.xlu1 %15812, %v16783_v58  }
 0x2c8   :  { %791 = vbcast.lane.b32.xlu0 %v789_v9, 256 }
 0x2cb   :  { %655 = vperm.xlu1 %15812, %v16786_v59  }
 0x2cc   :  { %798 = vbcast.lane.b32.xlu0 %v796_v10, 256 }
 0x2d0   :  { %805 = vbcast.lane.b32.xlu0 %v803_v14, 256 }
 0x2d4   :  { %812 = vbcast.lane.b32.xlu0 %v810_v49, 256 }
 0x332   :  { %v638_v48 = vpop.permute.xlu1 %637 }
 0x333   :  { %v635_v21 = vpop.permute.xlu0 %634  ;;  %v664_v22 = vrot.slane %v638_v48, %v16705_v46 }
 0x334   :  { %v660_v35 = vrot.slane %v635_v21, %v16705_v46 }
 0x336   :  { %v641_v15 = vpop.permute.xlu1 %640  ;;  %v689_v55 = vsel %vm542_vm4, %v664_v22, %v660_v35 }
 0x337   :  { %v668_v54 = vrot.slane %v641_v15, %v16705_v46 }
 0x339   :  { %v690_v4 = vsel %vm544_vm5, %v668_v54, %v689_v55 }
 0x33a   :  { %v644_v16 = vpop.permute.xlu1 %643 }
 0x33b   :  { %v672_v43 = vrot.slane %v644_v16, %v16705_v46 }
 0x33d   :  { %v691_v10 = vsel %vm546_vm6, %v672_v43, %v690_v4 }
 0x33e   :  { %v647_v18 = vpop.permute.xlu1 %646 }
 0x33f   :  { %v676_v56 = vrot.slane %v647_v18, %v16705_v46 }
 0x341   :  { %v692_v14 = vsel %vm548_vm7, %v676_v56, %v691_v10 }
 0x342   :  { %v650_v53 = vpop.permute.xlu1 %649 }
 0x343   :  { %v680_v60 = vrot.slane %v650_v53, %v16705_v46  ;;  %v764_v53 = vpop.permute.xlu0 %763 }
 0x345   :  { %v693_v15 = vsel %vm550_vm8, %v680_v60, %v692_v14 }
 0x346   :  { %v653_v57 = vpop.permute.xlu1 %652 }
 0x347   :  { %v684_v9 = vrot.slane %v653_v57, %v16705_v46  ;;  %v771_v22 = vpop.permute.xlu0 %770 }
 0x349   :  { %v694_v16 = vsel %vm552_vm9, %v684_v9, %v693_v15 }
 0x34a   :  { %v656_v49 = vpop.permute.xlu1 %655 }
 0x34b   :  { %v688_v48 = vrot.slane %v656_v49, %v16705_v46  ;;  %v778_v35 = vpop.permute.xlu0 %777 }
 0x34d   :  { %v695_v18 = vsel %vm554_vm10, %v688_v48, %v694_v16 }
 0x34e   :  { %v697_v21 = vsel %vm78_vm0, %v695_v18, 0.0 }
 0x34f   :  { %698 = vadd.xlane.f32.xlu1 %v697_v21  ;;  %v785_v57 = vpop.permute.xlu0 %784 }
 0x353   :  { %v792_v4 = vpop.permute.xlu0 %791 }
 0x357   :  { %v799_v49 = vpop.permute.xlu0 %798 }
 0x3dc   :  { %v699_v54 = vpop.xlane.xlu1 %698 }
 0x3dd   :  { %v724_v43 = vrot.slane %v699_v54, %v16753_v61  ;;  %v704_v56 = vrot.slane %v699_v54, %v16734_v23  ;;  %v708_v55 = vrot.slane %v699_v54, %v16737_v24  ;;  %v712_v60 = vrot.slane %v699_v54, %v16740_v31 }
 0x3de   :  { %v732_v9 = vrot.slane %v699_v54, %v16761_v50  ;;  %v716_v10 = vrot.slane %v699_v54, %v16743_v32  ;;  %v720_v14 = vrot.slane %v699_v54, %v16749_v42  ;;  %v728_v15 = vrot.slane %v699_v54, %v16757_v13 }
 0x3df   :  { %15846 = vrcp.f32 %v724_v43  ;;  %v21232_v54 = vrot.slane %v16600_v25, 7 }
 0x3e0   :  { %15848 = vrcp.f32 %v704_v56 }
 0x3e1   :  { %15850 = vrcp.f32 %v708_v55  ;;  %v806_v55 = vpop.permute.xlu0 %805 }
 0x3e2   :  { %15852 = vrcp.f32 %v712_v60 }
 0x3e3   :  { %15854 = vrcp.f32 %v732_v9 }
 0x3e4   :  { %15856 = vrcp.f32 %v716_v10 }
 0x3e5   :  { %15858 = vrcp.f32 %v720_v14 }
 0x3e6   :  { %15860 = vrcp.f32 %v728_v15 }
 0x3e9   :  { %v15847_v48 = vpop.eup %15846 }
 0x3ea   :  { %v15849_v16 = vpop.eup %15848  ;;  %v16832_v9 = vmul.f32 %v15847_v48, %v16780_v33  ;;  %v21230_v33 = vrot.slane %v16610_v27, 6 }
 0x3eb   :  { %v15851_v18 = vpop.eup %15850  ;;  %v16826_v43 = vmul.f32 %v15849_v16, %v16766_v52  ;;  %v21344_v16 = vrot.slane %v16605_v26, 1 }
 0x3ec   :  { %v15853_v56 = vpop.eup %15852  ;;  %v16829_v60 = vmul.f32 %v15851_v18, %v16764_v19  ;;  %21342 = vst [vmem:[#allocation8_spill] sm:$0xff] %v16832_v9 }
 0x3ed   :  { %21340 = vst [vmem:[#allocation6_spill] sm:$0xff] %v16826_v43  ;;  %v822_v10 = vmul.f32 %v764_v53, %v16826_v43  ;;  %v15855_v14 = vpop.eup %15854  ;;  %v16838_v21 = vmul.f32 %v15853_v56, %v16771_v34  ;;  %v854_v19 = vsel %vm542_vm4, %v16615_v28, %v21344_v16  ;;  %v827_v53 = vmul.f32 %v799_v49, %v16832_v9 }
 0x3ee   :  { %21341 = vst [vmem:[#allocation7_spill] sm:$0xff] %v16829_v60  ;;  %v823_v50 = vmul.f32 %v771_v22, %v16829_v60  ;;  %v15857_v52 = vpop.eup %15856  ;;  %v16847_v48 = vmul.f32 %v15855_v14, %v16786_v59  ;;  %v856_v34 = vsel %vm544_vm5, %v21232_v54, %v854_v19  ;;  %v813_v22 = vpop.permute.xlu0 %812  ;;  %v21225_v16 = vrot.slane %v16649_v45, 3 }
 0x3ef   :  { %21343 = vst [vmem:[#allocation9_spill] sm:$0xff] %v16838_v21  ;;  %953 = vperm.xlu1 %15812, %v822_v10   ;;  %v824_v15 = vmul.f32 %v778_v35, %v16838_v21  ;;  %v16854_v18 = vmul.f32 %v15857_v52, %v16774_v39  ;;  %v15859_v56 = vpop.eup %15858  ;;  %v858_v59 = vsel %vm546_vm6, %v21230_v33, %v856_v34  ;;  %v21226_v39 = vrot.slane %v16628_v37, 4  ;;  %v215_v34 = vld [vmem:[%s21213_s10] sm:$0xff] }
 0x3f0   :  { %956 = vperm.xlu0 %15813, %v823_v50   ;;  %21345 = vst [vmem:[#allocation10_spill] sm:$0xff] %v16847_v48  ;;  %v21227_v50 = vrot.slane %v16633_v38, 5  ;;  %v829_v49 = vmul.f32 %v813_v22, %v16847_v48  ;;  %v16862_v10 = vmul.f32 %v15859_v56, %v16777_v51  ;;  %v15861_v35 = vpop.eup %15860  ;;  %v216_v22 = vld [vmem:[%s21213_s10 + $0x8] sm:$0xff]  ;;  %v21233_v56 = vmov 0.0|0.0  }
 0x3f1   :  { %21346 = vst [vmem:[#allocation11_spill] sm:$0xff] %v16854_v18  ;;  %v825_v14 = vmul.f32 %v785_v57, %v16854_v18  ;;  %v21224_v57 = vrot.slane %v16644_v44, 2  ;;  %15600 = vmatprep.subr.bf16.mxu0 %v21233_v56  ;;  %15606 = vmatprep.subr.bf16.mxu1 %v21233_v56  ;;  %v21239_v54 = vrot.slane %v16644_v44, 1 }
 0x3f2   :  { %21347 = vst [vmem:[#allocation12_spill] sm:$0xff] %v16862_v10  ;;  %v860_v52 = vsel %vm548_vm7, %v21227_v50, %v858_v59  ;;  %v826_v19 = vmul.f32 %v792_v4, %v16862_v10  ;;  %v218_v59 = vld [vmem:[%s21213_s10 + $0x18] sm:$0xff] }
 0x3f3   :  { %968 = vperm.xlu1 %15812, %v827_v53   ;;  %v16872_v53 = vmul.f32 %v15861_v35, %v16783_v58  ;;  %v862_v51 = vsel %vm550_vm8, %v21226_v39, %v860_v52  ;;  %v1101_v35 = vrot.slane %v16508_v3, 7  ;;  %v21236_v52 = vmov 0.0  }
 0x3f4   :  { %959 = vperm.xlu0 %15813, %v824_v15   ;;  %v864_v58 = vsel %vm552_vm9, %v21225_v16, %v862_v51  ;;  %v16888_v15 = vpack.c.bf16 %v216_v22, %v215_v34  ;;  %15198 = vmatprep.mubr.msk.f32.mxu0 %vm16394_vm11, %v21236_v52  ;;  %v1105_v51 = vrot.slane %v16503_v2, 5  ;;  %v1107_v34 = vrot.slane %v16525_v6, 4 }
 0x3f5   :  { %21348 = vst [vmem:[#allocation13_spill] sm:$0xff] %v16872_v53  ;;  %v828_v4 = vmul.f32 %v806_v55, %v16872_v53  ;;  %v217_v55 = vld [vmem:[%s21213_s10 + $0x10] sm:$0xff]  ;;  %15214 = vmatprep.mubr.msk.f32.mxu1 %vm16394_vm11, %v21236_v52  ;;  %v1102_v22 = vsel %vm542_vm4, %v1101_v35, %v16494_v1  ;;  %v21228_v35 = vrot.slane %v16615_v28, 7 }
 0x3f6   :  { %21349 = vst [vmem:[#allocation14_spill] sm:$0xff] %v16888_v15  ;;  %15602 = vmatpush3.bf16.msra.mxu0 %v16888_v15 }
 0x3f7   :  { %974 = vperm.xlu1 %15812, %v829_v49   ;;  %v866_v49 = vsel %vm554_vm10, %v21224_v57, %v864_v58  ;;  %15603 = vmatprep.subr.bf16.mxu0 %v21233_v56 }
 0x3f8   :  { %962 = vperm.xlu0 %15813, %v825_v14   ;;  %v16903_v14 = vpack.c.bf16 %v218_v59, %v217_v55  ;;  %v1113_v59 = vrot.slane %v16543_v11, 1 }
 0x3fa   :  { %21350 = vst [vmem:[#allocation15_spill] sm:$0xff] %v16903_v14  ;;  %15605 = vmatpush3.bf16.msra.mxu0 %v16903_v14 }
 0x3fb   :  { %15201 = vmatprep.subr.mxu0 %v21236_v52 }
 0x3fc   :  { %965 = vperm.xlu0 %15813, %v826_v19   ;;  %v1103_v19 = vrot.slane %v16489_v0, 6 }
 0x3fe   :  { %v1104_v58 = vsel %vm544_vm5, %v1103_v19, %v1102_v22  ;;  %v21229_v19 = vrot.slane %v16600_v25, 6 }
 0x3ff   :  { %v1106_v55 = vsel %vm546_vm6, %v1105_v51, %v1104_v58  ;;  %v839_v51 = vsel %vm542_vm4, %v21228_v35, %v16605_v26 }
 0x400   :  { %971 = vperm.xlu0 %15813, %v828_v4   ;;  %v1109_v4 = vrot.slane %v16520_v5, 3  ;;  %v1108_v57 = vsel %vm548_vm7, %v1107_v34, %v1106_v55  ;;  %v21231_v34 = vrot.slane %v16610_v27, 5 }
 0x402   :  { %v1110_v16 = vsel %vm550_vm8, %v1109_v4, %v1108_v57  ;;  %v21238_v4 = vrot.slane %v16628_v37, 3 }
 0x404   :  { %867 = vrot.lane.b32.xlu0 %v866_v49, %s16391_s26  ;;  %v1111_v49 = vrot.slane %v16567_v17, 2 }
 0x406   :  { %v1112_v39 = vsel %vm552_vm9, %v1111_v49, %v1110_v16  ;;  %v841_v16 = vsel %vm544_vm5, %v21229_v19, %v839_v51 }
 0x407   :  { %v1114_v50 = vsel %vm554_vm10, %v1113_v59, %v1112_v39  ;;  %v21235_v39 = vrot.slane %v16633_v38, 4  ;;  %v848_v59 = vrot.slane %v16649_v45, 2 }
 0x408   :  { %1115 = vrot.lane.b32.xlu0 %v1114_v50, %s16391_s26  ;;  %v843_v50 = vsel %vm546_vm6, %v21231_v34, %v841_v16 }
 0x409   :  { %v845_v55 = vsel %vm548_vm7, %v21235_v39, %v843_v50 }
 0x40a   :  { %v847_v16 = vsel %vm550_vm8, %v21238_v4, %v845_v55 }
 0x46e   :  { %v954_v58 = vpop.permute.xlu1 %953 }
 0x46f   :  { %v957_v22 = vpop.permute.xlu0 %956  ;;  %v979_v35 = vrot.slane %v954_v58, %v16705_v46 }
 0x470   :  { %v983_v51 = vrot.slane %v957_v22, %v16705_v46  ;;  %v849_v22 = vsel %vm552_vm9, %v848_v59, %v847_v16  ;;  %v16971_v16 = vld [vmem:[%s21214_s9] sm:$0xff] }
 0x471   :  { %v851_v4 = vsel %vm554_vm10, %v21239_v54, %v849_v22 }
 0x472   :  { %v969_v56 = vpop.permute.xlu1 %968  ;;  %v1008_v39 = vsel %vm542_vm4, %v983_v51, %v979_v35 }
 0x473   :  { %v960_v57 = vpop.permute.xlu0 %959 }
 0x474   :  { %v987_v19 = vrot.slane %v960_v57, %v16705_v46 }
 0x476   :  { %v1009_v57 = vsel %vm544_vm5, %v987_v19, %v1008_v39  ;;  %v975_v35 = vpop.permute.xlu1 %974 }
 0x477   :  { %v963_v49 = vpop.permute.xlu0 %962  ;;  %v1007_v39 = vrot.slane %v975_v35, %v16705_v46 }
 0x478   :  { %v991_v34 = vrot.slane %v963_v49, %v16705_v46 }
 0x47a   :  { %v1010_v52 = vsel %vm546_vm6, %v991_v34, %v1009_v57  ;;  %v1137_v57 = vrot.slane %v16489_v0, 7 }
 0x47b   :  { %v966_v33 = vpop.permute.xlu0 %965 }
 0x47c   :  { %v995_v50 = vrot.slane %v966_v33, %v16705_v46  ;;  %v999_v33 = vrot.slane %v969_v56, %v16705_v46  ;;  %v21351_v56 = vmov 0.0  }
 0x47e   :  { %v1011_v55 = vsel %vm548_vm7, %v995_v50, %v1010_v52  ;;  %v21352_v50 = vmov 0.0|0.0  }
 0x47f   :  { %v972_v58 = vpop.permute.xlu0 %971  ;;  %v1012_v19 = vsel %vm550_vm8, %v999_v33, %v1011_v55 }
 0x480   :  { %v1003_v49 = vrot.slane %v972_v58, %v16705_v46  ;;  %v1139_v58 = vrot.slane %v16503_v2, 6 }
 0x482   :  { %v1013_v52 = vsel %vm552_vm9, %v1003_v49, %v1012_v19  ;;  %v1141_v49 = vrot.slane %v16525_v6, 5 }
 0x483   :  { %v868_v51 = vpop.permute.xlu0 %867  ;;  %v1014_v22 = vsel %vm554_vm10, %v1007_v39, %v1013_v52 }
 0x484   :  { %v870_v34 = vsel %vm277_vm1, %v851_v4, %v868_v51  ;;  %v1135_v4 = vrot.slane %v16494_v1, 1  ;;  %v14865_v1 = vld [vmem:[%s21215_s11] ss:$0 sm:$0xff] }
 0x485   :  { %15199 = vmatmul.mubr.msk.f32.vlgmr.msra.gmra.mrb[4].mxu0 %vm298_vm2, %v870_v34 }
 0x486   :  { %15202 = vmatpush3.msra.mxu0 %v16971_v16  ;;  %15203 = vmatprep.mubr.msk.f32.mxu0 %vm16394_vm11, %v21351_v56  ;;  %v1136_v55 = vsel %vm542_vm4, %v16508_v3, %v1135_v4  ;;  %v1145_v4 = vrot.slane %v16567_v17, 3 }
 0x487   :  { %15612 = vmatprep.subr.bf16.mxu0 %v21352_v50  ;;  %v1138_v33 = vsel %vm544_vm5, %v1137_v57, %v1136_v55 }
 0x488   :  { %v1140_v35 = vsel %vm546_vm6, %v1139_v58, %v1138_v33  ;;  %v1147_v58 = vrot.slane %v16543_v11, 2 }
 0x489   :  { %15204 = vmatmul.mubr.msk.f32.vlgmr.msra.gmra.mrb[6].mxu0 %vm78_vm0, %v1014_v22  ;;  %v1142_v51 = vsel %vm548_vm7, %v1141_v49, %v1140_v35  ;;  %v1143_v22 = vrot.slane %v16520_v5, 4 }
 0x48a   :  { %15225 = vmatprep.mubr.msk.f32.mxu0 %vm16394_vm11, %v21351_v56 }
 0x48b   :  { %v1144_v57 = vsel %vm550_vm8, %v1143_v22, %v1142_v51  ;;  %v16359_v22 = vld [vmem:[%s21336_s23 + $0x8] sm:$0xf] }
 0x48c   :  { %v1146_v55 = vsel %vm552_vm9, %v1145_v4, %v1144_v57  ;;  %v1393_v4 = vrot.slane %v16359_v22, 1 }
 0x48d   :  { %v1148_v33 = vsel %vm554_vm10, %v1147_v58, %v1146_v55 }
 0x558   :  { %v940_v19 = vpop.f32.mrb[4].mxu0 }
 0x559   :  { %v15200_v34 = vpop.f32.mrb[5].mxu0 }
 0x55c   :  { %v1083_v0 = vpop.f32.mrb[6].mxu0 }
 0x55d   :  { %v1084_v52 = vadd.f32 %v1083_v0, %v940_v19  ;;  %v15205_v2 = vpop.f32.mrb[7].mxu0 }
 0x55f   :  { %v1093_v39 = vadd.f32 %v14865_v1, %v1084_v52  ;;  %v1116_v1 = vpop.permute.xlu0 %1115  ;;  %v16358_v52 = vld [vmem:[%s21336_s23] sm:$0xf] }
 0x560   :  { %v1390_v2 = vrot.slane %v16358_v52, 3 }
 0x561   :  { %15862 = vtanh.f32 %v1093_v39  ;;  %v1094_v35 = vsub.f32 0.0, %v1093_v39  ;;  %v1391_v39 = vrot.slane %v16508_v3, 2  ;;  %v16360_v3 = vld [vmem:[%s21336_s23 + $0x4] sm:$0xf] }
 0x563   :  { %v1095_v19 = vmul.f32 1.442695, %v1094_v35 }
 0x565   :  { %15864 = vpow2.f32 %v1095_v19  ;;  %v1356_v19 = vrot.slane %v16358_v52, 2 }
 0x56b   :  { %v15863_v49 = vpop.eup %15862 }
 0x56c   :  { %1120 = vrot.lane.b32.xlu1 %v15863_v49, %s16396_s22  ;;  %v1396_v49 = vrot.slane %v16525_v6, 7 }
 0x56f   :  { %v15865_v5 = vpop.eup %15864 }
 0x570   :  { %1149 = vrot.lane.b32.xlu1 %v1148_v33, %s16397_s5  ;;  %v1097_v17 = vadd.f32 1.0, %v15865_v5  ;;  %v1357_v5 = vrot.slane %v16360_v3, 1 }
 0x572   :  { %15866 = vrcp.f32 %v1097_v17  ;;  %v1392_v17 = vsel %vm542_vm4, %v1391_v39, %v1390_v2 }
 0x573   :  { %v1394_v6 = vsel %vm544_vm5, %v1393_v4, %v1392_v17  ;;  %v21355_v17 = vrot.slane %v16610_v27, 6 }
 0x57c   :  { %v17006_v51 = vpop.eup %15866 }
 0x57d   :  { %v1118_v57 = vmul.f32 %v17006_v51, %v1116_v1  ;;  %v16361_v1 = vld [vmem:[%s21336_s23 + $0xc] sm:$0xf] }
 0x57e   :  { %v1395_v52 = vsel %vm546_vm6, %v16361_v1, %v1394_v6 }
 0x57f   :  { %v1397_v39 = vsel %vm548_vm7, %v1396_v49, %v1395_v52 }
 0x5de   :  { %v1121_v11 = vpop.permute.xlu1 %1120 }
 0x5df   :  { %v1123_v34 = vmul.f32 %v17006_v51, %v1121_v11  ;;  %v21353_v11 = vrot.slane %v16605_v26, 1  ;;  %v16362_v26 = vld [vmem:[%s21336_s23 + $0x10] sm:$0xf] }
 0x5e0   :  { %v1362_v2 = vrot.slane %v16362_v26, 6 }
 0x5e1   :  { %1125 = vrot.lane.b32.xlu0 %v1123_v34, %s16391_s26  ;;  %v1177_v34 = vsel %vm546_vm6, %v16615_v28, %v21353_v11 }
 0x5e2   :  { %v1150_v0 = vpop.permute.xlu1 %1149 }
 0x5e3   :  { %v1152_v58 = vmul.f32 %v17006_v51, %v1150_v0  ;;  %v1360_v0 = vrot.slane %v16361_v1, 7  ;;  %v21356_v1 = vrot.slane %v16633_v38, 5 }
 0x653   :  { %v1126_v55 = vpop.permute.xlu0 %1125 }
 0x654   :  { %v17020_v33 = vadd.f32 %v1126_v55, %v1118_v57  ;;  %v17022_v35 = vadd.f32 %v1152_v58, %v1126_v55  ;;  %v21354_v57 = vrot.slane %v16600_v25, 7  ;;  %v1358_v58 = vsel %vm542_vm4, %v1357_v5, %v1356_v19 }
 0x655   :  { %v1359_v55 = vsel %vm544_vm5, %v16359_v22, %v1358_v58  ;;  %v21357_v22 = vrot.slane %v16628_v37, 4  ;;  %v21358_v5 = vrot.slane %v16649_v45, 3 }
 0x656   :  { %15868 = vtanh.f32 %v17020_v33  ;;  %v1178_v4 = vsel %vm548_vm7, %v21354_v57, %v1177_v34  ;;  %v1361_v3 = vsel %vm546_vm6, %v1360_v0, %v1359_v55  ;;  %v21359_v34 = vrot.slane %v16644_v44, 2  ;;  %v225_v57 = vld [vmem:[%s21216_s13 + $0x8] sm:$0xff] }
 0x657   :  { %15870 = vtanh.f32 %v17022_v35  ;;  %v1179_v11 = vsel %vm550_vm8, %v21355_v17, %v1178_v4  ;;  %v1363_v6 = vsel %vm548_vm7, %v1362_v2, %v1361_v3  ;;  %v224_v2 = vld [vmem:[%s21216_s13] sm:$0xff]  ;;  %v221_v55 = vld [vmem:[%s21217_s12 + $0x8] sm:$0xff]  ;;  %v226_v3 = vld [vmem:[%s21216_s13 + $0x10] sm:$0xff] }
 0x658   :  { %v1180_v49 = vsel %vm552_vm9, %v21356_v1, %v1179_v11  ;;  %v1182_v0 = vsel %vm542_vm4, %v21359_v34, %v21358_v5  ;;  %v220_v4 = vld [vmem:[%s21217_s12] sm:$0xff]  ;;  %v17077_v58 = vpack.c.bf16 %v225_v57, %v224_v2  ;;  %v227_v17 = vld [vmem:[%s21216_s13 + $0x18] sm:$0xff]  ;;  %v222_v1 = vld [vmem:[%s21217_s12 + $0x10] sm:$0xff]  ;;  %v21363_v34 = vrot.slane %v16600_v25, 6 }
 0x659   :  { %v1181_v19 = vsel %vm554_vm10, %v21357_v22, %v1180_v49  ;;  %v17088_v11 = vpack.c.bf16 %v221_v55, %v220_v4  ;;  %v223_v49 = vld [vmem:[%s21217_s12 + $0x18] sm:$0xff]  ;;  %v16363_v22 = vld [vmem:[%s21208_s2] sm:$0xf]  ;;  %v16399_v2 = vmov 1966171168  }
 0x65a   :  { %21360 = vst [vmem:[#allocation16_spill] sm:$0xff] %v17077_v58  ;;  %15608 = vmatpush3.bf16.msra.mxu1 %v17077_v58  ;;  %v1417_v57 = vunpack.c.l.s4 %v16399_v2  ;;  %v16364_v4 = vld [vmem:[%s21336_s23 + $0x14] sm:$0xf] }
 0x65b   :  { %15614 = vmatpush3.bf16.msra.mxu0 %v17088_v11  ;;  %15609 = vmatprep.subr.bf16.mxu1 %v21352_v50  ;;  %v1398_v55 = vrot.slane %v16364_v4, 6 }
 0x65c   :  { %15615 = vmatprep.subr.bf16.mxu0 %v21352_v50 }
 0x65d   :  { %v1399_v25 = vsel %vm550_vm8, %v1398_v55, %v1397_v39  ;;  %v21366_v55 = vrot.slane %v16628_v37, 3 }
 0x660   :  { %v15869_v52 = vpop.eup %15868 }
 0x661   :  { %v15871_v26 = vpop.eup %15870  ;;  %1131 = vrot.lane.b32.xlu1 %v15869_v52, %s16398_s17  ;;  %v17097_v52 = vpack.c.bf16 %v227_v17, %v226_v3  ;;  %v21364_v3 = vrot.slane %v16610_v27, 5  ;;  %v16366_v27 = vld [vmem:[%s21336_s23 + $0x1c] sm:$0xf] }
 0x662   :  { %1156 = vrot.lane.b32.xlu0 %v15871_v26, %s16398_s17  ;;  %v17101_v26 = vpack.c.bf16 %v223_v49, %v222_v1  ;;  %v1418_v49 = vunpack.c.0.s8 %v1417_v57  ;;  %v1402_v2 = vrot.slane %v16366_v27, 4 }
 0x663   :  { %21361 = vst [vmem:[#allocation17_spill] sm:$0xff] %v17097_v52  ;;  %15611 = vmatpush3.bf16.msra.mxu1 %v17097_v52 }
 0x664   :  { %15617 = vmatpush3.bf16.msra.mxu0 %v17101_v26  ;;  %15619 = vmatprep.subr.bf16.mxu1 %v16546_v12  ;;  %v17138_v39 = vsub.s32 %v1418_v49, %v16702_v41 }
 0x665   :  { %1183 = vrot.lane.b32.xlu1 %v1181_v19, %s16391_s26  ;;  %15626 = vmatprep.subr.bf16.mxu0 %v21352_v50  ;;  %v21362_v19 = vrot.slane %v16615_v28, 7  ;;  %v16365_v28 = vld [vmem:[%s21336_s23 + $0x18] sm:$0xf]  ;;  %s16400_s23 = smov 64  }
 0x666   :  { %1185 = vrot.lane.b32.xlu0 %v1182_v0, %s16391_s26  ;;  %v1400_v1 = vrot.slane %v16365_v28, 5  ;;  %v1366_v57 = vrot.slane %v16365_v28, 4 }
 0x667   :  { %v1169_v5 = vsel %vm546_vm6, %v21362_v19, %v16363_v22  ;;  %v1364_v22 = vrot.slane %v16364_v4, 5  ;;  %v21365_v19 = vrot.slane %v16633_v38, 4 }
 0x668   :  { %v1170_v0 = vsel %vm548_vm7, %v21363_v34, %v1169_v5  ;;  %v1401_v54 = vsel %vm552_vm9, %v1400_v1, %v1399_v25  ;;  %v1368_v1 = vrot.slane %v16366_v27, 3 }
 0x669   :  { %v1171_v17 = vsel %vm550_vm8, %v21364_v3, %v1170_v0  ;;  %v1365_v4 = vsel %vm550_vm8, %v1364_v22, %v1363_v6 }
 0x66a   :  { %v1172_v5 = vsel %vm552_vm9, %v21365_v19, %v1171_v17  ;;  %v21367_v19 = vrot.slane %v16644_v44, 1  ;;  %v1367_v37 = vsel %vm552_vm9, %v1366_v57, %v1365_v4 }
 0x66b   :  { %v1173_v17 = vsel %vm554_vm10, %v21366_v55, %v1172_v5 }
 0x66c   :  { %v1174_v28 = vsel %vm542_vm4, %v21367_v19, %v848_v59 }
 0x6d3   :  { %v1132_v34 = vpop.permute.xlu1 %1131 }
 0x6d4   :  { %v17134_v0 = vmul.f32 %v17006_v51, %v1132_v34  ;;  %v1157_v3 = vpop.permute.xlu0 %1156 }
 0x6d5   :  { %v1159_v38 = vmul.f32 %v17006_v51, %v1157_v3  ;;  %v1403_v51 = vsel %vm554_vm10, %v1402_v2, %v1401_v54  ;;  %v1369_v54 = vsel %vm554_vm10, %v1368_v1, %v1367_v37  ;;  %v14868_v1 = vld [vmem:[%s21218_s14] ss:$0 sm:$0xff] }
 0x6d6   :  { %1161 = vrot.lane.b32.xlu1 %v17134_v0, %s16397_s5 }
 0x6d7   :  { %v17153_v41 = vrot.slane %v1159_v38, %v17138_v39  ;;  %1165 = vrot.lane.b32.xlu0 %v1159_v38, %s16398_s17  ;;  %v1184_v6 = vpop.permute.xlu1 %1183  ;;  %v1472_v45 = vcombine.high %v1159_v38, %v1159_v38 }
 0x6d8   :  { %v1189_v49 = vsel %vm277_vm1, %v1173_v17, %v1184_v6  ;;  %v1186_v25 = vpop.permute.xlu0 %1185 }
 0x6d9   :  { %v1487_v44 = vcombine.high %v17153_v41, %v17153_v41  ;;  %v1194_v59 = vrot.slane %v1189_v49, 2  ;;  %v1190_v22 = vsel %vm277_vm1, %v1174_v28, %v1186_v25  ;;  %v17165_v2 = vrot.slane %v1472_v45, %v17138_v39 }
 0x6da   :  { %v1195_v5 = vrot.slane %v1190_v22, 2 }
 0x6db   :  { %1404 = vrot.lane.b32.xlu0 %v1403_v51, %s16397_s5  ;;  %v1509_v27 = vrot.slane %v1487_v44, %v17138_v39  ;;  %v1488_v38 = vcombine.high %v17165_v2, %v17165_v2 }
 0x6dc   :  { %v1196_v34 = vsel %vm1193_vm12, %v1194_v59, %v1195_v5  ;;  %vm14771_vm12 = vcmask 125952  }
 0x6dd   :  { %15215 = vmatmul.mubr.msk.f32.vlgmr.msra.gmra.mrb[8].mxu1 %vm298_vm2, %v1196_v34  ;;  %v1628_v3 = vrot.slane %v1509_v27, %v16734_v23  ;;  %v1519_v57 = vcombine.high %v1509_v27, %v1509_v27  ;;  %v1516_v55 = vrot.slane %v1488_v38, %v17138_v39 }
 0x6de   :  { %15621 = vmatpush3.bf16.msra.mxu1 %v16546_v12 }
 0x6df   :  { %1370 = vrot.lane.b32.xlu0 %v1369_v54, %s16391_s26  ;;  %15623 = vmatprep.subr.bf16.mxu1 %v16579_v20  ;;  %v1636_v4 = vrot.slane %v1519_v57, %v16734_v23  ;;  %v1644_v17 = vrot.slane %v1516_v55, %v16734_v23 }
 0x6e2   :  { %15625 = vmatpush3.bf16.msra.mxu1 %v16579_v20 }
 0x6e3   :  { %1655 = vrot.lane.b32.xlu0 %v1628_v3, %s16400_s23  ;;  %15632 = vmatprep.subr.bf16.mxu1 %v21352_v50 }
 0x6e7   :  { %1659 = vrot.lane.b32.xlu0 %v1636_v4, %s16400_s23 }
 0x6eb   :  { %1663 = vrot.lane.b32.xlu0 %v1644_v17, %s16400_s23 }
 0x748   :  { %v1162_v19 = vpop.permute.xlu1 %1161 }
 0x749   :  { %v1166_v28 = vpop.permute.xlu0 %1165 }
 0x74a   :  { %v1168_v51 = vsel %vm277_vm1, %v1162_v19, %v1166_v28 }
 0x74b   :  { %15226 = vmatmul.mubr.msk.f32.vlgmr.msra.gmra.mrb[8].mxu0 %vm298_vm2, %v1168_v51 }
 0x74c   :  { %15628 = vmatpush3.bf16.msra.mxu0 %v16888_v15  ;;  %15250 = vmatprep.mubr.msk.f32.mxu0 %vm16394_vm11, %v21351_v56 }
 0x74d   :  { %15629 = vmatprep.subr.bf16.mxu0 %v21352_v50  ;;  %v1405_v4 = vpop.permute.xlu0 %1404 }
 0x750   :  { %15631 = vmatpush3.bf16.msra.mxu0 %v16903_v14 }
 0x751   :  { %15253 = vmatprep.subr.mxu0 %v21351_v56  ;;  %v1371_v17 = vpop.permute.xlu0 %1370 }
 0x753   :  { %15251 = vmatmul.mubr.msk.f32.vlgmr.msra.gmra.mrb[10].mxu0 %vm298_vm2, %v1168_v51 }
 0x754   :  { %15254 = vmatpush3.msra.mxu0 %v16971_v16  ;;  %15255 = vmatprep.mubr.msk.f32.mxu0 %vm16394_vm11, %v21351_v56 }
 0x755   :  { %15638 = vmatprep.subr.bf16.mxu0 %v21352_v50 }
 0x7b0   :  { %v1265_v6 = vpop.f32.mrb[8].mxu1 }
 0x7b1   :  { %v15216_v37 = vpop.f32.mrb[9].mxu1 }
 0x81e   :  { %v1338_v49 = vpop.f32.mrb[8].mxu0 }
 0x81f   :  { %v1339_v25 = vadd.f32 %v1338_v49, %v1265_v6  ;;  %v15227_v45 = vpop.f32.mrb[9].mxu0 }
 0x821   :  { %v1348_v44 = vadd.f32 %v14868_v1, %v1339_v25  ;;  %v1520_v1 = vcombine.high %v1516_v55, %v1516_v55  ;;  %v1495_v25 = vrot.slane %v17153_v41, %v17138_v39 }
 0x823   :  { %15872 = vtanh.f32 %v1348_v44  ;;  %v1349_v5 = vsub.f32 0.0, %v1348_v44  ;;  %v1652_v44 = vrot.slane %v1520_v1, %v16734_v23 }
 0x825   :  { %v1350_v54 = vmul.f32 1.442695, %v1349_v5  ;;  %v1502_v5 = vrot.slane %v17165_v2, %v17138_v39 }
 0x826   :  { %v17199_v59 = vpop.f32.mrb[10].mxu0 }
 0x827   :  { %v15252_v22 = vpop.f32.mrb[11].mxu0  ;;  %15874 = vpow2.f32 %v1350_v54  ;;  %v1640_v41 = vrot.slane %v1502_v5, %v16734_v23  ;;  %v1518_v54 = vcombine.high %v1502_v5, %v1502_v5  ;;  %v1866_v5 = vrot.slane %v17022_v35, %v17138_v39 }
 0x828   :  { %v1624_v22 = vrot.slane %v1495_v25, %v16734_v23 }
 0x82d   :  { %v15873_v16 = vpop.eup %15872 }
 0x82e   :  { %1375 = vrot.lane.b32.xlu1 %v15873_v16, %s16396_s22  ;;  %v1517_v16 = vcombine.high %v1495_v25, %v1495_v25 }
 0x830   :  { %v1632_v55 = vrot.slane %v1517_v16, %v16734_v23 }
 0x831   :  { %v15875_v34 = vpop.eup %15874 }
 0x832   :  { %v1352_v27 = vadd.f32 1.0, %v15875_v34  ;;  %v1648_v34 = vrot.slane %v1518_v54, %v16734_v23 }
 0x834   :  { %15876 = vrcp.f32 %v1352_v27 }
 0x83e   :  { %v17202_v3 = vpop.eup %15876 }
 0x83f   :  { %v1373_v19 = vmul.f32 %v17202_v3, %v1371_v17  ;;  %v1407_v28 = vmul.f32 %v17202_v3, %v1405_v4 }
 0x8a0   :  { %v1376_v57 = vpop.permute.xlu1 %1375 }
 0x8a1   :  { %v1378_v38 = vmul.f32 %v17202_v3, %v1376_v57 }
 0x8a3   :  { %1380 = vrot.lane.b32.xlu1 %v1378_v38, %s16391_s26 }
 0x915   :  { %v1381_v51 = vpop.permute.xlu1 %1380 }
 0x916   :  { %v17208_v6 = vadd.f32 %v1381_v51, %v1373_v19  ;;  %v17210_v37 = vadd.f32 %v1407_v28, %v1381_v51 }
 0x918   :  { %21368 = vst [vmem:[#allocation18_spill] sm:$0xff] %v17208_v6  ;;  %21369 = vst [vmem:[#allocation19_spill] sm:$0xff] %v17210_v37  ;;  %15878 = vtanh.f32 %v17208_v6 }
 0x919   :  { %15880 = vtanh.f32 %v17210_v37 }
 0x922   :  { %v15879_v49 = vpop.eup %15878 }
 0x923   :  { %v15881_v45 = vpop.eup %15880  ;;  %1386 = vrot.lane.b32.xlu0 %v15879_v49, %s16398_s17 }
 0x924   :  { %1411 = vrot.lane.b32.xlu1 %v15881_v45, %s16398_s17 }
 0x927   :  { %1667 = vrot.lane.b32.xlu0 %v1652_v44, %s16400_s23 }
 0x928   :  { %1653 = vrot.lane.b32.xlu1 %v1624_v22, %s16400_s23 }
 0x92c   :  { %1657 = vrot.lane.b32.xlu1 %v1632_v55, %s16400_s23 }
 0x930   :  { %1661 = vrot.lane.b32.xlu1 %v1640_v41, %s16400_s23 }
 0x934   :  { %1665 = vrot.lane.b32.xlu1 %v1648_v34, %s16400_s23 }
 0x996   :  { %v1412_v27 = vpop.permute.xlu1 %1411 }
 0x997   :  { %v17231_v57 = vmul.f32 %v17202_v3, %v1412_v27 }
 0x999   :  { %21370 = vst [vmem:[#allocation20_spill] sm:$0xff] %v17231_v57  ;;  %v1572_v38 = vcombine.high %v17231_v57, %v17231_v57  ;;  %v1579_v2 = vrot.slane %v17231_v57, %v17138_v39 }
 0x99b   :  { %v1595_v4 = vrot.slane %v1579_v2, %v17138_v39  ;;  %v1587_v17 = vcombine.high %v1579_v2, %v1579_v2  ;;  %v1586_v19 = vrot.slane %v1572_v38, %v17138_v39  ;;  %v1874_v38 = vcombine.high %v1866_v5, %v1866_v5 }
 0x99d   :  { %v1720_v28 = vrot.slane %v1595_v4, %v16734_v23  ;;  %v1609_v51 = vrot.slane %v1587_v17, %v17138_v39  ;;  %v1617_v1 = vcombine.high %v1595_v4, %v1595_v4  ;;  %v1588_v45 = vcombine.high %v1586_v19, %v1586_v19 }
 0x99e   :  { %v1602_v22 = vrot.slane %v1586_v19, %v17138_v39  ;;  %v1882_v4 = vrot.slane %v1866_v5, %v17138_v39  ;;  %v1896_v19 = vrot.slane %v1874_v38, %v17138_v39 }
 0x99f   :  { %1749 = vrot.lane.b32.xlu1 %v1720_v28, %s16400_s23  ;;  %v1724_v49 = vrot.slane %v1609_v51, %v16734_v23  ;;  %v1619_v25 = vcombine.high %v1609_v51, %v1609_v51  ;;  %v1728_v44 = vrot.slane %v1617_v1, %v16734_v23  ;;  %v1616_v55 = vrot.slane %v1588_v45, %v17138_v39 }
 0x9a0   :  { %v1736_v41 = vrot.slane %v1602_v22, %v16734_v23  ;;  %v1618_v54 = vcombine.high %v1602_v22, %v1602_v22  ;;  %v1966_v28 = vrot.slane %v17210_v37, %v17138_v39  ;;  %v2011_v51 = vrot.slane %v1882_v4, %v16734_v23 }
 0x9a1   :  { %1751 = vrot.lane.b32.xlu0 %v1724_v49, %s16400_s23  ;;  %v1732_v16 = vrot.slane %v1619_v25, %v16734_v23  ;;  %v1740_v34 = vrot.slane %v1616_v55, %v16734_v23  ;;  %v1620_v27 = vcombine.high %v1616_v55, %v1616_v55  ;;  %v1904_v1 = vcombine.high %v1882_v4, %v1882_v4 }
 0x9a2   :  { %v1744_v2 = vrot.slane %v1618_v54, %v16734_v23  ;;  %v2015_v49 = vrot.slane %v1896_v19, %v16734_v23  ;;  %v1906_v25 = vcombine.high %v1896_v19, %v1896_v19  ;;  %v1974_v45 = vcombine.high %v1966_v28, %v1966_v28 }
 0x9a3   :  { %1753 = vrot.lane.b32.xlu1 %v1728_v44, %s16400_s23  ;;  %v1748_v17 = vrot.slane %v1620_v27, %v16734_v23  ;;  %v1859_v44 = vcombine.high %v17022_v35, %v17022_v35  ;;  %v2019_v22 = vrot.slane %v1904_v1, %v16734_v23  ;;  %v1959_v4 = vcombine.high %v17210_v37, %v17210_v37 }
 0x9a4   :  { %v2023_v55 = vrot.slane %v1906_v25, %v16734_v23  ;;  %v1996_v5 = vrot.slane %v1974_v45, %v17138_v39 }
 0x9a5   :  { %1755 = vrot.lane.b32.xlu0 %v1732_v16, %s16400_s23  ;;  %v1982_v16 = vrot.slane %v1966_v28, %v17138_v39  ;;  %v1973_v1 = vrot.slane %v1959_v4, %v17138_v39 }
 0x9a6   :  { %v2111_v27 = vrot.slane %v1996_v5, %v16734_v23  ;;  %v2006_v38 = vcombine.high %v1996_v5, %v1996_v5 }
 0x9a7   :  { %1757 = vrot.lane.b32.xlu1 %v1736_v41, %s16400_s23  ;;  %v1873_v41 = vrot.slane %v1859_v44, %v17138_v39  ;;  %v2107_v54 = vrot.slane %v1982_v16, %v16734_v23 }
 0x9a8   :  { %v2119_v28 = vrot.slane %v2006_v38, %v16734_v23 }
 0x9a9   :  { %1759 = vrot.lane.b32.xlu0 %v1740_v34, %s16400_s23  ;;  %v2004_v34 = vcombine.high %v1982_v16, %v1982_v16  ;;  %v1889_v19 = vrot.slane %v1873_v41, %v17138_v39 }
 0x9ab   :  { %1761 = vrot.lane.b32.xlu1 %v1744_v2, %s16400_s23  ;;  %v1875_v2 = vcombine.high %v1873_v41, %v1873_v41  ;;  %v1905_v25 = vcombine.high %v1889_v19, %v1889_v19 }
 0x9ad   :  { %1763 = vrot.lane.b32.xlu0 %v1748_v17, %s16400_s23  ;;  %v2115_v17 = vrot.slane %v2004_v34, %v16734_v23  ;;  %v2035_v16 = vrot.slane %v1905_v25, %v16734_v23 }
 0x9af   :  { %2040 = vrot.lane.b32.xlu1 %v2011_v51, %s16400_s23  ;;  %v1903_v51 = vrot.slane %v1875_v2, %v17138_v39 }
 0x9b1   :  { %2042 = vrot.lane.b32.xlu0 %v2015_v49, %s16400_s23  ;;  %v2027_v49 = vrot.slane %v1889_v19, %v16734_v23  ;;  %v2031_v45 = vrot.slane %v1903_v51, %v16734_v23  ;;  %v1907_v44 = vcombine.high %v1903_v51, %v1903_v51  ;;  %v1654_v51 = vpop.permute.xlu1 %1653 }
 0x9b3   :  { %2044 = vrot.lane.b32.xlu1 %v2019_v22, %s16400_s23  ;;  %v1975_v22 = vcombine.high %v1973_v1, %v1973_v1  ;;  %v2039_v5 = vrot.slane %v1907_v44, %v16734_v23 }
 0x9b5   :  { %2046 = vrot.lane.b32.xlu0 %v2023_v55, %s16400_s23  ;;  %v1989_v55 = vrot.slane %v1973_v1, %v17138_v39  ;;  %v2003_v41 = vrot.slane %v1975_v22, %v17138_v39  ;;  %v1658_v25 = vpop.permute.xlu1 %1657 }
 0x9b7   :  { %2136 = vrot.lane.b32.xlu1 %v2107_v54, %s16400_s23  ;;  %v2123_v54 = vrot.slane %v1989_v55, %v16734_v23  ;;  %v2005_v34 = vcombine.high %v1989_v55, %v1989_v55  ;;  %v2007_v38 = vcombine.high %v2003_v41, %v2003_v41  ;;  %v1422_v55 = vrot.slane %v17134_v0, %v17138_v39 }
 0x9b9   :  { %2138 = vrot.lane.b32.xlu0 %v2111_v27, %s16400_s23  ;;  %v2127_v27 = vrot.slane %v2003_v41, %v16734_v23  ;;  %v2131_v2 = vrot.slane %v2005_v34, %v16734_v23  ;;  %v2135_v4 = vrot.slane %v2007_v38, %v16734_v23  ;;  %v1430_v34 = vcombine.high %v1422_v55, %v1422_v55 }
 0x9bb   :  { %2140 = vrot.lane.b32.xlu1 %v2115_v17, %s16400_s23  ;;  %v1656_v17 = vpop.permute.xlu0 %1655  ;;  %v1452_v9 = vrot.slane %v1430_v34, %v17138_v39 }
 0x9bd   :  { %2142 = vrot.lane.b32.xlu0 %v2119_v28, %s16400_s23  ;;  %v1775_v53 = vsel %vm1773_vm13, %v1452_v9, %v1656_v17 }
 0x9bf   :  { %2048 = vrot.lane.b32.xlu1 %v2027_v49, %s16400_s23  ;;  %v1660_v19 = vpop.permute.xlu0 %1659 }
 0x9c1   :  { %2050 = vrot.lane.b32.xlu0 %v2031_v45, %s16400_s23 }
 0x9c3   :  { %2052 = vrot.lane.b32.xlu1 %v2035_v16, %s16400_s23  ;;  %v17308_v28 = vpop.permute.xlu0 %1663  ;;  %v1662_v16 = vpop.permute.xlu1 %1661 }
 0x9c5   :  { %2054 = vrot.lane.b32.xlu0 %v2039_v5, %s16400_s23 }
 0x9c7   :  { %2144 = vrot.lane.b32.xlu1 %v2123_v54, %s16400_s23  ;;  %v1387_v1 = vpop.permute.xlu0 %1386 }
 0x9c8   :  { %v17311_v49 = vmul.f32 %v17202_v3, %v1387_v1  ;;  %v1415_v3 = vcombine.high %v17134_v0, %v17134_v0 }
 0x9c9   :  { %2146 = vrot.lane.b32.xlu0 %v2127_v27, %s16400_s23  ;;  %v1438_v27 = vrot.slane %v1422_v55, %v17138_v39 }
 0x9ca   :  { %v1529_v45 = vrot.slane %v17311_v49, %v17138_v39  ;;  %v1522_v44 = vcombine.high %v17311_v49, %v17311_v49 }
 0x9cb   :  { %2148 = vrot.lane.b32.xlu1 %v2131_v2, %s16400_s23  ;;  %v1666_v2 = vpop.permute.xlu1 %1665  ;;  %v1668_v48 = vpop.permute.xlu0 %1667  ;;  %v1774_v0 = vsel %vm1773_vm13, %v1438_v27, %v1654_v51  ;;  %v1460_v18 = vcombine.high %v1438_v27, %v1438_v27 }
 0x9cc   :  { %v1537_v22 = vcombine.high %v1529_v45, %v1529_v45  ;;  %v1545_v5 = vrot.slane %v1529_v45, %v17138_v39  ;;  %v1536_v41 = vrot.slane %v1522_v44, %v17138_v39 }
 0x9cd   :  { %2150 = vrot.lane.b32.xlu0 %v2135_v4, %s16400_s23  ;;  %v1776_v21 = vsel %vm1773_vm13, %v1460_v18, %v1658_v25 }
 0x9ce   :  { %v1559_v54 = vrot.slane %v1537_v22, %v17138_v39  ;;  %v1567_v38 = vcombine.high %v1545_v5, %v1545_v5  ;;  %v1680_v4 = vrot.slane %v1545_v5, %v16734_v23  ;;  %v1538_v1 = vcombine.high %v1536_v41, %v1536_v41 }
 0x9cf   :  { %v1429_v22 = vrot.slane %v1415_v3, %v17138_v39  ;;  %v1552_v10 = vrot.slane %v1536_v41, %v17138_v39 }
 0x9d0   :  { %v1684_v45 = vrot.slane %v1559_v54, %v16734_v23  ;;  %v1569_v44 = vcombine.high %v1559_v54, %v1559_v54  ;;  %v1783_v60 = vsel %vm1782_vm14, %v1774_v0, %v1680_v4  ;;  %v1688_v5 = vrot.slane %v1567_v38, %v16734_v23 }
 0x9d1   :  { %v1566_v27 = vrot.slane %v1538_v1, %v17138_v39  ;;  %v1462_v4 = vcombine.high %v1452_v9, %v1452_v9  ;;  %v1431_v0 = vcombine.high %v1429_v22, %v1429_v22  ;;  %v1445_v38 = vrot.slane %v1429_v22, %v17138_v39 }
 0x9d2   :  { %v1784_v3 = vsel %vm1782_vm14, %v1775_v53, %v1684_v45  ;;  %v1692_v51 = vrot.slane %v1569_v44, %v16734_v23  ;;  %v1696_v45 = vrot.slane %v1552_v10, %v16734_v23  ;;  %v1568_v22 = vcombine.high %v1552_v10, %v1552_v10 }
 0x9d3   :  { %v1777_v18 = vsel %vm1773_vm13, %v1462_v4, %v1660_v19  ;;  %v1778_v53 = vsel %vm1773_vm13, %v1445_v38, %v1662_v16  ;;  %v1700_v44 = vrot.slane %v1566_v27, %v16734_v23 }
 0x9d4   :  { %v1786_v9 = vsel %vm1782_vm14, %v1777_v18, %v1692_v51  ;;  %v1787_v16 = vsel %vm1782_vm14, %v1778_v53, %v1696_v45  ;;  %v1704_v4 = vrot.slane %v1568_v22, %v16734_v23 }
 0xa11   :  { %v1750_v55 = vpop.permute.xlu1 %1749 }
 0xa12   :  { %v1792_v54 = vsel %vm1791_vm15, %v1783_v60, %v1750_v55  ;;  %v1785_v60 = vsel %vm1782_vm14, %v1776_v21, %v1688_v5  ;;  %v1570_v55 = vcombine.high %v1566_v27, %v1566_v27  ;;  %v1461_v21 = vcombine.high %v1445_v38, %v1445_v38 }
 0xa13   :  { %2192 = vrot.lane.b32.xlu1 %v1792_v54, %s16397_s5  ;;  %v1752_v34 = vpop.permute.xlu0 %1751  ;;  %v1459_v54 = vrot.slane %v1431_v0, %v17138_v39 }
 0xa14   :  { %v1793_v17 = vsel %vm1791_vm15, %v1784_v3, %v1752_v34  ;;  %v1780_v34 = vsel %vm1773_vm13, %v1461_v21, %v1666_v2  ;;  %v1708_v0 = vrot.slane %v1570_v55, %v16734_v23 }
 0xa15   :  { %v1754_v41 = vpop.permute.xlu1 %1753  ;;  %2194 = vrot.lane.b32.xlu0 %v1793_v17, %s16397_s5  ;;  %v1779_v3 = vsel %vm1773_vm13, %v1459_v54, %v17308_v28  ;;  %v1463_v38 = vcombine.high %v1459_v54, %v1459_v54  ;;  %v1789_v28 = vsel %vm1782_vm14, %v1780_v34, %v1704_v4  ;;  %v1808_v34 = vrot.slane %v17020_v33, %v17138_v39 }
 0xa16   :  { %v1794_v25 = vsel %vm1791_vm15, %v1785_v60, %v1754_v41  ;;  %v1788_v10 = vsel %vm1782_vm14, %v1779_v3, %v1700_v44  ;;  %v1916_v3 = vrot.slane %v17208_v6, %v17138_v39 }
 0xa17   :  { %2196 = vrot.lane.b32.xlu1 %v1794_v25, %s16397_s5  ;;  %v1756_v1 = vpop.permute.xlu0 %1755  ;;  %v1781_v2 = vsel %vm1773_vm13, %v1463_v38, %v1668_v48  ;;  %v1816_v4 = vcombine.high %v1808_v34, %v1808_v34 }
 0xa18   :  { %v1795_v19 = vsel %vm1791_vm15, %v1786_v9, %v1756_v1  ;;  %v1790_v18 = vsel %vm1782_vm14, %v1781_v2, %v1708_v0  ;;  %v1801_v0 = vcombine.high %v17020_v33, %v17020_v33  ;;  %v1824_v2 = vrot.slane %v1808_v34, %v17138_v39 }
 0xa19   :  { %v1758_v5 = vpop.permute.xlu1 %1757  ;;  %2198 = vrot.lane.b32.xlu0 %v1795_v19, %s16397_s5 }
 0xa1a   :  { %v1796_v51 = vsel %vm1791_vm15, %v1787_v16, %v1758_v5  ;;  %v1846_v20 = vcombine.high %v1824_v2, %v1824_v2 }
 0xa1b   :  { %2200 = vrot.lane.b32.xlu1 %v1796_v51, %s16397_s5  ;;  %v1760_v27 = vpop.permute.xlu0 %1759 }
 0xa1c   :  { %v1797_v17 = vsel %vm1791_vm15, %v1788_v10, %v1760_v27  ;;  %v1909_v10 = vcombine.high %v17208_v6, %v17208_v6  ;;  %v1924_v27 = vcombine.high %v1916_v3, %v1916_v3 }
 0xa1d   :  { %v1762_v41 = vpop.permute.xlu1 %1761  ;;  %2202 = vrot.lane.b32.xlu0 %v1797_v17, %s16397_s5  ;;  %v1932_v17 = vrot.slane %v1916_v3, %v17138_v39 }
 0xa1e   :  { %v1798_v60 = vsel %vm1791_vm15, %v1789_v28, %v1762_v41  ;;  %v1946_v41 = vrot.slane %v1924_v27, %v17138_v39  ;;  %v1923_v28 = vrot.slane %v1909_v10, %v17138_v39 }
 0xa1f   :  { %2204 = vrot.lane.b32.xlu1 %v1798_v60, %s16397_s5  ;;  %v1764_v53 = vpop.permute.xlu0 %1763  ;;  %v1838_v60 = vrot.slane %v1816_v4, %v17138_v39  ;;  %v2067_v3 = vrot.slane %v1932_v17, %v16734_v23 }
 0xa20   :  { %v1799_v25 = vsel %vm1791_vm15, %v1790_v18, %v1764_v53  ;;  %v1815_v18 = vrot.slane %v1801_v0, %v17138_v39  ;;  %v2071_v10 = vrot.slane %v1946_v41, %v16734_v23  ;;  %v1956_v27 = vcombine.high %v1946_v41, %v1946_v41 }
 0xa21   :  { %2206 = vrot.lane.b32.xlu0 %v1799_v25, %s16397_s5  ;;  %v2041_v45 = vpop.permute.xlu1 %2040  ;;  %v1954_v25 = vcombine.high %v1932_v17, %v1932_v17  ;;  %v1925_v34 = vcombine.high %v1923_v28, %v1923_v28  ;;  %v1848_v4 = vcombine.high %v1838_v60, %v1838_v60 }
 0xa22   :  { %v2160_v43 = vsel %vm1773_vm13, %v1824_v2, %v2041_v45  ;;  %v1817_v14 = vcombine.high %v1815_v18, %v1815_v18 }
 0xa23   :  { %v2043_v9 = vpop.permute.xlu0 %2042  ;;  %v2168_v15 = vsel %vm1782_vm14, %v2160_v43, %v2067_v3  ;;  %v2075_v45 = vrot.slane %v1954_v25, %v16734_v23  ;;  %v1953_v25 = vrot.slane %v1925_v34, %v17138_v39 }
 0xa24   :  { %v2161_v6 = vsel %vm1773_vm13, %v1838_v60, %v2043_v9  ;;  %v1939_v9 = vrot.slane %v1923_v28, %v17138_v39 }
 0xa25   :  { %v2045_v1 = vpop.permute.xlu1 %2044  ;;  %v2169_v57 = vsel %vm1782_vm14, %v2161_v6, %v2071_v10  ;;  %v2079_v6 = vrot.slane %v1956_v27, %v16734_v23 }
 0xa26   :  { %v2162_v17 = vsel %vm1773_vm13, %v1846_v20, %v2045_v1  ;;  %v1831_v20 = vrot.slane %v1815_v18, %v17138_v39  ;;  %v1955_v10 = vcombine.high %v1939_v9, %v1939_v9 }
 0xa27   :  { %v2047_v44 = vpop.permute.xlu0 %2046 }
 0xa28   :  { %v2163_v41 = vsel %vm1773_vm13, %v1848_v4, %v2047_v44  ;;  %v2170_v44 = vsel %vm1782_vm14, %v2162_v17, %v2075_v45  ;;  %v1957_v45 = vcombine.high %v1953_v25, %v1953_v25 }
 0xa29   :  { %v2137_v22 = vpop.permute.xlu1 %2136 }
 0xa2a   :  { %v2176_v2 = vsel %vm1791_vm15, %v2168_v15, %v2137_v22  ;;  %v1845_v15 = vrot.slane %v1817_v14, %v17138_v39  ;;  %v2171_v22 = vsel %vm1782_vm14, %v2163_v41, %v2079_v6 }
 0xa2b   :  { %v2139_v55 = vpop.permute.xlu0 %2138 }
 0xa2c   :  { %v2177_v60 = vsel %vm1791_vm15, %v2169_v57, %v2139_v55  ;;  %v2083_v55 = vrot.slane %v1939_v9, %v16734_v23 }
 0xa2d   :  { %v2141_v54 = vpop.permute.xlu1 %2140 }
 0xa2e   :  { %v2178_v27 = vsel %vm1791_vm15, %v2170_v44, %v2141_v54  ;;  %v1847_v54 = vcombine.high %v1831_v20, %v1831_v20 }
 0xa2f   :  { %v2143_v21 = vpop.permute.xlu0 %2142 }
 0xa30   :  { %v2179_v18 = vsel %vm1791_vm15, %v2171_v22, %v2143_v21  ;;  %v1849_v21 = vcombine.high %v1845_v15, %v1845_v15 }
 0xa31   :  { %v2049_v48 = vpop.permute.xlu1 %2048 }
 0xa32   :  { %v2164_v14 = vsel %vm1773_vm13, %v1831_v20, %v2049_v48  ;;  %v2095_v20 = vrot.slane %v1957_v45, %v16734_v23 }
 0xa33   :  { %v2051_v19 = vpop.permute.xlu0 %2050 }
 0xa34   :  { %v2165_v34 = vsel %vm1773_vm13, %v1845_v15, %v2051_v19  ;;  %v2172_v19 = vsel %vm1782_vm14, %v2164_v14, %v2083_v55 }
 0xa35   :  { %v17372_v5 = vpop.permute.xlu1 %2052 }
 0xa37   :  { %v17374_v16 = vpop.permute.xlu0 %2054 }
 0xa39   :  { %v17380_v51 = vpop.permute.xlu1 %2144 }
 0xa3a   :  { %v2180_v6 = vsel %vm1791_vm15, %v2172_v19, %v17380_v51 }
 0xa3b   :  { %v17386_v38 = vpop.permute.xlu0 %2146 }
 0xa3d   :  { %v17394_v53 = vpop.permute.xlu1 %2148 }
 0xa3f   :  { %v17398_v37 = vpop.permute.xlu0 %2150 }
 0xa85   :  { %v2193_v0 = vpop.permute.xlu1 %2192 }
 0xa86   :  { %14772 = vst.msk [vmem:[%s21219_s16] sm:$0xf] %vm14771_vm12, %v2193_v0  ;;  %v2216_v28 = vsel %vm277_vm1, %v2193_v0, %v2176_v2  ;;  %v2087_v0 = vrot.slane %v1953_v25, %v16734_v23 }
 0xa87   :  { %v2195_v43 = vpop.permute.xlu0 %2194 }
 0xa88   :  { %v2217_v3 = vsel %vm277_vm1, %v2195_v43, %v2177_v60  ;;  %14773 = vst.msk [vmem:[%s21219_s16 + $0x4] sm:$0xf] %vm14771_vm12, %v2195_v43  ;;  %v2173_v2 = vsel %vm1782_vm14, %v2165_v34, %v2087_v0  ;;  %v2166_v60 = vsel %vm1773_vm13, %v1847_v54, %v17372_v5  ;;  %v2167_v43 = vsel %vm1773_vm13, %v1849_v21, %v17374_v16 }
 0xa89   :  { %v2232_v1 = vcombine.low %v2216_v28, %v2217_v3  ;;  %v2197_v57 = vpop.permute.xlu1 %2196  ;;  %v2181_v25 = vsel %vm1791_vm15, %v2173_v2, %v17386_v38  ;;  %v2091_v3 = vrot.slane %v1955_v10, %v16734_v23 }
 0xa8a   :  { %14774 = vst.msk [vmem:[%s21219_s16 + $0x8] sm:$0xf] %vm14771_vm12, %v2197_v57  ;;  %v2218_v9 = vsel %vm277_vm1, %v2197_v57, %v2178_v27 }
 0xa8b   :  { %15236 = vmatprep.mubr.msk.f32.mxu1 %vm298_vm2, %v2232_v1  ;;  %v2199_v4 = vpop.permute.xlu0 %2198  ;;  %v2174_v38 = vsel %vm1782_vm14, %v2166_v60, %v2091_v3  ;;  %v2175_v1 = vsel %vm1782_vm14, %v2167_v43, %v2095_v20 }
 0xa8c   :  { %v2219_v17 = vsel %vm277_vm1, %v2199_v4, %v2179_v18  ;;  %14775 = vst.msk [vmem:[%s21219_s16 + $0xc] sm:$0xf] %vm14771_vm12, %v2199_v4  ;;  %v2182_v57 = vsel %vm1791_vm15, %v2174_v38, %v17394_v53  ;;  %v2183_v44 = vsel %vm1791_vm15, %v2175_v1, %v17398_v37 }
 0xa8d   :  { %v2233_v48 = vcombine.low %v2218_v9, %v2219_v17  ;;  %v2201_v41 = vpop.permute.xlu1 %2200 }
 0xa8e   :  { %14776 = vst.msk [vmem:[%s21219_s16 + $0x10] sm:$0xf] %vm14771_vm12, %v2201_v41  ;;  %v2220_v15 = vsel %vm277_vm1, %v2201_v41, %v2180_v6 }
 0xa8f   :  { %15237 = vmatmul.mubr.msk.f32.vlgmr.msra.gmra.mrb[10].mxu1 %vm298_vm2, %v2233_v48  ;;  %v2203_v28 = vpop.permute.xlu0 %2202 }
 0xa90   :  { %v2221_v5 = vsel %vm277_vm1, %v2203_v28, %v2181_v25  ;;  %14777 = vst.msk [vmem:[%s21219_s16 + $0x14] sm:$0xf] %vm14771_vm12, %v2203_v28  ;;  %15634 = vmatpush3.bf16.msra.mxu1 %v17077_v58 }
 0xa91   :  { %v2234_v16 = vcombine.low %v2220_v15, %v2221_v5  ;;  %v2205_v51 = vpop.permute.xlu1 %2204  ;;  %15635 = vmatprep.subr.bf16.mxu1 %v21352_v50 }
 0xa92   :  { %14778 = vst.msk [vmem:[%s21219_s16 + $0x18] sm:$0xf] %vm14771_vm12, %v2205_v51  ;;  %v2222_v55 = vsel %vm277_vm1, %v2205_v51, %v2182_v57 }
 0xa93   :  { %15239 = vmatprep.mubr.msk.f32.mxu1 %vm298_vm2, %v2234_v16  ;;  %v2207_v22 = vpop.permute.xlu0 %2206  ;;  %v16367_v16 = vld [vmem:[%s21211_s7] ss:$0 sm:$0xff] }
 0xa94   :  { %v2223_v10 = vsel %vm277_vm1, %v2207_v22, %v2183_v44  ;;  %14779 = vst.msk [vmem:[%s21219_s16 + $0x1c] sm:$0xf] %vm14771_vm12, %v2207_v22  ;;  %15637 = vmatpush3.bf16.msra.mxu1 %v17097_v52 }
 0xa95   :  { %v2235_v27 = vcombine.low %v2222_v55, %v2223_v10  ;;  %15645 = vmatprep.subr.bf16.mxu1 %v16546_v12 }
 0xa97   :  { %15240 = vmatmul.mubr.msk.f32.gmra.mrb[12].mxu1 %vm298_vm2, %v2235_v27 }
 0xa98   :  { %15266 = vmatprep.mubr.msk.f32.mxu1 %vm16394_vm11, %v21351_v56 }
 0xb62   :  { %v15238_v37 = vpop.f32.mrb[10].mxu1 }
 0xb63   :  { %v2334_v53 = vcombine.high %v15238_v37, %v15238_v37  ;;  %v2343_v18 = vcombine.low %v15238_v37, %v15238_v37  ;;  %v2310_v14 = vpop.f32.mrb[11].mxu1 }
 0xb64   :  { %v2333_v34 = vcombine.high %v2310_v14, %v2310_v14  ;;  %v2341_v4 = vcombine.low %v2310_v14, %v2310_v14 }
 0xb65   :  { %v2359_v0 = vsel %vm420_vm3, %v15238_v37, %v2343_v18  ;;  %v2368_v45 = vadd.f32 %v2334_v53, %v16663_v62 }
 0xb66   :  { %v2357_v9 = vsel %vm420_vm3, %v2310_v14, %v2341_v4  ;;  %v2366_v17 = vadd.f32 %v2333_v34, %v16665_v63  ;;  %v2367_v54 = vadd.f32 %v2359_v0, %v16667_v7 }
 0xb67   :  { %15882 = vtanh.f32 %v2368_v45  ;;  %v2365_v21 = vadd.f32 %v2357_v9, %v16669_v8 }
 0xb69   :  { %15884 = vtanh.f32 %v2365_v21 }
 0xb6a   :  { %15886 = vtanh.f32 %v2366_v17  ;;  %v15241_v48 = vpop.f32.mrb[12].mxu1 }
 0xb6b   :  { %15888 = vtanh.f32 %v2367_v54  ;;  %v2336_v41 = vcombine.high %v15241_v48, %v15241_v48  ;;  %v2347_v19 = vcombine.low %v15241_v48, %v15241_v48  ;;  %v2320_v2 = vpop.f32.mrb[13].mxu1 }
 0xb6c   :  { %v2335_v60 = vcombine.high %v2320_v2, %v2320_v2  ;;  %v2345_v43 = vcombine.low %v2320_v2, %v2320_v2 }
 0xb6d   :  { %v2363_v6 = vsel %vm420_vm3, %v15241_v48, %v2347_v19  ;;  %v2372_v20 = vadd.f32 %v2336_v41, %v16684_v40 }
 0xb6e   :  { %v2371_v25 = vadd.f32 %v2363_v6, %v16679_v30  ;;  %v2361_v28 = vsel %vm420_vm3, %v2320_v2, %v2345_v43  ;;  %v2370_v3 = vadd.f32 %v2335_v60, %v16677_v29 }
 0xb6f   :  { %v2369_v15 = vadd.f32 %v2361_v28, %v16681_v36 }
 0xb70   :  { %15890 = vtanh.f32 %v2371_v25 }
 0xb71   :  { %v15883_v5 = vpop.eup %15882  ;;  %15892 = vtanh.f32 %v2369_v15 }
 0xb72   :  { %15894 = vtanh.f32 %v2370_v3  ;;  %v2384_v51 = vmul.f32 %v16367_v16, %v15883_v5 }
 0xb73   :  { %v15885_v38 = vpop.eup %15884  ;;  %15896 = vtanh.f32 %v2372_v20 }
 0xb74   :  { %v15887_v1 = vpop.eup %15886  ;;  %v2398_v57 = vsel %vm78_vm0, %v2384_v51, 0.0  ;;  %v2381_v44 = vmul.f32 %v16367_v16, %v15885_v38 }
 0xb75   :  { %v15889_v22 = vpop.eup %15888  ;;  %2399 = vadd.xlane.f32.xlu0 %v2398_v57  ;;  %v2382_v55 = vmul.f32 %v16367_v16, %v15887_v1 }
 0xb76   :  { %v2389_v10 = vsel %vm78_vm0, %v2381_v44, 0.0  ;;  %v2383_v37 = vmul.f32 %v16367_v16, %v15889_v22 }
 0xb77   :  { %2390 = vadd.xlane.f32.xlu1 %v2389_v10  ;;  %v2392_v27 = vsel %vm78_vm0, %v2382_v55, 0.0 }
 0xb78   :  { %v2395_v34 = vsel %vm78_vm0, %v2383_v37, 0.0 }
 0xb79   :  { %2393 = vadd.xlane.f32.xlu0 %v2392_v27 }
 0xb7a   :  { %v15891_v53 = vpop.eup %15890 }
 0xb7b   :  { %v15893_v18 = vpop.eup %15892  ;;  %v2387_v17 = vmul.f32 %v16367_v16, %v15891_v53 }
 0xb7c   :  { %v15895_v14 = vpop.eup %15894  ;;  %v2385_v4 = vmul.f32 %v16367_v16, %v15893_v18 }
 0xb7d   :  { %v15897_v0 = vpop.eup %15896  ;;  %2396 = vadd.xlane.f32.xlu0 %v2395_v34  ;;  %v2386_v45 = vmul.f32 %v16367_v16, %v15895_v14  ;;  %v2407_v48 = vsel %vm78_vm0, %v2387_v17, 0.0 }
 0xb7e   :  { %v2401_v9 = vsel %vm78_vm0, %v2385_v4, 0.0  ;;  %v2388_v21 = vmul.f32 %v16367_v16, %v15897_v0 }
 0xb7f   :  { %2402 = vadd.xlane.f32.xlu1 %v2401_v9  ;;  %v2404_v54 = vsel %vm78_vm0, %v2386_v45, 0.0 }
 0xb80   :  { %v2410_v41 = vsel %vm78_vm0, %v2388_v21, 0.0 }
 0xb81   :  { %2405 = vadd.xlane.f32.xlu0 %v2404_v54 }
 0xb83   :  { %2408 = vadd.xlane.f32.xlu1 %v2407_v48 }
 0xb85   :  { %2411 = vadd.xlane.f32.xlu0 %v2410_v41 }
 0xc02   :  { %v2400_v19 = vpop.xlane.xlu0 %2399 }
 0xc03   :  { %v2416_v25 = vadd.f32 %v2400_v19, %v16707_v47 }
 0xc04   :  { %v2391_v2 = vpop.xlane.xlu1 %2390 }
 0xc05   :  { %v2413_v6 = vadd.f32 %v2391_v2, %v16707_v47  ;;  %v2444_v38 = vrot.slane %v2416_v25, %v16705_v46 }
 0xc06   :  { %v2394_v60 = vpop.xlane.xlu0 %2393 }
 0xc07   :  { %v2414_v43 = vadd.f32 %v2394_v60, %v16707_v47  ;;  %v2432_v15 = vrot.slane %v2413_v6, %v16705_v46 }
 0xc09   :  { %v2436_v28 = vrot.slane %v2414_v43, %v16705_v46 }
 0xc0a   :  { %v2397_v3 = vpop.xlane.xlu0 %2396 }
 0xc0b   :  { %v2415_v20 = vadd.f32 %v2397_v3, %v16707_v47  ;;  %v2461_v1 = vsel %vm542_vm4, %v2436_v28, %v2432_v15 }
 0xc0c   :  { %v2403_v5 = vpop.xlane.xlu1 %2402 }
 0xc0d   :  { %v2440_v16 = vrot.slane %v2415_v20, %v16705_v46  ;;  %v2417_v51 = vadd.f32 %v2403_v5, %v16707_v47 }
 0xc0e   :  { %v2406_v57 = vpop.xlane.xlu0 %2405 }
 0xc0f   :  { %v2462_v44 = vsel %vm544_vm5, %v2440_v16, %v2461_v1  ;;  %v2448_v22 = vrot.slane %v2417_v51, %v16705_v46  ;;  %v2418_v55 = vadd.f32 %v2406_v57, %v16707_v47 }
 0xc10   :  { %v2463_v10 = vsel %vm546_vm6, %v2444_v38, %v2462_v44  ;;  %v2409_v27 = vpop.xlane.xlu1 %2408 }
 0xc11   :  { %v2464_v37 = vsel %vm548_vm7, %v2448_v22, %v2463_v10  ;;  %v2452_v53 = vrot.slane %v2418_v55, %v16705_v46  ;;  %v2419_v18 = vadd.f32 %v2409_v27, %v16707_v47 }
 0xc12   :  { %v2412_v14 = vpop.xlane.xlu0 %2411 }
 0xc13   :  { %v2456_v34 = vrot.slane %v2419_v18, %v16705_v46  ;;  %v2420_v4 = vadd.f32 %v2412_v14, %v16707_v47  ;;  %v2465_v0 = vsel %vm550_vm8, %v2452_v53, %v2464_v37  ;;  %v21371_v53 = vld [vmem:[#allocation5_spill] sm:$0xff] }
 0xc15   :  { %v2460_v45 = vrot.slane %v2420_v4, %v16705_v46  ;;  %v2466_v9 = vsel %vm552_vm9, %v2456_v34, %v2465_v0 }
 0xc17   :  { %v2467_v17 = vsel %vm554_vm10, %v2460_v45, %v2466_v9 }
 0xc18   :  { %v2469_v54 = vsel %vm78_vm0, %v2467_v17, -inf }
 0xc19   :  { %2470 = vmax.xlane.f32.xlu1 %v2469_v54  ;;  %v55_v54 = vld [vmem:[%s21212_s0 + $0x8] sm:$0xff] }
 0xca6   :  { %v2471_v21 = vpop.xlane.xlu1 %2470 }
 0xca7   :  { %v2476_v48 = vrot.slane %v2471_v21, %v16734_v23  ;;  %v2480_v41 = vrot.slane %v2471_v21, %v16737_v24  ;;  %v2484_v19 = vrot.slane %v2471_v21, %v16740_v31  ;;  %v2492_v2 = vrot.slane %v2471_v21, %v16749_v42 }
 0xca8   :  { %v2500_v60 = vrot.slane %v2471_v21, %v16757_v13  ;;  %v2488_v15 = vrot.slane %v2471_v21, %v16743_v32  ;;  %v2496_v22 = vrot.slane %v2471_v21, %v16753_v61  ;;  %v2504_v14 = vrot.slane %v2471_v21, %v21371_v53 }
 0xca9   :  { %v2513_v28 = vsub.f32 %v2413_v6, %v2476_v48  ;;  %v2514_v3 = vsub.f32 %v2414_v43, %v2480_v41  ;;  %v2515_v5 = vsub.f32 %v2415_v20, %v2484_v19  ;;  %v2517_v16 = vsub.f32 %v2417_v51, %v2492_v2 }
 0xcaa   :  { %v2519_v57 = vsub.f32 %v2419_v18, %v2500_v60  ;;  %v2516_v10 = vsub.f32 %v2416_v25, %v2488_v15  ;;  %v2518_v6 = vsub.f32 %v2418_v55, %v2496_v22  ;;  %v2520_v20 = vsub.f32 %v2420_v4, %v2504_v14 }
 0xcab   :  { %v2521_v38 = vmul.f32 1.442695, %v2513_v28  ;;  %v2523_v1 = vmul.f32 1.442695, %v2514_v3  ;;  %v2529_v44 = vmul.f32 1.442695, %v2517_v16  ;;  %v2673_v21 = vrot.slane %v55_v54, %v16734_v23 }
 0xcac   :  { %v2525_v27 = vmul.f32 1.442695, %v2515_v5  ;;  %v2533_v37 = vmul.f32 1.442695, %v2519_v57  ;;  %v2527_v43 = vmul.f32 1.442695, %v2516_v10  ;;  %v2680_v48 = vrot.slane %v55_v54, %v16737_v24 }
 0xcad   :  { %15898 = vpow2.f32 %v2521_v38  ;;  %v2531_v51 = vmul.f32 1.442695, %v2518_v6  ;;  %v2535_v25 = vmul.f32 1.442695, %v2520_v20  ;;  %v2687_v41 = vrot.slane %v55_v54, %v16740_v31 }
 0xcae   :  { %15900 = vpow2.f32 %v2523_v1  ;;  %v2694_v19 = vrot.slane %v55_v54, %v16743_v32  ;;  %v2701_v2 = vrot.slane %v55_v54, %v16749_v42  ;;  %v2708_v60 = vrot.slane %v55_v54, %v16753_v61 }
 0xcaf   :  { %15902 = vpow2.f32 %v2529_v44  ;;  %v2715_v28 = vrot.slane %v55_v54, %v16757_v13 }
 0xcb0   :  { %15904 = vpow2.f32 %v2525_v27 }
 0xcb1   :  { %15906 = vpow2.f32 %v2533_v37 }
 0xcb2   :  { %15908 = vpow2.f32 %v2527_v43 }
 0xcb3   :  { %15910 = vpow2.f32 %v2531_v51 }
 0xcb4   :  { %15912 = vpow2.f32 %v2535_v25 }
 0xcb7   :  { %v17545_v34 = vpop.eup %15898 }
 0xcb8   :  { %v17547_v18 = vpop.eup %15900  ;;  %2546 = vperm.xlu0 %15813, %v17545_v34  }
 0xcb9   :  { %2549 = vperm.xlu1 %15812, %v17547_v18   ;;  %v17551_v0 = vpop.eup %15902 }
 0xcba   :  { %v17553_v45 = vpop.eup %15904 }
 0xcbb   :  { %v17557_v55 = vpop.eup %15906 }
 0xcbc   :  { %2558 = vperm.xlu0 %15813, %v17551_v0   ;;  %v17559_v4 = vpop.eup %15908 }
 0xcbd   :  { %2552 = vperm.xlu1 %15812, %v17553_v45   ;;  %v17563_v9 = vpop.eup %15910 }
 0xcbe   :  { %v17566_v17 = vpop.eup %15912 }
 0xcc0   :  { %2564 = vperm.xlu0 %15813, %v17557_v55  }
 0xcc1   :  { %2555 = vperm.xlu1 %15812, %v17559_v4  }
 0xcc5   :  { %2561 = vperm.xlu1 %15812, %v17563_v9  }
 0xcc9   :  { %2567 = vperm.xlu1 %15812, %v17566_v17  }
 0xccd   :  { %2675 = vbcast.lane.b32.xlu1 %v2673_v21, 256 }
 0xcd1   :  { %2682 = vbcast.lane.b32.xlu1 %v2680_v48, 256 }
 0xcd5   :  { %2689 = vbcast.lane.b32.xlu1 %v2687_v41, 256 }
 0xcd9   :  { %2696 = vbcast.lane.b32.xlu1 %v2694_v19, 256 }
 0xcdd   :  { %2703 = vbcast.lane.b32.xlu1 %v2701_v2, 256 }
 0xce1   :  { %2710 = vbcast.lane.b32.xlu1 %v2708_v60, 256 }
 0xce5   :  { %2717 = vbcast.lane.b32.xlu1 %v2715_v28, 256  ;;  %v2722_v28 = vrot.slane %v55_v54, %v21371_v53 }
 0xd37   :  { %v2547_v15 = vpop.permute.xlu0 %2546 }
 0xd38   :  { %v2550_v3 = vpop.permute.xlu1 %2549  ;;  %v2572_v38 = vrot.slane %v2547_v15, %v16705_v46 }
 0xd39   :  { %v2576_v16 = vrot.slane %v2550_v3, %v16705_v46 }
 0xd3b   :  { %v2559_v57 = vpop.permute.xlu0 %2558  ;;  %v2601_v22 = vsel %vm542_vm4, %v2576_v16, %v2572_v38 }
 0xd3c   :  { %v2553_v5 = vpop.permute.xlu1 %2552  ;;  %v2588_v14 = vrot.slane %v2559_v57, %v16705_v46 }
 0xd3d   :  { %v2580_v1 = vrot.slane %v2553_v5, %v16705_v46 }
 0xd3f   :  { %v2602_v27 = vsel %vm544_vm5, %v2580_v1, %v2601_v22  ;;  %v2565_v43 = vpop.permute.xlu0 %2564 }
 0xd40   :  { %v2556_v44 = vpop.permute.xlu1 %2555  ;;  %v2596_v21 = vrot.slane %v2565_v43, %v16705_v46 }
 0xd41   :  { %v2584_v10 = vrot.slane %v2556_v44, %v16705_v46 }
 0xd43   :  { %v2603_v37 = vsel %vm546_vm6, %v2584_v10, %v2602_v27 }
 0xd44   :  { %v2562_v6 = vpop.permute.xlu1 %2561  ;;  %v2604_v51 = vsel %vm548_vm7, %v2588_v14, %v2603_v37 }
 0xd45   :  { %v2592_v20 = vrot.slane %v2562_v6, %v16705_v46 }
 0xd47   :  { %v2605_v25 = vsel %vm550_vm8, %v2592_v20, %v2604_v51 }
 0xd48   :  { %v2568_v48 = vpop.permute.xlu1 %2567  ;;  %v2606_v19 = vsel %vm552_vm9, %v2596_v21, %v2605_v25 }
 0xd49   :  { %v2600_v41 = vrot.slane %v2568_v48, %v16705_v46 }
 0xd4b   :  { %v2607_v2 = vsel %vm554_vm10, %v2600_v41, %v2606_v19 }
 0xd4c   :  { %v2609_v60 = vsel %vm78_vm0, %v2607_v2, 0.0  ;;  %v2676_v3 = vpop.permute.xlu1 %2675 }
 0xd4d   :  { %2610 = vadd.xlane.f32.xlu0 %v2609_v60 }
 0xd50   :  { %v2683_v15 = vpop.permute.xlu1 %2682 }
 0xd54   :  { %v2690_v5 = vpop.permute.xlu1 %2689 }
 0xd58   :  { %v2697_v16 = vpop.permute.xlu1 %2696 }
 0xd5c   :  { %v2704_v57 = vpop.permute.xlu1 %2703 }
 0xd60   :  { %v2711_v27 = vpop.permute.xlu1 %2710 }
 0xd63   :  { %2724 = vbcast.lane.b32.xlu0 %v2722_v28, 256 }
 0xd64   :  { %v2718_v6 = vpop.permute.xlu1 %2717 }
 0xdda   :  { %v2611_v38 = vpop.xlane.xlu0 %2610 }
 0xddb   :  { %v2640_v1 = vrot.slane %v2611_v38, %v16757_v13  ;;  %v2616_v44 = vrot.slane %v2611_v38, %v16734_v23  ;;  %v2620_v22 = vrot.slane %v2611_v38, %v16737_v24  ;;  %v2624_v10 = vrot.slane %v2611_v38, %v16740_v31 }
 0xddc   :  { %v2628_v54 = vrot.slane %v2611_v38, %v16743_v32  ;;  %v2632_v14 = vrot.slane %v2611_v38, %v16749_v42  ;;  %v2636_v48 = vrot.slane %v2611_v38, %v16753_v61 }
 0xddd   :  { %15914 = vrcp.f32 %v2640_v1 }
 0xdde   :  { %15916 = vrcp.f32 %v2616_v44 }
 0xddf   :  { %15918 = vrcp.f32 %v2620_v22 }
 0xde0   :  { %15920 = vrcp.f32 %v2624_v10 }
 0xde1   :  { %15922 = vrcp.f32 %v2628_v54  ;;  %v2725_v54 = vpop.permute.xlu0 %2724 }
 0xde2   :  { %15924 = vrcp.f32 %v2632_v14 }
 0xde3   :  { %15926 = vrcp.f32 %v2636_v48 }
 0xde7   :  { %v15915_v37 = vpop.eup %15914 }
 0xde8   :  { %v17603_v43 = vmul.f32 %v15915_v37, %v17557_v55  ;;  %v15917_v20 = vpop.eup %15916  ;;  %v2644_v55 = vrot.slane %v2611_v38, %v21371_v53 }
 0xde9   :  { %v15919_v51 = vpop.eup %15918  ;;  %v17607_v21 = vmul.f32 %v15917_v20, %v17545_v34 }
 0xdea   :  { %21372 = vst [vmem:[#allocation5_spill] sm:$0xff] %v17603_v43  ;;  %v2740_v25 = vmul.f32 %v2718_v6, %v17603_v43  ;;  %v17612_v19 = vmul.f32 %v15919_v51, %v17547_v18  ;;  %v15921_v2 = vpop.eup %15920  ;;  %15928 = vrcp.f32 %v2644_v55 }
 0xdeb   :  { %21373 = vst [vmem:[#allocation21_spill] sm:$0xff] %v17607_v21  ;;  %v2734_v41 = vmul.f32 %v2676_v3, %v17607_v21  ;;  %v17617_v28 = vmul.f32 %v15921_v2, %v17553_v45  ;;  %v15923_v34 = vpop.eup %15922 }
 0xdec   :  { %2839 = vperm.xlu0 %15813, %v2740_v25   ;;  %21374 = vst [vmem:[#allocation22_spill] sm:$0xff] %v17612_v19  ;;  %v2735_v60 = vmul.f32 %v2683_v15, %v17612_v19  ;;  %v17620_v1 = vmul.f32 %v15923_v34, %v17559_v4  ;;  %v15925_v18 = vpop.eup %15924 }
 0xded   :  { %2821 = vperm.xlu1 %15812, %v2734_v41   ;;  %21375 = vst [vmem:[#allocation23_spill] sm:$0xff] %v17617_v28  ;;  %v2736_v3 = vmul.f32 %v2690_v5, %v17617_v28  ;;  %v17625_v22 = vmul.f32 %v15925_v18, %v17551_v0  ;;  %v15927_v38 = vpop.eup %15926 }
 0xdee   :  { %21376 = vst [vmem:[#allocation24_spill] sm:$0xff] %v17620_v1  ;;  %v2737_v44 = vmul.f32 %v2697_v16, %v17620_v1  ;;  %v17629_v15 = vmul.f32 %v15927_v38, %v17563_v9 }
 0xdef   :  { %21377 = vst [vmem:[#allocation25_spill] sm:$0xff] %v17625_v22  ;;  %v2738_v45 = vmul.f32 %v2704_v57, %v17625_v22 }
 0xdf0   :  { %21378 = vst [vmem:[#allocation26_spill] sm:$0xff] %v17629_v15  ;;  %v2739_v4 = vmul.f32 %v2711_v27, %v17629_v15 }
 0xdf1   :  { %2824 = vperm.xlu1 %15812, %v2735_v60  }
 0xdf4   :  { %v15929_v10 = vpop.eup %15928 }
 0xdf5   :  { %2827 = vperm.xlu1 %15812, %v2736_v3   ;;  %v17633_v5 = vmul.f32 %v15929_v10, %v17566_v17 }
 0xdf7   :  { %21379 = vst [vmem:[#allocation27_spill] sm:$0xff] %v17633_v5  ;;  %v2741_v16 = vmul.f32 %v2725_v54, %v17633_v5 }
 0xdf9   :  { %2830 = vperm.xlu1 %15812, %v2737_v44  }
 0xdfd   :  { %2833 = vperm.xlu1 %15812, %v2738_v45  }
 0xe01   :  { %2836 = vperm.xlu1 %15812, %v2739_v4  }
 0xe05   :  { %2842 = vperm.xlu1 %15812, %v2741_v16  }
 0xe6b   :  { %v2840_v2 = vpop.permute.xlu0 %2839 }
 0xe6c   :  { %v2822_v0 = vpop.permute.xlu1 %2821  ;;  %v2871_v18 = vrot.slane %v2840_v2, %v16705_v46 }
 0xe6d   :  { %v2847_v51 = vrot.slane %v2822_v0, %v16705_v46  ;;  %v16368_v0 = vld [vmem:[%s21215_s11] ss:$0 sm:$0xff] }
 0xe70   :  { %v2825_v37 = vpop.permute.xlu1 %2824 }
 0xe71   :  { %v2851_v57 = vrot.slane %v2825_v37, %v16705_v46 }
 0xe73   :  { %v2876_v25 = vsel %vm542_vm4, %v2851_v57, %v2847_v51 }
 0xe74   :  { %v2828_v14 = vpop.permute.xlu1 %2827 }
 0xe75   :  { %v2855_v9 = vrot.slane %v2828_v14, %v16705_v46 }
 0xe77   :  { %v2877_v48 = vsel %vm544_vm5, %v2855_v9, %v2876_v25 }
 0xe78   :  { %v2831_v6 = vpop.permute.xlu1 %2830 }
 0xe79   :  { %v2859_v27 = vrot.slane %v2831_v6, %v16705_v46 }
 0xe7b   :  { %v2878_v55 = vsel %vm546_vm6, %v2859_v27, %v2877_v48 }
 0xe7c   :  { %v2834_v20 = vpop.permute.xlu1 %2833 }
 0xe7d   :  { %v2863_v17 = vrot.slane %v2834_v20, %v16705_v46 }
 0xe7f   :  { %v2879_v34 = vsel %vm548_vm7, %v2863_v17, %v2878_v55 }
 0xe80   :  { %v2837_v41 = vpop.permute.xlu1 %2836 }
 0xe81   :  { %v2867_v60 = vrot.slane %v2837_v41, %v16705_v46 }
 0xe83   :  { %v2880_v3 = vsel %vm550_vm8, %v2867_v60, %v2879_v34 }
 0xe84   :  { %v2843_v44 = vpop.permute.xlu1 %2842  ;;  %v2881_v45 = vsel %vm552_vm9, %v2871_v18, %v2880_v3  ;;  %v21380_v18 = vld [vmem:[#allocation20_spill] sm:$0xff] }
 0xe85   :  { %v2875_v38 = vrot.slane %v2843_v44, %v16705_v46 }
 0xe87   :  { %v2882_v10 = vsel %vm554_vm10, %v2875_v38, %v2881_v45 }
 0xe88   :  { %15256 = vmatmul.mubr.msk.f32.vlgmr.msra.gmra.mrb[12].mxu0 %vm78_vm0, %v2882_v10  ;;  %v21381_v10 = vld [vmem:[#allocation14_spill] sm:$0xff] }
 0xe89   :  { %15640 = vmatpush3.bf16.msra.mxu0 %v17088_v11  ;;  %15277 = vmatprep.mubr.msk.f32.mxu0 %vm16394_vm11, %v21351_v56 }
 0xe8a   :  { %15641 = vmatprep.subr.bf16.mxu0 %v21352_v50 }
 0xe8d   :  { %15643 = vmatpush3.bf16.msra.mxu0 %v17101_v26 }
 0xe8e   :  { %15652 = vmatprep.subr.bf16.mxu0 %v21352_v50 }
 0xf5b   :  { %v2951_v4 = vpop.f32.mrb[12].mxu0 }
 0xf5c   :  { %v2952_v54 = vadd.f32 %v2951_v4, %v17199_v59  ;;  %v15257_v16 = vpop.f32.mrb[13].mxu0 }
 0xf5d   :  { %v21382_v16 = vld [vmem:[#allocation15_spill] sm:$0xff] }
 0xf5e   :  { %v2955_v37 = vadd.f32 %v16368_v0, %v2952_v54  ;;  %v21383_v0 = vld [vmem:[#allocation4_spill] sm:$0xff] }
 0xf60   :  { %15930 = vtanh.f32 %v2955_v37  ;;  %v2956_v6 = vsub.f32 0.0, %v2955_v37 }
 0xf62   :  { %v2957_v57 = vmul.f32 1.442695, %v2956_v6 }
 0xf64   :  { %15932 = vpow2.f32 %v2957_v57 }
 0xf6a   :  { %v15931_v14 = vpop.eup %15930 }
 0xf6b   :  { %2965 = vrot.lane.b32.xlu0 %v15931_v14, %s16396_s22 }
 0xf6e   :  { %v15933_v9 = vpop.eup %15932 }
 0xf6f   :  { %v2959_v20 = vadd.f32 1.0, %v15933_v9 }
 0xf71   :  { %15934 = vrcp.f32 %v2959_v20  ;;  %v16369_v20 = vld [vmem:[%s21218_s14] ss:$0 sm:$0xff] }
 0xf7b   :  { %v15935_v51 = vpop.eup %15934 }
 0xf7c   :  { %v2980_v59 = vmul.f32 %v15935_v51, %v17022_v35  ;;  %v2963_v25 = vmul.f32 %v15935_v51, %v17020_v33 }
 0xfdd   :  { %v2966_v27 = vpop.permute.xlu0 %2965 }
 0xfde   :  { %v2968_v17 = vmul.f32 %v15935_v51, %v2966_v27 }
 0xfe0   :  { %2970 = vrot.lane.b32.xlu1 %v2968_v17, %s16391_s26 }
0x1052   :  { %v2971_v48 = vpop.permute.xlu1 %2970 }
0x1053   :  { %v17666_v41 = vadd.f32 %v2971_v48, %v2963_v25  ;;  %v17668_v2 = vadd.f32 %v2980_v59, %v2971_v48 }
0x1055   :  { %15936 = vtanh.f32 %v17666_v41 }
0x1056   :  { %15938 = vtanh.f32 %v17668_v2 }
0x105f   :  { %v15937_v55 = vpop.eup %15936 }
0x1060   :  { %v15939_v60 = vpop.eup %15938  ;;  %2976 = vrot.lane.b32.xlu0 %v15937_v55, %s16398_s17 }
0x1061   :  { %2984 = vrot.lane.b32.xlu1 %v15939_v60, %s16398_s17 }
0x10d2   :  { %v2977_v34 = vpop.permute.xlu0 %2976 }
0x10d3   :  { %v2985_v3 = vpop.permute.xlu1 %2984  ;;  %v17674_v35 = vmul.f32 %v15935_v51, %v2977_v34 }
0x10d4   :  { %v2987_v33 = vmul.f32 %v15935_v51, %v2985_v3 }
0x10d5   :  { %2989 = vrot.lane.b32.xlu0 %v17674_v35, %s16397_s5 }
0x10d6   :  { %2993 = vrot.lane.b32.xlu1 %v2987_v33, %s16398_s17  ;;  %v3247_v34 = vrot.slane %v2987_v33, %v17138_v39  ;;  %v3240_v3 = vcombine.high %v2987_v33, %v2987_v33 }
0x10d9   :  { %2997 = vrot.lane.b32.xlu0 %v17311_v49, %s16397_s5 }
0x10da   :  { %3000 = vrot.lane.b32.xlu1 %v21380_v18, %s16398_s17  ;;  %v3255_v18 = vcombine.high %v3247_v34, %v3247_v34 }
0x1147   :  { %v2990_v44 = vpop.permute.xlu0 %2989 }
0x1148   :  { %v2994_v38 = vpop.permute.xlu1 %2993 }
0x1149   :  { %v2996_v45 = vsel %vm277_vm1, %v2990_v44, %v2994_v38 }
0x114a   :  { %15278 = vmatmul.mubr.msk.f32.vlgmr.msra.gmra.mrb[14].mxu0 %vm298_vm2, %v2996_v45 }
0x114b   :  { %15654 = vmatpush3.bf16.msra.mxu0 %v21381_v10  ;;  %v2998_v4 = vpop.permute.xlu0 %2997  ;;  %15302 = vmatprep.mubr.msk.f32.mxu0 %vm16394_vm11, %v21351_v56 }
0x114c   :  { %v3001_v54 = vpop.permute.xlu1 %3000  ;;  %15655 = vmatprep.subr.bf16.mxu0 %v21352_v50 }
0x114d   :  { %v3003_v49 = vsel %vm277_vm1, %v2998_v4, %v3001_v54  ;;  %v3277_v54 = vrot.slane %v3255_v18, %v17138_v39 }
0x114e   :  { %15267 = vmatmul.mubr.msk.f32.vlgmr.msra.gmra.mrb[14].mxu1 %vm298_vm2, %v3003_v49 }
0x114f   :  { %15657 = vmatpush3.bf16.msra.mxu0 %v21382_v16  ;;  %15647 = vmatpush3.bf16.msra.mxu1 %v16546_v12 }
0x1150   :  { %15649 = vmatprep.subr.bf16.mxu1 %v21383_v0  ;;  %15658 = vmatprep.subr.bf16.mxu0 %v21352_v50 }
0x1152   :  { %15303 = vmatmul.mubr.msk.f32.vlgmr.msra.gmra.mrb[16].mxu0 %vm298_vm2, %v2996_v45  ;;  %v3254_v45 = vrot.slane %v3240_v3, %v17138_v39  ;;  %v3263_v3 = vrot.slane %v3247_v34, %v17138_v39 }
0x1153   :  { %15651 = vmatpush3.bf16.msra.mxu1 %v21383_v0  ;;  %15660 = vmatpush3.bf16.msra.mxu0 %v17077_v58 }
0x1154   :  { %15305 = vmatprep.subr.mxu1 %v21351_v56  ;;  %15661 = vmatprep.subr.bf16.mxu0 %v21352_v50  ;;  %v3256_v49 = vcombine.high %v3254_v45, %v3254_v45 }
0x1155   :  { %15318 = vmatprep.mubr.msk.f32.mxu0 %vm16394_vm11, %v21351_v56 }
0x1157   :  { %15663 = vmatpush3.bf16.msra.mxu0 %v17097_v52 }
0x1158   :  { %15671 = vmatprep.subr.bf16.mxu0 %v16546_v12 }
0x121d   :  { %v3146_v37 = vpop.f32.mrb[14].mxu0 }
0x121e   :  { %v15279_v14 = vpop.f32.mrb[15].mxu0 }
0x121f   :  { %v3287_v14 = vcombine.high %v3277_v54, %v3277_v54 }
0x1221   :  { %v3073_v6 = vpop.f32.mrb[14].mxu1  ;;  %v3404_v33 = vrot.slane %v3287_v14, %v16734_v23 }
0x1222   :  { %v3147_v57 = vadd.f32 %v3146_v37, %v3073_v6  ;;  %v15268_v9 = vpop.f32.mrb[15].mxu1  ;;  %v3396_v37 = vrot.slane %v3277_v54, %v16734_v23  ;;  %v3284_v6 = vrot.slane %v3256_v49, %v17138_v39  ;;  %v3285_v54 = vcombine.high %v3263_v3, %v3263_v3 }
0x1223   :  { %v21384_v9 = vld [vmem:[#allocation19_spill] sm:$0xff] }
0x1224   :  { %v3150_v51 = vadd.f32 %v16369_v20, %v3147_v57  ;;  %v3412_v57 = vrot.slane %v3284_v6, %v16734_v23  ;;  %v3400_v49 = vrot.slane %v3285_v54, %v16734_v23 }
0x1225   :  { %v17707_v27 = vpop.f32.mrb[16].mxu0 }
0x1226   :  { %15940 = vtanh.f32 %v3150_v51  ;;  %v15304_v17 = vpop.f32.mrb[17].mxu0  ;;  %v3151_v25 = vsub.f32 0.0, %v3150_v51  ;;  %v21385_v51 = vld [vmem:[#allocation18_spill] sm:$0xff] }
0x1228   :  { %v3152_v48 = vmul.f32 1.442695, %v3151_v25 }
0x122a   :  { %15942 = vpow2.f32 %v3152_v48 }
0x1230   :  { %v15941_v59 = vpop.eup %15940 }
0x1231   :  { %3160 = vrot.lane.b32.xlu0 %v15941_v59, %s16396_s22 }
0x1234   :  { %v15943_v55 = vpop.eup %15942 }
0x1235   :  { %v3154_v60 = vadd.f32 1.0, %v15943_v55  ;;  %v3288_v55 = vcombine.high %v3284_v6, %v3284_v6 }
0x1237   :  { %15944 = vrcp.f32 %v3154_v60 }
0x1241   :  { %v17711_v44 = vpop.eup %15944 }
0x1242   :  { %v3175_v20 = vmul.f32 %v17711_v44, %v21384_v9  ;;  %v3158_v17 = vmul.f32 %v17711_v44, %v21385_v51 }
0x12a3   :  { %v3161_v38 = vpop.permute.xlu0 %3160 }
0x12a4   :  { %v3163_v4 = vmul.f32 %v17711_v44, %v3161_v38  ;;  %v3420_v38 = vrot.slane %v3288_v55, %v16734_v23 }
0x12a6   :  { %3165 = vrot.lane.b32.xlu1 %v3163_v4, %s16391_s26  ;;  %v3392_v4 = vrot.slane %v3263_v3, %v16734_v23 }
0x12aa   :  { %3423 = vrot.lane.b32.xlu1 %v3396_v37, %s16400_s23  ;;  %v3270_v37 = vrot.slane %v3254_v45, %v17138_v39 }
0x12ac   :  { %v3408_v34 = vrot.slane %v3270_v37, %v16734_v23  ;;  %v3286_v14 = vcombine.high %v3270_v37, %v3270_v37 }
0x12ae   :  { %3427 = vrot.lane.b32.xlu1 %v3404_v33, %s16400_s23  ;;  %v3416_v33 = vrot.slane %v3286_v14, %v16734_v23 }
0x12b2   :  { %3431 = vrot.lane.b32.xlu1 %v3412_v57, %s16400_s23 }
0x1318   :  { %v3166_v59 = vpop.permute.xlu1 %3165 }
0x1319   :  { %v17728_v25 = vadd.f32 %v3166_v59, %v3158_v17  ;;  %v17730_v48 = vadd.f32 %v3175_v20, %v3166_v59 }
0x131b   :  { %21386 = vst [vmem:[#allocation20_spill] sm:$0xff] %v17728_v25  ;;  %21387 = vst [vmem:[#allocation19_spill] sm:$0xff] %v17730_v48  ;;  %15946 = vtanh.f32 %v17728_v25 }
0x131c   :  { %15948 = vtanh.f32 %v17730_v48 }
0x1325   :  { %v15947_v60 = vpop.eup %15946 }
0x1326   :  { %v15949_v18 = vpop.eup %15948  ;;  %3171 = vrot.lane.b32.xlu1 %v15947_v60, %s16398_s17 }
0x1327   :  { %3179 = vrot.lane.b32.xlu0 %v15949_v18, %s16398_s17 }
0x132a   :  { %3435 = vrot.lane.b32.xlu1 %v3420_v38, %s16400_s23 }
0x132b   :  { %3421 = vrot.lane.b32.xlu0 %v3392_v4, %s16400_s23 }
0x132f   :  { %3425 = vrot.lane.b32.xlu0 %v3400_v49, %s16400_s23 }
0x1333   :  { %3429 = vrot.lane.b32.xlu0 %v3408_v34, %s16400_s23  ;;  %v3631_v34 = vrot.slane %v17668_v2, %v17138_v39 }
0x1337   :  { %3433 = vrot.lane.b32.xlu0 %v3416_v33, %s16400_s23 }
0x1399   :  { %v3180_v6 = vpop.permute.xlu0 %3179 }
0x139a   :  { %v17749_v57 = vmul.f32 %v17711_v44, %v3180_v6 }
0x139c   :  { %v3340_v9 = vcombine.high %v17749_v57, %v17749_v57  ;;  %v3347_v45 = vrot.slane %v17749_v57, %v17138_v39 }
0x139e   :  { %v3354_v20 = vrot.slane %v3340_v9, %v17138_v39  ;;  %v3355_v51 = vcombine.high %v3347_v45, %v3347_v45  ;;  %v3363_v17 = vrot.slane %v3347_v45, %v17138_v39  ;;  %v3639_v45 = vcombine.high %v3631_v34, %v3631_v34 }
0x13a0   :  { %v3488_v59 = vrot.slane %v3363_v17, %v16734_v23  ;;  %v3377_v55 = vrot.slane %v3355_v51, %v17138_v39  ;;  %v3385_v60 = vcombine.high %v3363_v17, %v3363_v17  ;;  %v3356_v3 = vcombine.high %v3354_v20, %v3354_v20 }
0x13a1   :  { %v3370_v54 = vrot.slane %v3354_v20, %v17138_v39  ;;  %v3647_v51 = vrot.slane %v3631_v34, %v17138_v39 }
0x13a2   :  { %3517 = vrot.lane.b32.xlu0 %v3488_v59, %s16400_s23  ;;  %v3492_v18 = vrot.slane %v3377_v55, %v16734_v23  ;;  %v3387_v38 = vcombine.high %v3377_v55, %v3377_v55  ;;  %v3496_v4 = vrot.slane %v3385_v60, %v16734_v23  ;;  %v3384_v37 = vrot.slane %v3356_v3, %v17138_v39 }
0x13a3   :  { %v3504_v14 = vrot.slane %v3370_v54, %v16734_v23  ;;  %v3386_v33 = vcombine.high %v3370_v54, %v3370_v54  ;;  %v3661_v59 = vrot.slane %v3639_v45, %v17138_v39  ;;  %v3731_v55 = vrot.slane %v17730_v48, %v17138_v39 }
0x13a4   :  { %3519 = vrot.lane.b32.xlu1 %v3492_v18, %s16400_s23  ;;  %v3500_v49 = vrot.slane %v3387_v38, %v16734_v23  ;;  %v3508_v6 = vrot.slane %v3384_v37, %v16734_v23  ;;  %v3388_v9 = vcombine.high %v3384_v37, %v3384_v37  ;;  %v3776_v60 = vrot.slane %v3647_v51, %v16734_v23 }
0x13a5   :  { %v3512_v20 = vrot.slane %v3386_v33, %v16734_v23  ;;  %v3669_v3 = vcombine.high %v3647_v51, %v3647_v51  ;;  %v3624_v18 = vcombine.high %v17668_v2, %v17668_v2  ;;  %v3780_v38 = vrot.slane %v3661_v59, %v16734_v23 }
0x13a6   :  { %3521 = vrot.lane.b32.xlu0 %v3496_v4, %s16400_s23  ;;  %v3516_v17 = vrot.slane %v3388_v9, %v16734_v23  ;;  %v3671_v4 = vcombine.high %v3661_v59, %v3661_v59  ;;  %v3739_v54 = vcombine.high %v3731_v55, %v3731_v55  ;;  %v3747_v37 = vrot.slane %v3731_v55, %v17138_v39 }
0x13a7   :  { %v3638_v33 = vrot.slane %v3624_v18, %v17138_v39  ;;  %v3724_v45 = vcombine.high %v17730_v48, %v17730_v48 }
0x13a8   :  { %3523 = vrot.lane.b32.xlu1 %v3500_v49, %s16400_s23  ;;  %v3784_v49 = vrot.slane %v3669_v3, %v16734_v23  ;;  %v3788_v34 = vrot.slane %v3671_v4, %v16734_v23  ;;  %v3769_v9 = vcombine.high %v3747_v37, %v3747_v37 }
0x13a9   :  { %v3654_v55 = vrot.slane %v3638_v33, %v17138_v39  ;;  %v3738_v18 = vrot.slane %v3724_v45, %v17138_v39 }
0x13aa   :  { %3525 = vrot.lane.b32.xlu0 %v3504_v14, %s16400_s23  ;;  %v3761_v14 = vrot.slane %v3739_v54, %v17138_v39  ;;  %v3880_v59 = vrot.slane %v3769_v9, %v16734_v23 }
0x13ab   :  { %v3670_v4 = vcombine.high %v3654_v55, %v3654_v55 }
0x13ac   :  { %3527 = vrot.lane.b32.xlu1 %v3508_v6, %s16400_s23  ;;  %v3872_v6 = vrot.slane %v3747_v37, %v16734_v23  ;;  %v3771_v51 = vcombine.high %v3761_v14, %v3761_v14  ;;  %v3740_v37 = vcombine.high %v3738_v18, %v3738_v18 }
0x13ae   :  { %3529 = vrot.lane.b32.xlu0 %v3512_v20, %s16400_s23  ;;  %v3876_v20 = vrot.slane %v3761_v14, %v16734_v23  ;;  %v3754_v14 = vrot.slane %v3738_v18, %v17138_v39  ;;  %v3422_v18 = vpop.permute.xlu0 %3421 }
0x13b0   :  { %3531 = vrot.lane.b32.xlu1 %v3516_v17, %s16400_s23  ;;  %v3640_v17 = vcombine.high %v3638_v33, %v3638_v33  ;;  %v3888_v9 = vrot.slane %v3754_v14, %v16734_v23  ;;  %v3770_v45 = vcombine.high %v3754_v14, %v3754_v14 }
0x13b2   :  { %3805 = vrot.lane.b32.xlu0 %v3776_v60, %s16400_s23  ;;  %v3884_v60 = vrot.slane %v3771_v51, %v16734_v23  ;;  %v3668_v3 = vrot.slane %v3640_v17, %v17138_v39  ;;  %v3896_v17 = vrot.slane %v3770_v45, %v16734_v23 }
0x13b4   :  { %3807 = vrot.lane.b32.xlu1 %v3780_v38, %s16400_s23  ;;  %v3792_v38 = vrot.slane %v3654_v55, %v16734_v23  ;;  %v3796_v54 = vrot.slane %v3668_v3, %v16734_v23  ;;  %v3424_v55 = vpop.permute.xlu1 %3423 }
0x13b6   :  { %3809 = vrot.lane.b32.xlu0 %v3784_v49, %s16400_s23  ;;  %v3672_v49 = vcombine.high %v3668_v3, %v3668_v3 }
0x13b8   :  { %3811 = vrot.lane.b32.xlu1 %v3788_v34, %s16400_s23  ;;  %v3800_v34 = vrot.slane %v3670_v4, %v16734_v23  ;;  %v3804_v33 = vrot.slane %v3672_v49, %v16734_v23 }
0x13ba   :  { %3901 = vrot.lane.b32.xlu0 %v3872_v6, %s16400_s23  ;;  %v3768_v6 = vrot.slane %v3740_v37, %v17138_v39 }
0x13bc   :  { %3903 = vrot.lane.b32.xlu1 %v3876_v20, %s16400_s23  ;;  %v3892_v20 = vrot.slane %v3768_v6, %v16734_v23  ;;  %v3772_v51 = vcombine.high %v3768_v6, %v3768_v6 }
0x13be   :  { %3905 = vrot.lane.b32.xlu0 %v3880_v59, %s16400_s23  ;;  %v3900_v59 = vrot.slane %v3772_v51, %v16734_v23 }
0x13c0   :  { %3907 = vrot.lane.b32.xlu1 %v3884_v60, %s16400_s23  ;;  %v3428_v60 = vpop.permute.xlu1 %3427 }
0x13c2   :  { %3813 = vrot.lane.b32.xlu0 %v3792_v38, %s16400_s23 }
0x13c4   :  { %3815 = vrot.lane.b32.xlu1 %v3796_v54, %s16400_s23  ;;  %v17826_v3 = vpop.permute.xlu1 %3431  ;;  %v3426_v54 = vpop.permute.xlu0 %3425 }
0x13c6   :  { %3817 = vrot.lane.b32.xlu0 %v3800_v34, %s16400_s23 }
0x13c8   :  { %3819 = vrot.lane.b32.xlu1 %v3804_v33, %s16400_s23  ;;  %v3172_v38 = vpop.permute.xlu1 %3171  ;;  %v3430_v14 = vpop.permute.xlu0 %3429  ;;  %v3190_v33 = vrot.slane %v17674_v35, %v17138_v39 }
0x13c9   :  { %v17829_v4 = vmul.f32 %v17711_v44, %v3172_v38  ;;  %v3183_v44 = vcombine.high %v17674_v35, %v17674_v35 }
0x13ca   :  { %3909 = vrot.lane.b32.xlu0 %v3888_v9, %s16400_s23  ;;  %v3206_v51 = vrot.slane %v3190_v33, %v17138_v39 }
0x13cb   :  { %v3297_v49 = vrot.slane %v17829_v4, %v17138_v39  ;;  %v3290_v37 = vcombine.high %v17829_v4, %v17829_v4 }
0x13cc   :  { %3911 = vrot.lane.b32.xlu1 %v3892_v20, %s16400_s23  ;;  %v3198_v20 = vcombine.high %v3190_v33, %v3190_v33  ;;  %v3436_v15 = vpop.permute.xlu1 %3435  ;;  %v3228_v43 = vcombine.high %v3206_v51, %v3206_v51 }
0x13cd   :  { %v3305_v34 = vcombine.high %v3297_v49, %v3297_v49  ;;  %v3313_v6 = vrot.slane %v3297_v49, %v17138_v39  ;;  %v3304_v9 = vrot.slane %v3290_v37, %v17138_v39  ;;  %v3197_v49 = vrot.slane %v3183_v44, %v17138_v39 }
0x13ce   :  { %3913 = vrot.lane.b32.xlu0 %v3896_v17, %s16400_s23  ;;  %v3220_v37 = vrot.slane %v3198_v20, %v17138_v39  ;;  %v3543_v21 = vsel %vm1773_vm13, %v3228_v43, %v3426_v54 }
0x13cf   :  { %v3327_v45 = vrot.slane %v3305_v34, %v17138_v39  ;;  %v3335_v17 = vcombine.high %v3313_v6, %v3313_v6  ;;  %v3448_v38 = vrot.slane %v3313_v6, %v16734_v23  ;;  %v3306_v5 = vcombine.high %v3304_v9, %v3304_v9 }
0x13d0   :  { %3915 = vrot.lane.b32.xlu1 %v3900_v59, %s16400_s23  ;;  %v3434_v59 = vpop.permute.xlu0 %3433  ;;  %v3541_v34 = vsel %vm1773_vm13, %v3206_v51, %v3422_v18  ;;  %v3542_v28 = vsel %vm1773_vm13, %v3220_v37, %v3424_v55  ;;  %v3320_v6 = vrot.slane %v3304_v9, %v17138_v39 }
0x13d1   :  { %v3452_v1 = vrot.slane %v3327_v45, %v16734_v23  ;;  %v3337_v19 = vcombine.high %v3327_v45, %v3327_v45  ;;  %v3549_v22 = vsel %vm1782_vm14, %v3541_v34, %v3448_v38  ;;  %v3456_v33 = vrot.slane %v3335_v17, %v16734_v23 }
0x13d2   :  { %v3334_v51 = vrot.slane %v3306_v5, %v17138_v39  ;;  %v3230_v38 = vcombine.high %v3220_v37, %v3220_v37  ;;  %v3199_v34 = vcombine.high %v3197_v49, %v3197_v49  ;;  %v3213_v17 = vrot.slane %v3197_v49, %v17138_v39 }
0x13d3   :  { %v3550_v44 = vsel %vm1782_vm14, %v3542_v28, %v3452_v1  ;;  %v3460_v18 = vrot.slane %v3337_v19, %v16734_v23  ;;  %v3551_v43 = vsel %vm1782_vm14, %v3543_v21, %v3456_v33  ;;  %v3464_v19 = vrot.slane %v3320_v6, %v16734_v23 }
0x13d4   :  { %v3545_v28 = vsel %vm1773_vm13, %v3213_v17, %v3430_v14  ;;  %v3468_v49 = vrot.slane %v3334_v51, %v16734_v23  ;;  %v3336_v37 = vcombine.high %v3320_v6, %v3320_v6  ;;  %v3227_v21 = vrot.slane %v3199_v34, %v17138_v39 }
0x13d5   :  { %v3229_v33 = vcombine.high %v3213_v17, %v3213_v17  ;;  %v3553_v14 = vsel %vm1782_vm14, %v3545_v28, %v3464_v19 }
0x13d6   :  { %v3231_v17 = vcombine.high %v3227_v21, %v3227_v21 }
0x1414   :  { %v3518_v35 = vpop.permute.xlu0 %3517 }
0x1415   :  { %v3557_v45 = vsel %vm1791_vm15, %v3549_v22, %v3518_v35  ;;  %v3544_v22 = vsel %vm1773_vm13, %v3230_v38, %v3428_v60  ;;  %v3338_v35 = vcombine.high %v3334_v51, %v3334_v51  ;;  %v3472_v38 = vrot.slane %v3336_v37, %v16734_v23 }
0x1416   :  { %3957 = vrot.lane.b32.xlu0 %v3557_v45, %s16397_s5  ;;  %v3520_v20 = vpop.permute.xlu1 %3519  ;;  %v3552_v5 = vsel %vm1782_vm14, %v3544_v22, %v3460_v18 }
0x1417   :  { %v3558_v55 = vsel %vm1791_vm15, %v3550_v44, %v3520_v20  ;;  %v3546_v44 = vsel %vm1773_vm13, %v3227_v21, %v17826_v3  ;;  %v3547_v20 = vsel %vm1773_vm13, %v3229_v33, %v3434_v59  ;;  %v3476_v34 = vrot.slane %v3338_v35, %v16734_v23 }
0x1418   :  { %v3522_v9 = vpop.permute.xlu0 %3521  ;;  %3959 = vrot.lane.b32.xlu1 %v3558_v55, %s16397_s5  ;;  %v3554_v6 = vsel %vm1782_vm14, %v3546_v44, %v3468_v49  ;;  %v3548_v3 = vsel %vm1773_vm13, %v3231_v17, %v3436_v15  ;;  %v3681_v44 = vrot.slane %v17728_v25, %v17138_v39 }
0x1419   :  { %v3559_v1 = vsel %vm1791_vm15, %v3551_v43, %v3522_v9  ;;  %v3555_v43 = vsel %vm1782_vm14, %v3547_v20, %v3472_v38  ;;  %v3556_v22 = vsel %vm1782_vm14, %v3548_v3, %v3476_v34  ;;  %v3573_v20 = vrot.slane %v17666_v41, %v17138_v39 }
0x141a   :  { %3961 = vrot.lane.b32.xlu0 %v3559_v1, %s16397_s5  ;;  %v3524_v54 = vpop.permute.xlu1 %3523  ;;  %v3566_v34 = vcombine.high %v17666_v41, %v17666_v41 }
0x141b   :  { %v3560_v60 = vsel %vm1791_vm15, %v3552_v5, %v3524_v54  ;;  %v3581_v38 = vcombine.high %v3573_v20, %v3573_v20  ;;  %v3589_v3 = vrot.slane %v3573_v20, %v17138_v39 }
0x141c   :  { %v3526_v45 = vpop.permute.xlu0 %3525  ;;  %3963 = vrot.lane.b32.xlu1 %v3560_v60, %s16397_s5 }
0x141d   :  { %v3561_v18 = vsel %vm1791_vm15, %v3553_v14, %v3526_v45  ;;  %v3611_v20 = vcombine.high %v3589_v3, %v3589_v3 }
0x141e   :  { %3965 = vrot.lane.b32.xlu0 %v3561_v18, %s16397_s5  ;;  %v3528_v51 = vpop.permute.xlu1 %3527 }
0x141f   :  { %v3562_v55 = vsel %vm1791_vm15, %v3554_v6, %v3528_v51  ;;  %v3674_v6 = vcombine.high %v17728_v25, %v17728_v25  ;;  %v3689_v51 = vcombine.high %v3681_v44, %v3681_v44 }
0x1420   :  { %v3530_v9 = vpop.permute.xlu0 %3529  ;;  %3967 = vrot.lane.b32.xlu1 %v3562_v55, %s16397_s5  ;;  %v3697_v55 = vrot.slane %v3681_v44, %v17138_v39 }
0x1421   :  { %v3563_v59 = vsel %vm1791_vm15, %v3555_v43, %v3530_v9  ;;  %v3711_v9 = vrot.slane %v3689_v51, %v17138_v39  ;;  %v3688_v43 = vrot.slane %v3674_v6, %v17138_v39 }
0x1422   :  { %3969 = vrot.lane.b32.xlu0 %v3563_v59, %s16397_s5  ;;  %v3532_v28 = vpop.permute.xlu1 %3531  ;;  %v3603_v59 = vrot.slane %v3581_v38, %v17138_v39  ;;  %v3832_v44 = vrot.slane %v3697_v55, %v16734_v23 }
0x1423   :  { %v3564_v1 = vsel %vm1791_vm15, %v3556_v22, %v3532_v28  ;;  %v3580_v22 = vrot.slane %v3566_v34, %v17138_v39  ;;  %v3836_v51 = vrot.slane %v3711_v9, %v16734_v23  ;;  %v3721_v6 = vcombine.high %v3711_v9, %v3711_v9 }
0x1424   :  { %3971 = vrot.lane.b32.xlu1 %v3564_v1, %s16397_s5  ;;  %v3806_v19 = vpop.permute.xlu0 %3805  ;;  %v3719_v1 = vcombine.high %v3697_v55, %v3697_v55  ;;  %v3690_v48 = vcombine.high %v3688_v43, %v3688_v43  ;;  %v3613_v0 = vcombine.high %v3603_v59, %v3603_v59 }
0x1425   :  { %v3925_v52 = vsel %vm1773_vm13, %v3589_v3, %v3806_v19  ;;  %v3582_v38 = vcombine.high %v3580_v22, %v3580_v22 }
0x1426   :  { %v3808_v5 = vpop.permute.xlu1 %3807  ;;  %v3933_v34 = vsel %vm1782_vm14, %v3925_v52, %v3832_v44  ;;  %v3840_v19 = vrot.slane %v3719_v1, %v16734_v23  ;;  %v3718_v1 = vrot.slane %v3690_v48, %v17138_v39 }
0x1427   :  { %v3926_v58 = vsel %vm1773_vm13, %v3603_v59, %v3808_v5  ;;  %v3704_v5 = vrot.slane %v3688_v43, %v17138_v39 }
0x1428   :  { %v3810_v54 = vpop.permute.xlu0 %3809  ;;  %v3934_v16 = vsel %vm1782_vm14, %v3926_v58, %v3836_v51  ;;  %v3844_v58 = vrot.slane %v3721_v6, %v16734_v23 }
0x1429   :  { %v3927_v55 = vsel %vm1773_vm13, %v3611_v20, %v3810_v54  ;;  %v3610_v54 = vrot.slane %v3582_v38, %v17138_v39  ;;  %v3848_v48 = vrot.slane %v3704_v5, %v16734_v23 }
0x142a   :  { %v3812_v49 = vpop.permute.xlu1 %3811 }
0x142b   :  { %v3928_v9 = vsel %vm1773_vm13, %v3613_v0, %v3812_v49  ;;  %v3596_v0 = vrot.slane %v3580_v22, %v17138_v39 }
0x142c   :  { %v3902_v37 = vpop.permute.xlu0 %3901 }
0x142d   :  { %v3941_v3 = vsel %vm1791_vm15, %v3933_v34, %v3902_v37  ;;  %v3935_v37 = vsel %vm1782_vm14, %v3927_v55, %v3840_v19  ;;  %v3852_v34 = vrot.slane %v3718_v1, %v16734_v23  ;;  %v3722_v19 = vcombine.high %v3718_v1, %v3718_v1 }
0x142e   :  { %v3904_v35 = vpop.permute.xlu1 %3903 }
0x142f   :  { %v3942_v59 = vsel %vm1791_vm15, %v3934_v16, %v3904_v35  ;;  %v3936_v35 = vsel %vm1782_vm14, %v3928_v9, %v3844_v58 }
0x1430   :  { %v3906_v21 = vpop.permute.xlu0 %3905 }
0x1431   :  { %v3943_v51 = vsel %vm1791_vm15, %v3935_v37, %v3906_v21  ;;  %v3612_v21 = vcombine.high %v3596_v0, %v3596_v0 }
0x1432   :  { %v3908_v33 = vpop.permute.xlu1 %3907 }
0x1433   :  { %v3944_v22 = vsel %vm1791_vm15, %v3936_v35, %v3908_v33  ;;  %v3614_v33 = vcombine.high %v3610_v54, %v3610_v54 }
0x1434   :  { %v3814_v15 = vpop.permute.xlu0 %3813 }
0x1435   :  { %v3929_v6 = vsel %vm1773_vm13, %v3596_v0, %v3814_v15  ;;  %v3860_v0 = vrot.slane %v3722_v19, %v16734_v23 }
0x1436   :  { %v3816_v60 = vpop.permute.xlu1 %3815 }
0x1437   :  { %v3930_v20 = vsel %vm1773_vm13, %v3610_v54, %v3816_v60  ;;  %v3937_v60 = vsel %vm1782_vm14, %v3929_v6, %v3848_v48 }
0x1438   :  { %v17890_v45 = vpop.permute.xlu0 %3817 }
0x143a   :  { %v17892_v14 = vpop.permute.xlu1 %3819 }
0x143c   :  { %v17898_v18 = vpop.permute.xlu0 %3909 }
0x143d   :  { %v3945_v58 = vsel %vm1791_vm15, %v3937_v60, %v17898_v18 }
0x143e   :  { %v17904_v17 = vpop.permute.xlu1 %3911 }
0x1440   :  { %v17912_v28 = vpop.permute.xlu0 %3913 }
0x1442   :  { %v17916_v25 = vpop.permute.xlu1 %3915 }
0x1488   :  { %v3958_v12 = vpop.permute.xlu0 %3957 }
0x1489   :  { %14780 = vst.msk [vmem:[%s21219_s16 + $0x20] sm:$0xf] %vm14771_vm12, %v3958_v12  ;;  %v3981_v43 = vsel %vm277_vm1, %v3958_v12, %v3941_v3  ;;  %v3720_v12 = vcombine.high %v3704_v5, %v3704_v5  ;;  %v3938_v3 = vsel %vm1782_vm14, %v3930_v20, %v3852_v34 }
0x148a   :  { %v3960_v52 = vpop.permute.xlu1 %3959  ;;  %v3946_v1 = vsel %vm1791_vm15, %v3938_v3, %v17904_v17 }
0x148b   :  { %v3982_v44 = vsel %vm277_vm1, %v3960_v52, %v3942_v59  ;;  %14781 = vst.msk [vmem:[%s21219_s16 + $0x24] sm:$0xf] %vm14771_vm12, %v3960_v52  ;;  %v3931_v59 = vsel %vm1773_vm13, %v3612_v21, %v17890_v45  ;;  %v3932_v52 = vsel %vm1773_vm13, %v3614_v33, %v17892_v14  ;;  %v17987_v14 = vld [vmem:[%s21214_s9] sm:$0xff] }
0x148c   :  { %v3997_v49 = vcombine.low %v3981_v43, %v3982_v44  ;;  %v3962_v16 = vpop.permute.xlu0 %3961  ;;  %v3856_v44 = vrot.slane %v3720_v12, %v16734_v23 }
0x148d   :  { %14782 = vst.msk [vmem:[%s21219_s16 + $0x28] sm:$0xf] %vm14771_vm12, %v3962_v16  ;;  %v3983_v5 = vsel %vm277_vm1, %v3962_v16, %v3943_v51  ;;  %v3940_v16 = vsel %vm1782_vm14, %v3932_v52, %v3860_v0 }
0x148e   :  { %15288 = vmatprep.mubr.msk.f32.mxu1 %vm298_vm2, %v3997_v49  ;;  %v3964_v38 = vpop.permute.xlu1 %3963  ;;  %v3939_v49 = vsel %vm1782_vm14, %v3931_v59, %v3856_v44  ;;  %v3948_v35 = vsel %vm1791_vm15, %v3940_v16, %v17916_v25 }
0x148f   :  { %v3984_v55 = vsel %vm277_vm1, %v3964_v38, %v3944_v22  ;;  %14783 = vst.msk [vmem:[%s21219_s16 + $0x2c] sm:$0xf] %vm14771_vm12, %v3964_v38  ;;  %v3947_v37 = vsel %vm1791_vm15, %v3939_v49, %v17912_v28  ;;  %v16371_v49 = vld [vmem:[%s21211_s7] ss:$0 sm:$0xff] }
0x1490   :  { %v3998_v15 = vcombine.low %v3983_v5, %v3984_v55  ;;  %v3966_v9 = vpop.permute.xlu0 %3965 }
0x1491   :  { %14784 = vst.msk [vmem:[%s21219_s16 + $0x30] sm:$0xf] %vm14771_vm12, %v3966_v9  ;;  %v3985_v54 = vsel %vm277_vm1, %v3966_v9, %v3945_v58 }
0x1492   :  { %15289 = vmatmul.mubr.msk.f32.vlgmr.msra.gmra.mrb[16].mxu1 %vm298_vm2, %v3998_v15  ;;  %v3968_v43 = vpop.permute.xlu1 %3967 }
0x1493   :  { %v3986_v45 = vsel %vm277_vm1, %v3968_v43, %v3946_v1  ;;  %14785 = vst.msk [vmem:[%s21219_s16 + $0x34] sm:$0xf] %vm14771_vm12, %v3968_v43  ;;  %15306 = vmatpush3.msra.mxu1 %v17987_v14 }
0x1494   :  { %v3999_v18 = vcombine.low %v3985_v54, %v3986_v45  ;;  %v3970_v17 = vpop.permute.xlu0 %3969  ;;  %15664 = vmatprep.subr.bf16.mxu1 %v21352_v50 }
0x1495   :  { %14786 = vst.msk [vmem:[%s21219_s16 + $0x38] sm:$0xf] %vm14771_vm12, %v3970_v17  ;;  %v3987_v12 = vsel %vm277_vm1, %v3970_v17, %v3947_v37 }
0x1496   :  { %15291 = vmatprep.mubr.msk.f32.mxu1 %vm298_vm2, %v3999_v18  ;;  %v3972_v48 = vpop.permute.xlu1 %3971 }
0x1497   :  { %v3988_v51 = vsel %vm277_vm1, %v3972_v48, %v3948_v35  ;;  %14787 = vst.msk [vmem:[%s21219_s16 + $0x3c] sm:$0xf] %vm14771_vm12, %v3972_v48 }
0x1498   :  { %v4000_v22 = vcombine.low %v3987_v12, %v3988_v51 }
0x149a   :  { %15292 = vmatmul.mubr.msk.f32.gmra.mrb[18].mxu1 %vm298_vm2, %v4000_v22 }
0x149b   :  { %15307 = vmatprep.mubr.msk.f32.mxu1 %vm16394_vm11, %v21351_v56 }
0x1565   :  { %v15290_v28 = vpop.f32.mrb[16].mxu1 }
0x1566   :  { %v4099_v25 = vcombine.high %v15290_v28, %v15290_v28  ;;  %v4108_v6 = vcombine.low %v15290_v28, %v15290_v28  ;;  %v4075_v20 = vpop.f32.mrb[17].mxu1 }
0x1567   :  { %v4098_v38 = vcombine.high %v4075_v20, %v4075_v20  ;;  %v4106_v34 = vcombine.low %v4075_v20, %v4075_v20 }
0x1568   :  { %v4124_v19 = vsel %vm420_vm3, %v15290_v28, %v4108_v6  ;;  %v4133_v5 = vadd.f32 %v4099_v25, %v16663_v62 }
0x1569   :  { %v4132_v55 = vadd.f32 %v4124_v19, %v16667_v7  ;;  %v4122_v21 = vsel %vm420_vm3, %v4075_v20, %v4106_v34  ;;  %v4131_v33 = vadd.f32 %v4098_v38, %v16665_v63 }
0x156a   :  { %15950 = vtanh.f32 %v4133_v5  ;;  %v4130_v15 = vadd.f32 %v4122_v21, %v16669_v8 }
0x156b   :  { %15952 = vtanh.f32 %v4132_v55 }
0x156c   :  { %15954 = vtanh.f32 %v4131_v33 }
0x156d   :  { %v15293_v9 = vpop.f32.mrb[18].mxu1  ;;  %15956 = vtanh.f32 %v4130_v15 }
0x156e   :  { %v4101_v60 = vcombine.high %v15293_v9, %v15293_v9  ;;  %v4112_v3 = vcombine.low %v15293_v9, %v15293_v9  ;;  %v4085_v59 = vpop.f32.mrb[19].mxu1 }
0x156f   :  { %v4100_v52 = vcombine.high %v4085_v59, %v4085_v59  ;;  %v4110_v58 = vcombine.low %v4085_v59, %v4085_v59 }
0x1570   :  { %v4128_v1 = vsel %vm420_vm3, %v15293_v9, %v4112_v3  ;;  %v4137_v54 = vadd.f32 %v4101_v60, %v16684_v40 }
0x1571   :  { %v4136_v43 = vadd.f32 %v4128_v1, %v16679_v30  ;;  %v4126_v44 = vsel %vm420_vm3, %v4085_v59, %v4110_v58  ;;  %v4135_v0 = vadd.f32 %v4100_v52, %v16677_v29 }
0x1572   :  { %v4134_v45 = vadd.f32 %v4126_v44, %v16681_v36 }
0x1573   :  { %15958 = vtanh.f32 %v4136_v43 }
0x1574   :  { %v15951_v18 = vpop.eup %15950  ;;  %15960 = vtanh.f32 %v4134_v45 }
0x1575   :  { %v15953_v17 = vpop.eup %15952  ;;  %15962 = vtanh.f32 %v4135_v0  ;;  %v4149_v16 = vmul.f32 %v16371_v49, %v15951_v18 }
0x1576   :  { %15964 = vtanh.f32 %v4137_v54  ;;  %v15955_v37 = vpop.eup %15954  ;;  %v4148_v48 = vmul.f32 %v16371_v49, %v15953_v17 }
0x1577   :  { %v4163_v35 = vsel %vm78_vm0, %v4149_v16, 0.0  ;;  %v15957_v12 = vpop.eup %15956  ;;  %v4147_v51 = vmul.f32 %v16371_v49, %v15955_v37 }
0x1578   :  { %4164 = vadd.xlane.f32.xlu0 %v4163_v35  ;;  %v4160_v28 = vsel %vm78_vm0, %v4148_v48, 0.0  ;;  %v4146_v25 = vmul.f32 %v16371_v49, %v15957_v12 }
0x1579   :  { %v4157_v22 = vsel %vm78_vm0, %v4147_v51, 0.0 }
0x157a   :  { %4158 = vadd.xlane.f32.xlu1 %v4157_v22  ;;  %v4154_v34 = vsel %vm78_vm0, %v4146_v25, 0.0 }
0x157c   :  { %4161 = vadd.xlane.f32.xlu0 %v4160_v28 }
0x157d   :  { %v15959_v6 = vpop.eup %15958 }
0x157e   :  { %v15961_v20 = vpop.eup %15960  ;;  %v4152_v33 = vmul.f32 %v16371_v49, %v15959_v6 }
0x157f   :  { %v15963_v38 = vpop.eup %15962  ;;  %v4150_v19 = vmul.f32 %v16371_v49, %v15961_v20 }
0x1580   :  { %v15965_v5 = vpop.eup %15964  ;;  %4155 = vadd.xlane.f32.xlu0 %v4154_v34  ;;  %v4151_v55 = vmul.f32 %v16371_v49, %v15963_v38  ;;  %v4172_v60 = vsel %vm78_vm0, %v4152_v33, 0.0 }
0x1581   :  { %v4166_v21 = vsel %vm78_vm0, %v4150_v19, 0.0  ;;  %v4153_v9 = vmul.f32 %v16371_v49, %v15965_v5 }
0x1582   :  { %4167 = vadd.xlane.f32.xlu1 %v4166_v21  ;;  %v4169_v15 = vsel %vm78_vm0, %v4151_v55, 0.0 }
0x1583   :  { %v4175_v3 = vsel %vm78_vm0, %v4153_v9, 0.0 }
0x1584   :  { %4170 = vadd.xlane.f32.xlu0 %v4169_v15 }
0x1586   :  { %4173 = vadd.xlane.f32.xlu1 %v4172_v60 }
0x1588   :  { %4176 = vadd.xlane.f32.xlu0 %v4175_v3 }
0x1605   :  { %v4165_v59 = vpop.xlane.xlu0 %4164 }
0x1606   :  { %v4181_v0 = vadd.f32 %v4165_v59, %v16707_v47 }
0x1607   :  { %v4159_v52 = vpop.xlane.xlu1 %4158 }
0x1608   :  { %v4179_v1 = vadd.f32 %v4159_v52, %v16707_v47  ;;  %v4209_v35 = vrot.slane %v4181_v0, %v16705_v46 }
0x1609   :  { %v4162_v58 = vpop.xlane.xlu0 %4161 }
0x160a   :  { %v4180_v43 = vadd.f32 %v4162_v58, %v16707_v47  ;;  %v4201_v18 = vrot.slane %v4179_v1, %v16705_v46 }
0x160c   :  { %v4205_v16 = vrot.slane %v4180_v43, %v16705_v46 }
0x160d   :  { %v4156_v44 = vpop.xlane.xlu0 %4155 }
0x160e   :  { %v4178_v54 = vadd.f32 %v4156_v44, %v16707_v47 }
0x160f   :  { %v4168_v45 = vpop.xlane.xlu1 %4167 }
0x1610   :  { %v4197_v17 = vrot.slane %v4178_v54, %v16705_v46  ;;  %v4182_v49 = vadd.f32 %v4168_v45, %v16707_v47 }
0x1611   :  { %v4171_v37 = vpop.xlane.xlu0 %4170 }
0x1612   :  { %v4226_v48 = vsel %vm542_vm4, %v4201_v18, %v4197_v17  ;;  %v4213_v12 = vrot.slane %v4182_v49, %v16705_v46  ;;  %v4183_v51 = vadd.f32 %v4171_v37, %v16707_v47 }
0x1613   :  { %v4227_v22 = vsel %vm544_vm5, %v4205_v16, %v4226_v48  ;;  %v4174_v28 = vpop.xlane.xlu1 %4173 }
0x1614   :  { %v4228_v25 = vsel %vm546_vm6, %v4209_v35, %v4227_v22  ;;  %v4217_v6 = vrot.slane %v4183_v51, %v16705_v46  ;;  %v4184_v20 = vadd.f32 %v4174_v28, %v16707_v47 }
0x1615   :  { %v4229_v38 = vsel %vm548_vm7, %v4213_v12, %v4228_v25  ;;  %v4177_v34 = vpop.xlane.xlu0 %4176 }
0x1616   :  { %v4221_v19 = vrot.slane %v4184_v20, %v16705_v46  ;;  %v4185_v5 = vadd.f32 %v4177_v34, %v16707_v47  ;;  %v4230_v55 = vsel %vm550_vm8, %v4217_v6, %v4229_v38 }
0x1618   :  { %v4225_v21 = vrot.slane %v4185_v5, %v16705_v46  ;;  %v4231_v33 = vsel %vm552_vm9, %v4221_v19, %v4230_v55 }
0x161a   :  { %v4232_v15 = vsel %vm554_vm10, %v4225_v21, %v4231_v33 }
0x161b   :  { %v4234_v9 = vsel %vm78_vm0, %v4232_v15, -inf }
0x161c   :  { %4235 = vmax.xlane.f32.xlu1 %v4234_v9  ;;  %v56_v9 = vld [vmem:[%s21212_s0 + $0x10] sm:$0xff] }
0x16a9   :  { %v4236_v60 = vpop.xlane.xlu1 %4235 }
0x16aa   :  { %v4241_v3 = vrot.slane %v4236_v60, %v16734_v23  ;;  %v4245_v59 = vrot.slane %v4236_v60, %v16737_v24  ;;  %v4249_v52 = vrot.slane %v4236_v60, %v16740_v31  ;;  %v4253_v58 = vrot.slane %v4236_v60, %v16743_v32 }
0x16ab   :  { %v4261_v44 = vrot.slane %v4236_v60, %v16753_v61  ;;  %v4257_v16 = vrot.slane %v4236_v60, %v16749_v42  ;;  %v4269_v12 = vrot.slane %v4236_v60, %v21371_v53  ;;  %v4265_v25 = vrot.slane %v4236_v60, %v16757_v13 }
0x16ac   :  { %v4278_v45 = vsub.f32 %v4178_v54, %v4241_v3  ;;  %v4279_v18 = vsub.f32 %v4179_v1, %v4245_v59  ;;  %v4281_v17 = vsub.f32 %v4181_v0, %v4253_v58  ;;  %v4280_v37 = vsub.f32 %v4180_v43, %v4249_v52 }
0x16ad   :  { %v4283_v22 = vsub.f32 %v4183_v51, %v4261_v44  ;;  %v4282_v6 = vsub.f32 %v4182_v49, %v4257_v16  ;;  %v4285_v34 = vsub.f32 %v4185_v5, %v4269_v12  ;;  %v4284_v1 = vsub.f32 %v4184_v20, %v4265_v25 }
0x16ae   :  { %v4286_v35 = vmul.f32 1.442695, %v4278_v45  ;;  %v4288_v48 = vmul.f32 1.442695, %v4279_v18  ;;  %v4292_v28 = vmul.f32 1.442695, %v4281_v17  ;;  %v4438_v60 = vrot.slane %v56_v9, %v16734_v23 }
0x16af   :  { %v4290_v38 = vmul.f32 1.442695, %v4280_v37  ;;  %v4296_v54 = vmul.f32 1.442695, %v4283_v22  ;;  %v4294_v0 = vmul.f32 1.442695, %v4282_v6  ;;  %v4445_v3 = vrot.slane %v56_v9, %v16737_v24 }
0x16b0   :  { %15966 = vpow2.f32 %v4286_v35  ;;  %v4300_v43 = vmul.f32 1.442695, %v4285_v34  ;;  %v4298_v19 = vmul.f32 1.442695, %v4284_v1  ;;  %v4452_v59 = vrot.slane %v56_v9, %v16740_v31 }
0x16b1   :  { %15968 = vpow2.f32 %v4288_v48  ;;  %v4459_v52 = vrot.slane %v56_v9, %v16743_v32  ;;  %v4466_v58 = vrot.slane %v56_v9, %v16749_v42  ;;  %v4473_v44 = vrot.slane %v56_v9, %v16753_v61 }
0x16b2   :  { %15970 = vpow2.f32 %v4292_v28  ;;  %v4480_v45 = vrot.slane %v56_v9, %v16757_v13  ;;  %v4487_v18 = vrot.slane %v56_v9, %v21371_v53 }
0x16b3   :  { %15972 = vpow2.f32 %v4290_v38 }
0x16b4   :  { %15974 = vpow2.f32 %v4296_v54 }
0x16b5   :  { %15976 = vpow2.f32 %v4294_v0 }
0x16b6   :  { %15978 = vpow2.f32 %v4300_v43 }
0x16b7   :  { %15980 = vpow2.f32 %v4298_v19 }
0x16ba   :  { %v18066_v55 = vpop.eup %15966 }
0x16bb   :  { %v18068_v51 = vpop.eup %15968  ;;  %4311 = vperm.xlu0 %15813, %v18066_v55  }
0x16bc   :  { %4314 = vperm.xlu1 %15812, %v18068_v51   ;;  %v18072_v49 = vpop.eup %15970 }
0x16bd   :  { %v18074_v5 = vpop.eup %15972 }
0x16be   :  { %v18078_v20 = vpop.eup %15974 }
0x16bf   :  { %4320 = vperm.xlu0 %15813, %v18072_v49   ;;  %v18080_v21 = vpop.eup %15976 }
0x16c0   :  { %4317 = vperm.xlu1 %15812, %v18074_v5   ;;  %v18084_v33 = vpop.eup %15978 }
0x16c1   :  { %v18086_v15 = vpop.eup %15980 }
0x16c3   :  { %4326 = vperm.xlu0 %15813, %v18078_v20  }
0x16c4   :  { %4323 = vperm.xlu1 %15812, %v18080_v21  }
0x16c7   :  { %4332 = vperm.xlu0 %15813, %v18084_v33  }
0x16c8   :  { %4329 = vperm.xlu1 %15812, %v18086_v15  }
0x16cb   :  { %4440 = vbcast.lane.b32.xlu0 %v4438_v60, 256 }
0x16cf   :  { %4447 = vbcast.lane.b32.xlu0 %v4445_v3, 256 }
0x16d3   :  { %4454 = vbcast.lane.b32.xlu0 %v4452_v59, 256 }
0x16d7   :  { %4461 = vbcast.lane.b32.xlu0 %v4459_v52, 256 }
0x16db   :  { %4468 = vbcast.lane.b32.xlu0 %v4466_v58, 256 }
0x16df   :  { %4475 = vbcast.lane.b32.xlu0 %v4473_v44, 256 }
0x16e3   :  { %4482 = vbcast.lane.b32.xlu0 %v4480_v45, 256 }
0x16e7   :  { %4489 = vbcast.lane.b32.xlu0 %v4487_v18, 256 }
0x173a   :  { %v4312_v17 = vpop.permute.xlu0 %4311 }
0x173b   :  { %v4315_v16 = vpop.permute.xlu1 %4314  ;;  %v4337_v35 = vrot.slane %v4312_v17, %v16705_v46 }
0x173c   :  { %v4341_v37 = vrot.slane %v4315_v16, %v16705_v46 }
0x173e   :  { %v4321_v48 = vpop.permute.xlu0 %4320  ;;  %v4366_v28 = vsel %vm542_vm4, %v4341_v37, %v4337_v35 }
0x173f   :  { %v4318_v12 = vpop.permute.xlu1 %4317  ;;  %v4349_v25 = vrot.slane %v4321_v48, %v16705_v46 }
0x1740   :  { %v4345_v22 = vrot.slane %v4318_v12, %v16705_v46 }
0x1742   :  { %v4367_v6 = vsel %vm544_vm5, %v4345_v22, %v4366_v28  ;;  %v4327_v38 = vpop.permute.xlu0 %4326 }
0x1743   :  { %v4324_v34 = vpop.permute.xlu1 %4323  ;;  %v4368_v1 = vsel %vm546_vm6, %v4349_v25, %v4367_v6  ;;  %v4357_v0 = vrot.slane %v4327_v38, %v16705_v46 }
0x1744   :  { %v4353_v54 = vrot.slane %v4324_v34, %v16705_v46 }
0x1746   :  { %v4369_v43 = vsel %vm548_vm7, %v4353_v54, %v4368_v1  ;;  %v4333_v19 = vpop.permute.xlu0 %4332 }
0x1747   :  { %v4330_v9 = vpop.permute.xlu1 %4329  ;;  %v4365_v60 = vrot.slane %v4333_v19, %v16705_v46  ;;  %v4370_v59 = vsel %vm550_vm8, %v4357_v0, %v4369_v43 }
0x1748   :  { %v4361_v3 = vrot.slane %v4330_v9, %v16705_v46 }
0x174a   :  { %v4371_v52 = vsel %vm552_vm9, %v4361_v3, %v4370_v59  ;;  %v4441_v45 = vpop.permute.xlu0 %4440 }
0x174b   :  { %v4372_v58 = vsel %vm554_vm10, %v4365_v60, %v4371_v52 }
0x174c   :  { %v4374_v44 = vsel %vm78_vm0, %v4372_v58, 0.0 }
0x174d   :  { %4375 = vadd.xlane.f32.xlu1 %v4374_v44 }
0x174e   :  { %v4448_v18 = vpop.permute.xlu0 %4447 }
0x1752   :  { %v4455_v17 = vpop.permute.xlu0 %4454 }
0x1756   :  { %v4462_v22 = vpop.permute.xlu0 %4461 }
0x175a   :  { %v4469_v6 = vpop.permute.xlu0 %4468 }
0x175e   :  { %v4476_v0 = vpop.permute.xlu0 %4475 }
0x17da   :  { %v4376_v16 = vpop.xlane.xlu1 %4375 }
0x17db   :  { %v4405_v37 = vrot.slane %v4376_v16, %v16757_v13  ;;  %v4381_v35 = vrot.slane %v4376_v16, %v16734_v23  ;;  %v4385_v48 = vrot.slane %v4376_v16, %v16737_v24  ;;  %v4389_v12 = vrot.slane %v4376_v16, %v16740_v31 }
0x17dc   :  { %v4393_v28 = vrot.slane %v4376_v16, %v16743_v32  ;;  %v4397_v25 = vrot.slane %v4376_v16, %v16749_v42  ;;  %v4401_v38 = vrot.slane %v4376_v16, %v16753_v61  ;;  %v4409_v9 = vrot.slane %v4376_v16, %v21371_v53 }
0x17dd   :  { %15982 = vrcp.f32 %v4405_v37 }
0x17de   :  { %15984 = vrcp.f32 %v4381_v35 }
0x17df   :  { %15986 = vrcp.f32 %v4385_v48 }
0x17e0   :  { %15988 = vrcp.f32 %v4389_v12 }
0x17e1   :  { %15990 = vrcp.f32 %v4393_v28 }
0x17e2   :  { %15992 = vrcp.f32 %v4397_v25 }
0x17e3   :  { %15994 = vrcp.f32 %v4401_v38 }
0x17e4   :  { %15996 = vrcp.f32 %v4409_v9 }
0x17e7   :  { %v15983_v34 = vpop.eup %15982 }
0x17e8   :  { %v15985_v54 = vpop.eup %15984  ;;  %v18136_v58 = vmul.f32 %v15983_v34, %v18086_v15 }
0x17e9   :  { %v15987_v1 = vpop.eup %15986  ;;  %v18125_v43 = vmul.f32 %v15985_v54, %v18066_v55  ;;  %v4483_v55 = vpop.permute.xlu0 %4482 }
0x17ea   :  { %v15989_v19 = vpop.eup %15988  ;;  %v18129_v60 = vmul.f32 %v15987_v1, %v18068_v51  ;;  %21391 = vst [vmem:[#allocation30_spill] sm:$0xff] %v18136_v58 }
0x17eb   :  { %21388 = vst [vmem:[#allocation18_spill] sm:$0xff] %v18125_v43  ;;  %v4499_v3 = vmul.f32 %v4441_v45, %v18125_v43  ;;  %v18133_v59 = vmul.f32 %v15989_v19, %v18074_v5  ;;  %v15991_v52 = vpop.eup %15990  ;;  %v4505_v45 = vmul.f32 %v4483_v55, %v18136_v58 }
0x17ec   :  { %21389 = vst [vmem:[#allocation28_spill] sm:$0xff] %v18129_v60  ;;  %v4500_v44 = vmul.f32 %v4448_v18, %v18129_v60  ;;  %v18141_v51 = vmul.f32 %v15991_v52, %v18072_v49  ;;  %v15993_v37 = vpop.eup %15992 }
0x17ed   :  { %21390 = vst [vmem:[#allocation29_spill] sm:$0xff] %v18133_v59  ;;  %4586 = vperm.xlu0 %15813, %v4499_v3   ;;  %v4501_v16 = vmul.f32 %v4455_v17, %v18133_v59  ;;  %v18145_v5 = vmul.f32 %v15993_v37, %v18080_v21  ;;  %v15995_v18 = vpop.eup %15994  ;;  %v4490_v28 = vpop.permute.xlu0 %4489 }
0x17ee   :  { %4589 = vperm.xlu1 %15812, %v4500_v44   ;;  %21392 = vst [vmem:[#allocation31_spill] sm:$0xff] %v18141_v51  ;;  %v4502_v15 = vmul.f32 %v4462_v22, %v18141_v51  ;;  %v18150_v48 = vmul.f32 %v15995_v18, %v18078_v20  ;;  %v15997_v17 = vpop.eup %15996 }
0x17ef   :  { %21393 = vst [vmem:[#allocation32_spill] sm:$0xff] %v18145_v5  ;;  %v4503_v35 = vmul.f32 %v4469_v6, %v18145_v5  ;;  %v18154_v12 = vmul.f32 %v15997_v17, %v18084_v33 }
0x17f0   :  { %21394 = vst [vmem:[#allocation33_spill] sm:$0xff] %v18150_v48  ;;  %v4504_v49 = vmul.f32 %v4476_v0, %v18150_v48 }
0x17f1   :  { %4592 = vperm.xlu0 %15813, %v4501_v16   ;;  %21395 = vst [vmem:[#allocation34_spill] sm:$0xff] %v18154_v12  ;;  %v4506_v21 = vmul.f32 %v4490_v28, %v18154_v12 }
0x17f2   :  { %4604 = vperm.xlu1 %15812, %v4505_v45  }
0x17f5   :  { %4595 = vperm.xlu0 %15813, %v4502_v15  }
0x17f9   :  { %4598 = vperm.xlu0 %15813, %v4503_v35  }
0x17fd   :  { %4601 = vperm.xlu0 %15813, %v4504_v49  }
0x1801   :  { %4607 = vperm.xlu0 %15813, %v4506_v21  }
0x186c   :  { %v4587_v22 = vpop.permute.xlu0 %4586 }
0x186d   :  { %v4590_v38 = vpop.permute.xlu1 %4589  ;;  %v4612_v20 = vrot.slane %v4587_v22, %v16705_v46  ;;  %v16372_v22 = vld [vmem:[%s21215_s11] ss:$0 sm:$0xff] }
0x186e   :  { %v4616_v6 = vrot.slane %v4590_v38, %v16705_v46 }
0x1870   :  { %v4593_v25 = vpop.permute.xlu0 %4592  ;;  %v4641_v19 = vsel %vm542_vm4, %v4616_v6, %v4612_v20 }
0x1871   :  { %v4620_v54 = vrot.slane %v4593_v25, %v16705_v46  ;;  %v4605_v52 = vpop.permute.xlu1 %4604 }
0x1872   :  { %v4636_v45 = vrot.slane %v4605_v52, %v16705_v46 }
0x1873   :  { %v4642_v9 = vsel %vm544_vm5, %v4620_v54, %v4641_v19 }
0x1874   :  { %v4596_v34 = vpop.permute.xlu0 %4595 }
0x1875   :  { %v4624_v0 = vrot.slane %v4596_v34, %v16705_v46 }
0x1877   :  { %v4643_v44 = vsel %vm546_vm6, %v4624_v0, %v4642_v9 }
0x1878   :  { %v4599_v1 = vpop.permute.xlu0 %4598 }
0x1879   :  { %v4628_v33 = vrot.slane %v4599_v1, %v16705_v46 }
0x187b   :  { %v4644_v16 = vsel %vm548_vm7, %v4628_v33, %v4643_v44 }
0x187c   :  { %v4602_v3 = vpop.permute.xlu0 %4601 }
0x187d   :  { %v4632_v55 = vrot.slane %v4602_v3, %v16705_v46 }
0x187f   :  { %v4645_v37 = vsel %vm550_vm8, %v4632_v55, %v4644_v16 }
0x1880   :  { %v4608_v15 = vpop.permute.xlu0 %4607  ;;  %v4646_v35 = vsel %vm552_vm9, %v4636_v45, %v4645_v37 }
0x1881   :  { %v4640_v18 = vrot.slane %v4608_v15, %v16705_v46 }
0x1883   :  { %v4647_v17 = vsel %vm554_vm10, %v4640_v18, %v4646_v35 }
0x1884   :  { %15308 = vmatmul.mubr.msk.f32.vlgmr.msra.gmra.mrb[20].mxu1 %vm78_vm0, %v4647_v17 }
0x1885   :  { %15666 = vmatpush3.bf16.msra.mxu1 %v17088_v11  ;;  %15329 = vmatprep.mubr.msk.f32.mxu1 %vm16394_vm11, %v21351_v56 }
0x1886   :  { %15667 = vmatprep.subr.bf16.mxu1 %v21352_v50 }
0x1889   :  { %15669 = vmatpush3.bf16.msra.mxu1 %v17101_v26 }
0x188a   :  { %15678 = vmatprep.subr.bf16.mxu1 %v21352_v50 }
0x1957   :  { %v4716_v49 = vpop.f32.mrb[20].mxu1 }
0x1958   :  { %v4717_v28 = vadd.f32 %v4716_v49, %v17707_v27  ;;  %v15309_v21 = vpop.f32.mrb[21].mxu1  ;;  %v21397_v49 = vld [vmem:[#allocation3_spill] sm:$0xff] }
0x195a   :  { %v4720_v25 = vadd.f32 %v16372_v22, %v4717_v28  ;;  %v21398_v28 = vld [vmem:[#allocation4_spill] sm:$0xff] }
0x195c   :  { %15998 = vtanh.f32 %v4720_v25  ;;  %v4721_v34 = vsub.f32 0.0, %v4720_v25 }
0x195e   :  { %v4722_v6 = vmul.f32 1.442695, %v4721_v34 }
0x1960   :  { %16000 = vpow2.f32 %v4722_v6  ;;  %v16373_v6 = vld [vmem:[%s21218_s14] ss:$0 sm:$0xff] }
0x1966   :  { %v15999_v38 = vpop.eup %15998 }
0x1967   :  { %4730 = vrot.lane.b32.xlu1 %v15999_v38, %s16396_s22 }
0x196a   :  { %v16001_v20 = vpop.eup %16000 }
0x196b   :  { %v4724_v54 = vadd.f32 1.0, %v16001_v20 }
0x196d   :  { %16002 = vrcp.f32 %v4724_v54 }
0x1977   :  { %v16003_v1 = vpop.eup %16002 }
0x1978   :  { %v4745_v27 = vmul.f32 %v16003_v1, %v17668_v2  ;;  %v4728_v19 = vmul.f32 %v16003_v1, %v17666_v41 }
0x19d9   :  { %v4731_v0 = vpop.permute.xlu1 %4730 }
0x19da   :  { %v4733_v33 = vmul.f32 %v16003_v1, %v4731_v0 }
0x19dc   :  { %4735 = vrot.lane.b32.xlu0 %v4733_v33, %s16391_s26 }
0x1a4e   :  { %v4736_v9 = vpop.permute.xlu0 %4735 }
0x1a4f   :  { %v18187_v3 = vadd.f32 %v4736_v9, %v4728_v19  ;;  %v18189_v52 = vadd.f32 %v4745_v27, %v4736_v9 }
0x1a51   :  { %16004 = vtanh.f32 %v18187_v3 }
0x1a52   :  { %16006 = vtanh.f32 %v18189_v52 }
0x1a5b   :  { %v16005_v44 = vpop.eup %16004 }
0x1a5c   :  { %v16007_v55 = vpop.eup %16006  ;;  %4741 = vrot.lane.b32.xlu1 %v16005_v44, %s16398_s17 }
0x1a5d   :  { %4749 = vrot.lane.b32.xlu0 %v16007_v55, %s16398_s17 }
0x1ace   :  { %v4742_v16 = vpop.permute.xlu1 %4741 }
0x1acf   :  { %v4750_v37 = vpop.permute.xlu0 %4749  ;;  %v18195_v2 = vmul.f32 %v16003_v1, %v4742_v16 }
0x1ad0   :  { %v4752_v41 = vmul.f32 %v16003_v1, %v4750_v37 }
0x1ad1   :  { %4754 = vrot.lane.b32.xlu1 %v18195_v2, %s16397_s5 }
0x1ad2   :  { %4758 = vrot.lane.b32.xlu0 %v4752_v41, %s16398_s17  ;;  %v5012_v9 = vrot.slane %v4752_v41, %v17138_v39  ;;  %v5005_v44 = vcombine.high %v4752_v41, %v4752_v41 }
0x1ad4   :  { %v5020_v55 = vcombine.high %v5012_v9, %v5012_v9 }
0x1ad5   :  { %4762 = vrot.lane.b32.xlu1 %v17829_v4, %s16397_s5 }
0x1ad6   :  { %4765 = vrot.lane.b32.xlu0 %v17749_v57, %s16398_s17  ;;  %v21396_v57 = vld [vmem:[#allocation15_spill] sm:$0xff] }
0x1b43   :  { %v4755_v45 = vpop.permute.xlu1 %4754 }
0x1b44   :  { %v4759_v15 = vpop.permute.xlu0 %4758 }
0x1b45   :  { %v4761_v18 = vsel %vm277_vm1, %v4755_v45, %v4759_v15  ;;  %v5019_v45 = vrot.slane %v5005_v44, %v17138_v39 }
0x1b46   :  { %15330 = vmatmul.mubr.msk.f32.vlgmr.msra.gmra.mrb[22].mxu1 %vm298_vm2, %v4761_v18 }
0x1b47   :  { %15680 = vmatpush3.bf16.msra.mxu1 %v21381_v10  ;;  %v4763_v35 = vpop.permute.xlu1 %4762  ;;  %15354 = vmatprep.mubr.msk.f32.mxu1 %vm16394_vm11, %v21351_v56 }
0x1b48   :  { %v4766_v17 = vpop.permute.xlu0 %4765  ;;  %15681 = vmatprep.subr.bf16.mxu1 %v21352_v50 }
0x1b49   :  { %v4768_v4 = vsel %vm277_vm1, %v4763_v35, %v4766_v17  ;;  %v5021_v35 = vcombine.high %v5019_v45, %v5019_v45 }
0x1b4a   :  { %15319 = vmatmul.mubr.msk.f32.vlgmr.msra.gmra.mrb[18].mxu0 %vm298_vm2, %v4768_v4 }
0x1b4b   :  { %15683 = vmatpush3.bf16.msra.mxu1 %v21396_v57  ;;  %15673 = vmatpush3.bf16.msra.mxu0 %v21397_v49 }
0x1b4c   :  { %15675 = vmatprep.subr.bf16.mxu0 %v21398_v28  ;;  %15357 = vmatprep.subr.mxu1 %v21351_v56 }
0x1b4e   :  { %15355 = vmatmul.mubr.msk.f32.vlgmr.msra.gmra.mrb[24].mxu1 %vm298_vm2, %v4761_v18  ;;  %v5042_v18 = vrot.slane %v5020_v55, %v17138_v39 }
0x1b4f   :  { %15677 = vmatpush3.bf16.msra.mxu0 %v21398_v28  ;;  %15358 = vmatpush3.msra.mxu1 %v17987_v14 }
0x1b50   :  { %15359 = vmatprep.mubr.msk.f32.mxu1 %vm16394_vm11, %v21351_v56  ;;  %15690 = vmatprep.subr.bf16.mxu1 %v21352_v50  ;;  %v5161_v17 = vrot.slane %v5042_v18, %v16734_v23  ;;  %v5052_v4 = vcombine.high %v5042_v18, %v5042_v18  ;;  %v5035_v18 = vrot.slane %v5019_v45, %v17138_v39 }
0x1b51   :  { %15684 = vmatprep.subr.bf16.mxu0 %v21352_v50 }
0x1b52   :  { %v5169_v41 = vrot.slane %v5052_v4, %v16734_v23 }
0x1c19   :  { %v4911_v21 = vpop.f32.mrb[22].mxu1 }
0x1c1a   :  { %v15331_v22 = vpop.f32.mrb[23].mxu1 }
0x1c1d   :  { %v4838_v25 = vpop.f32.mrb[18].mxu0 }
0x1c1e   :  { %v4912_v38 = vadd.f32 %v4911_v21, %v4838_v25  ;;  %v15320_v34 = vpop.f32.mrb[19].mxu0  ;;  %v5049_v21 = vrot.slane %v5021_v35, %v17138_v39  ;;  %v21399_v25 = vld [vmem:[#allocation19_spill] sm:$0xff]  ;;  %v5051_v35 = vcombine.high %v5035_v18, %v5035_v18 }
0x1c1f   :  { %v21400_v34 = vld [vmem:[#allocation20_spill] sm:$0xff] }
0x1c20   :  { %v4915_v20 = vadd.f32 %v16373_v6, %v4912_v38  ;;  %v5177_v22 = vrot.slane %v5049_v21, %v16734_v23 }
0x1c21   :  { %v18226_v54 = vpop.f32.mrb[24].mxu1 }
0x1c22   :  { %16008 = vtanh.f32 %v4915_v20  ;;  %v15356_v14 = vpop.f32.mrb[25].mxu1  ;;  %v4916_v0 = vsub.f32 0.0, %v4915_v20 }
0x1c24   :  { %v4917_v33 = vmul.f32 1.442695, %v4916_v0  ;;  %v5053_v0 = vcombine.high %v5049_v21, %v5049_v21 }
0x1c26   :  { %16010 = vpow2.f32 %v4917_v33  ;;  %v5185_v44 = vrot.slane %v5053_v0, %v16734_v23 }
0x1c2c   :  { %v16009_v1 = vpop.eup %16008 }
0x1c2d   :  { %4925 = vrot.lane.b32.xlu1 %v16009_v1, %s16396_s22 }
0x1c30   :  { %v16011_v27 = vpop.eup %16010 }
0x1c31   :  { %v4919_v19 = vadd.f32 1.0, %v16011_v27  ;;  %v5028_v27 = vrot.slane %v5012_v9, %v17138_v39  ;;  %v5173_v9 = vrot.slane %v5035_v18, %v16734_v23 }
0x1c33   :  { %16012 = vrcp.f32 %v4919_v19  ;;  %v5157_v55 = vrot.slane %v5028_v27, %v16734_v23 }
0x1c3d   :  { %v18230_v16 = vpop.eup %16012 }
0x1c3e   :  { %v4940_v38 = vmul.f32 %v18230_v16, %v21399_v25  ;;  %v4923_v6 = vmul.f32 %v18230_v16, %v21400_v34 }
0x1c9f   :  { %v4926_v37 = vpop.permute.xlu1 %4925 }
0x1ca0   :  { %v4928_v15 = vmul.f32 %v18230_v16, %v4926_v37  ;;  %v5050_v37 = vcombine.high %v5028_v27, %v5028_v27 }
0x1ca2   :  { %4930 = vrot.lane.b32.xlu0 %v4928_v15, %s16391_s26  ;;  %v5165_v15 = vrot.slane %v5050_v37, %v16734_v23 }
0x1ca6   :  { %5188 = vrot.lane.b32.xlu0 %v5161_v17, %s16400_s23  ;;  %v5181_v17 = vrot.slane %v5051_v35, %v16734_v23 }
0x1caa   :  { %5192 = vrot.lane.b32.xlu0 %v5169_v41, %s16400_s23 }
0x1cae   :  { %5196 = vrot.lane.b32.xlu0 %v5177_v22, %s16400_s23 }
0x1d14   :  { %v4931_v20 = vpop.permute.xlu0 %4930 }
0x1d15   :  { %v18247_v14 = vadd.f32 %v4931_v20, %v4923_v6  ;;  %v18249_v1 = vadd.f32 %v4940_v38, %v4931_v20 }
0x1d17   :  { %21401 = vst [vmem:[#allocation19_spill] sm:$0xff] %v18247_v14  ;;  %21402 = vst [vmem:[#allocation20_spill] sm:$0xff] %v18249_v1  ;;  %16014 = vtanh.f32 %v18247_v14 }
0x1d18   :  { %16016 = vtanh.f32 %v18249_v1 }
0x1d21   :  { %v16015_v33 = vpop.eup %16014 }
0x1d22   :  { %v16017_v19 = vpop.eup %16016  ;;  %4936 = vrot.lane.b32.xlu0 %v16015_v33, %s16398_s17 }
0x1d23   :  { %4944 = vrot.lane.b32.xlu1 %v16017_v19, %s16398_s17 }
0x1d26   :  { %5200 = vrot.lane.b32.xlu0 %v5185_v44, %s16400_s23 }
0x1d27   :  { %5186 = vrot.lane.b32.xlu1 %v5157_v55, %s16400_s23 }
0x1d2b   :  { %5190 = vrot.lane.b32.xlu1 %v5165_v15, %s16400_s23  ;;  %v5396_v15 = vrot.slane %v18189_v52, %v17138_v39 }
0x1d2f   :  { %5194 = vrot.lane.b32.xlu1 %v5173_v9, %s16400_s23 }
0x1d33   :  { %5198 = vrot.lane.b32.xlu1 %v5181_v17, %s16400_s23 }
0x1d95   :  { %v4945_v4 = vpop.permute.xlu1 %4944 }
0x1d96   :  { %v18268_v41 = vmul.f32 %v18230_v16, %v4945_v4  ;;  %v5404_v4 = vcombine.high %v5396_v15, %v5396_v15 }
0x1d98   :  { %v5105_v21 = vcombine.high %v18268_v41, %v18268_v41  ;;  %v5112_v45 = vrot.slane %v18268_v41, %v17138_v39 }
0x1d9a   :  { %v5119_v22 = vrot.slane %v5105_v21, %v17138_v39  ;;  %v5120_v25 = vcombine.high %v5112_v45, %v5112_v45  ;;  %v5128_v38 = vrot.slane %v5112_v45, %v17138_v39  ;;  %v5412_v45 = vrot.slane %v5396_v15, %v17138_v39 }
0x1d9c   :  { %v5253_v34 = vrot.slane %v5128_v38, %v16734_v23  ;;  %v5142_v6 = vrot.slane %v5120_v25, %v17138_v39  ;;  %v5150_v20 = vcombine.high %v5128_v38, %v5128_v38  ;;  %v5121_v0 = vcombine.high %v5119_v22, %v5119_v22 }
0x1d9d   :  { %v5135_v44 = vrot.slane %v5119_v22, %v17138_v39  ;;  %v5426_v25 = vrot.slane %v5404_v4, %v17138_v39  ;;  %v5496_v38 = vrot.slane %v18249_v1, %v17138_v39 }
0x1d9e   :  { %5282 = vrot.lane.b32.xlu1 %v5253_v34, %s16400_s23  ;;  %v5257_v33 = vrot.slane %v5142_v6, %v16734_v23  ;;  %v5152_v27 = vcombine.high %v5142_v6, %v5142_v6  ;;  %v5261_v19 = vrot.slane %v5150_v20, %v16734_v23  ;;  %v5149_v37 = vrot.slane %v5121_v0, %v17138_v39 }
0x1d9f   :  { %v5269_v18 = vrot.slane %v5135_v44, %v16734_v23  ;;  %v5151_v9 = vcombine.high %v5135_v44, %v5135_v44  ;;  %v5541_v34 = vrot.slane %v5412_v45, %v16734_v23  ;;  %v5434_v6 = vcombine.high %v5412_v45, %v5412_v45 }
0x1da0   :  { %5284 = vrot.lane.b32.xlu0 %v5257_v33, %s16400_s23  ;;  %v5265_v55 = vrot.slane %v5152_v27, %v16734_v23  ;;  %v5273_v35 = vrot.slane %v5149_v37, %v16734_v23  ;;  %v5153_v17 = vcombine.high %v5149_v37, %v5149_v37  ;;  %v5389_v20 = vcombine.high %v18189_v52, %v18189_v52 }
0x1da1   :  { %v5277_v21 = vrot.slane %v5151_v9, %v16734_v23  ;;  %v5545_v0 = vrot.slane %v5426_v25, %v16734_v23  ;;  %v5436_v33 = vcombine.high %v5426_v25, %v5426_v25  ;;  %v5504_v27 = vcombine.high %v5496_v38, %v5496_v38 }
0x1da2   :  { %5286 = vrot.lane.b32.xlu1 %v5261_v19, %s16400_s23  ;;  %v5281_v22 = vrot.slane %v5153_v17, %v16734_v23  ;;  %v5549_v19 = vrot.slane %v5434_v6, %v16734_v23  ;;  %v5512_v44 = vrot.slane %v5496_v38, %v17138_v39  ;;  %v5403_v15 = vrot.slane %v5389_v20, %v17138_v39 }
0x1da3   :  { %v5526_v37 = vrot.slane %v5504_v27, %v17138_v39 }
0x1da4   :  { %5288 = vrot.lane.b32.xlu0 %v5265_v55, %s16400_s23  ;;  %v5553_v55 = vrot.slane %v5436_v33, %v16734_v23  ;;  %v5534_v9 = vcombine.high %v5512_v44, %v5512_v44 }
0x1da5   :  { %v5641_v17 = vrot.slane %v5526_v37, %v16734_v23  ;;  %v5536_v4 = vcombine.high %v5526_v37, %v5526_v37 }
0x1da6   :  { %5290 = vrot.lane.b32.xlu1 %v5269_v18, %s16400_s23  ;;  %v5637_v18 = vrot.slane %v5512_v44, %v16734_v23  ;;  %v5645_v45 = vrot.slane %v5534_v9, %v16734_v23 }
0x1da7   :  { %v5649_v25 = vrot.slane %v5536_v4, %v16734_v23 }
0x1da8   :  { %5292 = vrot.lane.b32.xlu0 %v5273_v35, %s16400_s23  ;;  %v5489_v35 = vcombine.high %v18249_v1, %v18249_v1 }
0x1daa   :  { %5294 = vrot.lane.b32.xlu1 %v5277_v21, %s16400_s23  ;;  %v5405_v21 = vcombine.high %v5403_v15, %v5403_v15 }
0x1dac   :  { %5296 = vrot.lane.b32.xlu0 %v5281_v22, %s16400_s23  ;;  %v5419_v22 = vrot.slane %v5403_v15, %v17138_v39  ;;  %v5433_v38 = vrot.slane %v5405_v21, %v17138_v39  ;;  %v5189_v21 = vpop.permute.xlu0 %5188 }
0x1dae   :  { %5570 = vrot.lane.b32.xlu1 %v5541_v34, %s16400_s23  ;;  %v5503_v34 = vrot.slane %v5489_v35, %v17138_v39  ;;  %v5557_v6 = vrot.slane %v5419_v22, %v16734_v23  ;;  %v5435_v20 = vcombine.high %v5419_v22, %v5419_v22  ;;  %v5437_v33 = vcombine.high %v5433_v38, %v5433_v38 }
0x1db0   :  { %5572 = vrot.lane.b32.xlu0 %v5545_v0, %s16400_s23  ;;  %v5561_v0 = vrot.slane %v5433_v38, %v16734_v23  ;;  %v5505_v27 = vcombine.high %v5503_v34, %v5503_v34  ;;  %v5519_v44 = vrot.slane %v5503_v34, %v17138_v39 }
0x1db2   :  { %5574 = vrot.lane.b32.xlu1 %v5549_v19, %s16400_s23  ;;  %v5565_v19 = vrot.slane %v5435_v20, %v16734_v23  ;;  %v5533_v37 = vrot.slane %v5505_v27, %v17138_v39  ;;  %v5653_v15 = vrot.slane %v5519_v44, %v16734_v23 }
0x1db4   :  { %5576 = vrot.lane.b32.xlu0 %v5553_v55, %s16400_s23  ;;  %v5569_v55 = vrot.slane %v5437_v33, %v16734_v23  ;;  %v5657_v9 = vrot.slane %v5533_v37, %v16734_v23  ;;  %v5537_v35 = vcombine.high %v5533_v37, %v5533_v37 }
0x1db6   :  { %5666 = vrot.lane.b32.xlu1 %v5637_v18, %s16400_s23  ;;  %v5535_v18 = vcombine.high %v5519_v44, %v5519_v44  ;;  %v5665_v4 = vrot.slane %v5537_v35, %v16734_v23 }
0x1db8   :  { %5668 = vrot.lane.b32.xlu0 %v5641_v17, %s16400_s23  ;;  %v5661_v17 = vrot.slane %v5535_v18, %v16734_v23 }
0x1dba   :  { %5670 = vrot.lane.b32.xlu1 %v5645_v45, %s16400_s23  ;;  %v5193_v45 = vpop.permute.xlu0 %5192 }
0x1dbc   :  { %5672 = vrot.lane.b32.xlu0 %v5649_v25, %s16400_s23  ;;  %v5187_v25 = vpop.permute.xlu1 %5186 }
0x1dbe   :  { %5578 = vrot.lane.b32.xlu1 %v5557_v6, %s16400_s23  ;;  %v18345_v22 = vpop.permute.xlu0 %5196 }
0x1dc0   :  { %5580 = vrot.lane.b32.xlu0 %v5561_v0, %s16400_s23  ;;  %v5191_v6 = vpop.permute.xlu1 %5190 }
0x1dc2   :  { %5582 = vrot.lane.b32.xlu1 %v5565_v19, %s16400_s23  ;;  %v4937_v38 = vpop.permute.xlu0 %4936  ;;  %v4955_v19 = vrot.slane %v18195_v2, %v17138_v39 }
0x1dc3   :  { %v18348_v34 = vmul.f32 %v18230_v16, %v4937_v38  ;;  %v4948_v16 = vcombine.high %v18195_v2, %v18195_v2 }
0x1dc4   :  { %5584 = vrot.lane.b32.xlu0 %v5569_v55, %s16400_s23  ;;  %v5195_v27 = vpop.permute.xlu1 %5194  ;;  %v4971_v18 = vrot.slane %v4955_v19, %v17138_v39 }
0x1dc5   :  { %v5062_v20 = vrot.slane %v18348_v34, %v17138_v39  ;;  %v5055_v0 = vcombine.high %v18348_v34, %v18348_v34 }
0x1dc6   :  { %5674 = vrot.lane.b32.xlu1 %v5653_v15, %s16400_s23  ;;  %v4963_v15 = vcombine.high %v4955_v19, %v4955_v19  ;;  %v5201_v38 = vpop.permute.xlu0 %5200  ;;  %v4993_v58 = vcombine.high %v4971_v18, %v4971_v18 }
0x1dc7   :  { %v5070_v33 = vcombine.high %v5062_v20, %v5062_v20  ;;  %v5078_v44 = vrot.slane %v5062_v20, %v17138_v39  ;;  %v5069_v55 = vrot.slane %v5055_v0, %v17138_v39  ;;  %v4962_v20 = vrot.slane %v4948_v16, %v17138_v39 }
0x1dc8   :  { %5676 = vrot.lane.b32.xlu0 %v5657_v9, %s16400_s23  ;;  %v5199_v35 = vpop.permute.xlu1 %5198  ;;  %v4985_v0 = vrot.slane %v4963_v15, %v17138_v39  ;;  %v5308_v60 = vsel %vm1773_vm13, %v4993_v58, %v5191_v6 }
0x1dc9   :  { %v5092_v37 = vrot.slane %v5070_v33, %v17138_v39  ;;  %v5100_v9 = vcombine.high %v5078_v44, %v5078_v44  ;;  %v5306_v33 = vsel %vm1773_vm13, %v4971_v18, %v5187_v25 }
0x1dca   :  { %5678 = vrot.lane.b32.xlu1 %v5661_v17, %s16400_s23  ;;  %v5213_v17 = vrot.slane %v5078_v44, %v16734_v23  ;;  %v5307_v5 = vsel %vm1773_vm13, %v4985_v0, %v5189_v21  ;;  %v5085_v44 = vrot.slane %v5069_v55, %v17138_v39 }
0x1dcb   :  { %v5217_v12 = vrot.slane %v5092_v37, %v16734_v23  ;;  %v5102_v48 = vcombine.high %v5092_v37, %v5092_v37  ;;  %v5221_v19 = vrot.slane %v5100_v9, %v16734_v23  ;;  %v4978_v9 = vrot.slane %v4962_v20, %v17138_v39 }
0x1dcc   :  { %5680 = vrot.lane.b32.xlu0 %v5665_v4, %s16400_s23  ;;  %v5071_v4 = vcombine.high %v5069_v55, %v5069_v55  ;;  %v5314_v51 = vsel %vm1782_vm14, %v5306_v33, %v5213_v17  ;;  %v4995_v17 = vcombine.high %v4985_v0, %v4985_v0  ;;  %v4964_v33 = vcombine.high %v4962_v20, %v4962_v20 }
0x1dcd   :  { %v5315_v16 = vsel %vm1782_vm14, %v5307_v5, %v5217_v12  ;;  %v5225_v25 = vrot.slane %v5102_v48, %v16734_v23  ;;  %v5316_v58 = vsel %vm1782_vm14, %v5308_v60, %v5221_v19  ;;  %v5310_v5 = vsel %vm1773_vm13, %v4978_v9, %v5195_v27 }
0x1dce   :  { %v5099_v18 = vrot.slane %v5071_v4, %v17138_v39  ;;  %v5229_v48 = vrot.slane %v5085_v44, %v16734_v23  ;;  %v5101_v0 = vcombine.high %v5085_v44, %v5085_v44  ;;  %v4992_v60 = vrot.slane %v4964_v33, %v17138_v39 }
0x1dcf   :  { %v4994_v19 = vcombine.high %v4978_v9, %v4978_v9 }
0x1dd0   :  { %v5233_v20 = vrot.slane %v5099_v18, %v16734_v23  ;;  %v5318_v27 = vsel %vm1782_vm14, %v5310_v5, %v5229_v48  ;;  %v4996_v9 = vcombine.high %v4992_v60, %v4992_v60 }
0x1e10   :  { %v5283_v2 = vpop.permute.xlu1 %5282 }
0x1e11   :  { %v5322_v37 = vsel %vm1791_vm15, %v5314_v51, %v5283_v2  ;;  %v5309_v51 = vsel %vm1773_vm13, %v4995_v17, %v5193_v45  ;;  %v5103_v2 = vcombine.high %v5099_v18, %v5099_v18  ;;  %v5237_v17 = vrot.slane %v5101_v0, %v16734_v23 }
0x1e12   :  { %5722 = vrot.lane.b32.xlu1 %v5322_v37, %s16397_s5  ;;  %v5285_v15 = vpop.permute.xlu0 %5284  ;;  %v5317_v6 = vsel %vm1782_vm14, %v5309_v51, %v5225_v25 }
0x1e13   :  { %v5323_v21 = vsel %vm1791_vm15, %v5315_v16, %v5285_v15  ;;  %v5311_v16 = vsel %vm1773_vm13, %v4992_v60, %v18345_v22  ;;  %v5312_v15 = vsel %vm1773_vm13, %v4994_v19, %v5199_v35  ;;  %v5241_v33 = vrot.slane %v5103_v2, %v16734_v23 }
0x1e14   :  { %v5287_v55 = vpop.permute.xlu1 %5286  ;;  %5724 = vrot.lane.b32.xlu0 %v5323_v21, %s16397_s5  ;;  %v5319_v44 = vsel %vm1782_vm14, %v5311_v16, %v5233_v20  ;;  %v5313_v22 = vsel %vm1773_vm13, %v4996_v9, %v5201_v38  ;;  %v5446_v16 = vrot.slane %v18247_v14, %v17138_v39 }
0x1e15   :  { %v5324_v12 = vsel %vm1791_vm15, %v5316_v58, %v5287_v55  ;;  %v5320_v58 = vsel %vm1782_vm14, %v5312_v15, %v5237_v17  ;;  %v5321_v51 = vsel %vm1782_vm14, %v5313_v22, %v5241_v33  ;;  %v5338_v15 = vrot.slane %v18187_v3, %v17138_v39 }
0x1e16   :  { %5726 = vrot.lane.b32.xlu1 %v5324_v12, %s16397_s5  ;;  %v5289_v4 = vpop.permute.xlu0 %5288  ;;  %v5331_v33 = vcombine.high %v18187_v3, %v18187_v3 }
0x1e17   :  { %v5325_v45 = vsel %vm1791_vm15, %v5317_v6, %v5289_v4  ;;  %v5346_v17 = vcombine.high %v5338_v15, %v5338_v15  ;;  %v5354_v22 = vrot.slane %v5338_v15, %v17138_v39 }
0x1e18   :  { %v5291_v37 = vpop.permute.xlu1 %5290  ;;  %5728 = vrot.lane.b32.xlu0 %v5325_v45, %s16397_s5 }
0x1e19   :  { %v5326_v25 = vsel %vm1791_vm15, %v5318_v27, %v5291_v37  ;;  %v5376_v15 = vcombine.high %v5354_v22, %v5354_v22 }
0x1e1a   :  { %5730 = vrot.lane.b32.xlu1 %v5326_v25, %s16397_s5  ;;  %v5293_v18 = vpop.permute.xlu0 %5292 }
0x1e1b   :  { %v5327_v21 = vsel %vm1791_vm15, %v5319_v44, %v5293_v18  ;;  %v5439_v44 = vcombine.high %v18247_v14, %v18247_v14  ;;  %v5454_v18 = vcombine.high %v5446_v16, %v5446_v16 }
0x1e1c   :  { %v5295_v55 = vpop.permute.xlu1 %5294  ;;  %5732 = vrot.lane.b32.xlu0 %v5327_v21, %s16397_s5  ;;  %v5462_v21 = vrot.slane %v5446_v16, %v17138_v39 }
0x1e1d   :  { %v5328_v35 = vsel %vm1791_vm15, %v5320_v58, %v5295_v55  ;;  %v5476_v55 = vrot.slane %v5454_v18, %v17138_v39  ;;  %v5453_v58 = vrot.slane %v5439_v44, %v17138_v39 }
0x1e1e   :  { %5734 = vrot.lane.b32.xlu1 %v5328_v35, %s16397_s5  ;;  %v5297_v5 = vpop.permute.xlu0 %5296  ;;  %v5368_v35 = vrot.slane %v5346_v17, %v17138_v39  ;;  %v5597_v16 = vrot.slane %v5462_v21, %v16734_v23 }
0x1e1f   :  { %v5329_v12 = vsel %vm1791_vm15, %v5321_v51, %v5297_v5  ;;  %v5345_v51 = vrot.slane %v5331_v33, %v17138_v39  ;;  %v5601_v18 = vrot.slane %v5476_v55, %v16734_v23  ;;  %v5486_v44 = vcombine.high %v5476_v55, %v5476_v55 }
0x1e20   :  { %5736 = vrot.lane.b32.xlu0 %v5329_v12, %s16397_s5  ;;  %v5571_v48 = vpop.permute.xlu1 %5570  ;;  %v5484_v12 = vcombine.high %v5462_v21, %v5462_v21  ;;  %v5455_v1 = vcombine.high %v5453_v58, %v5453_v58  ;;  %v5378_v28 = vcombine.high %v5368_v35, %v5368_v35 }
0x1e21   :  { %v5690_v59 = vsel %vm1773_vm13, %v5354_v22, %v5571_v48  ;;  %v5347_v17 = vcombine.high %v5345_v51, %v5345_v51 }
0x1e22   :  { %v5573_v6 = vpop.permute.xlu0 %5572  ;;  %v5698_v33 = vsel %vm1782_vm14, %v5690_v59, %v5597_v16  ;;  %v5605_v48 = vrot.slane %v5484_v12, %v16734_v23  ;;  %v5483_v12 = vrot.slane %v5455_v1, %v17138_v39 }
0x1e23   :  { %v5691_v43 = vsel %vm1773_vm13, %v5368_v35, %v5573_v6  ;;  %v5469_v6 = vrot.slane %v5453_v58, %v17138_v39 }
0x1e24   :  { %v5575_v4 = vpop.permute.xlu1 %5574  ;;  %v5699_v10 = vsel %vm1782_vm14, %v5691_v43, %v5601_v18  ;;  %v5609_v43 = vrot.slane %v5486_v44, %v16734_v23 }
0x1e25   :  { %v5692_v21 = vsel %vm1773_vm13, %v5376_v15, %v5575_v4  ;;  %v5375_v4 = vrot.slane %v5347_v17, %v17138_v39  ;;  %v5613_v1 = vrot.slane %v5469_v6, %v16734_v23 }
0x1e26   :  { %v5577_v20 = vpop.permute.xlu0 %5576 }
0x1e27   :  { %v5693_v55 = vsel %vm1773_vm13, %v5378_v28, %v5577_v20  ;;  %v5361_v28 = vrot.slane %v5345_v51, %v17138_v39 }
0x1e28   :  { %v5667_v0 = vpop.permute.xlu1 %5666 }
0x1e29   :  { %v5706_v22 = vsel %vm1791_vm15, %v5698_v33, %v5667_v0  ;;  %v5700_v0 = vsel %vm1782_vm14, %v5692_v21, %v5605_v48  ;;  %v5617_v33 = vrot.slane %v5483_v12, %v16734_v23  ;;  %v5487_v48 = vcombine.high %v5483_v12, %v5483_v12 }
0x1e2a   :  { %v5669_v2 = vpop.permute.xlu0 %5668 }
0x1e2b   :  { %v5707_v35 = vsel %vm1791_vm15, %v5699_v10, %v5669_v2  ;;  %v5701_v2 = vsel %vm1782_vm14, %v5693_v55, %v5609_v43 }
0x1e2c   :  { %v5671_v60 = vpop.permute.xlu1 %5670 }
0x1e2d   :  { %v5708_v18 = vsel %vm1791_vm15, %v5700_v0, %v5671_v60  ;;  %v5377_v60 = vcombine.high %v5361_v28, %v5361_v28 }
0x1e2e   :  { %v5673_v19 = vpop.permute.xlu0 %5672 }
0x1e2f   :  { %v5709_v51 = vsel %vm1791_vm15, %v5701_v2, %v5673_v19  ;;  %v5379_v19 = vcombine.high %v5375_v4, %v5375_v4 }
0x1e30   :  { %v5579_v38 = vpop.permute.xlu1 %5578 }
0x1e31   :  { %v5694_v44 = vsel %vm1773_vm13, %v5361_v28, %v5579_v38  ;;  %v5625_v28 = vrot.slane %v5487_v48, %v16734_v23 }
0x1e32   :  { %v5581_v45 = vpop.permute.xlu0 %5580 }
0x1e33   :  { %v5695_v15 = vsel %vm1773_vm13, %v5375_v4, %v5581_v45  ;;  %v5702_v45 = vsel %vm1782_vm14, %v5694_v44, %v5613_v1 }
0x1e34   :  { %v18409_v37 = vpop.permute.xlu1 %5582 }
0x1e36   :  { %v18411_v27 = vpop.permute.xlu0 %5584 }
0x1e38   :  { %v18417_v25 = vpop.permute.xlu1 %5674 }
0x1e39   :  { %v5710_v43 = vsel %vm1791_vm15, %v5702_v45, %v18417_v25 }
0x1e3a   :  { %v18423_v9 = vpop.permute.xlu0 %5676 }
0x1e3c   :  { %v18431_v5 = vpop.permute.xlu1 %5678 }
0x1e3e   :  { %v18435_v14 = vpop.permute.xlu0 %5680 }
0x1e84   :  { %v5723_v57 = vpop.permute.xlu1 %5722 }
0x1e85   :  { %14788 = vst.msk [vmem:[%s21219_s16 + $0x40] sm:$0xf] %vm14771_vm12, %v5723_v57  ;;  %v5746_v58 = vsel %vm277_vm1, %v5723_v57, %v5706_v22  ;;  %v5485_v57 = vcombine.high %v5469_v6, %v5469_v6  ;;  %v5703_v22 = vsel %vm1782_vm14, %v5695_v15, %v5617_v33 }
0x1e86   :  { %v5725_v59 = vpop.permute.xlu0 %5724  ;;  %v5711_v12 = vsel %vm1791_vm15, %v5703_v22, %v18423_v9 }
0x1e87   :  { %v5747_v16 = vsel %vm277_vm1, %v5725_v59, %v5707_v35  ;;  %14789 = vst.msk [vmem:[%s21219_s16 + $0x44] sm:$0xf] %vm14771_vm12, %v5725_v59  ;;  %v5696_v35 = vsel %vm1773_vm13, %v5377_v60, %v18409_v37  ;;  %v5697_v59 = vsel %vm1773_vm13, %v5379_v19, %v18411_v27  ;;  %v21403_v27 = vld [vmem:[#allocation16_spill] sm:$0xff] }
0x1e88   :  { %v5762_v20 = vcombine.low %v5746_v58, %v5747_v16  ;;  %v5727_v10 = vpop.permute.xlu1 %5726  ;;  %v5621_v16 = vrot.slane %v5485_v57, %v16734_v23 }
0x1e89   :  { %14790 = vst.msk [vmem:[%s21219_s16 + $0x48] sm:$0xf] %vm14771_vm12, %v5727_v10  ;;  %v5748_v6 = vsel %vm277_vm1, %v5727_v10, %v5708_v18  ;;  %v5705_v10 = vsel %vm1782_vm14, %v5697_v59, %v5625_v28 }
0x1e8a   :  { %15340 = vmatprep.mubr.msk.f32.mxu0 %vm298_vm2, %v5762_v20  ;;  %v5729_v17 = vpop.permute.xlu0 %5728  ;;  %v5704_v20 = vsel %vm1782_vm14, %v5696_v35, %v5621_v16  ;;  %v5713_v2 = vsel %vm1791_vm15, %v5705_v10, %v18435_v14 }
0x1e8b   :  { %v5749_v21 = vsel %vm277_vm1, %v5729_v17, %v5709_v51  ;;  %14791 = vst.msk [vmem:[%s21219_s16 + $0x4c] sm:$0xf] %vm14771_vm12, %v5729_v17  ;;  %v5712_v0 = vsel %vm1791_vm15, %v5704_v20, %v18431_v5  ;;  %v21404_v51 = vld [vmem:[#allocation17_spill] sm:$0xff]  ;;  %v16374_v20 = vld [vmem:[%s21211_s7] ss:$0 sm:$0xff] }
0x1e8c   :  { %v5763_v38 = vcombine.low %v5748_v6, %v5749_v21  ;;  %v5731_v55 = vpop.permute.xlu1 %5730 }
0x1e8d   :  { %14792 = vst.msk [vmem:[%s21219_s16 + $0x50] sm:$0xf] %vm14771_vm12, %v5731_v55  ;;  %v5750_v4 = vsel %vm277_vm1, %v5731_v55, %v5710_v43 }
0x1e8e   :  { %15341 = vmatmul.mubr.msk.f32.vlgmr.msra.gmra.mrb[20].mxu0 %vm298_vm2, %v5763_v38  ;;  %v5733_v58 = vpop.permute.xlu0 %5732 }
0x1e8f   :  { %v5751_v37 = vsel %vm277_vm1, %v5733_v58, %v5711_v12  ;;  %14793 = vst.msk [vmem:[%s21219_s16 + $0x54] sm:$0xf] %vm14771_vm12, %v5733_v58  ;;  %15686 = vmatpush3.bf16.msra.mxu0 %v21403_v27 }
0x1e90   :  { %v5764_v25 = vcombine.low %v5750_v4, %v5751_v37  ;;  %v5735_v9 = vpop.permute.xlu1 %5734  ;;  %15687 = vmatprep.subr.bf16.mxu0 %v21352_v50 }
0x1e91   :  { %14794 = vst.msk [vmem:[%s21219_s16 + $0x58] sm:$0xf] %vm14771_vm12, %v5735_v9  ;;  %v5752_v57 = vsel %vm277_vm1, %v5735_v9, %v5712_v0 }
0x1e92   :  { %15343 = vmatprep.mubr.msk.f32.mxu0 %vm298_vm2, %v5764_v25  ;;  %v5737_v1 = vpop.permute.xlu0 %5736 }
0x1e93   :  { %v5753_v18 = vsel %vm277_vm1, %v5737_v1, %v5713_v2  ;;  %14795 = vst.msk [vmem:[%s21219_s16 + $0x5c] sm:$0xf] %vm14771_vm12, %v5737_v1  ;;  %15689 = vmatpush3.bf16.msra.mxu0 %v21404_v51 }
0x1e94   :  { %v5765_v44 = vcombine.low %v5752_v57, %v5753_v18  ;;  %15697 = vmatprep.subr.bf16.mxu0 %v21397_v49 }
0x1e96   :  { %15344 = vmatmul.mubr.msk.f32.gmra.mrb[22].mxu0 %vm298_vm2, %v5765_v44 }
0x1e97   :  { %15370 = vmatprep.mubr.msk.f32.mxu0 %vm16394_vm11, %v21351_v56 }
0x1f61   :  { %v15342_v14 = vpop.f32.mrb[20].mxu0 }
0x1f62   :  { %v5864_v5 = vcombine.high %v15342_v14, %v15342_v14  ;;  %v5873_v15 = vcombine.low %v15342_v14, %v15342_v14  ;;  %v5840_v17 = vpop.f32.mrb[21].mxu0 }
0x1f63   :  { %v5863_v33 = vcombine.high %v5840_v17, %v5840_v17  ;;  %v5871_v48 = vcombine.low %v5840_v17, %v5840_v17 }
0x1f64   :  { %v5889_v6 = vsel %vm420_vm3, %v15342_v14, %v5873_v15  ;;  %v5898_v21 = vadd.f32 %v5864_v5, %v16663_v62 }
0x1f65   :  { %v5887_v60 = vsel %vm420_vm3, %v5840_v17, %v5871_v48  ;;  %v5896_v19 = vadd.f32 %v5863_v33, %v16665_v63  ;;  %v5897_v38 = vadd.f32 %v5889_v6, %v16667_v7 }
0x1f66   :  { %16018 = vtanh.f32 %v5898_v21  ;;  %v5895_v55 = vadd.f32 %v5887_v60, %v16669_v8 }
0x1f68   :  { %16020 = vtanh.f32 %v5895_v55 }
0x1f69   :  { %16022 = vtanh.f32 %v5896_v19  ;;  %v15345_v45 = vpop.f32.mrb[22].mxu0 }
0x1f6a   :  { %16024 = vtanh.f32 %v5897_v38  ;;  %v5866_v22 = vcombine.high %v15345_v45, %v15345_v45  ;;  %v5877_v35 = vcombine.low %v15345_v45, %v15345_v45  ;;  %v5850_v59 = vpop.f32.mrb[23].mxu0 }
0x1f6b   :  { %v5865_v43 = vcombine.high %v5850_v59, %v5850_v59  ;;  %v5875_v12 = vcombine.low %v5850_v59, %v5850_v59 }
0x1f6c   :  { %v5893_v58 = vsel %vm420_vm3, %v15345_v45, %v5877_v35  ;;  %v5902_v37 = vadd.f32 %v5866_v22, %v16684_v40 }
0x1f6d   :  { %v5901_v16 = vadd.f32 %v5893_v58, %v16679_v30  ;;  %v5891_v28 = vsel %vm420_vm3, %v5850_v59, %v5875_v12  ;;  %v5900_v4 = vadd.f32 %v5865_v43, %v16677_v29 }
0x1f6e   :  { %v5899_v25 = vadd.f32 %v5891_v28, %v16681_v36 }
0x1f6f   :  { %16026 = vtanh.f32 %v5901_v16 }
0x1f70   :  { %v16019_v9 = vpop.eup %16018  ;;  %16028 = vtanh.f32 %v5899_v25 }
0x1f71   :  { %16030 = vtanh.f32 %v5900_v4  ;;  %v5914_v10 = vmul.f32 %v16374_v20, %v16019_v9 }
0x1f72   :  { %v16021_v0 = vpop.eup %16020  ;;  %16032 = vtanh.f32 %v5902_v37 }
0x1f73   :  { %v16023_v2 = vpop.eup %16022  ;;  %v5928_v1 = vsel %vm78_vm0, %v5914_v10, 0.0  ;;  %v5911_v57 = vmul.f32 %v16374_v20, %v16021_v0 }
0x1f74   :  { %v16025_v18 = vpop.eup %16024  ;;  %5929 = vadd.xlane.f32.xlu0 %v5928_v1  ;;  %v5912_v44 = vmul.f32 %v16374_v20, %v16023_v2 }
0x1f75   :  { %v5919_v14 = vsel %vm78_vm0, %v5911_v57, 0.0  ;;  %v5913_v15 = vmul.f32 %v16374_v20, %v16025_v18 }
0x1f76   :  { %5920 = vadd.xlane.f32.xlu1 %v5919_v14  ;;  %v5922_v5 = vsel %vm78_vm0, %v5912_v44, 0.0 }
0x1f77   :  { %v5925_v6 = vsel %vm78_vm0, %v5913_v15, 0.0 }
0x1f78   :  { %5923 = vadd.xlane.f32.xlu0 %v5922_v5 }
0x1f79   :  { %v16027_v17 = vpop.eup %16026 }
0x1f7a   :  { %v16029_v33 = vpop.eup %16028  ;;  %v5917_v55 = vmul.f32 %v16374_v20, %v16027_v17 }
0x1f7b   :  { %v16031_v48 = vpop.eup %16030  ;;  %v5915_v21 = vmul.f32 %v16374_v20, %v16029_v33 }
0x1f7c   :  { %v16033_v60 = vpop.eup %16032  ;;  %5926 = vadd.xlane.f32.xlu0 %v5925_v6  ;;  %v5916_v19 = vmul.f32 %v16374_v20, %v16031_v48  ;;  %v5937_v35 = vsel %vm78_vm0, %v5917_v55, 0.0 }
0x1f7d   :  { %v5931_v38 = vsel %vm78_vm0, %v5915_v21, 0.0  ;;  %v5918_v22 = vmul.f32 %v16374_v20, %v16033_v60 }
0x1f7e   :  { %5932 = vadd.xlane.f32.xlu1 %v5931_v38  ;;  %v5934_v45 = vsel %vm78_vm0, %v5916_v19, 0.0 }
0x1f7f   :  { %v5940_v59 = vsel %vm78_vm0, %v5918_v22, 0.0 }
0x1f80   :  { %5935 = vadd.xlane.f32.xlu0 %v5934_v45 }
0x1f82   :  { %5938 = vadd.xlane.f32.xlu1 %v5937_v35 }
0x1f84   :  { %5941 = vadd.xlane.f32.xlu0 %v5940_v59 }
0x2001   :  { %v5930_v43 = vpop.xlane.xlu0 %5929 }
0x2002   :  { %v5946_v4 = vadd.f32 %v5930_v43, %v16707_v47 }
0x2003   :  { %v5921_v12 = vpop.xlane.xlu1 %5920 }
0x2004   :  { %v5943_v28 = vadd.f32 %v5921_v12, %v16707_v47  ;;  %v5974_v1 = vrot.slane %v5946_v4, %v16705_v46 }
0x2005   :  { %v5924_v58 = vpop.xlane.xlu0 %5923 }
0x2006   :  { %v5944_v16 = vadd.f32 %v5924_v58, %v16707_v47  ;;  %v5962_v20 = vrot.slane %v5943_v28, %v16705_v46 }
0x2008   :  { %v5966_v37 = vrot.slane %v5944_v16, %v16705_v46 }
0x2009   :  { %v5927_v25 = vpop.xlane.xlu0 %5926 }
0x200a   :  { %v5945_v9 = vadd.f32 %v5927_v25, %v16707_v47  ;;  %v5991_v57 = vsel %vm542_vm4, %v5966_v37, %v5962_v20 }
0x200b   :  { %v5933_v10 = vpop.xlane.xlu1 %5932 }
0x200c   :  { %v5970_v0 = vrot.slane %v5945_v9, %v16705_v46  ;;  %v5947_v2 = vadd.f32 %v5933_v10, %v16707_v47 }
0x200d   :  { %v5936_v18 = vpop.xlane.xlu0 %5935 }
0x200e   :  { %v5992_v44 = vsel %vm544_vm5, %v5970_v0, %v5991_v57  ;;  %v5978_v14 = vrot.slane %v5947_v2, %v16705_v46  ;;  %v5948_v5 = vadd.f32 %v5936_v18, %v16707_v47 }
0x200f   :  { %v5993_v15 = vsel %vm546_vm6, %v5974_v1, %v5992_v44  ;;  %v5939_v17 = vpop.xlane.xlu1 %5938 }
0x2010   :  { %v5994_v33 = vsel %vm548_vm7, %v5978_v14, %v5993_v15  ;;  %v5982_v48 = vrot.slane %v5948_v5, %v16705_v46  ;;  %v5949_v6 = vadd.f32 %v5939_v17, %v16707_v47 }
0x2011   :  { %v5942_v21 = vpop.xlane.xlu0 %5941 }
0x2012   :  { %v5986_v60 = vrot.slane %v5949_v6, %v16705_v46  ;;  %v5950_v19 = vadd.f32 %v5942_v21, %v16707_v47  ;;  %v5995_v38 = vsel %vm550_vm8, %v5982_v48, %v5994_v33 }
0x2014   :  { %v5990_v55 = vrot.slane %v5950_v19, %v16705_v46  ;;  %v5996_v45 = vsel %vm552_vm9, %v5986_v60, %v5995_v38 }
0x2016   :  { %v5997_v22 = vsel %vm554_vm10, %v5990_v55, %v5996_v45 }
0x2017   :  { %v5999_v35 = vsel %vm78_vm0, %v5997_v22, -inf }
0x2018   :  { %6000 = vmax.xlane.f32.xlu1 %v5999_v35 }
0x20a5   :  { %v6001_v59 = vpop.xlane.xlu1 %6000 }
0x20a6   :  { %v6006_v43 = vrot.slane %v6001_v59, %v16734_v23  ;;  %v6010_v12 = vrot.slane %v6001_v59, %v16737_v24  ;;  %v6014_v58 = vrot.slane %v6001_v59, %v16740_v31  ;;  %v6022_v37 = vrot.slane %v6001_v59, %v16749_v42 }
0x20a7   :  { %v6030_v25 = vrot.slane %v6001_v59, %v16757_v13  ;;  %v6018_v0 = vrot.slane %v6001_v59, %v16743_v32  ;;  %v6026_v17 = vrot.slane %v6001_v59, %v16753_v61  ;;  %v6034_v60 = vrot.slane %v6001_v59, %v21371_v53  ;;  %v57_v59 = vld [vmem:[%s21212_s0 + $0x18] sm:$0xff] }
0x20a8   :  { %v6043_v20 = vsub.f32 %v5943_v28, %v6006_v43  ;;  %v6044_v10 = vsub.f32 %v5944_v16, %v6010_v12  ;;  %v6045_v1 = vsub.f32 %v5945_v9, %v6014_v58  ;;  %v6047_v57 = vsub.f32 %v5947_v2, %v6022_v37 }
0x20a9   :  { %v6049_v14 = vsub.f32 %v5949_v6, %v6030_v25  ;;  %v6046_v33 = vsub.f32 %v5946_v4, %v6018_v0  ;;  %v6048_v28 = vsub.f32 %v5948_v5, %v6026_v17  ;;  %v6050_v9 = vsub.f32 %v5950_v19, %v6034_v60 }
0x20aa   :  { %v6051_v18 = vmul.f32 1.442695, %v6043_v20  ;;  %v6053_v44 = vmul.f32 1.442695, %v6044_v10  ;;  %v6059_v15 = vmul.f32 1.442695, %v6047_v57  ;;  %v6203_v43 = vrot.slane %v57_v59, %v16734_v23 }
0x20ab   :  { %v6055_v48 = vmul.f32 1.442695, %v6045_v1  ;;  %v6063_v21 = vmul.f32 1.442695, %v6049_v14  ;;  %v6057_v16 = vmul.f32 1.442695, %v6046_v33  ;;  %v6210_v12 = vrot.slane %v57_v59, %v16737_v24 }
0x20ac   :  { %16034 = vpow2.f32 %v6051_v18  ;;  %v6061_v2 = vmul.f32 1.442695, %v6048_v28  ;;  %v6065_v4 = vmul.f32 1.442695, %v6050_v9  ;;  %v6217_v58 = vrot.slane %v57_v59, %v16740_v31 }
0x20ad   :  { %16036 = vpow2.f32 %v6053_v44  ;;  %v6224_v37 = vrot.slane %v57_v59, %v16743_v32  ;;  %v6231_v25 = vrot.slane %v57_v59, %v16749_v42  ;;  %v6238_v20 = vrot.slane %v57_v59, %v16753_v61 }
0x20ae   :  { %16038 = vpow2.f32 %v6059_v15  ;;  %v6245_v10 = vrot.slane %v57_v59, %v16757_v13 }
0x20af   :  { %16040 = vpow2.f32 %v6055_v48 }
0x20b0   :  { %16042 = vpow2.f32 %v6063_v21 }
0x20b1   :  { %16044 = vpow2.f32 %v6057_v16 }
0x20b2   :  { %16046 = vpow2.f32 %v6061_v2 }
0x20b3   :  { %16048 = vpow2.f32 %v6065_v4 }
0x20b6   :  { %v18582_v38 = vpop.eup %16034 }
0x20b7   :  { %v18584_v6 = vpop.eup %16036  ;;  %6076 = vperm.xlu0 %15813, %v18582_v38  }
0x20b8   :  { %6079 = vperm.xlu1 %15812, %v18584_v6   ;;  %v18588_v55 = vpop.eup %16038 }
0x20b9   :  { %v18590_v45 = vpop.eup %16040 }
0x20ba   :  { %v18594_v5 = vpop.eup %16042 }
0x20bb   :  { %6088 = vperm.xlu0 %15813, %v18588_v55   ;;  %v18596_v19 = vpop.eup %16044 }
0x20bc   :  { %6082 = vperm.xlu1 %15812, %v18590_v45   ;;  %v18600_v22 = vpop.eup %16046 }
0x20bd   :  { %v18603_v35 = vpop.eup %16048 }
0x20bf   :  { %6094 = vperm.xlu0 %15813, %v18594_v5  }
0x20c0   :  { %6085 = vperm.xlu1 %15812, %v18596_v19  }
0x20c4   :  { %6091 = vperm.xlu1 %15812, %v18600_v22  }
0x20c8   :  { %6097 = vperm.xlu1 %15812, %v18603_v35  }
0x20cc   :  { %6205 = vbcast.lane.b32.xlu1 %v6203_v43, 256 }
0x20d0   :  { %6212 = vbcast.lane.b32.xlu1 %v6210_v12, 256 }
0x20d4   :  { %6219 = vbcast.lane.b32.xlu1 %v6217_v58, 256 }
0x20d8   :  { %6226 = vbcast.lane.b32.xlu1 %v6224_v37, 256 }
0x20dc   :  { %6233 = vbcast.lane.b32.xlu1 %v6231_v25, 256 }
0x20e0   :  { %6240 = vbcast.lane.b32.xlu1 %v6238_v20, 256 }
0x20e4   :  { %6247 = vbcast.lane.b32.xlu1 %v6245_v10, 256 }
0x2136   :  { %v6077_v1 = vpop.permute.xlu0 %6076 }
0x2137   :  { %v6080_v0 = vpop.permute.xlu1 %6079  ;;  %v6102_v44 = vrot.slane %v6077_v1, %v16705_v46 }
0x2138   :  { %v6106_v18 = vrot.slane %v6080_v0, %v16705_v46  ;;  %v6252_v0 = vrot.slane %v57_v59, %v21371_v53 }
0x213a   :  { %v6089_v15 = vpop.permute.xlu0 %6088  ;;  %v6131_v33 = vsel %vm542_vm4, %v6106_v18, %v6102_v44 }
0x213b   :  { %v6083_v57 = vpop.permute.xlu1 %6082  ;;  %v6118_v28 = vrot.slane %v6089_v15, %v16705_v46 }
0x213c   :  { %v6110_v14 = vrot.slane %v6083_v57, %v16705_v46 }
0x213e   :  { %v6132_v21 = vsel %vm544_vm5, %v6110_v14, %v6131_v33  ;;  %v6095_v9 = vpop.permute.xlu0 %6094 }
0x213f   :  { %v6086_v17 = vpop.permute.xlu1 %6085  ;;  %v6126_v12 = vrot.slane %v6095_v9, %v16705_v46 }
0x2140   :  { %v6114_v48 = vrot.slane %v6086_v17, %v16705_v46 }
0x2142   :  { %v6133_v60 = vsel %vm546_vm6, %v6114_v48, %v6132_v21 }
0x2143   :  { %v6092_v16 = vpop.permute.xlu1 %6091  ;;  %v6134_v4 = vsel %vm548_vm7, %v6118_v28, %v6133_v60 }
0x2144   :  { %v6122_v2 = vrot.slane %v6092_v16, %v16705_v46 }
0x2146   :  { %v6135_v43 = vsel %vm550_vm8, %v6122_v2, %v6134_v4 }
0x2147   :  { %v6098_v58 = vpop.permute.xlu1 %6097  ;;  %v6136_v25 = vsel %vm552_vm9, %v6126_v12, %v6135_v43 }
0x2148   :  { %v6130_v37 = vrot.slane %v6098_v58, %v16705_v46 }
0x214a   :  { %v6137_v20 = vsel %vm554_vm10, %v6130_v37, %v6136_v25 }
0x214b   :  { %v6139_v10 = vsel %vm78_vm0, %v6137_v20, 0.0  ;;  %v6206_v1 = vpop.permute.xlu1 %6205 }
0x214c   :  { %6140 = vadd.xlane.f32.xlu0 %v6139_v10 }
0x214f   :  { %v6213_v57 = vpop.permute.xlu1 %6212 }
0x2153   :  { %v6220_v18 = vpop.permute.xlu1 %6219 }
0x2157   :  { %v6227_v44 = vpop.permute.xlu1 %6226 }
0x215b   :  { %v6234_v17 = vpop.permute.xlu1 %6233 }
0x215f   :  { %v6241_v60 = vpop.permute.xlu1 %6240 }
0x2162   :  { %6254 = vbcast.lane.b32.xlu0 %v6252_v0, 256 }
0x2163   :  { %v6248_v9 = vpop.permute.xlu1 %6247 }
0x21d9   :  { %v6141_v14 = vpop.xlane.xlu0 %6140 }
0x21da   :  { %v6170_v15 = vrot.slane %v6141_v14, %v16757_v13  ;;  %v6146_v33 = vrot.slane %v6141_v14, %v16734_v23  ;;  %v6150_v48 = vrot.slane %v6141_v14, %v16737_v24  ;;  %v6154_v21 = vrot.slane %v6141_v14, %v16740_v31 }
0x21db   :  { %v6158_v59 = vrot.slane %v6141_v14, %v16743_v32  ;;  %v6162_v16 = vrot.slane %v6141_v14, %v16749_v42  ;;  %v6166_v37 = vrot.slane %v6141_v14, %v16753_v61 }
0x21dc   :  { %16050 = vrcp.f32 %v6170_v15 }
0x21dd   :  { %16052 = vrcp.f32 %v6146_v33 }
0x21de   :  { %16054 = vrcp.f32 %v6150_v48 }
0x21df   :  { %16056 = vrcp.f32 %v6154_v21 }
0x21e0   :  { %16058 = vrcp.f32 %v6158_v59 }
0x21e1   :  { %16060 = vrcp.f32 %v6162_v16 }
0x21e2   :  { %16062 = vrcp.f32 %v6166_v37 }
0x21e6   :  { %v16051_v28 = vpop.eup %16050 }
0x21e7   :  { %v18640_v2 = vmul.f32 %v16051_v28, %v18594_v5  ;;  %v16053_v4 = vpop.eup %16052  ;;  %v6174_v5 = vrot.slane %v6141_v14, %v21371_v53  ;;  %v6255_v28 = vpop.permute.xlu0 %6254 }
0x21e8   :  { %v16055_v43 = vpop.eup %16054  ;;  %v18644_v58 = vmul.f32 %v16053_v4, %v18582_v38 }
0x21e9   :  { %21405 = vst [vmem:[#allocation35_spill] sm:$0xff] %v18640_v2  ;;  %v6270_v12 = vmul.f32 %v6248_v9, %v18640_v2  ;;  %v18649_v20 = vmul.f32 %v16055_v43, %v18584_v6  ;;  %v16057_v10 = vpop.eup %16056  ;;  %16064 = vrcp.f32 %v6174_v5 }
0x21ea   :  { %21406 = vst [vmem:[#allocation36_spill] sm:$0xff] %v18644_v58  ;;  %v6264_v25 = vmul.f32 %v6206_v1, %v18644_v58  ;;  %v18654_v15 = vmul.f32 %v16057_v10, %v18590_v45  ;;  %v16059_v38 = vpop.eup %16058 }
0x21eb   :  { %6369 = vperm.xlu0 %15813, %v6270_v12   ;;  %21407 = vst [vmem:[#allocation37_spill] sm:$0xff] %v18649_v20  ;;  %v6265_v0 = vmul.f32 %v6213_v57, %v18649_v20  ;;  %v18657_v33 = vmul.f32 %v16059_v38, %v18596_v19  ;;  %v16061_v6 = vpop.eup %16060 }
0x21ec   :  { %6351 = vperm.xlu1 %15812, %v6264_v25   ;;  %21408 = vst [vmem:[#allocation38_spill] sm:$0xff] %v18654_v15  ;;  %v6266_v1 = vmul.f32 %v6220_v18, %v18654_v15  ;;  %v18662_v21 = vmul.f32 %v16061_v6, %v18588_v55  ;;  %v16063_v14 = vpop.eup %16062 }
0x21ed   :  { %21409 = vst [vmem:[#allocation39_spill] sm:$0xff] %v18657_v33  ;;  %v6267_v48 = vmul.f32 %v6227_v44, %v18657_v33  ;;  %v18666_v57 = vmul.f32 %v16063_v14, %v18600_v22 }
0x21ee   :  { %21410 = vst [vmem:[#allocation40_spill] sm:$0xff] %v18662_v21  ;;  %v6268_v45 = vmul.f32 %v6234_v17, %v18662_v21 }
0x21ef   :  { %21411 = vst [vmem:[#allocation41_spill] sm:$0xff] %v18666_v57  ;;  %v6269_v19 = vmul.f32 %v6241_v60, %v18666_v57 }
0x21f0   :  { %6354 = vperm.xlu1 %15812, %v6265_v0  }
0x21f3   :  { %v16065_v59 = vpop.eup %16064 }
0x21f4   :  { %6357 = vperm.xlu1 %15812, %v6266_v1   ;;  %v18670_v18 = vmul.f32 %v16065_v59, %v18603_v35 }
0x21f6   :  { %21412 = vst [vmem:[#allocation42_spill] sm:$0xff] %v18670_v18  ;;  %v6271_v44 = vmul.f32 %v6255_v28, %v18670_v18 }
0x21f8   :  { %6360 = vperm.xlu1 %15812, %v6267_v48  }
0x21fc   :  { %6363 = vperm.xlu1 %15812, %v6268_v45  }
0x2200   :  { %6366 = vperm.xlu1 %15812, %v6269_v19  }
0x2204   :  { %6372 = vperm.xlu1 %15812, %v6271_v44  }
0x226a   :  { %v6370_v5 = vpop.permute.xlu0 %6369 }
0x226b   :  { %v6352_v55 = vpop.permute.xlu1 %6351  ;;  %v6401_v48 = vrot.slane %v6370_v5, %v16705_v46 }
0x226c   :  { %v6377_v12 = vrot.slane %v6352_v55, %v16705_v46 }
0x226f   :  { %v6355_v16 = vpop.permute.xlu1 %6354 }
0x2270   :  { %v6381_v17 = vrot.slane %v6355_v16, %v16705_v46  ;;  %v16375_v16 = vld [vmem:[%s21215_s11] ss:$0 sm:$0xff] }
0x2272   :  { %v6406_v37 = vsel %vm542_vm4, %v6381_v17, %v6377_v12 }
0x2273   :  { %v6358_v9 = vpop.permute.xlu1 %6357 }
0x2274   :  { %v6385_v22 = vrot.slane %v6358_v9, %v16705_v46 }
0x2276   :  { %v6407_v25 = vsel %vm544_vm5, %v6385_v22, %v6406_v37 }
0x2277   :  { %v6361_v4 = vpop.permute.xlu1 %6360 }
0x2278   :  { %v6389_v60 = vrot.slane %v6361_v4, %v16705_v46 }
0x227a   :  { %v6408_v0 = vsel %vm546_vm6, %v6389_v60, %v6407_v25 }
0x227b   :  { %v6364_v43 = vpop.permute.xlu1 %6363 }
0x227c   :  { %v6393_v35 = vrot.slane %v6364_v43, %v16705_v46 }
0x227e   :  { %v6409_v1 = vsel %vm548_vm7, %v6393_v35, %v6408_v0 }
0x227f   :  { %v6367_v10 = vpop.permute.xlu1 %6366 }
0x2280   :  { %v6397_v38 = vrot.slane %v6367_v10, %v16705_v46 }
0x2282   :  { %v6410_v6 = vsel %vm550_vm8, %v6397_v38, %v6409_v1 }
0x2283   :  { %v6373_v14 = vpop.permute.xlu1 %6372  ;;  %v6411_v59 = vsel %vm552_vm9, %v6401_v48, %v6410_v6 }
0x2284   :  { %v6405_v45 = vrot.slane %v6373_v14, %v16705_v46 }
0x2286   :  { %v6412_v19 = vsel %vm554_vm10, %v6405_v45, %v6411_v59 }
0x2287   :  { %15360 = vmatmul.mubr.msk.f32.vlgmr.msra.gmra.mrb[26].mxu1 %vm78_vm0, %v6412_v19  ;;  %v21413_v19 = vld [vmem:[#allocation14_spill] sm:$0xff] }
0x2288   :  { %15692 = vmatpush3.bf16.msra.mxu1 %v17088_v11  ;;  %15381 = vmatprep.mubr.msk.f32.mxu1 %vm16394_vm11, %v21351_v56 }
0x2289   :  { %15693 = vmatprep.subr.bf16.mxu1 %v21352_v50 }
0x228c   :  { %15695 = vmatpush3.bf16.msra.mxu1 %v17101_v26 }
0x228d   :  { %15704 = vmatprep.subr.bf16.mxu1 %v21352_v50 }
0x235a   :  { %v6481_v28 = vpop.f32.mrb[26].mxu1 }
0x235b   :  { %v6482_v44 = vadd.f32 %v6481_v28, %v18226_v54  ;;  %v15361_v55 = vpop.f32.mrb[27].mxu1 }
0x235c   :  { %v21415_v55 = vld [vmem:[#allocation4_spill] sm:$0xff] }
0x235d   :  { %v6485_v9 = vadd.f32 %v16375_v16, %v6482_v44 }
0x235f   :  { %16066 = vtanh.f32 %v6485_v9  ;;  %v6486_v17 = vsub.f32 0.0, %v6485_v9 }
0x2361   :  { %v6487_v22 = vmul.f32 1.442695, %v6486_v17 }
0x2363   :  { %16068 = vpow2.f32 %v6487_v22 }
0x2369   :  { %v16067_v4 = vpop.eup %16066 }
0x236a   :  { %6495 = vrot.lane.b32.xlu0 %v16067_v4, %s16396_s22 }
0x236d   :  { %v16069_v43 = vpop.eup %16068 }
0x236e   :  { %v6489_v12 = vadd.f32 1.0, %v16069_v43  ;;  %v16376_v43 = vld [vmem:[%s21218_s14] ss:$0 sm:$0xff] }
0x2370   :  { %16070 = vrcp.f32 %v6489_v12 }
0x237a   :  { %v16071_v60 = vpop.eup %16070 }
0x237b   :  { %v6510_v54 = vmul.f32 %v16071_v60, %v18189_v52  ;;  %v6493_v25 = vmul.f32 %v16071_v60, %v18187_v3 }
0x23dc   :  { %v6496_v35 = vpop.permute.xlu0 %6495 }
0x23dd   :  { %v6498_v37 = vmul.f32 %v16071_v60, %v6496_v35 }
0x23df   :  { %6500 = vrot.lane.b32.xlu1 %v6498_v37, %s16391_s26 }
0x2451   :  { %v6501_v10 = vpop.permute.xlu1 %6500 }
0x2452   :  { %v18703_v5 = vadd.f32 %v6501_v10, %v6493_v25  ;;  %v18705_v0 = vadd.f32 %v6510_v54, %v6501_v10 }
0x2454   :  { %16072 = vtanh.f32 %v18703_v5 }
0x2455   :  { %16074 = vtanh.f32 %v18705_v0 }
0x245e   :  { %v16073_v38 = vpop.eup %16072 }
0x245f   :  { %v16075_v1 = vpop.eup %16074  ;;  %6506 = vrot.lane.b32.xlu0 %v16073_v38, %s16398_s17 }
0x2460   :  { %6514 = vrot.lane.b32.xlu1 %v16075_v1, %s16398_s17 }
0x24d1   :  { %v6507_v6 = vpop.permute.xlu0 %6506 }
0x24d2   :  { %v6515_v48 = vpop.permute.xlu1 %6514  ;;  %v18711_v52 = vmul.f32 %v16071_v60, %v6507_v6 }
0x24d3   :  { %v6517_v3 = vmul.f32 %v16071_v60, %v6515_v48 }
0x24d4   :  { %6519 = vrot.lane.b32.xlu0 %v18711_v52, %s16397_s5 }
0x24d5   :  { %6523 = vrot.lane.b32.xlu1 %v6517_v3, %s16398_s17  ;;  %v6777_v1 = vrot.slane %v6517_v3, %v17138_v39  ;;  %v6770_v6 = vcombine.high %v6517_v3, %v6517_v3 }
0x24d7   :  { %v6785_v48 = vcombine.high %v6777_v1, %v6777_v1 }
0x24d8   :  { %6527 = vrot.lane.b32.xlu0 %v18348_v34, %s16397_s5 }
0x24d9   :  { %6530 = vrot.lane.b32.xlu1 %v18268_v41, %s16398_s17  ;;  %v21414_v41 = vld [vmem:[#allocation15_spill] sm:$0xff] }
0x2546   :  { %v6520_v14 = vpop.permute.xlu0 %6519 }
0x2547   :  { %v6524_v45 = vpop.permute.xlu1 %6523 }
0x2548   :  { %v6526_v59 = vsel %vm277_vm1, %v6520_v14, %v6524_v45 }
0x2549   :  { %15382 = vmatmul.mubr.msk.f32.vlgmr.msra.gmra.mrb[28].mxu1 %vm298_vm2, %v6526_v59 }
0x254a   :  { %15706 = vmatpush3.bf16.msra.mxu1 %v21413_v19  ;;  %v6528_v28 = vpop.permute.xlu0 %6527  ;;  %15406 = vmatprep.mubr.msk.f32.mxu1 %vm16394_vm11, %v21351_v56 }
0x254b   :  { %v6531_v44 = vpop.permute.xlu1 %6530  ;;  %15707 = vmatprep.subr.bf16.mxu1 %v21352_v50 }
0x254c   :  { %v6533_v34 = vsel %vm277_vm1, %v6528_v28, %v6531_v44  ;;  %v6807_v44 = vrot.slane %v6785_v48, %v17138_v39 }
0x254d   :  { %15371 = vmatmul.mubr.msk.f32.vlgmr.msra.gmra.mrb[24].mxu0 %vm298_vm2, %v6533_v34 }
0x254e   :  { %15709 = vmatpush3.bf16.msra.mxu1 %v21414_v41  ;;  %15699 = vmatpush3.bf16.msra.mxu0 %v21397_v49 }
0x254f   :  { %15701 = vmatprep.subr.bf16.mxu0 %v21415_v55  ;;  %15710 = vmatprep.subr.bf16.mxu1 %v21352_v50 }
0x2551   :  { %15407 = vmatmul.mubr.msk.f32.vlgmr.msra.gmra.mrb[30].mxu1 %vm298_vm2, %v6526_v59  ;;  %v6784_v59 = vrot.slane %v6770_v6, %v17138_v39  ;;  %v6793_v6 = vrot.slane %v6777_v1, %v17138_v39 }
0x2552   :  { %15703 = vmatpush3.bf16.msra.mxu0 %v21415_v55  ;;  %15712 = vmatpush3.bf16.msra.mxu1 %v21403_v27 }
0x2553   :  { %15409 = vmatprep.subr.mxu0 %v21351_v56  ;;  %15713 = vmatprep.subr.bf16.mxu1 %v21352_v50  ;;  %v6786_v34 = vcombine.high %v6784_v59, %v6784_v59 }
0x2554   :  { %15422 = vmatprep.mubr.msk.f32.mxu1 %vm16394_vm11, %v21351_v56 }
0x2556   :  { %15715 = vmatpush3.bf16.msra.mxu1 %v21404_v51 }
0x2557   :  { %15723 = vmatprep.subr.bf16.mxu1 %v21397_v49 }
0x261c   :  { %v6676_v16 = vpop.f32.mrb[28].mxu1 }
0x261d   :  { %v15383_v9 = vpop.f32.mrb[29].mxu1 }
0x261e   :  { %v6817_v9 = vcombine.high %v6807_v44, %v6807_v44 }
0x2620   :  { %v6603_v4 = vpop.f32.mrb[24].mxu0  ;;  %v6934_v3 = vrot.slane %v6817_v9, %v16734_v23 }
0x2621   :  { %v6677_v17 = vadd.f32 %v6676_v16, %v6603_v4  ;;  %v15372_v22 = vpop.f32.mrb[25].mxu0  ;;  %v6926_v16 = vrot.slane %v6807_v44, %v16734_v23  ;;  %v6814_v4 = vrot.slane %v6786_v34, %v17138_v39  ;;  %v6815_v44 = vcombine.high %v6793_v6, %v6793_v6 }
0x2622   :  { %v21416_v22 = vld [vmem:[#allocation20_spill] sm:$0xff] }
0x2623   :  { %v6680_v12 = vadd.f32 %v16376_v43, %v6677_v17  ;;  %v6942_v17 = vrot.slane %v6814_v4, %v16734_v23  ;;  %v6930_v34 = vrot.slane %v6815_v44, %v16734_v23 }
0x2624   :  { %v18744_v60 = vpop.f32.mrb[30].mxu1 }
0x2625   :  { %16076 = vtanh.f32 %v6680_v12  ;;  %v15408_v35 = vpop.f32.mrb[31].mxu1  ;;  %v6681_v54 = vsub.f32 0.0, %v6680_v12  ;;  %v21417_v12 = vld [vmem:[#allocation19_spill] sm:$0xff] }
0x2627   :  { %v6682_v25 = vmul.f32 1.442695, %v6681_v54 }
0x2629   :  { %16078 = vpow2.f32 %v6682_v25 }
0x262f   :  { %v16077_v37 = vpop.eup %16076 }
0x2630   :  { %6690 = vrot.lane.b32.xlu0 %v16077_v37, %s16396_s22 }
0x2633   :  { %v16079_v10 = vpop.eup %16078 }
0x2634   :  { %v6684_v38 = vadd.f32 1.0, %v16079_v10  ;;  %v6818_v10 = vcombine.high %v6814_v4, %v6814_v4 }
0x2636   :  { %16080 = vrcp.f32 %v6684_v38 }
0x2640   :  { %v18748_v14 = vpop.eup %16080 }
0x2641   :  { %v6705_v43 = vmul.f32 %v18748_v14, %v21416_v22  ;;  %v6688_v35 = vmul.f32 %v18748_v14, %v21417_v12 }
0x26a2   :  { %v6691_v45 = vpop.permute.xlu0 %6690 }
0x26a3   :  { %v6693_v28 = vmul.f32 %v18748_v14, %v6691_v45  ;;  %v6950_v45 = vrot.slane %v6818_v10, %v16734_v23 }
0x26a5   :  { %6695 = vrot.lane.b32.xlu1 %v6693_v28, %s16391_s26  ;;  %v6922_v28 = vrot.slane %v6793_v6, %v16734_v23 }
0x26a9   :  { %6953 = vrot.lane.b32.xlu1 %v6926_v16, %s16400_s23  ;;  %v6800_v16 = vrot.slane %v6784_v59, %v17138_v39 }
0x26ab   :  { %v6938_v1 = vrot.slane %v6800_v16, %v16734_v23  ;;  %v6816_v9 = vcombine.high %v6800_v16, %v6800_v16 }
0x26ad   :  { %6957 = vrot.lane.b32.xlu1 %v6934_v3, %s16400_s23  ;;  %v6946_v3 = vrot.slane %v6816_v9, %v16734_v23 }
0x26b1   :  { %6961 = vrot.lane.b32.xlu1 %v6942_v17, %s16400_s23 }
0x2717   :  { %v6696_v37 = vpop.permute.xlu1 %6695 }
0x2718   :  { %v18765_v54 = vadd.f32 %v6696_v37, %v6688_v35  ;;  %v18767_v25 = vadd.f32 %v6705_v43, %v6696_v37 }
0x271a   :  { %21418 = vst [vmem:[#allocation20_spill] sm:$0xff] %v18765_v54  ;;  %21419 = vst [vmem:[#allocation19_spill] sm:$0xff] %v18767_v25  ;;  %16082 = vtanh.f32 %v18765_v54 }
0x271b   :  { %16084 = vtanh.f32 %v18767_v25 }
0x2724   :  { %v16083_v38 = vpop.eup %16082 }
0x2725   :  { %v16085_v48 = vpop.eup %16084  ;;  %6701 = vrot.lane.b32.xlu1 %v16083_v38, %s16398_s17 }
0x2726   :  { %6709 = vrot.lane.b32.xlu0 %v16085_v48, %s16398_s17 }
0x2729   :  { %6965 = vrot.lane.b32.xlu1 %v6950_v45, %s16400_s23 }
0x272a   :  { %6951 = vrot.lane.b32.xlu0 %v6922_v28, %s16400_s23 }
0x272e   :  { %6955 = vrot.lane.b32.xlu0 %v6930_v34, %s16400_s23 }
0x2732   :  { %6959 = vrot.lane.b32.xlu0 %v6938_v1, %s16400_s23  ;;  %v7161_v1 = vrot.slane %v18705_v0, %v17138_v39 }
0x2736   :  { %6963 = vrot.lane.b32.xlu0 %v6946_v3, %s16400_s23 }
0x2798   :  { %v6710_v4 = vpop.permute.xlu0 %6709 }
0x2799   :  { %v18786_v17 = vmul.f32 %v18748_v14, %v6710_v4 }
0x279b   :  { %v6870_v22 = vcombine.high %v18786_v17, %v18786_v17  ;;  %v6877_v59 = vrot.slane %v18786_v17, %v17138_v39 }
0x279d   :  { %v6884_v43 = vrot.slane %v6870_v22, %v17138_v39  ;;  %v6885_v12 = vcombine.high %v6877_v59, %v6877_v59  ;;  %v6893_v35 = vrot.slane %v6877_v59, %v17138_v39  ;;  %v7169_v59 = vcombine.high %v7161_v1, %v7161_v1 }
0x279f   :  { %v7018_v37 = vrot.slane %v6893_v35, %v16734_v23  ;;  %v6907_v10 = vrot.slane %v6885_v12, %v17138_v39  ;;  %v6915_v38 = vcombine.high %v6893_v35, %v6893_v35  ;;  %v6886_v6 = vcombine.high %v6884_v43, %v6884_v43 }
0x27a0   :  { %v6900_v44 = vrot.slane %v6884_v43, %v17138_v39  ;;  %v7177_v12 = vrot.slane %v7161_v1, %v17138_v39 }
0x27a1   :  { %7047 = vrot.lane.b32.xlu0 %v7018_v37, %s16400_s23  ;;  %v7022_v48 = vrot.slane %v6907_v10, %v16734_v23  ;;  %v6917_v45 = vcombine.high %v6907_v10, %v6907_v10  ;;  %v7026_v28 = vrot.slane %v6915_v38, %v16734_v23  ;;  %v6914_v16 = vrot.slane %v6886_v6, %v17138_v39 }
0x27a2   :  { %v7034_v9 = vrot.slane %v6900_v44, %v16734_v23  ;;  %v6916_v3 = vcombine.high %v6900_v44, %v6900_v44  ;;  %v7191_v37 = vrot.slane %v7169_v59, %v17138_v39  ;;  %v7261_v10 = vrot.slane %v18767_v25, %v17138_v39 }
0x27a3   :  { %7049 = vrot.lane.b32.xlu1 %v7022_v48, %s16400_s23  ;;  %v7030_v34 = vrot.slane %v6917_v45, %v16734_v23  ;;  %v7038_v4 = vrot.slane %v6914_v16, %v16734_v23  ;;  %v6918_v22 = vcombine.high %v6914_v16, %v6914_v16  ;;  %v7306_v38 = vrot.slane %v7177_v12, %v16734_v23 }
0x27a4   :  { %v7042_v43 = vrot.slane %v6916_v3, %v16734_v23  ;;  %v7199_v6 = vcombine.high %v7177_v12, %v7177_v12  ;;  %v7154_v48 = vcombine.high %v18705_v0, %v18705_v0  ;;  %v7310_v45 = vrot.slane %v7191_v37, %v16734_v23 }
0x27a5   :  { %7051 = vrot.lane.b32.xlu0 %v7026_v28, %s16400_s23  ;;  %v7046_v35 = vrot.slane %v6918_v22, %v16734_v23  ;;  %v7201_v28 = vcombine.high %v7191_v37, %v7191_v37  ;;  %v7269_v44 = vcombine.high %v7261_v10, %v7261_v10  ;;  %v7277_v16 = vrot.slane %v7261_v10, %v17138_v39 }
0x27a6   :  { %v7168_v3 = vrot.slane %v7154_v48, %v17138_v39  ;;  %v7254_v59 = vcombine.high %v18767_v25, %v18767_v25 }
0x27a7   :  { %7053 = vrot.lane.b32.xlu1 %v7030_v34, %s16400_s23  ;;  %v7314_v34 = vrot.slane %v7199_v6, %v16734_v23  ;;  %v7318_v1 = vrot.slane %v7201_v28, %v16734_v23  ;;  %v7299_v22 = vcombine.high %v7277_v16, %v7277_v16 }
0x27a8   :  { %v7184_v10 = vrot.slane %v7168_v3, %v17138_v39  ;;  %v7268_v48 = vrot.slane %v7254_v59, %v17138_v39 }
0x27a9   :  { %7055 = vrot.lane.b32.xlu0 %v7034_v9, %s16400_s23  ;;  %v7291_v9 = vrot.slane %v7269_v44, %v17138_v39  ;;  %v7410_v37 = vrot.slane %v7299_v22, %v16734_v23 }
0x27aa   :  { %v7200_v28 = vcombine.high %v7184_v10, %v7184_v10 }
0x27ab   :  { %7057 = vrot.lane.b32.xlu1 %v7038_v4, %s16400_s23  ;;  %v7402_v4 = vrot.slane %v7277_v16, %v16734_v23  ;;  %v7301_v12 = vcombine.high %v7291_v9, %v7291_v9  ;;  %v7270_v16 = vcombine.high %v7268_v48, %v7268_v48 }
0x27ad   :  { %7059 = vrot.lane.b32.xlu0 %v7042_v43, %s16400_s23  ;;  %v7406_v43 = vrot.slane %v7291_v9, %v16734_v23  ;;  %v7284_v9 = vrot.slane %v7268_v48, %v17138_v39  ;;  %v6952_v48 = vpop.permute.xlu0 %6951 }
0x27af   :  { %7061 = vrot.lane.b32.xlu1 %v7046_v35, %s16400_s23  ;;  %v7170_v35 = vcombine.high %v7168_v3, %v7168_v3  ;;  %v7418_v22 = vrot.slane %v7284_v9, %v16734_v23  ;;  %v7300_v59 = vcombine.high %v7284_v9, %v7284_v9 }
0x27b1   :  { %7335 = vrot.lane.b32.xlu0 %v7306_v38, %s16400_s23  ;;  %v7414_v38 = vrot.slane %v7301_v12, %v16734_v23  ;;  %v7198_v6 = vrot.slane %v7170_v35, %v17138_v39  ;;  %v7426_v35 = vrot.slane %v7300_v59, %v16734_v23 }
0x27b3   :  { %7337 = vrot.lane.b32.xlu1 %v7310_v45, %s16400_s23  ;;  %v7322_v45 = vrot.slane %v7184_v10, %v16734_v23  ;;  %v7326_v44 = vrot.slane %v7198_v6, %v16734_v23  ;;  %v6954_v10 = vpop.permute.xlu1 %6953 }
0x27b5   :  { %7339 = vrot.lane.b32.xlu0 %v7314_v34, %s16400_s23  ;;  %v7202_v34 = vcombine.high %v7198_v6, %v7198_v6 }
0x27b7   :  { %7341 = vrot.lane.b32.xlu1 %v7318_v1, %s16400_s23  ;;  %v7330_v1 = vrot.slane %v7200_v28, %v16734_v23  ;;  %v7334_v3 = vrot.slane %v7202_v34, %v16734_v23 }
0x27b9   :  { %7431 = vrot.lane.b32.xlu0 %v7402_v4, %s16400_s23  ;;  %v7298_v4 = vrot.slane %v7270_v16, %v17138_v39 }
0x27bb   :  { %7433 = vrot.lane.b32.xlu1 %v7406_v43, %s16400_s23  ;;  %v7422_v43 = vrot.slane %v7298_v4, %v16734_v23  ;;  %v7302_v12 = vcombine.high %v7298_v4, %v7298_v4 }
0x27bd   :  { %7435 = vrot.lane.b32.xlu0 %v7410_v37, %s16400_s23  ;;  %v7430_v37 = vrot.slane %v7302_v12, %v16734_v23 }
0x27bf   :  { %7437 = vrot.lane.b32.xlu1 %v7414_v38, %s16400_s23  ;;  %v6958_v38 = vpop.permute.xlu1 %6957 }
0x27c1   :  { %7343 = vrot.lane.b32.xlu0 %v7322_v45, %s16400_s23 }
0x27c3   :  { %7345 = vrot.lane.b32.xlu1 %v7326_v44, %s16400_s23  ;;  %v18863_v6 = vpop.permute.xlu1 %6961  ;;  %v6956_v44 = vpop.permute.xlu0 %6955 }
0x27c5   :  { %7347 = vrot.lane.b32.xlu0 %v7330_v1, %s16400_s23 }
0x27c7   :  { %7349 = vrot.lane.b32.xlu1 %v7334_v3, %s16400_s23  ;;  %v6702_v45 = vpop.permute.xlu1 %6701  ;;  %v6960_v9 = vpop.permute.xlu0 %6959  ;;  %v6720_v3 = vrot.slane %v18711_v52, %v17138_v39 }
0x27c8   :  { %v18866_v28 = vmul.f32 %v18748_v14, %v6702_v45  ;;  %v6713_v14 = vcombine.high %v18711_v52, %v18711_v52 }
0x27c9   :  { %7439 = vrot.lane.b32.xlu0 %v7418_v22, %s16400_s23  ;;  %v6736_v12 = vrot.slane %v6720_v3, %v17138_v39 }
0x27ca   :  { %v6827_v34 = vrot.slane %v18866_v28, %v17138_v39  ;;  %v6820_v16 = vcombine.high %v18866_v28, %v18866_v28 }
0x27cb   :  { %7441 = vrot.lane.b32.xlu1 %v7422_v43, %s16400_s23  ;;  %v6728_v43 = vcombine.high %v6720_v3, %v6720_v3  ;;  %v6966_v57 = vpop.permute.xlu1 %6965  ;;  %v6758_v21 = vcombine.high %v6736_v12, %v6736_v12 }
0x27cc   :  { %v6835_v1 = vcombine.high %v6827_v34, %v6827_v34  ;;  %v6843_v4 = vrot.slane %v6827_v34, %v17138_v39  ;;  %v6834_v22 = vrot.slane %v6820_v16, %v17138_v39  ;;  %v6727_v34 = vrot.slane %v6713_v14, %v17138_v39 }
0x27cd   :  { %7443 = vrot.lane.b32.xlu0 %v7426_v35, %s16400_s23  ;;  %v6750_v16 = vrot.slane %v6728_v43, %v17138_v39  ;;  %v7073_v58 = vsel %vm1773_vm13, %v6758_v21, %v6956_v44 }
0x27ce   :  { %v6857_v59 = vrot.slane %v6835_v1, %v17138_v39  ;;  %v6865_v35 = vcombine.high %v6843_v4, %v6843_v4  ;;  %v6978_v45 = vrot.slane %v6843_v4, %v16734_v23  ;;  %v6836_v18 = vcombine.high %v6834_v22, %v6834_v22 }
0x27cf   :  { %7445 = vrot.lane.b32.xlu1 %v7430_v37, %s16400_s23  ;;  %v6964_v37 = vpop.permute.xlu0 %6963  ;;  %v7071_v1 = vsel %vm1773_vm13, %v6736_v12, %v6952_v48  ;;  %v7072_v15 = vsel %vm1773_vm13, %v6750_v16, %v6954_v10  ;;  %v6850_v4 = vrot.slane %v6834_v22, %v17138_v39 }
0x27d0   :  { %v6982_v2 = vrot.slane %v6857_v59, %v16734_v23  ;;  %v6867_v33 = vcombine.high %v6857_v59, %v6857_v59  ;;  %v7079_v20 = vsel %vm1782_vm14, %v7071_v1, %v6978_v45  ;;  %v6986_v3 = vrot.slane %v6865_v35, %v16734_v23 }
0x27d1   :  { %v6864_v12 = vrot.slane %v6836_v18, %v17138_v39  ;;  %v6760_v45 = vcombine.high %v6750_v16, %v6750_v16  ;;  %v6729_v1 = vcombine.high %v6727_v34, %v6727_v34  ;;  %v6743_v35 = vrot.slane %v6727_v34, %v17138_v39 }
0x27d2   :  { %v7080_v14 = vsel %vm1782_vm14, %v7072_v15, %v6982_v2  ;;  %v6990_v48 = vrot.slane %v6867_v33, %v16734_v23  ;;  %v7081_v21 = vsel %vm1782_vm14, %v7073_v58, %v6986_v3  ;;  %v6994_v33 = vrot.slane %v6850_v4, %v16734_v23 }
0x27d3   :  { %v7075_v2 = vsel %vm1773_vm13, %v6743_v35, %v6960_v9  ;;  %v6998_v34 = vrot.slane %v6864_v12, %v16734_v23  ;;  %v6866_v16 = vcombine.high %v6850_v4, %v6850_v4  ;;  %v6757_v58 = vrot.slane %v6729_v1, %v17138_v39 }
0x27d4   :  { %v6759_v3 = vcombine.high %v6743_v35, %v6743_v35  ;;  %v7083_v9 = vsel %vm1782_vm14, %v7075_v2, %v6994_v33 }
0x27d5   :  { %v6761_v35 = vcombine.high %v6757_v58, %v6757_v58 }
0x2813   :  { %v7048_v52 = vpop.permute.xlu0 %7047 }
0x2814   :  { %v7087_v59 = vsel %vm1791_vm15, %v7079_v20, %v7048_v52  ;;  %v7074_v20 = vsel %vm1773_vm13, %v6760_v45, %v6958_v38  ;;  %v6868_v52 = vcombine.high %v6864_v12, %v6864_v12  ;;  %v7002_v45 = vrot.slane %v6866_v16, %v16734_v23 }
0x2815   :  { %7487 = vrot.lane.b32.xlu0 %v7087_v59, %s16397_s5  ;;  %v7050_v43 = vpop.permute.xlu1 %7049  ;;  %v7082_v18 = vsel %vm1782_vm14, %v7074_v20, %v6990_v48 }
0x2816   :  { %v7088_v10 = vsel %vm1791_vm15, %v7080_v14, %v7050_v43  ;;  %v7076_v14 = vsel %vm1773_vm13, %v6757_v58, %v18863_v6  ;;  %v7077_v43 = vsel %vm1773_vm13, %v6759_v3, %v6964_v37  ;;  %v7006_v1 = vrot.slane %v6868_v52, %v16734_v23 }
0x2817   :  { %v7052_v22 = vpop.permute.xlu0 %7051  ;;  %7489 = vrot.lane.b32.xlu1 %v7088_v10, %s16397_s5  ;;  %v7084_v4 = vsel %vm1782_vm14, %v7076_v14, %v6998_v34  ;;  %v7078_v6 = vsel %vm1773_vm13, %v6761_v35, %v6966_v57  ;;  %v7211_v14 = vrot.slane %v18765_v54, %v17138_v39 }
0x2818   :  { %v7089_v15 = vsel %vm1791_vm15, %v7081_v21, %v7052_v22  ;;  %v7085_v21 = vsel %vm1782_vm14, %v7077_v43, %v7002_v45  ;;  %v7086_v20 = vsel %vm1782_vm14, %v7078_v6, %v7006_v1  ;;  %v7103_v43 = vrot.slane %v18703_v5, %v17138_v39 }
0x2819   :  { %7491 = vrot.lane.b32.xlu0 %v7089_v15, %s16397_s5  ;;  %v7054_v44 = vpop.permute.xlu1 %7053  ;;  %v7096_v1 = vcombine.high %v18703_v5, %v18703_v5 }
0x281a   :  { %v7090_v38 = vsel %vm1791_vm15, %v7082_v18, %v7054_v44  ;;  %v7111_v45 = vcombine.high %v7103_v43, %v7103_v43  ;;  %v7119_v6 = vrot.slane %v7103_v43, %v17138_v39 }
0x281b   :  { %v7056_v59 = vpop.permute.xlu0 %7055  ;;  %7493 = vrot.lane.b32.xlu1 %v7090_v38, %s16397_s5 }
0x281c   :  { %v7091_v48 = vsel %vm1791_vm15, %v7083_v9, %v7056_v59  ;;  %v7141_v43 = vcombine.high %v7119_v6, %v7119_v6 }
0x281d   :  { %7495 = vrot.lane.b32.xlu0 %v7091_v48, %s16397_s5  ;;  %v7058_v12 = vpop.permute.xlu1 %7057 }
0x281e   :  { %v7092_v10 = vsel %vm1791_vm15, %v7084_v4, %v7058_v12  ;;  %v7204_v4 = vcombine.high %v18765_v54, %v18765_v54  ;;  %v7219_v12 = vcombine.high %v7211_v14, %v7211_v14 }
0x281f   :  { %v7060_v22 = vpop.permute.xlu0 %7059  ;;  %7497 = vrot.lane.b32.xlu1 %v7092_v10, %s16397_s5  ;;  %v7227_v10 = vrot.slane %v7211_v14, %v17138_v39 }
0x2820   :  { %v7093_v37 = vsel %vm1791_vm15, %v7085_v21, %v7060_v22  ;;  %v7241_v22 = vrot.slane %v7219_v12, %v17138_v39  ;;  %v7218_v21 = vrot.slane %v7204_v4, %v17138_v39 }
0x2821   :  { %7499 = vrot.lane.b32.xlu0 %v7093_v37, %s16397_s5  ;;  %v7062_v2 = vpop.permute.xlu1 %7061  ;;  %v7133_v37 = vrot.slane %v7111_v45, %v17138_v39  ;;  %v7362_v14 = vrot.slane %v7227_v10, %v16734_v23 }
0x2822   :  { %v7094_v15 = vsel %vm1791_vm15, %v7086_v20, %v7062_v2  ;;  %v7110_v20 = vrot.slane %v7096_v1, %v17138_v39  ;;  %v7366_v12 = vrot.slane %v7241_v22, %v16734_v23  ;;  %v7251_v4 = vcombine.high %v7241_v22, %v7241_v22 }
0x2823   :  { %7501 = vrot.lane.b32.xlu1 %v7094_v15, %s16397_s5  ;;  %v7336_v33 = vpop.permute.xlu0 %7335  ;;  %v7249_v15 = vcombine.high %v7227_v10, %v7227_v10  ;;  %v7220_v25 = vcombine.high %v7218_v21, %v7218_v21  ;;  %v7143_v55 = vcombine.high %v7133_v37, %v7133_v37 }
0x2824   :  { %v7455_v51 = vsel %vm1773_vm13, %v7119_v6, %v7336_v33  ;;  %v7112_v45 = vcombine.high %v7110_v20, %v7110_v20 }
0x2825   :  { %v7338_v18 = vpop.permute.xlu1 %7337  ;;  %v7463_v1 = vsel %vm1782_vm14, %v7455_v51, %v7362_v14  ;;  %v7370_v33 = vrot.slane %v7249_v15, %v16734_v23  ;;  %v7248_v15 = vrot.slane %v7220_v25, %v17138_v39 }
0x2826   :  { %v7456_v27 = vsel %vm1773_vm13, %v7133_v37, %v7338_v18  ;;  %v7234_v18 = vrot.slane %v7218_v21, %v17138_v39 }
0x2827   :  { %v7340_v44 = vpop.permute.xlu0 %7339  ;;  %v7464_v41 = vsel %vm1782_vm14, %v7456_v27, %v7366_v12  ;;  %v7374_v27 = vrot.slane %v7251_v4, %v16734_v23 }
0x2828   :  { %v7457_v10 = vsel %vm1773_vm13, %v7141_v43, %v7340_v44  ;;  %v7140_v44 = vrot.slane %v7112_v45, %v17138_v39  ;;  %v7378_v25 = vrot.slane %v7234_v18, %v16734_v23 }
0x2829   :  { %v7342_v34 = vpop.permute.xlu1 %7341 }
0x282a   :  { %v7458_v22 = vsel %vm1773_vm13, %v7143_v55, %v7342_v34  ;;  %v7126_v55 = vrot.slane %v7110_v20, %v17138_v39 }
0x282b   :  { %v7432_v16 = vpop.permute.xlu0 %7431 }
0x282c   :  { %v7471_v6 = vsel %vm1791_vm15, %v7463_v1, %v7432_v16  ;;  %v7465_v16 = vsel %vm1782_vm14, %v7457_v10, %v7370_v33  ;;  %v7382_v1 = vrot.slane %v7248_v15, %v16734_v23  ;;  %v7252_v33 = vcombine.high %v7248_v15, %v7248_v15 }
0x282d   :  { %v7434_v52 = vpop.permute.xlu1 %7433 }
0x282e   :  { %v7472_v37 = vsel %vm1791_vm15, %v7464_v41, %v7434_v52  ;;  %v7466_v52 = vsel %vm1782_vm14, %v7458_v22, %v7374_v27 }
0x282f   :  { %v7436_v58 = vpop.permute.xlu0 %7435 }
0x2830   :  { %v7473_v12 = vsel %vm1791_vm15, %v7465_v16, %v7436_v58  ;;  %v7142_v58 = vcombine.high %v7126_v55, %v7126_v55 }
0x2831   :  { %v7438_v3 = vpop.permute.xlu1 %7437 }
0x2832   :  { %v7474_v20 = vsel %vm1791_vm15, %v7466_v52, %v7438_v3  ;;  %v7144_v3 = vcombine.high %v7140_v44, %v7140_v44 }
0x2833   :  { %v7344_v57 = vpop.permute.xlu0 %7343 }
0x2834   :  { %v7459_v4 = vsel %vm1773_vm13, %v7126_v55, %v7344_v57  ;;  %v7390_v55 = vrot.slane %v7252_v33, %v16734_v23 }
0x2835   :  { %v7346_v38 = vpop.permute.xlu1 %7345 }
0x2836   :  { %v7460_v43 = vsel %vm1773_vm13, %v7140_v44, %v7346_v38  ;;  %v7467_v38 = vsel %vm1782_vm14, %v7459_v4, %v7378_v25 }
0x2837   :  { %v18927_v59 = vpop.permute.xlu0 %7347 }
0x2839   :  { %v18929_v9 = vpop.permute.xlu1 %7349 }
0x283b   :  { %v18935_v48 = vpop.permute.xlu0 %7439 }
0x283c   :  { %v7475_v27 = vsel %vm1791_vm15, %v7467_v38, %v18935_v48 }
0x283d   :  { %v18941_v35 = vpop.permute.xlu1 %7441 }
0x283f   :  { %v18949_v2 = vpop.permute.xlu0 %7443 }
0x2841   :  { %v18953_v54 = vpop.permute.xlu1 %7445 }
0x2887   :  { %v7488_v49 = vpop.permute.xlu0 %7487 }
0x2888   :  { %14796 = vst.msk [vmem:[%s21219_s16 + $0x60] sm:$0xf] %vm14771_vm12, %v7488_v49  ;;  %v7511_v21 = vsel %vm277_vm1, %v7488_v49, %v7471_v6  ;;  %v7250_v49 = vcombine.high %v7234_v18, %v7234_v18  ;;  %v7468_v6 = vsel %vm1782_vm14, %v7460_v43, %v7382_v1 }
0x2889   :  { %v7490_v51 = vpop.permute.xlu1 %7489  ;;  %v7476_v15 = vsel %vm1791_vm15, %v7468_v6, %v18941_v35 }
0x288a   :  { %v7512_v14 = vsel %vm277_vm1, %v7490_v51, %v7472_v37  ;;  %14797 = vst.msk [vmem:[%s21219_s16 + $0x64] sm:$0xf] %vm14771_vm12, %v7490_v51  ;;  %v7461_v37 = vsel %vm1773_vm13, %v7142_v58, %v18927_v59  ;;  %v7462_v51 = vsel %vm1773_vm13, %v7144_v3, %v18929_v9  ;;  %v19024_v9 = vld [vmem:[%s21214_s9] sm:$0xff] }
0x288b   :  { %v7527_v34 = vcombine.low %v7511_v21, %v7512_v14  ;;  %v7492_v41 = vpop.permute.xlu0 %7491  ;;  %v7386_v14 = vrot.slane %v7250_v49, %v16734_v23 }
0x288c   :  { %14798 = vst.msk [vmem:[%s21219_s16 + $0x68] sm:$0xf] %vm14771_vm12, %v7492_v41  ;;  %v7513_v18 = vsel %vm277_vm1, %v7492_v41, %v7473_v12  ;;  %v7470_v41 = vsel %vm1782_vm14, %v7462_v51, %v7390_v55 }
0x288d   :  { %15392 = vmatprep.mubr.msk.f32.mxu0 %vm298_vm2, %v7527_v34  ;;  %v7494_v45 = vpop.permute.xlu1 %7493  ;;  %v7469_v34 = vsel %vm1782_vm14, %v7461_v37, %v7386_v14  ;;  %v7478_v52 = vsel %vm1791_vm15, %v7470_v41, %v18953_v54 }
0x288e   :  { %v7514_v10 = vsel %vm277_vm1, %v7494_v45, %v7474_v20  ;;  %14799 = vst.msk [vmem:[%s21219_s16 + $0x6c] sm:$0xf] %vm14771_vm12, %v7494_v45  ;;  %v7477_v16 = vsel %vm1791_vm15, %v7469_v34, %v18949_v2  ;;  %v16378_v34 = vld [vmem:[%s21211_s7] ss:$0 sm:$0xff] }
0x288f   :  { %v7528_v57 = vcombine.low %v7513_v18, %v7514_v10  ;;  %v7496_v22 = vpop.permute.xlu0 %7495 }
0x2890   :  { %14800 = vst.msk [vmem:[%s21219_s16 + $0x70] sm:$0xf] %vm14771_vm12, %v7496_v22  ;;  %v7515_v44 = vsel %vm277_vm1, %v7496_v22, %v7475_v27 }
0x2891   :  { %15393 = vmatmul.mubr.msk.f32.vlgmr.msra.gmra.mrb[26].mxu0 %vm298_vm2, %v7528_v57  ;;  %v7498_v21 = vpop.permute.xlu1 %7497 }
0x2892   :  { %v7516_v59 = vsel %vm277_vm1, %v7498_v21, %v7476_v15  ;;  %14801 = vst.msk [vmem:[%s21219_s16 + $0x74] sm:$0xf] %vm14771_vm12, %v7498_v21  ;;  %15410 = vmatpush3.msra.mxu0 %v19024_v9 }
0x2893   :  { %v7529_v48 = vcombine.low %v7515_v44, %v7516_v59  ;;  %v7500_v35 = vpop.permute.xlu0 %7499  ;;  %15716 = vmatprep.subr.bf16.mxu0 %v21352_v50 }
0x2894   :  { %14802 = vst.msk [vmem:[%s21219_s16 + $0x78] sm:$0xf] %vm14771_vm12, %v7500_v35  ;;  %v7517_v49 = vsel %vm277_vm1, %v7500_v35, %v7477_v16 }
0x2895   :  { %15395 = vmatprep.mubr.msk.f32.mxu0 %vm298_vm2, %v7529_v48  ;;  %v7502_v25 = vpop.permute.xlu1 %7501 }
0x2896   :  { %v7518_v12 = vsel %vm277_vm1, %v7502_v25, %v7478_v52  ;;  %14803 = vst.msk [vmem:[%s21219_s16 + $0x7c] sm:$0xf] %vm14771_vm12, %v7502_v25 }
0x2897   :  { %v7530_v20 = vcombine.low %v7517_v49, %v7518_v12 }
0x2899   :  { %15396 = vmatmul.mubr.msk.f32.gmra.mrb[28].mxu0 %vm298_vm2, %v7530_v20 }
0x289a   :  { %15411 = vmatprep.mubr.msk.f32.mxu0 %vm16394_vm11, %v21351_v56 }
0x2964   :  { %v15394_v2 = vpop.f32.mrb[26].mxu0 }
0x2965   :  { %v7629_v54 = vcombine.high %v15394_v2, %v15394_v2  ;;  %v7638_v4 = vcombine.low %v15394_v2, %v15394_v2  ;;  %v7605_v43 = vpop.f32.mrb[27].mxu0 }
0x2966   :  { %v7628_v45 = vcombine.high %v7605_v43, %v7605_v43  ;;  %v7636_v1 = vcombine.low %v7605_v43, %v7605_v43 }
0x2967   :  { %v7654_v33 = vsel %vm420_vm3, %v15394_v2, %v7638_v4  ;;  %v7663_v18 = vadd.f32 %v7629_v54, %v16663_v62 }
0x2968   :  { %v7662_v10 = vadd.f32 %v7654_v33, %v16667_v7  ;;  %v7652_v58 = vsel %vm420_vm3, %v7605_v43, %v7636_v1  ;;  %v7661_v3 = vadd.f32 %v7628_v45, %v16665_v63 }
0x2969   :  { %16086 = vtanh.f32 %v7663_v18  ;;  %v7660_v57 = vadd.f32 %v7652_v58, %v16669_v8 }
0x296a   :  { %16088 = vtanh.f32 %v7662_v10 }
0x296b   :  { %16090 = vtanh.f32 %v7661_v3 }
0x296c   :  { %v15397_v22 = vpop.f32.mrb[28].mxu0  ;;  %16092 = vtanh.f32 %v7660_v57 }
0x296d   :  { %v7631_v38 = vcombine.high %v15397_v22, %v15397_v22  ;;  %v7642_v6 = vcombine.low %v15397_v22, %v15397_v22  ;;  %v7615_v37 = vpop.f32.mrb[29].mxu0 }
0x296e   :  { %v7630_v51 = vcombine.high %v7615_v37, %v7615_v37  ;;  %v7640_v27 = vcombine.low %v7615_v37, %v7615_v37 }
0x296f   :  { %v7658_v15 = vsel %vm420_vm3, %v15397_v22, %v7642_v6  ;;  %v7667_v44 = vadd.f32 %v7631_v38, %v16684_v40 }
0x2970   :  { %v7666_v21 = vadd.f32 %v7658_v15, %v16679_v30  ;;  %v7656_v14 = vsel %vm420_vm3, %v7615_v37, %v7640_v27  ;;  %v7665_v55 = vadd.f32 %v7630_v51, %v16677_v29 }
0x2971   :  { %v7664_v59 = vadd.f32 %v7656_v14, %v16681_v36 }
0x2972   :  { %16094 = vtanh.f32 %v7666_v21 }
0x2973   :  { %v16087_v48 = vpop.eup %16086  ;;  %16096 = vtanh.f32 %v7664_v59 }
0x2974   :  { %v16089_v35 = vpop.eup %16088  ;;  %16098 = vtanh.f32 %v7665_v55  ;;  %v7679_v41 = vmul.f32 %v16378_v34, %v16087_v48 }
0x2975   :  { %16100 = vtanh.f32 %v7667_v44  ;;  %v16091_v16 = vpop.eup %16090  ;;  %v7678_v25 = vmul.f32 %v16378_v34, %v16089_v35 }
0x2976   :  { %v7693_v52 = vsel %vm78_vm0, %v7679_v41, 0.0  ;;  %v16093_v49 = vpop.eup %16092  ;;  %v7677_v12 = vmul.f32 %v16378_v34, %v16091_v16 }
0x2977   :  { %7694 = vadd.xlane.f32.xlu0 %v7693_v52  ;;  %v7690_v2 = vsel %vm78_vm0, %v7678_v25, 0.0  ;;  %v7676_v54 = vmul.f32 %v16378_v34, %v16093_v49 }
0x2978   :  { %v7687_v20 = vsel %vm78_vm0, %v7677_v12, 0.0 }
0x2979   :  { %7688 = vadd.xlane.f32.xlu1 %v7687_v20  ;;  %v7684_v1 = vsel %vm78_vm0, %v7676_v54, 0.0 }
0x297b   :  { %7691 = vadd.xlane.f32.xlu0 %v7690_v2 }
0x297c   :  { %v16095_v4 = vpop.eup %16094 }
0x297d   :  { %v16097_v43 = vpop.eup %16096  ;;  %v7682_v3 = vmul.f32 %v16378_v34, %v16095_v4 }
0x297e   :  { %v16099_v45 = vpop.eup %16098  ;;  %v7680_v33 = vmul.f32 %v16378_v34, %v16097_v43 }
0x297f   :  { %v16101_v18 = vpop.eup %16100  ;;  %7685 = vadd.xlane.f32.xlu0 %v7684_v1  ;;  %v7681_v10 = vmul.f32 %v16378_v34, %v16099_v45  ;;  %v7702_v38 = vsel %vm78_vm0, %v7682_v3, 0.0 }
0x2980   :  { %v7696_v58 = vsel %vm78_vm0, %v7680_v33, 0.0  ;;  %v7683_v22 = vmul.f32 %v16378_v34, %v16101_v18 }
0x2981   :  { %7697 = vadd.xlane.f32.xlu1 %v7696_v58  ;;  %v7699_v57 = vsel %vm78_vm0, %v7681_v10, 0.0 }
0x2982   :  { %v7705_v6 = vsel %vm78_vm0, %v7683_v22, 0.0 }
0x2983   :  { %7700 = vadd.xlane.f32.xlu0 %v7699_v57 }
0x2985   :  { %7703 = vadd.xlane.f32.xlu1 %v7702_v38 }
0x2987   :  { %7706 = vadd.xlane.f32.xlu0 %v7705_v6 }
0x2a04   :  { %v7695_v37 = vpop.xlane.xlu0 %7694 }
0x2a05   :  { %v7711_v55 = vadd.f32 %v7695_v37, %v16707_v47 }
0x2a06   :  { %v7689_v51 = vpop.xlane.xlu1 %7688 }
0x2a07   :  { %v7709_v15 = vadd.f32 %v7689_v51, %v16707_v47  ;;  %v7739_v52 = vrot.slane %v7711_v55, %v16705_v46 }
0x2a08   :  { %v7692_v27 = vpop.xlane.xlu0 %7691 }
0x2a09   :  { %v7710_v21 = vadd.f32 %v7692_v27, %v16707_v47  ;;  %v7731_v48 = vrot.slane %v7709_v15, %v16705_v46 }
0x2a0b   :  { %v7735_v41 = vrot.slane %v7710_v21, %v16705_v46 }
0x2a0c   :  { %v7686_v14 = vpop.xlane.xlu0 %7685 }
0x2a0d   :  { %v7708_v44 = vadd.f32 %v7686_v14, %v16707_v47 }
0x2a0e   :  { %v7698_v59 = vpop.xlane.xlu1 %7697 }
0x2a0f   :  { %v7727_v35 = vrot.slane %v7708_v44, %v16705_v46  ;;  %v7712_v34 = vadd.f32 %v7698_v59, %v16707_v47 }
0x2a10   :  { %v7701_v16 = vpop.xlane.xlu0 %7700 }
0x2a11   :  { %v7756_v25 = vsel %vm542_vm4, %v7731_v48, %v7727_v35  ;;  %v7743_v49 = vrot.slane %v7712_v34, %v16705_v46  ;;  %v7713_v12 = vadd.f32 %v7701_v16, %v16707_v47 }
0x2a12   :  { %v7757_v20 = vsel %vm544_vm5, %v7735_v41, %v7756_v25  ;;  %v7704_v2 = vpop.xlane.xlu1 %7703 }
0x2a13   :  { %v7758_v54 = vsel %vm546_vm6, %v7739_v52, %v7757_v20  ;;  %v7747_v4 = vrot.slane %v7713_v12, %v16705_v46  ;;  %v7714_v43 = vadd.f32 %v7704_v2, %v16707_v47 }
0x2a14   :  { %v7759_v45 = vsel %vm548_vm7, %v7743_v49, %v7758_v54  ;;  %v7707_v1 = vpop.xlane.xlu0 %7706 }
0x2a15   :  { %v7751_v33 = vrot.slane %v7714_v43, %v16705_v46  ;;  %v7715_v18 = vadd.f32 %v7707_v1, %v16707_v47  ;;  %v7760_v10 = vsel %vm550_vm8, %v7747_v4, %v7759_v45 }
0x2a17   :  { %v7755_v58 = vrot.slane %v7715_v18, %v16705_v46  ;;  %v7761_v3 = vsel %vm552_vm9, %v7751_v33, %v7760_v10 }
0x2a19   :  { %v7762_v57 = vsel %vm554_vm10, %v7755_v58, %v7761_v3 }
0x2a1a   :  { %v7764_v22 = vsel %vm78_vm0, %v7762_v57, -inf }
0x2a1b   :  { %7765 = vmax.xlane.f32.xlu1 %v7764_v22  ;;  %v58_v22 = vld [vmem:[%s21212_s0 + $0x20] sm:$0xff] }
0x2aa8   :  { %v7766_v38 = vpop.xlane.xlu1 %7765 }
0x2aa9   :  { %v7771_v6 = vrot.slane %v7766_v38, %v16734_v23  ;;  %v7775_v37 = vrot.slane %v7766_v38, %v16737_v24  ;;  %v7779_v51 = vrot.slane %v7766_v38, %v16740_v31  ;;  %v7783_v27 = vrot.slane %v7766_v38, %v16743_v32 }
0x2aaa   :  { %v7791_v14 = vrot.slane %v7766_v38, %v16753_v61  ;;  %v7787_v41 = vrot.slane %v7766_v38, %v16749_v42  ;;  %v7799_v49 = vrot.slane %v7766_v38, %v21371_v53  ;;  %v7795_v54 = vrot.slane %v7766_v38, %v16757_v13 }
0x2aab   :  { %v7808_v59 = vsub.f32 %v7708_v44, %v7771_v6  ;;  %v7809_v48 = vsub.f32 %v7709_v15, %v7775_v37  ;;  %v7811_v35 = vsub.f32 %v7711_v55, %v7783_v27  ;;  %v7810_v16 = vsub.f32 %v7710_v21, %v7779_v51 }
0x2aac   :  { %v7813_v20 = vsub.f32 %v7713_v12, %v7791_v14  ;;  %v7812_v4 = vsub.f32 %v7712_v34, %v7787_v41  ;;  %v7815_v1 = vsub.f32 %v7715_v18, %v7799_v49  ;;  %v7814_v15 = vsub.f32 %v7714_v43, %v7795_v54 }
0x2aad   :  { %v7816_v52 = vmul.f32 1.442695, %v7808_v59  ;;  %v7818_v25 = vmul.f32 1.442695, %v7809_v48  ;;  %v7822_v2 = vmul.f32 1.442695, %v7811_v35  ;;  %v7968_v38 = vrot.slane %v58_v22, %v16734_v23 }
0x2aae   :  { %v7820_v45 = vmul.f32 1.442695, %v7810_v16  ;;  %v7826_v44 = vmul.f32 1.442695, %v7813_v20  ;;  %v7824_v55 = vmul.f32 1.442695, %v7812_v4  ;;  %v7975_v6 = vrot.slane %v58_v22, %v16737_v24 }
0x2aaf   :  { %16102 = vpow2.f32 %v7816_v52  ;;  %v7830_v21 = vmul.f32 1.442695, %v7815_v1  ;;  %v7828_v33 = vmul.f32 1.442695, %v7814_v15  ;;  %v7982_v37 = vrot.slane %v58_v22, %v16740_v31 }
0x2ab0   :  { %16104 = vpow2.f32 %v7818_v25  ;;  %v7989_v51 = vrot.slane %v58_v22, %v16743_v32  ;;  %v7996_v27 = vrot.slane %v58_v22, %v16749_v42  ;;  %v8003_v14 = vrot.slane %v58_v22, %v16753_v61 }
0x2ab1   :  { %16106 = vpow2.f32 %v7822_v2  ;;  %v8010_v59 = vrot.slane %v58_v22, %v16757_v13  ;;  %v8017_v48 = vrot.slane %v58_v22, %v21371_v53 }
0x2ab2   :  { %16108 = vpow2.f32 %v7820_v45 }
0x2ab3   :  { %16110 = vpow2.f32 %v7826_v44 }
0x2ab4   :  { %16112 = vpow2.f32 %v7824_v55 }
0x2ab5   :  { %16114 = vpow2.f32 %v7830_v21 }
0x2ab6   :  { %16116 = vpow2.f32 %v7828_v33 }
0x2ab9   :  { %v19103_v10 = vpop.eup %16102 }
0x2aba   :  { %v19105_v12 = vpop.eup %16104  ;;  %7841 = vperm.xlu0 %15813, %v19103_v10  }
0x2abb   :  { %7844 = vperm.xlu1 %15812, %v19105_v12   ;;  %v19109_v34 = vpop.eup %16106 }
0x2abc   :  { %v19111_v18 = vpop.eup %16108 }
0x2abd   :  { %v19115_v43 = vpop.eup %16110 }
0x2abe   :  { %7850 = vperm.xlu0 %15813, %v19109_v34   ;;  %v19117_v58 = vpop.eup %16112 }
0x2abf   :  { %7847 = vperm.xlu1 %15812, %v19111_v18   ;;  %v19121_v3 = vpop.eup %16114 }
0x2ac0   :  { %v19123_v57 = vpop.eup %16116 }
0x2ac2   :  { %7856 = vperm.xlu0 %15813, %v19115_v43  }
0x2ac3   :  { %7853 = vperm.xlu1 %15812, %v19117_v58  }
0x2ac6   :  { %7862 = vperm.xlu0 %15813, %v19121_v3  }
0x2ac7   :  { %7859 = vperm.xlu1 %15812, %v19123_v57  }
0x2aca   :  { %7970 = vbcast.lane.b32.xlu0 %v7968_v38, 256 }
0x2ace   :  { %7977 = vbcast.lane.b32.xlu0 %v7975_v6, 256 }
0x2ad2   :  { %7984 = vbcast.lane.b32.xlu0 %v7982_v37, 256 }
0x2ad6   :  { %7991 = vbcast.lane.b32.xlu0 %v7989_v51, 256 }
0x2ada   :  { %7998 = vbcast.lane.b32.xlu0 %v7996_v27, 256 }
0x2ade   :  { %8005 = vbcast.lane.b32.xlu0 %v8003_v14, 256 }
0x2ae2   :  { %8012 = vbcast.lane.b32.xlu0 %v8010_v59, 256 }
0x2ae6   :  { %8019 = vbcast.lane.b32.xlu0 %v8017_v48, 256 }
0x2b39   :  { %v7842_v35 = vpop.permute.xlu0 %7841 }
0x2b3a   :  { %v7845_v41 = vpop.permute.xlu1 %7844  ;;  %v7867_v52 = vrot.slane %v7842_v35, %v16705_v46 }
0x2b3b   :  { %v7871_v16 = vrot.slane %v7845_v41, %v16705_v46 }
0x2b3d   :  { %v7851_v25 = vpop.permute.xlu0 %7850  ;;  %v7896_v2 = vsel %vm542_vm4, %v7871_v16, %v7867_v52 }
0x2b3e   :  { %v7848_v49 = vpop.permute.xlu1 %7847  ;;  %v7879_v54 = vrot.slane %v7851_v25, %v16705_v46 }
0x2b3f   :  { %v7875_v20 = vrot.slane %v7848_v49, %v16705_v46 }
0x2b41   :  { %v7897_v4 = vsel %vm544_vm5, %v7875_v20, %v7896_v2  ;;  %v7857_v45 = vpop.permute.xlu0 %7856 }
0x2b42   :  { %v7854_v1 = vpop.permute.xlu1 %7853  ;;  %v7898_v15 = vsel %vm546_vm6, %v7879_v54, %v7897_v4  ;;  %v7887_v55 = vrot.slane %v7857_v45, %v16705_v46 }
0x2b43   :  { %v7883_v44 = vrot.slane %v7854_v1, %v16705_v46 }
0x2b45   :  { %v7899_v21 = vsel %vm548_vm7, %v7883_v44, %v7898_v15  ;;  %v7863_v33 = vpop.permute.xlu0 %7862 }
0x2b46   :  { %v7860_v22 = vpop.permute.xlu1 %7859  ;;  %v7895_v38 = vrot.slane %v7863_v33, %v16705_v46  ;;  %v7900_v37 = vsel %vm550_vm8, %v7887_v55, %v7899_v21 }
0x2b47   :  { %v7891_v6 = vrot.slane %v7860_v22, %v16705_v46 }
0x2b49   :  { %v7901_v51 = vsel %vm552_vm9, %v7891_v6, %v7900_v37  ;;  %v7971_v59 = vpop.permute.xlu0 %7970 }
0x2b4a   :  { %v7902_v27 = vsel %vm554_vm10, %v7895_v38, %v7901_v51 }
0x2b4b   :  { %v7904_v14 = vsel %vm78_vm0, %v7902_v27, 0.0 }
0x2b4c   :  { %7905 = vadd.xlane.f32.xlu1 %v7904_v14 }
0x2b4d   :  { %v7978_v48 = vpop.permute.xlu0 %7977 }
0x2b51   :  { %v7985_v35 = vpop.permute.xlu0 %7984 }
0x2b55   :  { %v7992_v20 = vpop.permute.xlu0 %7991 }
0x2b59   :  { %v7999_v4 = vpop.permute.xlu0 %7998 }
0x2b5d   :  { %v8006_v55 = vpop.permute.xlu0 %8005 }
0x2bd9   :  { %v7906_v41 = vpop.xlane.xlu1 %7905 }
0x2bda   :  { %v7935_v16 = vrot.slane %v7906_v41, %v16757_v13  ;;  %v7911_v52 = vrot.slane %v7906_v41, %v16734_v23  ;;  %v7915_v25 = vrot.slane %v7906_v41, %v16737_v24  ;;  %v7919_v49 = vrot.slane %v7906_v41, %v16740_v31 }
0x2bdb   :  { %v7923_v2 = vrot.slane %v7906_v41, %v16743_v32  ;;  %v7927_v54 = vrot.slane %v7906_v41, %v16749_v42  ;;  %v7931_v45 = vrot.slane %v7906_v41, %v16753_v61  ;;  %v7939_v22 = vrot.slane %v7906_v41, %v21371_v53 }
0x2bdc   :  { %16118 = vrcp.f32 %v7935_v16 }
0x2bdd   :  { %16120 = vrcp.f32 %v7911_v52 }
0x2bde   :  { %16122 = vrcp.f32 %v7915_v25 }
0x2bdf   :  { %16124 = vrcp.f32 %v7919_v49 }
0x2be0   :  { %16126 = vrcp.f32 %v7923_v2 }
0x2be1   :  { %16128 = vrcp.f32 %v7927_v54 }
0x2be2   :  { %16130 = vrcp.f32 %v7931_v45 }
0x2be3   :  { %16132 = vrcp.f32 %v7939_v22 }
0x2be6   :  { %v16119_v1 = vpop.eup %16118 }
0x2be7   :  { %v16121_v44 = vpop.eup %16120  ;;  %v19173_v27 = vmul.f32 %v16119_v1, %v19123_v57 }
0x2be8   :  { %v16123_v15 = vpop.eup %16122  ;;  %v19162_v21 = vmul.f32 %v16121_v44, %v19103_v10  ;;  %v8013_v10 = vpop.permute.xlu0 %8012 }
0x2be9   :  { %v16125_v33 = vpop.eup %16124  ;;  %v19166_v38 = vmul.f32 %v16123_v15, %v19105_v12  ;;  %21423 = vst [vmem:[#allocation46_spill] sm:$0xff] %v19173_v27 }
0x2bea   :  { %21420 = vst [vmem:[#allocation43_spill] sm:$0xff] %v19162_v21  ;;  %v8029_v6 = vmul.f32 %v7971_v59, %v19162_v21  ;;  %v19170_v37 = vmul.f32 %v16125_v33, %v19111_v18  ;;  %v16127_v51 = vpop.eup %16126  ;;  %v8035_v59 = vmul.f32 %v8013_v10, %v19173_v27 }
0x2beb   :  { %21421 = vst [vmem:[#allocation44_spill] sm:$0xff] %v19166_v38  ;;  %v8030_v14 = vmul.f32 %v7978_v48, %v19166_v38  ;;  %v19178_v12 = vmul.f32 %v16127_v51, %v19109_v34  ;;  %v16129_v16 = vpop.eup %16128 }
0x2bec   :  { %21422 = vst [vmem:[#allocation45_spill] sm:$0xff] %v19170_v37  ;;  %8116 = vperm.xlu0 %15813, %v8029_v6   ;;  %v8031_v41 = vmul.f32 %v7985_v35, %v19170_v37  ;;  %v19182_v18 = vmul.f32 %v16129_v16, %v19117_v58  ;;  %v16131_v48 = vpop.eup %16130  ;;  %v8020_v2 = vpop.permute.xlu0 %8019 }
0x2bed   :  { %8119 = vperm.xlu1 %15812, %v8030_v14   ;;  %21424 = vst [vmem:[#allocation47_spill] sm:$0xff] %v19178_v12  ;;  %v8032_v57 = vmul.f32 %v7992_v20, %v19178_v12  ;;  %v19187_v25 = vmul.f32 %v16131_v48, %v19115_v43  ;;  %v16133_v35 = vpop.eup %16132 }
0x2bee   :  { %21425 = vst [vmem:[#allocation48_spill] sm:$0xff] %v19182_v18  ;;  %v8033_v52 = vmul.f32 %v7999_v4, %v19182_v18  ;;  %v19191_v49 = vmul.f32 %v16133_v35, %v19121_v3 }
0x2bef   :  { %21426 = vst [vmem:[#allocation49_spill] sm:$0xff] %v19187_v25  ;;  %v8034_v34 = vmul.f32 %v8006_v55, %v19187_v25 }
0x2bf0   :  { %8122 = vperm.xlu0 %15813, %v8031_v41   ;;  %21427 = vst [vmem:[#allocation50_spill] sm:$0xff] %v19191_v49  ;;  %v8036_v58 = vmul.f32 %v8020_v2, %v19191_v49 }
0x2bf1   :  { %8134 = vperm.xlu1 %15812, %v8035_v59  }
0x2bf4   :  { %8125 = vperm.xlu0 %15813, %v8032_v57  }
0x2bf8   :  { %8128 = vperm.xlu0 %15813, %v8033_v52  }
0x2bfc   :  { %8131 = vperm.xlu0 %15813, %v8034_v34  }
0x2c00   :  { %8137 = vperm.xlu0 %15813, %v8036_v58  }
0x2c6b   :  { %v8117_v20 = vpop.permute.xlu0 %8116 }
0x2c6c   :  { %v8120_v45 = vpop.permute.xlu1 %8119  ;;  %v8142_v43 = vrot.slane %v8117_v20, %v16705_v46  ;;  %v16379_v20 = vld [vmem:[%s21215_s11] ss:$0 sm:$0xff] }
0x2c6d   :  { %v8146_v4 = vrot.slane %v8120_v45, %v16705_v46 }
0x2c6f   :  { %v8123_v54 = vpop.permute.xlu0 %8122  ;;  %v8171_v33 = vsel %vm542_vm4, %v8146_v4, %v8142_v43 }
0x2c70   :  { %v8150_v44 = vrot.slane %v8123_v54, %v16705_v46  ;;  %v8135_v51 = vpop.permute.xlu1 %8134 }
0x2c71   :  { %v8166_v59 = vrot.slane %v8135_v51, %v16705_v46 }
0x2c72   :  { %v8172_v22 = vsel %vm544_vm5, %v8150_v44, %v8171_v33 }
0x2c73   :  { %v8126_v1 = vpop.permute.xlu0 %8125 }
0x2c74   :  { %v8154_v55 = vrot.slane %v8126_v1, %v16705_v46 }
0x2c76   :  { %v8173_v14 = vsel %vm546_vm6, %v8154_v55, %v8172_v22 }
0x2c77   :  { %v8129_v15 = vpop.permute.xlu0 %8128 }
0x2c78   :  { %v8158_v3 = vrot.slane %v8129_v15, %v16705_v46 }
0x2c7a   :  { %v8174_v41 = vsel %vm548_vm7, %v8158_v3, %v8173_v14 }
0x2c7b   :  { %v8132_v6 = vpop.permute.xlu0 %8131 }
0x2c7c   :  { %v8162_v10 = vrot.slane %v8132_v6, %v16705_v46 }
0x2c7e   :  { %v8175_v16 = vsel %vm550_vm8, %v8162_v10, %v8174_v41 }
0x2c7f   :  { %v8138_v57 = vpop.permute.xlu0 %8137  ;;  %v8176_v52 = vsel %vm552_vm9, %v8166_v59, %v8175_v16 }
0x2c80   :  { %v8170_v48 = vrot.slane %v8138_v57, %v16705_v46 }
0x2c82   :  { %v8177_v35 = vsel %vm554_vm10, %v8170_v48, %v8176_v52 }
0x2c83   :  { %15412 = vmatmul.mubr.msk.f32.vlgmr.msra.gmra.mrb[30].mxu0 %vm78_vm0, %v8177_v35 }
0x2c84   :  { %15718 = vmatpush3.bf16.msra.mxu0 %v17088_v11  ;;  %15433 = vmatprep.mubr.msk.f32.mxu0 %vm16394_vm11, %v21351_v56 }
0x2c85   :  { %15719 = vmatprep.subr.bf16.mxu0 %v21352_v50 }
0x2c88   :  { %15721 = vmatpush3.bf16.msra.mxu0 %v17101_v26 }
0x2c89   :  { %15730 = vmatprep.subr.bf16.mxu0 %v21352_v50 }
0x2d56   :  { %v8246_v34 = vpop.f32.mrb[30].mxu0 }
0x2d57   :  { %v8247_v2 = vadd.f32 %v8246_v34, %v18744_v60  ;;  %v15413_v58 = vpop.f32.mrb[31].mxu0  ;;  %v21429_v34 = vld [vmem:[#allocation3_spill] sm:$0xff] }
0x2d59   :  { %v8250_v54 = vadd.f32 %v16379_v20, %v8247_v2  ;;  %v21430_v2 = vld [vmem:[#allocation4_spill] sm:$0xff] }
0x2d5b   :  { %16134 = vtanh.f32 %v8250_v54  ;;  %v8251_v1 = vsub.f32 0.0, %v8250_v54 }
0x2d5d   :  { %v8252_v4 = vmul.f32 1.442695, %v8251_v1 }
0x2d5f   :  { %16136 = vpow2.f32 %v8252_v4  ;;  %v16380_v4 = vld [vmem:[%s21218_s14] ss:$0 sm:$0xff] }
0x2d65   :  { %v16135_v45 = vpop.eup %16134 }
0x2d66   :  { %8260 = vrot.lane.b32.xlu1 %v16135_v45, %s16396_s22 }
0x2d69   :  { %v16137_v43 = vpop.eup %16136 }
0x2d6a   :  { %v8254_v44 = vadd.f32 1.0, %v16137_v43 }
0x2d6c   :  { %16138 = vrcp.f32 %v8254_v44 }
0x2d76   :  { %v16139_v15 = vpop.eup %16138 }
0x2d77   :  { %v8275_v60 = vmul.f32 %v16139_v15, %v18705_v0  ;;  %v8258_v33 = vmul.f32 %v16139_v15, %v18703_v5 }
0x2dd8   :  { %v8261_v55 = vpop.permute.xlu1 %8260 }
0x2dd9   :  { %v8263_v3 = vmul.f32 %v16139_v15, %v8261_v55 }
0x2ddb   :  { %8265 = vrot.lane.b32.xlu0 %v8263_v3, %s16391_s26 }
0x2e4d   :  { %v8266_v22 = vpop.permute.xlu0 %8265 }
0x2e4e   :  { %v19224_v6 = vadd.f32 %v8266_v22, %v8258_v33  ;;  %v19226_v51 = vadd.f32 %v8275_v60, %v8266_v22 }
0x2e50   :  { %16140 = vtanh.f32 %v19224_v6 }
0x2e51   :  { %16142 = vtanh.f32 %v19226_v51 }
0x2e5a   :  { %v16141_v14 = vpop.eup %16140 }
0x2e5b   :  { %v16143_v10 = vpop.eup %16142  ;;  %8271 = vrot.lane.b32.xlu1 %v16141_v14, %s16398_s17 }
0x2e5c   :  { %8279 = vrot.lane.b32.xlu0 %v16143_v10, %s16398_s17 }
0x2ecd   :  { %v8272_v41 = vpop.permute.xlu1 %8271 }
0x2ece   :  { %v8280_v16 = vpop.permute.xlu0 %8279  ;;  %v19232_v0 = vmul.f32 %v16139_v15, %v8272_v41 }
0x2ecf   :  { %v8282_v5 = vmul.f32 %v16139_v15, %v8280_v16 }
0x2ed0   :  { %8284 = vrot.lane.b32.xlu1 %v19232_v0, %s16397_s5 }
0x2ed1   :  { %8288 = vrot.lane.b32.xlu0 %v8282_v5, %s16398_s17  ;;  %v8542_v22 = vrot.slane %v8282_v5, %v17138_v39  ;;  %v8535_v14 = vcombine.high %v8282_v5, %v8282_v5 }
0x2ed3   :  { %v8550_v10 = vcombine.high %v8542_v22, %v8542_v22 }
0x2ed4   :  { %8292 = vrot.lane.b32.xlu1 %v18866_v28, %s16397_s5 }
0x2ed5   :  { %8295 = vrot.lane.b32.xlu0 %v18786_v17, %s16398_s17  ;;  %v21428_v17 = vld [vmem:[#allocation15_spill] sm:$0xff] }
0x2f42   :  { %v8285_v59 = vpop.permute.xlu1 %8284 }
0x2f43   :  { %v8289_v57 = vpop.permute.xlu0 %8288 }
0x2f44   :  { %v8291_v48 = vsel %vm277_vm1, %v8285_v59, %v8289_v57  ;;  %v8549_v59 = vrot.slane %v8535_v14, %v17138_v39 }
0x2f45   :  { %15434 = vmatmul.mubr.msk.f32.vlgmr.msra.gmra.mrb[32].mxu0 %vm298_vm2, %v8291_v48 }
0x2f46   :  { %15732 = vmatpush3.bf16.msra.mxu0 %v21413_v19  ;;  %v8293_v52 = vpop.permute.xlu1 %8292  ;;  %15458 = vmatprep.mubr.msk.f32.mxu0 %vm16394_vm11, %v21351_v56 }
0x2f47   :  { %v8296_v35 = vpop.permute.xlu0 %8295  ;;  %15733 = vmatprep.subr.bf16.mxu0 %v21352_v50 }
0x2f48   :  { %v8298_v28 = vsel %vm277_vm1, %v8293_v52, %v8296_v35  ;;  %v8551_v52 = vcombine.high %v8549_v59, %v8549_v59 }
0x2f49   :  { %15423 = vmatmul.mubr.msk.f32.vlgmr.msra.gmra.mrb[32].mxu1 %vm298_vm2, %v8298_v28 }
0x2f4a   :  { %15735 = vmatpush3.bf16.msra.mxu0 %v21428_v17  ;;  %15725 = vmatpush3.bf16.msra.mxu1 %v21429_v34 }
0x2f4b   :  { %15727 = vmatprep.subr.bf16.mxu1 %v21430_v2  ;;  %15461 = vmatprep.subr.mxu0 %v21351_v56 }
0x2f4d   :  { %15459 = vmatmul.mubr.msk.f32.vlgmr.msra.gmra.mrb[34].mxu0 %vm298_vm2, %v8291_v48  ;;  %v8572_v48 = vrot.slane %v8550_v10, %v17138_v39 }
0x2f4e   :  { %15729 = vmatpush3.bf16.msra.mxu1 %v21430_v2  ;;  %15462 = vmatpush3.msra.mxu0 %v19024_v9 }
0x2f4f   :  { %15463 = vmatprep.mubr.msk.f32.mxu0 %vm16394_vm11, %v21351_v56  ;;  %15742 = vmatprep.subr.bf16.mxu0 %v21352_v50  ;;  %v8691_v35 = vrot.slane %v8572_v48, %v16734_v23  ;;  %v8582_v28 = vcombine.high %v8572_v48, %v8572_v48  ;;  %v8565_v48 = vrot.slane %v8549_v59, %v17138_v39 }
0x2f50   :  { %15736 = vmatprep.subr.bf16.mxu1 %v21352_v50 }
0x2f51   :  { %v8699_v5 = vrot.slane %v8582_v28, %v16734_v23 }
0x3018   :  { %v8441_v58 = vpop.f32.mrb[32].mxu0 }
0x3019   :  { %v15435_v20 = vpop.f32.mrb[33].mxu0 }
0x301c   :  { %v8368_v54 = vpop.f32.mrb[32].mxu1 }
0x301d   :  { %v8442_v45 = vadd.f32 %v8441_v58, %v8368_v54  ;;  %v15424_v1 = vpop.f32.mrb[33].mxu1  ;;  %v8579_v58 = vrot.slane %v8551_v52, %v17138_v39  ;;  %v21431_v54 = vld [vmem:[#allocation19_spill] sm:$0xff]  ;;  %v8581_v52 = vcombine.high %v8565_v48, %v8565_v48 }
0x301e   :  { %v21432_v1 = vld [vmem:[#allocation20_spill] sm:$0xff] }
0x301f   :  { %v8445_v43 = vadd.f32 %v16380_v4, %v8442_v45  ;;  %v8707_v20 = vrot.slane %v8579_v58, %v16734_v23 }
0x3020   :  { %v19263_v44 = vpop.f32.mrb[34].mxu0 }
0x3021   :  { %16144 = vtanh.f32 %v8445_v43  ;;  %v15460_v9 = vpop.f32.mrb[35].mxu0  ;;  %v8446_v55 = vsub.f32 0.0, %v8445_v43 }
0x3023   :  { %v8447_v3 = vmul.f32 1.442695, %v8446_v55  ;;  %v8583_v55 = vcombine.high %v8579_v58, %v8579_v58 }
0x3025   :  { %16146 = vpow2.f32 %v8447_v3  ;;  %v8715_v14 = vrot.slane %v8583_v55, %v16734_v23 }
0x302b   :  { %v16145_v15 = vpop.eup %16144 }
0x302c   :  { %8455 = vrot.lane.b32.xlu1 %v16145_v15, %s16396_s22 }
0x302f   :  { %v16147_v60 = vpop.eup %16146 }
0x3030   :  { %v8449_v33 = vadd.f32 1.0, %v16147_v60  ;;  %v8558_v60 = vrot.slane %v8542_v22, %v17138_v39  ;;  %v8703_v22 = vrot.slane %v8565_v48, %v16734_v23 }
0x3032   :  { %16148 = vrcp.f32 %v8449_v33  ;;  %v8687_v10 = vrot.slane %v8558_v60, %v16734_v23 }
0x303c   :  { %v19267_v41 = vpop.eup %16148 }
0x303d   :  { %v8470_v45 = vmul.f32 %v19267_v41, %v21431_v54  ;;  %v8453_v4 = vmul.f32 %v19267_v41, %v21432_v1 }
0x309e   :  { %v8456_v16 = vpop.permute.xlu1 %8455 }
0x309f   :  { %v8458_v57 = vmul.f32 %v19267_v41, %v8456_v16  ;;  %v8580_v16 = vcombine.high %v8558_v60, %v8558_v60 }
0x30a1   :  { %8460 = vrot.lane.b32.xlu0 %v8458_v57, %s16391_s26  ;;  %v8695_v57 = vrot.slane %v8580_v16, %v16734_v23 }
0x30a5   :  { %8718 = vrot.lane.b32.xlu0 %v8691_v35, %s16400_s23  ;;  %v8711_v35 = vrot.slane %v8581_v52, %v16734_v23 }
0x30a9   :  { %8722 = vrot.lane.b32.xlu0 %v8699_v5, %s16400_s23 }
0x30ad   :  { %8726 = vrot.lane.b32.xlu0 %v8707_v20, %s16400_s23 }
0x3113   :  { %v8461_v43 = vpop.permute.xlu0 %8460 }
0x3114   :  { %v19284_v9 = vadd.f32 %v8461_v43, %v8453_v4  ;;  %v19286_v15 = vadd.f32 %v8470_v45, %v8461_v43 }
0x3116   :  { %21433 = vst [vmem:[#allocation19_spill] sm:$0xff] %v19284_v9  ;;  %21434 = vst [vmem:[#allocation20_spill] sm:$0xff] %v19286_v15  ;;  %16150 = vtanh.f32 %v19284_v9 }
0x3117   :  { %16152 = vtanh.f32 %v19286_v15 }
0x3120   :  { %v16151_v3 = vpop.eup %16150 }
0x3121   :  { %v16153_v33 = vpop.eup %16152  ;;  %8466 = vrot.lane.b32.xlu0 %v16151_v3, %s16398_s17 }
0x3122   :  { %8474 = vrot.lane.b32.xlu1 %v16153_v33, %s16398_s17 }
0x3125   :  { %8730 = vrot.lane.b32.xlu0 %v8715_v14, %s16400_s23 }
0x3126   :  { %8716 = vrot.lane.b32.xlu1 %v8687_v10, %s16400_s23 }
0x312a   :  { %8720 = vrot.lane.b32.xlu1 %v8695_v57, %s16400_s23  ;;  %v8926_v57 = vrot.slane %v19226_v51, %v17138_v39 }
0x312e   :  { %8724 = vrot.lane.b32.xlu1 %v8703_v22, %s16400_s23 }
0x3132   :  { %8728 = vrot.lane.b32.xlu1 %v8711_v35, %s16400_s23 }
0x3194   :  { %v8475_v28 = vpop.permute.xlu1 %8474 }
0x3195   :  { %v19305_v5 = vmul.f32 %v19267_v41, %v8475_v28  ;;  %v8934_v28 = vcombine.high %v8926_v57, %v8926_v57 }
0x3197   :  { %v8635_v58 = vcombine.high %v19305_v5, %v19305_v5  ;;  %v8642_v59 = vrot.slane %v19305_v5, %v17138_v39 }
0x3199   :  { %v8649_v20 = vrot.slane %v8635_v58, %v17138_v39  ;;  %v8650_v54 = vcombine.high %v8642_v59, %v8642_v59  ;;  %v8658_v45 = vrot.slane %v8642_v59, %v17138_v39  ;;  %v8942_v59 = vrot.slane %v8926_v57, %v17138_v39 }
0x319b   :  { %v8783_v1 = vrot.slane %v8658_v45, %v16734_v23  ;;  %v8672_v4 = vrot.slane %v8650_v54, %v17138_v39  ;;  %v8680_v43 = vcombine.high %v8658_v45, %v8658_v45  ;;  %v8651_v55 = vcombine.high %v8649_v20, %v8649_v20 }
0x319c   :  { %v8665_v14 = vrot.slane %v8649_v20, %v17138_v39  ;;  %v8956_v54 = vrot.slane %v8934_v28, %v17138_v39  ;;  %v9026_v45 = vrot.slane %v19286_v15, %v17138_v39 }
0x319d   :  { %8812 = vrot.lane.b32.xlu1 %v8783_v1, %s16400_s23  ;;  %v8787_v3 = vrot.slane %v8672_v4, %v16734_v23  ;;  %v8682_v60 = vcombine.high %v8672_v4, %v8672_v4  ;;  %v8791_v33 = vrot.slane %v8680_v43, %v16734_v23  ;;  %v8679_v16 = vrot.slane %v8651_v55, %v17138_v39 }
0x319e   :  { %v8799_v48 = vrot.slane %v8665_v14, %v16734_v23  ;;  %v8681_v22 = vcombine.high %v8665_v14, %v8665_v14  ;;  %v9071_v1 = vrot.slane %v8942_v59, %v16734_v23  ;;  %v8964_v4 = vcombine.high %v8942_v59, %v8942_v59 }
0x319f   :  { %8814 = vrot.lane.b32.xlu0 %v8787_v3, %s16400_s23  ;;  %v8795_v10 = vrot.slane %v8682_v60, %v16734_v23  ;;  %v8803_v52 = vrot.slane %v8679_v16, %v16734_v23  ;;  %v8683_v35 = vcombine.high %v8679_v16, %v8679_v16  ;;  %v8919_v43 = vcombine.high %v19226_v51, %v19226_v51 }
0x31a0   :  { %v8807_v58 = vrot.slane %v8681_v22, %v16734_v23  ;;  %v9075_v55 = vrot.slane %v8956_v54, %v16734_v23  ;;  %v8966_v3 = vcombine.high %v8956_v54, %v8956_v54  ;;  %v9034_v60 = vcombine.high %v9026_v45, %v9026_v45 }
0x31a1   :  { %8816 = vrot.lane.b32.xlu1 %v8791_v33, %s16400_s23  ;;  %v8811_v20 = vrot.slane %v8683_v35, %v16734_v23  ;;  %v9079_v33 = vrot.slane %v8964_v4, %v16734_v23  ;;  %v9042_v14 = vrot.slane %v9026_v45, %v17138_v39  ;;  %v8933_v57 = vrot.slane %v8919_v43, %v17138_v39 }
0x31a2   :  { %v9056_v16 = vrot.slane %v9034_v60, %v17138_v39 }
0x31a3   :  { %8818 = vrot.lane.b32.xlu0 %v8795_v10, %s16400_s23  ;;  %v9083_v10 = vrot.slane %v8966_v3, %v16734_v23  ;;  %v9064_v22 = vcombine.high %v9042_v14, %v9042_v14 }
0x31a4   :  { %v9171_v35 = vrot.slane %v9056_v16, %v16734_v23  ;;  %v9066_v28 = vcombine.high %v9056_v16, %v9056_v16 }
0x31a5   :  { %8820 = vrot.lane.b32.xlu1 %v8799_v48, %s16400_s23  ;;  %v9167_v48 = vrot.slane %v9042_v14, %v16734_v23  ;;  %v9175_v59 = vrot.slane %v9064_v22, %v16734_v23 }
0x31a6   :  { %v9179_v54 = vrot.slane %v9066_v28, %v16734_v23 }
0x31a7   :  { %8822 = vrot.lane.b32.xlu0 %v8803_v52, %s16400_s23  ;;  %v9019_v52 = vcombine.high %v19286_v15, %v19286_v15 }
0x31a9   :  { %8824 = vrot.lane.b32.xlu1 %v8807_v58, %s16400_s23  ;;  %v8935_v58 = vcombine.high %v8933_v57, %v8933_v57 }
0x31ab   :  { %8826 = vrot.lane.b32.xlu0 %v8811_v20, %s16400_s23  ;;  %v8949_v20 = vrot.slane %v8933_v57, %v17138_v39  ;;  %v8963_v45 = vrot.slane %v8935_v58, %v17138_v39  ;;  %v8719_v58 = vpop.permute.xlu0 %8718 }
0x31ad   :  { %9100 = vrot.lane.b32.xlu1 %v9071_v1, %s16400_s23  ;;  %v9033_v1 = vrot.slane %v9019_v52, %v17138_v39  ;;  %v9087_v4 = vrot.slane %v8949_v20, %v16734_v23  ;;  %v8965_v43 = vcombine.high %v8949_v20, %v8949_v20  ;;  %v8967_v3 = vcombine.high %v8963_v45, %v8963_v45 }
0x31af   :  { %9102 = vrot.lane.b32.xlu0 %v9075_v55, %s16400_s23  ;;  %v9091_v55 = vrot.slane %v8963_v45, %v16734_v23  ;;  %v9035_v60 = vcombine.high %v9033_v1, %v9033_v1  ;;  %v9049_v14 = vrot.slane %v9033_v1, %v17138_v39 }
0x31b1   :  { %9104 = vrot.lane.b32.xlu1 %v9079_v33, %s16400_s23  ;;  %v9095_v33 = vrot.slane %v8965_v43, %v16734_v23  ;;  %v9063_v16 = vrot.slane %v9035_v60, %v17138_v39  ;;  %v9183_v57 = vrot.slane %v9049_v14, %v16734_v23 }
0x31b3   :  { %9106 = vrot.lane.b32.xlu0 %v9083_v10, %s16400_s23  ;;  %v9099_v10 = vrot.slane %v8967_v3, %v16734_v23  ;;  %v9187_v22 = vrot.slane %v9063_v16, %v16734_v23  ;;  %v9067_v52 = vcombine.high %v9063_v16, %v9063_v16 }
0x31b5   :  { %9196 = vrot.lane.b32.xlu1 %v9167_v48, %s16400_s23  ;;  %v9065_v48 = vcombine.high %v9049_v14, %v9049_v14  ;;  %v9195_v28 = vrot.slane %v9067_v52, %v16734_v23 }
0x31b7   :  { %9198 = vrot.lane.b32.xlu0 %v9171_v35, %s16400_s23  ;;  %v9191_v35 = vrot.slane %v9065_v48, %v16734_v23 }
0x31b9   :  { %9200 = vrot.lane.b32.xlu1 %v9175_v59, %s16400_s23  ;;  %v8723_v59 = vpop.permute.xlu0 %8722 }
0x31bb   :  { %9202 = vrot.lane.b32.xlu0 %v9179_v54, %s16400_s23  ;;  %v8717_v54 = vpop.permute.xlu1 %8716 }
0x31bd   :  { %9108 = vrot.lane.b32.xlu1 %v9087_v4, %s16400_s23  ;;  %v19382_v20 = vpop.permute.xlu0 %8726 }
0x31bf   :  { %9110 = vrot.lane.b32.xlu0 %v9091_v55, %s16400_s23  ;;  %v8721_v4 = vpop.permute.xlu1 %8720 }
0x31c1   :  { %9112 = vrot.lane.b32.xlu1 %v9095_v33, %s16400_s23  ;;  %v8467_v45 = vpop.permute.xlu0 %8466  ;;  %v8485_v33 = vrot.slane %v19232_v0, %v17138_v39 }
0x31c2   :  { %v19385_v1 = vmul.f32 %v19267_v41, %v8467_v45  ;;  %v8478_v41 = vcombine.high %v19232_v0, %v19232_v0 }
0x31c3   :  { %9114 = vrot.lane.b32.xlu0 %v9099_v10, %s16400_s23  ;;  %v8725_v60 = vpop.permute.xlu1 %8724  ;;  %v8501_v48 = vrot.slane %v8485_v33, %v17138_v39 }
0x31c4   :  { %v8592_v43 = vrot.slane %v19385_v1, %v17138_v39  ;;  %v8585_v55 = vcombine.high %v19385_v1, %v19385_v1 }
0x31c5   :  { %9204 = vrot.lane.b32.xlu1 %v9183_v57, %s16400_s23  ;;  %v8493_v57 = vcombine.high %v8485_v33, %v8485_v33  ;;  %v8731_v45 = vpop.permute.xlu0 %8730  ;;  %v8523_v27 = vcombine.high %v8501_v48, %v8501_v48 }
0x31c6   :  { %v8600_v3 = vcombine.high %v8592_v43, %v8592_v43  ;;  %v8608_v14 = vrot.slane %v8592_v43, %v17138_v39  ;;  %v8599_v10 = vrot.slane %v8585_v55, %v17138_v39  ;;  %v8492_v43 = vrot.slane %v8478_v41, %v17138_v39 }
0x31c7   :  { %9206 = vrot.lane.b32.xlu0 %v9187_v22, %s16400_s23  ;;  %v8729_v52 = vpop.permute.xlu1 %8728  ;;  %v8515_v55 = vrot.slane %v8493_v57, %v17138_v39  ;;  %v8838_v38 = vsel %vm1773_vm13, %v8523_v27, %v8721_v4 }
0x31c8   :  { %v8622_v16 = vrot.slane %v8600_v3, %v17138_v39  ;;  %v8630_v22 = vcombine.high %v8608_v14, %v8608_v14  ;;  %v8836_v3 = vsel %vm1773_vm13, %v8501_v48, %v8717_v54 }
0x31c9   :  { %9208 = vrot.lane.b32.xlu1 %v9191_v35, %s16400_s23  ;;  %v8743_v35 = vrot.slane %v8608_v14, %v16734_v23  ;;  %v8837_v18 = vsel %vm1773_vm13, %v8515_v55, %v8719_v58  ;;  %v8615_v14 = vrot.slane %v8599_v10, %v17138_v39 }
0x31ca   :  { %v8747_v49 = vrot.slane %v8622_v16, %v16734_v23  ;;  %v8632_v25 = vcombine.high %v8622_v16, %v8622_v16  ;;  %v8751_v33 = vrot.slane %v8630_v22, %v16734_v23  ;;  %v8508_v22 = vrot.slane %v8492_v43, %v17138_v39 }
0x31cb   :  { %9210 = vrot.lane.b32.xlu0 %v9195_v28, %s16400_s23  ;;  %v8601_v28 = vcombine.high %v8599_v10, %v8599_v10  ;;  %v8844_v12 = vsel %vm1782_vm14, %v8836_v3, %v8743_v35  ;;  %v8525_v35 = vcombine.high %v8515_v55, %v8515_v55  ;;  %v8494_v3 = vcombine.high %v8492_v43, %v8492_v43 }
0x31cc   :  { %v8845_v41 = vsel %vm1782_vm14, %v8837_v18, %v8747_v49  ;;  %v8755_v54 = vrot.slane %v8632_v25, %v16734_v23  ;;  %v8846_v27 = vsel %vm1782_vm14, %v8838_v38, %v8751_v33  ;;  %v8840_v18 = vsel %vm1773_vm13, %v8508_v22, %v8725_v60 }
0x31cd   :  { %v8629_v48 = vrot.slane %v8601_v28, %v17138_v39  ;;  %v8759_v25 = vrot.slane %v8615_v14, %v16734_v23  ;;  %v8631_v55 = vcombine.high %v8615_v14, %v8615_v14  ;;  %v8522_v38 = vrot.slane %v8494_v3, %v17138_v39 }
0x31ce   :  { %v8524_v33 = vcombine.high %v8508_v22, %v8508_v22 }
0x31cf   :  { %v8763_v43 = vrot.slane %v8629_v48, %v16734_v23  ;;  %v8848_v60 = vsel %vm1782_vm14, %v8840_v18, %v8759_v25  ;;  %v8526_v22 = vcombine.high %v8522_v38, %v8522_v38 }
0x320f   :  { %v8813_v0 = vpop.permute.xlu1 %8812 }
0x3210   :  { %v8852_v16 = vsel %vm1791_vm15, %v8844_v12, %v8813_v0  ;;  %v8839_v12 = vsel %vm1773_vm13, %v8525_v35, %v8723_v59  ;;  %v8633_v0 = vcombine.high %v8629_v48, %v8629_v48  ;;  %v8767_v35 = vrot.slane %v8631_v55, %v16734_v23 }
0x3211   :  { %9252 = vrot.lane.b32.xlu1 %v8852_v16, %s16397_s5  ;;  %v8815_v57 = vpop.permute.xlu0 %8814  ;;  %v8847_v4 = vsel %vm1782_vm14, %v8839_v12, %v8755_v54 }
0x3212   :  { %v8853_v58 = vsel %vm1791_vm15, %v8845_v41, %v8815_v57  ;;  %v8841_v41 = vsel %vm1773_vm13, %v8522_v38, %v19382_v20  ;;  %v8842_v57 = vsel %vm1773_vm13, %v8524_v33, %v8729_v52  ;;  %v8771_v3 = vrot.slane %v8633_v0, %v16734_v23 }
0x3213   :  { %v8817_v10 = vpop.permute.xlu1 %8816  ;;  %9254 = vrot.lane.b32.xlu0 %v8853_v58, %s16397_s5  ;;  %v8849_v14 = vsel %vm1782_vm14, %v8841_v41, %v8763_v43  ;;  %v8843_v20 = vsel %vm1773_vm13, %v8526_v22, %v8731_v45  ;;  %v8976_v41 = vrot.slane %v19284_v9, %v17138_v39 }
0x3214   :  { %v8854_v49 = vsel %vm1791_vm15, %v8846_v27, %v8817_v10  ;;  %v8850_v27 = vsel %vm1782_vm14, %v8842_v57, %v8767_v35  ;;  %v8851_v12 = vsel %vm1782_vm14, %v8843_v20, %v8771_v3  ;;  %v8868_v57 = vrot.slane %v19224_v6, %v17138_v39 }
0x3215   :  { %9256 = vrot.lane.b32.xlu1 %v8854_v49, %s16397_s5  ;;  %v8819_v28 = vpop.permute.xlu0 %8818  ;;  %v8861_v3 = vcombine.high %v19224_v6, %v19224_v6 }
0x3216   :  { %v8855_v59 = vsel %vm1791_vm15, %v8847_v4, %v8819_v28  ;;  %v8876_v35 = vcombine.high %v8868_v57, %v8868_v57  ;;  %v8884_v20 = vrot.slane %v8868_v57, %v17138_v39 }
0x3217   :  { %v8821_v16 = vpop.permute.xlu1 %8820  ;;  %9258 = vrot.lane.b32.xlu0 %v8855_v59, %s16397_s5 }
0x3218   :  { %v8856_v54 = vsel %vm1791_vm15, %v8848_v60, %v8821_v16  ;;  %v8906_v57 = vcombine.high %v8884_v20, %v8884_v20 }
0x3219   :  { %9260 = vrot.lane.b32.xlu1 %v8856_v54, %s16397_s5  ;;  %v8823_v48 = vpop.permute.xlu0 %8822 }
0x321a   :  { %v8857_v58 = vsel %vm1791_vm15, %v8849_v14, %v8823_v48  ;;  %v8969_v14 = vcombine.high %v19284_v9, %v19284_v9  ;;  %v8984_v48 = vcombine.high %v8976_v41, %v8976_v41 }
0x321b   :  { %v8825_v10 = vpop.permute.xlu1 %8824  ;;  %9262 = vrot.lane.b32.xlu0 %v8857_v58, %s16397_s5  ;;  %v8992_v58 = vrot.slane %v8976_v41, %v17138_v39 }
0x321c   :  { %v8858_v52 = vsel %vm1791_vm15, %v8850_v27, %v8825_v10  ;;  %v9006_v10 = vrot.slane %v8984_v48, %v17138_v39  ;;  %v8983_v27 = vrot.slane %v8969_v14, %v17138_v39 }
0x321d   :  { %9264 = vrot.lane.b32.xlu1 %v8858_v52, %s16397_s5  ;;  %v8827_v18 = vpop.permute.xlu0 %8826  ;;  %v8898_v52 = vrot.slane %v8876_v35, %v17138_v39  ;;  %v9127_v41 = vrot.slane %v8992_v58, %v16734_v23 }
0x321e   :  { %v8859_v49 = vsel %vm1791_vm15, %v8851_v12, %v8827_v18  ;;  %v8875_v12 = vrot.slane %v8861_v3, %v17138_v39  ;;  %v9131_v48 = vrot.slane %v9006_v10, %v16734_v23  ;;  %v9016_v14 = vcombine.high %v9006_v10, %v9006_v10 }
0x321f   :  { %9266 = vrot.lane.b32.xlu0 %v8859_v49, %s16397_s5  ;;  %v9101_v25 = vpop.permute.xlu1 %9100  ;;  %v9014_v49 = vcombine.high %v8992_v58, %v8992_v58  ;;  %v8985_v15 = vcombine.high %v8983_v27, %v8983_v27  ;;  %v8908_v2 = vcombine.high %v8898_v52, %v8898_v52 }
0x3220   :  { %v9220_v37 = vsel %vm1773_vm13, %v8884_v20, %v9101_v25  ;;  %v8877_v35 = vcombine.high %v8875_v12, %v8875_v12 }
0x3221   :  { %v9103_v4 = vpop.permute.xlu0 %9102  ;;  %v9228_v3 = vsel %vm1782_vm14, %v9220_v37, %v9127_v41  ;;  %v9135_v25 = vrot.slane %v9014_v49, %v16734_v23  ;;  %v9013_v49 = vrot.slane %v8985_v15, %v17138_v39 }
0x3222   :  { %v9221_v21 = vsel %vm1773_vm13, %v8898_v52, %v9103_v4  ;;  %v8999_v4 = vrot.slane %v8983_v27, %v17138_v39 }
0x3223   :  { %v9105_v28 = vpop.permute.xlu1 %9104  ;;  %v9229_v19 = vsel %vm1782_vm14, %v9221_v21, %v9131_v48  ;;  %v9139_v21 = vrot.slane %v9016_v14, %v16734_v23 }
0x3224   :  { %v9222_v58 = vsel %vm1773_vm13, %v8906_v57, %v9105_v28  ;;  %v8905_v28 = vrot.slane %v8877_v35, %v17138_v39  ;;  %v9143_v15 = vrot.slane %v8999_v4, %v16734_v23 }
0x3225   :  { %v9107_v43 = vpop.permute.xlu0 %9106 }
0x3226   :  { %v9223_v10 = vsel %vm1773_vm13, %v8908_v2, %v9107_v43  ;;  %v8891_v2 = vrot.slane %v8875_v12, %v17138_v39 }
0x3227   :  { %v9197_v55 = vpop.permute.xlu1 %9196 }
0x3228   :  { %v9236_v20 = vsel %vm1791_vm15, %v9228_v3, %v9197_v55  ;;  %v9230_v55 = vsel %vm1782_vm14, %v9222_v58, %v9135_v25  ;;  %v9147_v3 = vrot.slane %v9013_v49, %v16734_v23  ;;  %v9017_v25 = vcombine.high %v9013_v49, %v9013_v49 }
0x3229   :  { %v9199_v0 = vpop.permute.xlu0 %9198 }
0x322a   :  { %v9237_v52 = vsel %vm1791_vm15, %v9229_v19, %v9199_v0  ;;  %v9231_v0 = vsel %vm1782_vm14, %v9223_v10, %v9139_v21 }
0x322b   :  { %v9201_v38 = vpop.permute.xlu1 %9200 }
0x322c   :  { %v9238_v48 = vsel %vm1791_vm15, %v9230_v55, %v9201_v38  ;;  %v8907_v38 = vcombine.high %v8891_v2, %v8891_v2 }
0x322d   :  { %v9203_v33 = vpop.permute.xlu0 %9202 }
0x322e   :  { %v9239_v12 = vsel %vm1791_vm15, %v9231_v0, %v9203_v33  ;;  %v8909_v33 = vcombine.high %v8905_v28, %v8905_v28 }
0x322f   :  { %v9109_v45 = vpop.permute.xlu1 %9108 }
0x3230   :  { %v9224_v14 = vsel %vm1773_vm13, %v8891_v2, %v9109_v45  ;;  %v9155_v2 = vrot.slane %v9017_v25, %v16734_v23 }
0x3231   :  { %v9111_v59 = vpop.permute.xlu0 %9110 }
0x3232   :  { %v9225_v57 = vsel %vm1773_vm13, %v8905_v28, %v9111_v59  ;;  %v9232_v59 = vsel %vm1782_vm14, %v9224_v14, %v9143_v15 }
0x3233   :  { %v19446_v16 = vpop.permute.xlu1 %9112 }
0x3235   :  { %v19448_v60 = vpop.permute.xlu0 %9114 }
0x3237   :  { %v19454_v54 = vpop.permute.xlu1 %9204 }
0x3238   :  { %v9240_v21 = vsel %vm1791_vm15, %v9232_v59, %v19454_v54 }
0x3239   :  { %v19460_v22 = vpop.permute.xlu0 %9206 }
0x323b   :  { %v19468_v18 = vpop.permute.xlu1 %9208 }
0x323d   :  { %v19472_v9 = vpop.permute.xlu0 %9210 }
0x3283   :  { %v9253_v17 = vpop.permute.xlu1 %9252 }
0x3284   :  { %14804 = vst.msk [vmem:[%s21219_s16 + $0x80] sm:$0xf] %vm14771_vm12, %v9253_v17  ;;  %v9276_v27 = vsel %vm277_vm1, %v9253_v17, %v9236_v20  ;;  %v9015_v17 = vcombine.high %v8999_v4, %v8999_v4  ;;  %v9233_v20 = vsel %vm1782_vm14, %v9225_v57, %v9147_v3 }
0x3285   :  { %v9255_v37 = vpop.permute.xlu0 %9254  ;;  %v9241_v49 = vsel %vm1791_vm15, %v9233_v20, %v19460_v22 }
0x3286   :  { %v9277_v41 = vsel %vm277_vm1, %v9255_v37, %v9237_v52  ;;  %14805 = vst.msk [vmem:[%s21219_s16 + $0x84] sm:$0xf] %vm14771_vm12, %v9255_v37  ;;  %v9226_v52 = vsel %vm1773_vm13, %v8907_v38, %v19446_v16  ;;  %v9227_v37 = vsel %vm1773_vm13, %v8909_v33, %v19448_v60  ;;  %v21435_v60 = vld [vmem:[#allocation16_spill] sm:$0xff] }
0x3287   :  { %v9292_v43 = vcombine.low %v9276_v27, %v9277_v41  ;;  %v9257_v19 = vpop.permute.xlu1 %9256  ;;  %v9151_v41 = vrot.slane %v9015_v17, %v16734_v23 }
0x3288   :  { %14806 = vst.msk [vmem:[%s21219_s16 + $0x88] sm:$0xf] %vm14771_vm12, %v9257_v19  ;;  %v9278_v4 = vsel %vm277_vm1, %v9257_v19, %v9238_v48  ;;  %v9235_v19 = vsel %vm1782_vm14, %v9227_v37, %v9155_v2 }
0x3289   :  { %15444 = vmatprep.mubr.msk.f32.mxu1 %vm298_vm2, %v9292_v43  ;;  %v9259_v35 = vpop.permute.xlu0 %9258  ;;  %v9234_v43 = vsel %vm1782_vm14, %v9226_v52, %v9151_v41  ;;  %v9243_v0 = vsel %vm1791_vm15, %v9235_v19, %v19472_v9 }
0x328a   :  { %v9279_v58 = vsel %vm277_vm1, %v9259_v35, %v9239_v12  ;;  %14807 = vst.msk [vmem:[%s21219_s16 + $0x8c] sm:$0xf] %vm14771_vm12, %v9259_v35  ;;  %v9242_v55 = vsel %vm1791_vm15, %v9234_v43, %v19468_v18  ;;  %v21436_v12 = vld [vmem:[#allocation17_spill] sm:$0xff]  ;;  %v16381_v43 = vld [vmem:[%s21211_s7] ss:$0 sm:$0xff] }
0x328b   :  { %v9293_v45 = vcombine.low %v9278_v4, %v9279_v58  ;;  %v9261_v10 = vpop.permute.xlu1 %9260 }
0x328c   :  { %14808 = vst.msk [vmem:[%s21219_s16 + $0x90] sm:$0xf] %vm14771_vm12, %v9261_v10  ;;  %v9280_v28 = vsel %vm277_vm1, %v9261_v10, %v9240_v21 }
0x328d   :  { %15445 = vmatmul.mubr.msk.f32.vlgmr.msra.gmra.mrb[34].mxu1 %vm298_vm2, %v9293_v45  ;;  %v9263_v27 = vpop.permute.xlu0 %9262 }
0x328e   :  { %v9281_v16 = vsel %vm277_vm1, %v9263_v27, %v9241_v49  ;;  %14809 = vst.msk [vmem:[%s21219_s16 + $0x94] sm:$0xf] %vm14771_vm12, %v9263_v27  ;;  %15738 = vmatpush3.bf16.msra.mxu1 %v21435_v60 }
0x328f   :  { %v9294_v54 = vcombine.low %v9280_v28, %v9281_v16  ;;  %v9265_v22 = vpop.permute.xlu1 %9264  ;;  %15739 = vmatprep.subr.bf16.mxu1 %v21352_v50 }
0x3290   :  { %14810 = vst.msk [vmem:[%s21219_s16 + $0x98] sm:$0xf] %vm14771_vm12, %v9265_v22  ;;  %v9282_v17 = vsel %vm277_vm1, %v9265_v22, %v9242_v55 }
0x3291   :  { %15447 = vmatprep.mubr.msk.f32.mxu1 %vm298_vm2, %v9294_v54  ;;  %v9267_v15 = vpop.permute.xlu0 %9266 }
0x3292   :  { %v9283_v48 = vsel %vm277_vm1, %v9267_v15, %v9243_v0  ;;  %14811 = vst.msk [vmem:[%s21219_s16 + $0x9c] sm:$0xf] %vm14771_vm12, %v9267_v15  ;;  %15741 = vmatpush3.bf16.msra.mxu1 %v21436_v12 }
0x3293   :  { %v9295_v14 = vcombine.low %v9282_v17, %v9283_v48  ;;  %15749 = vmatprep.subr.bf16.mxu1 %v21429_v34 }
0x3295   :  { %15448 = vmatmul.mubr.msk.f32.gmra.mrb[36].mxu1 %vm298_vm2, %v9295_v14 }
0x3296   :  { %15474 = vmatprep.mubr.msk.f32.mxu1 %vm16394_vm11, %v21351_v56 }
0x3360   :  { %v15446_v9 = vpop.f32.mrb[34].mxu1 }
0x3361   :  { %v9394_v18 = vcombine.high %v15446_v9, %v15446_v9  ;;  %v9403_v57 = vcombine.low %v15446_v9, %v15446_v9  ;;  %v9370_v35 = vpop.f32.mrb[35].mxu1 }
0x3362   :  { %v9393_v3 = vcombine.high %v9370_v35, %v9370_v35  ;;  %v9401_v25 = vcombine.low %v9370_v35, %v9370_v35 }
0x3363   :  { %v9419_v4 = vsel %vm420_vm3, %v15446_v9, %v9403_v57  ;;  %v9428_v58 = vadd.f32 %v9394_v18, %v16663_v62 }
0x3364   :  { %v9417_v38 = vsel %vm420_vm3, %v9370_v35, %v9401_v25  ;;  %v9426_v33 = vadd.f32 %v9393_v3, %v16665_v63  ;;  %v9427_v45 = vadd.f32 %v9419_v4, %v16667_v7 }
0x3365   :  { %16154 = vtanh.f32 %v9428_v58  ;;  %v9425_v10 = vadd.f32 %v9417_v38, %v16669_v8 }
0x3367   :  { %16156 = vtanh.f32 %v9425_v10 }
0x3368   :  { %16158 = vtanh.f32 %v9426_v33  ;;  %v15449_v59 = vpop.f32.mrb[36].mxu1 }
0x3369   :  { %16160 = vtanh.f32 %v9427_v45  ;;  %v9396_v20 = vcombine.high %v15449_v59, %v15449_v59  ;;  %v9407_v52 = vcombine.low %v15449_v59, %v15449_v59  ;;  %v9380_v37 = vpop.f32.mrb[37].mxu1 }
0x336a   :  { %v9395_v21 = vcombine.high %v9380_v37, %v9380_v37  ;;  %v9405_v49 = vcombine.low %v9380_v37, %v9380_v37 }
0x336b   :  { %v9423_v27 = vsel %vm420_vm3, %v15449_v59, %v9407_v52  ;;  %v9432_v16 = vadd.f32 %v9396_v20, %v16684_v40 }
0x336c   :  { %v9431_v41 = vadd.f32 %v9423_v27, %v16679_v30  ;;  %v9421_v2 = vsel %vm420_vm3, %v9380_v37, %v9405_v49  ;;  %v9430_v28 = vadd.f32 %v9395_v21, %v16677_v29 }
0x336d   :  { %v9429_v54 = vadd.f32 %v9421_v2, %v16681_v36 }
0x336e   :  { %16162 = vtanh.f32 %v9431_v41 }
0x336f   :  { %v16155_v22 = vpop.eup %16154  ;;  %16164 = vtanh.f32 %v9429_v54 }
0x3370   :  { %16166 = vtanh.f32 %v9430_v28  ;;  %v9444_v19 = vmul.f32 %v16381_v43, %v16155_v22 }
0x3371   :  { %v16157_v55 = vpop.eup %16156  ;;  %16168 = vtanh.f32 %v9432_v16 }
0x3372   :  { %v16159_v0 = vpop.eup %16158  ;;  %v9458_v15 = vsel %vm78_vm0, %v9444_v19, 0.0  ;;  %v9441_v17 = vmul.f32 %v16381_v43, %v16157_v55 }
0x3373   :  { %v16161_v48 = vpop.eup %16160  ;;  %9459 = vadd.xlane.f32.xlu0 %v9458_v15  ;;  %v9442_v14 = vmul.f32 %v16381_v43, %v16159_v0 }
0x3374   :  { %v9449_v9 = vsel %vm78_vm0, %v9441_v17, 0.0  ;;  %v9443_v57 = vmul.f32 %v16381_v43, %v16161_v48 }
0x3375   :  { %9450 = vadd.xlane.f32.xlu1 %v9449_v9  ;;  %v9452_v18 = vsel %vm78_vm0, %v9442_v14, 0.0 }
0x3376   :  { %v9455_v4 = vsel %vm78_vm0, %v9443_v57, 0.0 }
0x3377   :  { %9453 = vadd.xlane.f32.xlu0 %v9452_v18 }
0x3378   :  { %v16163_v35 = vpop.eup %16162 }
0x3379   :  { %v16165_v3 = vpop.eup %16164  ;;  %v9447_v10 = vmul.f32 %v16381_v43, %v16163_v35 }
0x337a   :  { %v16167_v25 = vpop.eup %16166  ;;  %v9445_v58 = vmul.f32 %v16381_v43, %v16165_v3 }
0x337b   :  { %v16169_v38 = vpop.eup %16168  ;;  %9456 = vadd.xlane.f32.xlu0 %v9455_v4  ;;  %v9446_v33 = vmul.f32 %v16381_v43, %v16167_v25  ;;  %v9467_v52 = vsel %vm78_vm0, %v9447_v10, 0.0 }
0x337c   :  { %v9461_v45 = vsel %vm78_vm0, %v9445_v58, 0.0  ;;  %v9448_v20 = vmul.f32 %v16381_v43, %v16169_v38 }
0x337d   :  { %9462 = vadd.xlane.f32.xlu1 %v9461_v45  ;;  %v9464_v59 = vsel %vm78_vm0, %v9446_v33, 0.0 }
0x337e   :  { %v9470_v37 = vsel %vm78_vm0, %v9448_v20, 0.0 }
0x337f   :  { %9465 = vadd.xlane.f32.xlu0 %v9464_v59 }
0x3381   :  { %9468 = vadd.xlane.f32.xlu1 %v9467_v52 }
0x3383   :  { %9471 = vadd.xlane.f32.xlu0 %v9470_v37 }
0x3400   :  { %v9460_v21 = vpop.xlane.xlu0 %9459 }
0x3401   :  { %v9476_v28 = vadd.f32 %v9460_v21, %v16707_v47 }
0x3402   :  { %v9451_v49 = vpop.xlane.xlu1 %9450 }
0x3403   :  { %v9473_v2 = vadd.f32 %v9451_v49, %v16707_v47  ;;  %v9504_v15 = vrot.slane %v9476_v28, %v16705_v46 }
0x3404   :  { %v9454_v27 = vpop.xlane.xlu0 %9453 }
0x3405   :  { %v9474_v41 = vadd.f32 %v9454_v27, %v16707_v47  ;;  %v9492_v43 = vrot.slane %v9473_v2, %v16705_v46 }
0x3407   :  { %v9496_v16 = vrot.slane %v9474_v41, %v16705_v46 }
0x3408   :  { %v9457_v54 = vpop.xlane.xlu0 %9456 }
0x3409   :  { %v9475_v22 = vadd.f32 %v9457_v54, %v16707_v47  ;;  %v9521_v17 = vsel %vm542_vm4, %v9496_v16, %v9492_v43 }
0x340a   :  { %v9463_v19 = vpop.xlane.xlu1 %9462 }
0x340b   :  { %v9500_v55 = vrot.slane %v9475_v22, %v16705_v46  ;;  %v9477_v0 = vadd.f32 %v9463_v19, %v16707_v47 }
0x340c   :  { %v9466_v48 = vpop.xlane.xlu0 %9465 }
0x340d   :  { %v9522_v14 = vsel %vm544_vm5, %v9500_v55, %v9521_v17  ;;  %v9508_v9 = vrot.slane %v9477_v0, %v16705_v46  ;;  %v9478_v18 = vadd.f32 %v9466_v48, %v16707_v47 }
0x340e   :  { %v9523_v57 = vsel %vm546_vm6, %v9504_v15, %v9522_v14  ;;  %v9469_v35 = vpop.xlane.xlu1 %9468 }
0x340f   :  { %v9524_v3 = vsel %vm548_vm7, %v9508_v9, %v9523_v57  ;;  %v9512_v25 = vrot.slane %v9478_v18, %v16705_v46  ;;  %v9479_v4 = vadd.f32 %v9469_v35, %v16707_v47 }
0x3410   :  { %v9472_v58 = vpop.xlane.xlu0 %9471 }
0x3411   :  { %v9516_v38 = vrot.slane %v9479_v4, %v16705_v46  ;;  %v9480_v33 = vadd.f32 %v9472_v58, %v16707_v47  ;;  %v9525_v45 = vsel %vm550_vm8, %v9512_v25, %v9524_v3 }
0x3413   :  { %v9520_v10 = vrot.slane %v9480_v33, %v16705_v46  ;;  %v9526_v59 = vsel %vm552_vm9, %v9516_v38, %v9525_v45 }
0x3415   :  { %v9527_v20 = vsel %vm554_vm10, %v9520_v10, %v9526_v59 }
0x3416   :  { %v9529_v52 = vsel %vm78_vm0, %v9527_v20, -inf }
0x3417   :  { %9530 = vmax.xlane.f32.xlu1 %v9529_v52 }
0x34a4   :  { %v9531_v37 = vpop.xlane.xlu1 %9530 }
0x34a5   :  { %v9536_v21 = vrot.slane %v9531_v37, %v16734_v23  ;;  %v9540_v49 = vrot.slane %v9531_v37, %v16737_v24  ;;  %v9544_v27 = vrot.slane %v9531_v37, %v16740_v31  ;;  %v9552_v16 = vrot.slane %v9531_v37, %v16749_v42 }
0x34a6   :  { %v9560_v54 = vrot.slane %v9531_v37, %v16757_v13  ;;  %v9548_v55 = vrot.slane %v9531_v37, %v16743_v32  ;;  %v9556_v35 = vrot.slane %v9531_v37, %v16753_v61  ;;  %v9564_v38 = vrot.slane %v9531_v37, %v21371_v53  ;;  %v59_v37 = vld [vmem:[%s21212_s0 + $0x28] sm:$0xff] }
0x34a7   :  { %v9573_v43 = vsub.f32 %v9473_v2, %v9536_v21  ;;  %v9574_v19 = vsub.f32 %v9474_v41, %v9540_v49  ;;  %v9575_v15 = vsub.f32 %v9475_v22, %v9544_v27  ;;  %v9577_v17 = vsub.f32 %v9477_v0, %v9552_v16 }
0x34a8   :  { %v9579_v9 = vsub.f32 %v9479_v4, %v9560_v54  ;;  %v9576_v3 = vsub.f32 %v9476_v28, %v9548_v55  ;;  %v9578_v2 = vsub.f32 %v9478_v18, %v9556_v35  ;;  %v9580_v22 = vsub.f32 %v9480_v33, %v9564_v38 }
0x34a9   :  { %v9581_v48 = vmul.f32 1.442695, %v9573_v43  ;;  %v9583_v14 = vmul.f32 1.442695, %v9574_v19  ;;  %v9589_v57 = vmul.f32 1.442695, %v9577_v17  ;;  %v9733_v21 = vrot.slane %v59_v37, %v16734_v23 }
0x34aa   :  { %v9585_v25 = vmul.f32 1.442695, %v9575_v15  ;;  %v9593_v58 = vmul.f32 1.442695, %v9579_v9  ;;  %v9587_v41 = vmul.f32 1.442695, %v9576_v3  ;;  %v9740_v49 = vrot.slane %v59_v37, %v16737_v24 }
0x34ab   :  { %16170 = vpow2.f32 %v9581_v48  ;;  %v9591_v0 = vmul.f32 1.442695, %v9578_v2  ;;  %v9595_v28 = vmul.f32 1.442695, %v9580_v22  ;;  %v9747_v27 = vrot.slane %v59_v37, %v16740_v31 }
0x34ac   :  { %16172 = vpow2.f32 %v9583_v14  ;;  %v9754_v16 = vrot.slane %v59_v37, %v16743_v32  ;;  %v9761_v54 = vrot.slane %v59_v37, %v16749_v42  ;;  %v9768_v43 = vrot.slane %v59_v37, %v16753_v61 }
0x34ad   :  { %16174 = vpow2.f32 %v9589_v57  ;;  %v9775_v19 = vrot.slane %v59_v37, %v16757_v13 }
0x34ae   :  { %16176 = vpow2.f32 %v9585_v25 }
0x34af   :  { %16178 = vpow2.f32 %v9593_v58 }
0x34b0   :  { %16180 = vpow2.f32 %v9587_v41 }
0x34b1   :  { %16182 = vpow2.f32 %v9591_v0 }
0x34b2   :  { %16184 = vpow2.f32 %v9595_v28 }
0x34b5   :  { %v19619_v45 = vpop.eup %16170 }
0x34b6   :  { %v19621_v4 = vpop.eup %16172  ;;  %9606 = vperm.xlu0 %15813, %v19619_v45  }
0x34b7   :  { %9609 = vperm.xlu1 %15812, %v19621_v4   ;;  %v19625_v10 = vpop.eup %16174 }
0x34b8   :  { %v19627_v59 = vpop.eup %16176 }
0x34b9   :  { %v19631_v18 = vpop.eup %16178 }
0x34ba   :  { %9618 = vperm.xlu0 %15813, %v19625_v10   ;;  %v19633_v33 = vpop.eup %16180 }
0x34bb   :  { %9612 = vperm.xlu1 %15812, %v19627_v59   ;;  %v19637_v20 = vpop.eup %16182 }
0x34bc   :  { %v19640_v52 = vpop.eup %16184 }
0x34be   :  { %9624 = vperm.xlu0 %15813, %v19631_v18  }
0x34bf   :  { %9615 = vperm.xlu1 %15812, %v19633_v33  }
0x34c3   :  { %9621 = vperm.xlu1 %15812, %v19637_v20  }
0x34c7   :  { %9627 = vperm.xlu1 %15812, %v19640_v52  }
0x34cb   :  { %9735 = vbcast.lane.b32.xlu1 %v9733_v21, 256 }
0x34cf   :  { %9742 = vbcast.lane.b32.xlu1 %v9740_v49, 256 }
0x34d3   :  { %9749 = vbcast.lane.b32.xlu1 %v9747_v27, 256 }
0x34d7   :  { %9756 = vbcast.lane.b32.xlu1 %v9754_v16, 256 }
0x34db   :  { %9763 = vbcast.lane.b32.xlu1 %v9761_v54, 256 }
0x34df   :  { %9770 = vbcast.lane.b32.xlu1 %v9768_v43, 256 }
0x34e3   :  { %9777 = vbcast.lane.b32.xlu1 %v9775_v19, 256 }
0x3535   :  { %v9607_v15 = vpop.permute.xlu0 %9606 }
0x3536   :  { %v9610_v55 = vpop.permute.xlu1 %9609  ;;  %v9632_v14 = vrot.slane %v9607_v15, %v16705_v46 }
0x3537   :  { %v9636_v48 = vrot.slane %v9610_v55, %v16705_v46  ;;  %v9782_v55 = vrot.slane %v59_v37, %v21371_v53 }
0x3539   :  { %v9619_v57 = vpop.permute.xlu0 %9618  ;;  %v9661_v3 = vsel %vm542_vm4, %v9636_v48, %v9632_v14 }
0x353a   :  { %v9613_v17 = vpop.permute.xlu1 %9612  ;;  %v9648_v2 = vrot.slane %v9619_v57, %v16705_v46 }
0x353b   :  { %v9640_v9 = vrot.slane %v9613_v17, %v16705_v46 }
0x353d   :  { %v9662_v58 = vsel %vm544_vm5, %v9640_v9, %v9661_v3  ;;  %v9625_v22 = vpop.permute.xlu0 %9624 }
0x353e   :  { %v9616_v35 = vpop.permute.xlu1 %9615  ;;  %v9656_v49 = vrot.slane %v9625_v22, %v16705_v46 }
0x353f   :  { %v9644_v25 = vrot.slane %v9616_v35, %v16705_v46 }
0x3541   :  { %v9663_v38 = vsel %vm546_vm6, %v9644_v25, %v9662_v58 }
0x3542   :  { %v9622_v41 = vpop.permute.xlu1 %9621  ;;  %v9664_v28 = vsel %vm548_vm7, %v9648_v2, %v9663_v38 }
0x3543   :  { %v9652_v0 = vrot.slane %v9622_v41, %v16705_v46 }
0x3545   :  { %v9665_v21 = vsel %vm550_vm8, %v9652_v0, %v9664_v28 }
0x3546   :  { %v9628_v27 = vpop.permute.xlu1 %9627  ;;  %v9666_v54 = vsel %vm552_vm9, %v9656_v49, %v9665_v21 }
0x3547   :  { %v9660_v16 = vrot.slane %v9628_v27, %v16705_v46 }
0x3549   :  { %v9667_v43 = vsel %vm554_vm10, %v9660_v16, %v9666_v54 }
0x354a   :  { %v9669_v19 = vsel %vm78_vm0, %v9667_v43, 0.0  ;;  %v9736_v15 = vpop.permute.xlu1 %9735 }
0x354b   :  { %9670 = vadd.xlane.f32.xlu0 %v9669_v19 }
0x354e   :  { %v9743_v17 = vpop.permute.xlu1 %9742 }
0x3552   :  { %v9750_v48 = vpop.permute.xlu1 %9749 }
0x3556   :  { %v9757_v14 = vpop.permute.xlu1 %9756 }
0x355a   :  { %v9764_v35 = vpop.permute.xlu1 %9763 }
0x355e   :  { %v9771_v38 = vpop.permute.xlu1 %9770 }
0x3561   :  { %9784 = vbcast.lane.b32.xlu0 %v9782_v55, 256 }
0x3562   :  { %v9778_v22 = vpop.permute.xlu1 %9777 }
0x35d8   :  { %v9671_v9 = vpop.xlane.xlu0 %9670 }
0x35d9   :  { %v9700_v57 = vrot.slane %v9671_v9, %v16757_v13  ;;  %v9676_v3 = vrot.slane %v9671_v9, %v16734_v23  ;;  %v9680_v25 = vrot.slane %v9671_v9, %v16737_v24  ;;  %v9684_v58 = vrot.slane %v9671_v9, %v16740_v31 }
0x35da   :  { %v9688_v37 = vrot.slane %v9671_v9, %v16743_v32  ;;  %v9692_v41 = vrot.slane %v9671_v9, %v16749_v42  ;;  %v9696_v16 = vrot.slane %v9671_v9, %v16753_v61 }
0x35db   :  { %16186 = vrcp.f32 %v9700_v57 }
0x35dc   :  { %16188 = vrcp.f32 %v9676_v3 }
0x35dd   :  { %16190 = vrcp.f32 %v9680_v25 }
0x35de   :  { %16192 = vrcp.f32 %v9684_v58 }
0x35df   :  { %16194 = vrcp.f32 %v9688_v37 }
0x35e0   :  { %16196 = vrcp.f32 %v9692_v41 }
0x35e1   :  { %16198 = vrcp.f32 %v9696_v16 }
0x35e5   :  { %v16187_v2 = vpop.eup %16186 }
0x35e6   :  { %v19677_v0 = vmul.f32 %v16187_v2, %v19631_v18  ;;  %v16189_v28 = vpop.eup %16188  ;;  %v9704_v18 = vrot.slane %v9671_v9, %v21371_v53  ;;  %v9785_v2 = vpop.permute.xlu0 %9784 }
0x35e7   :  { %v16191_v21 = vpop.eup %16190  ;;  %v19681_v27 = vmul.f32 %v16189_v28, %v19619_v45 }
0x35e8   :  { %21437 = vst [vmem:[#allocation51_spill] sm:$0xff] %v19677_v0  ;;  %v9800_v49 = vmul.f32 %v9778_v22, %v19677_v0  ;;  %v19686_v43 = vmul.f32 %v16191_v21, %v19621_v4  ;;  %v16193_v19 = vpop.eup %16192  ;;  %16200 = vrcp.f32 %v9704_v18 }
0x35e9   :  { %21438 = vst [vmem:[#allocation52_spill] sm:$0xff] %v19681_v27  ;;  %v9794_v54 = vmul.f32 %v9736_v15, %v19681_v27  ;;  %v19691_v57 = vmul.f32 %v16193_v19, %v19627_v59  ;;  %v16195_v45 = vpop.eup %16194 }
0x35ea   :  { %9899 = vperm.xlu0 %15813, %v9800_v49   ;;  %21439 = vst [vmem:[#allocation53_spill] sm:$0xff] %v19686_v43  ;;  %v9795_v55 = vmul.f32 %v9743_v17, %v19686_v43  ;;  %v19694_v3 = vmul.f32 %v16195_v45, %v19633_v33  ;;  %v16197_v4 = vpop.eup %16196 }
0x35eb   :  { %9881 = vperm.xlu1 %15812, %v9794_v54   ;;  %21440 = vst [vmem:[#allocation54_spill] sm:$0xff] %v19691_v57  ;;  %v9796_v15 = vmul.f32 %v9750_v48, %v19691_v57  ;;  %v19699_v58 = vmul.f32 %v16197_v4, %v19625_v10  ;;  %v16199_v9 = vpop.eup %16198 }
0x35ec   :  { %21441 = vst [vmem:[#allocation55_spill] sm:$0xff] %v19694_v3  ;;  %v9797_v25 = vmul.f32 %v9757_v14, %v19694_v3  ;;  %v19703_v17 = vmul.f32 %v16199_v9, %v19637_v20 }
0x35ed   :  { %21442 = vst [vmem:[#allocation56_spill] sm:$0xff] %v19699_v58  ;;  %v9798_v59 = vmul.f32 %v9764_v35, %v19699_v58 }
0x35ee   :  { %21443 = vst [vmem:[#allocation57_spill] sm:$0xff] %v19703_v17  ;;  %v9799_v33 = vmul.f32 %v9771_v38, %v19703_v17 }
0x35ef   :  { %9884 = vperm.xlu1 %15812, %v9795_v55  }
0x35f2   :  { %v16201_v37 = vpop.eup %16200 }
0x35f3   :  { %9887 = vperm.xlu1 %15812, %v9796_v15   ;;  %v19707_v48 = vmul.f32 %v16201_v37, %v19640_v52 }
0x35f5   :  { %21444 = vst [vmem:[#allocation58_spill] sm:$0xff] %v19707_v48  ;;  %v9801_v14 = vmul.f32 %v9785_v2, %v19707_v48 }
0x35f7   :  { %9890 = vperm.xlu1 %15812, %v9797_v25  }
0x35fb   :  { %9893 = vperm.xlu1 %15812, %v9798_v59  }
0x35ff   :  { %9896 = vperm.xlu1 %15812, %v9799_v33  }
0x3603   :  { %9902 = vperm.xlu1 %15812, %v9801_v14  }
0x3669   :  { %v9900_v18 = vpop.permute.xlu0 %9899 }
0x366a   :  { %v9882_v10 = vpop.permute.xlu1 %9881  ;;  %v9931_v25 = vrot.slane %v9900_v18, %v16705_v46 }
0x366b   :  { %v9907_v49 = vrot.slane %v9882_v10, %v16705_v46 }
0x366e   :  { %v9885_v41 = vpop.permute.xlu1 %9884 }
0x366f   :  { %v9911_v35 = vrot.slane %v9885_v41, %v16705_v46  ;;  %v16382_v41 = vld [vmem:[%s21215_s11] ss:$0 sm:$0xff] }
0x3671   :  { %v9936_v16 = vsel %vm542_vm4, %v9911_v35, %v9907_v49 }
0x3672   :  { %v9888_v22 = vpop.permute.xlu1 %9887 }
0x3673   :  { %v9915_v20 = vrot.slane %v9888_v22, %v16705_v46 }
0x3675   :  { %v9937_v54 = vsel %vm544_vm5, %v9915_v20, %v9936_v16 }
0x3676   :  { %v9891_v28 = vpop.permute.xlu1 %9890 }
0x3677   :  { %v9919_v38 = vrot.slane %v9891_v28, %v16705_v46 }
0x3679   :  { %v9938_v55 = vsel %vm546_vm6, %v9919_v38, %v9937_v54 }
0x367a   :  { %v9894_v21 = vpop.permute.xlu1 %9893 }
0x367b   :  { %v9923_v52 = vrot.slane %v9894_v21, %v16705_v46 }
0x367d   :  { %v9939_v15 = vsel %vm548_vm7, %v9923_v52, %v9938_v55 }
0x367e   :  { %v9897_v19 = vpop.permute.xlu1 %9896 }
0x367f   :  { %v9927_v45 = vrot.slane %v9897_v19, %v16705_v46 }
0x3681   :  { %v9940_v4 = vsel %vm550_vm8, %v9927_v45, %v9939_v15 }
0x3682   :  { %v9903_v9 = vpop.permute.xlu1 %9902  ;;  %v9941_v37 = vsel %vm552_vm9, %v9931_v25, %v9940_v4 }
0x3683   :  { %v9935_v59 = vrot.slane %v9903_v9, %v16705_v46 }
0x3685   :  { %v9942_v33 = vsel %vm554_vm10, %v9935_v59, %v9941_v37 }
0x3686   :  { %15464 = vmatmul.mubr.msk.f32.vlgmr.msra.gmra.mrb[36].mxu0 %vm78_vm0, %v9942_v33  ;;  %v21445_v33 = vld [vmem:[#allocation14_spill] sm:$0xff] }
0x3687   :  { %15744 = vmatpush3.bf16.msra.mxu0 %v17088_v11  ;;  %15485 = vmatprep.mubr.msk.f32.mxu0 %vm16394_vm11, %v21351_v56 }
0x3688   :  { %15745 = vmatprep.subr.bf16.mxu0 %v21352_v50 }
0x368b   :  { %15747 = vmatpush3.bf16.msra.mxu0 %v17101_v26 }
0x368c   :  { %15756 = vmatprep.subr.bf16.mxu0 %v21352_v50 }
0x3759   :  { %v10011_v2 = vpop.f32.mrb[36].mxu0 }
0x375a   :  { %v10012_v14 = vadd.f32 %v10011_v2, %v19263_v44  ;;  %v15465_v10 = vpop.f32.mrb[37].mxu0 }
0x375b   :  { %v21447_v10 = vld [vmem:[#allocation4_spill] sm:$0xff] }
0x375c   :  { %v10015_v22 = vadd.f32 %v16382_v41, %v10012_v14 }
0x375e   :  { %16202 = vtanh.f32 %v10015_v22  ;;  %v10016_v35 = vsub.f32 0.0, %v10015_v22 }
0x3760   :  { %v10017_v20 = vmul.f32 1.442695, %v10016_v35 }
0x3762   :  { %16204 = vpow2.f32 %v10017_v20 }
0x3768   :  { %v16203_v28 = vpop.eup %16202 }
0x3769   :  { %10025 = vrot.lane.b32.xlu0 %v16203_v28, %s16396_s22 }
0x376c   :  { %v16205_v21 = vpop.eup %16204 }
0x376d   :  { %v10019_v49 = vadd.f32 1.0, %v16205_v21  ;;  %v16383_v21 = vld [vmem:[%s21218_s14] ss:$0 sm:$0xff] }
0x376f   :  { %16206 = vrcp.f32 %v10019_v49 }
0x3779   :  { %v16207_v38 = vpop.eup %16206 }
0x377a   :  { %v10040_v44 = vmul.f32 %v16207_v38, %v19226_v51  ;;  %v10023_v54 = vmul.f32 %v16207_v38, %v19224_v6 }
0x37db   :  { %v10026_v52 = vpop.permute.xlu0 %10025 }
0x37dc   :  { %v10028_v16 = vmul.f32 %v16207_v38, %v10026_v52 }
0x37de   :  { %10030 = vrot.lane.b32.xlu1 %v10028_v16, %s16391_s26 }
0x3850   :  { %v10031_v19 = vpop.permute.xlu1 %10030 }
0x3851   :  { %v19740_v18 = vadd.f32 %v10031_v19, %v10023_v54  ;;  %v19742_v55 = vadd.f32 %v10040_v44, %v10031_v19 }
0x3853   :  { %16208 = vtanh.f32 %v19740_v18 }
0x3854   :  { %16210 = vtanh.f32 %v19742_v55 }
0x385d   :  { %v16209_v45 = vpop.eup %16208 }
0x385e   :  { %v16211_v15 = vpop.eup %16210  ;;  %10036 = vrot.lane.b32.xlu0 %v16209_v45, %s16398_s17 }
0x385f   :  { %10044 = vrot.lane.b32.xlu1 %v16211_v15, %s16398_s17 }
0x38d0   :  { %v10037_v4 = vpop.permute.xlu0 %10036 }
0x38d1   :  { %v10045_v25 = vpop.permute.xlu1 %10044  ;;  %v19748_v51 = vmul.f32 %v16207_v38, %v10037_v4 }
0x38d2   :  { %v10047_v6 = vmul.f32 %v16207_v38, %v10045_v25 }
0x38d3   :  { %10049 = vrot.lane.b32.xlu0 %v19748_v51, %s16397_s5 }
0x38d4   :  { %10053 = vrot.lane.b32.xlu1 %v10047_v6, %s16398_s17  ;;  %v10307_v15 = vrot.slane %v10047_v6, %v17138_v39  ;;  %v10300_v4 = vcombine.high %v10047_v6, %v10047_v6 }
0x38d6   :  { %v10315_v25 = vcombine.high %v10307_v15, %v10307_v15 }
0x38d7   :  { %10057 = vrot.lane.b32.xlu0 %v19385_v1, %s16397_s5 }
0x38d8   :  { %10060 = vrot.lane.b32.xlu1 %v19305_v5, %s16398_s17  ;;  %v21446_v5 = vld [vmem:[#allocation15_spill] sm:$0xff] }
0x3945   :  { %v10050_v9 = vpop.permute.xlu0 %10049 }
0x3946   :  { %v10054_v59 = vpop.permute.xlu1 %10053 }
0x3947   :  { %v10056_v37 = vsel %vm277_vm1, %v10050_v9, %v10054_v59 }
0x3948   :  { %15486 = vmatmul.mubr.msk.f32.vlgmr.msra.gmra.mrb[38].mxu0 %vm298_vm2, %v10056_v37 }
0x3949   :  { %15758 = vmatpush3.bf16.msra.mxu0 %v21445_v33  ;;  %v10058_v2 = vpop.permute.xlu0 %10057  ;;  %15510 = vmatprep.mubr.msk.f32.mxu0 %vm16394_vm11, %v21351_v56 }
0x394a   :  { %v10061_v14 = vpop.permute.xlu1 %10060  ;;  %15759 = vmatprep.subr.bf16.mxu0 %v21352_v50 }
0x394b   :  { %v10063_v1 = vsel %vm277_vm1, %v10058_v2, %v10061_v14  ;;  %v10337_v14 = vrot.slane %v10315_v25, %v17138_v39 }
0x394c   :  { %15475 = vmatmul.mubr.msk.f32.vlgmr.msra.gmra.mrb[38].mxu1 %vm298_vm2, %v10063_v1 }
0x394d   :  { %15761 = vmatpush3.bf16.msra.mxu0 %v21446_v5  ;;  %15751 = vmatpush3.bf16.msra.mxu1 %v21429_v34 }
0x394e   :  { %15753 = vmatprep.subr.bf16.mxu1 %v21447_v10  ;;  %15762 = vmatprep.subr.bf16.mxu0 %v21352_v50 }
0x3950   :  { %15511 = vmatmul.mubr.msk.f32.vlgmr.msra.gmra.mrb[40].mxu0 %vm298_vm2, %v10056_v37  ;;  %v10314_v37 = vrot.slane %v10300_v4, %v17138_v39  ;;  %v10323_v4 = vrot.slane %v10307_v15, %v17138_v39 }
0x3951   :  { %15755 = vmatpush3.bf16.msra.mxu1 %v21447_v10  ;;  %15764 = vmatpush3.bf16.msra.mxu0 %v21435_v60 }
0x3952   :  { %15513 = vmatprep.subr.mxu1 %v21351_v56  ;;  %15765 = vmatprep.subr.bf16.mxu0 %v21352_v50  ;;  %v10316_v1 = vcombine.high %v10314_v37, %v10314_v37 }
0x3953   :  { %15526 = vmatprep.mubr.msk.f32.mxu0 %vm16394_vm11, %v21351_v56 }
0x3955   :  { %15767 = vmatpush3.bf16.msra.mxu0 %v21436_v12 }
0x3956   :  { %15775 = vmatprep.subr.bf16.mxu0 %v21429_v34 }
0x3a1b   :  { %v10206_v41 = vpop.f32.mrb[38].mxu0 }
0x3a1c   :  { %v15487_v22 = vpop.f32.mrb[39].mxu0 }
0x3a1d   :  { %v10347_v22 = vcombine.high %v10337_v14, %v10337_v14 }
0x3a1f   :  { %v10133_v28 = vpop.f32.mrb[38].mxu1  ;;  %v10464_v6 = vrot.slane %v10347_v22, %v16734_v23 }
0x3a20   :  { %v10207_v35 = vadd.f32 %v10206_v41, %v10133_v28  ;;  %v15476_v20 = vpop.f32.mrb[39].mxu1  ;;  %v10456_v41 = vrot.slane %v10337_v14, %v16734_v23  ;;  %v10344_v28 = vrot.slane %v10316_v1, %v17138_v39  ;;  %v10345_v14 = vcombine.high %v10323_v4, %v10323_v4 }
0x3a21   :  { %v21448_v20 = vld [vmem:[#allocation20_spill] sm:$0xff] }
0x3a22   :  { %v10210_v49 = vadd.f32 %v16383_v21, %v10207_v35  ;;  %v10472_v35 = vrot.slane %v10344_v28, %v16734_v23  ;;  %v10460_v1 = vrot.slane %v10345_v14, %v16734_v23 }
0x3a23   :  { %v19781_v38 = vpop.f32.mrb[40].mxu0 }
0x3a24   :  { %16212 = vtanh.f32 %v10210_v49  ;;  %v15512_v52 = vpop.f32.mrb[41].mxu0  ;;  %v10211_v44 = vsub.f32 0.0, %v10210_v49  ;;  %v21449_v49 = vld [vmem:[#allocation19_spill] sm:$0xff] }
0x3a26   :  { %v10212_v54 = vmul.f32 1.442695, %v10211_v44 }
0x3a28   :  { %16214 = vpow2.f32 %v10212_v54 }
0x3a2e   :  { %v16213_v16 = vpop.eup %16212 }
0x3a2f   :  { %10220 = vrot.lane.b32.xlu0 %v16213_v16, %s16396_s22 }
0x3a32   :  { %v16215_v19 = vpop.eup %16214 }
0x3a33   :  { %v10214_v45 = vadd.f32 1.0, %v16215_v19  ;;  %v10348_v19 = vcombine.high %v10344_v28, %v10344_v28 }
0x3a35   :  { %16216 = vrcp.f32 %v10214_v45 }
0x3a3f   :  { %v19785_v9 = vpop.eup %16216 }
0x3a40   :  { %v10235_v21 = vmul.f32 %v19785_v9, %v21448_v20  ;;  %v10218_v52 = vmul.f32 %v19785_v9, %v21449_v49 }
0x3aa1   :  { %v10221_v59 = vpop.permute.xlu0 %10220 }
0x3aa2   :  { %v10223_v2 = vmul.f32 %v19785_v9, %v10221_v59  ;;  %v10480_v59 = vrot.slane %v10348_v19, %v16734_v23 }
0x3aa4   :  { %10225 = vrot.lane.b32.xlu1 %v10223_v2, %s16391_s26  ;;  %v10452_v2 = vrot.slane %v10323_v4, %v16734_v23 }
0x3aa8   :  { %10483 = vrot.lane.b32.xlu1 %v10456_v41, %s16400_s23  ;;  %v10330_v41 = vrot.slane %v10314_v37, %v17138_v39 }
0x3aaa   :  { %v10468_v15 = vrot.slane %v10330_v41, %v16734_v23  ;;  %v10346_v22 = vcombine.high %v10330_v41, %v10330_v41 }
0x3aac   :  { %10487 = vrot.lane.b32.xlu1 %v10464_v6, %s16400_s23  ;;  %v10476_v6 = vrot.slane %v10346_v22, %v16734_v23 }
0x3ab0   :  { %10491 = vrot.lane.b32.xlu1 %v10472_v35, %s16400_s23 }
0x3b16   :  { %v10226_v16 = vpop.permute.xlu1 %10225 }
0x3b17   :  { %v19802_v44 = vadd.f32 %v10226_v16, %v10218_v52  ;;  %v19804_v54 = vadd.f32 %v10235_v21, %v10226_v16 }
0x3b19   :  { %21450 = vst [vmem:[#allocation14_spill] sm:$0xff] %v19802_v44  ;;  %21451 = vst [vmem:[#allocation20_spill] sm:$0xff] %v19804_v54  ;;  %16218 = vtanh.f32 %v19802_v44 }
0x3b1a   :  { %16220 = vtanh.f32 %v19804_v54 }
0x3b23   :  { %v16219_v45 = vpop.eup %16218 }
0x3b24   :  { %v16221_v25 = vpop.eup %16220  ;;  %10231 = vrot.lane.b32.xlu1 %v16219_v45, %s16398_s17 }
0x3b25   :  { %10239 = vrot.lane.b32.xlu0 %v16221_v25, %s16398_s17 }
0x3b28   :  { %10495 = vrot.lane.b32.xlu1 %v10480_v59, %s16400_s23 }
0x3b29   :  { %10481 = vrot.lane.b32.xlu0 %v10452_v2, %s16400_s23 }
0x3b2d   :  { %10485 = vrot.lane.b32.xlu0 %v10460_v1, %s16400_s23 }
0x3b31   :  { %10489 = vrot.lane.b32.xlu0 %v10468_v15, %s16400_s23  ;;  %v10691_v15 = vrot.slane %v19742_v55, %v17138_v39 }
0x3b35   :  { %10493 = vrot.lane.b32.xlu0 %v10476_v6, %s16400_s23 }
0x3b97   :  { %v10240_v28 = vpop.permute.xlu0 %10239 }
0x3b98   :  { %v19823_v35 = vmul.f32 %v19785_v9, %v10240_v28 }
0x3b9a   :  { %v10400_v20 = vcombine.high %v19823_v35, %v19823_v35  ;;  %v10407_v37 = vrot.slane %v19823_v35, %v17138_v39 }
0x3b9c   :  { %v10414_v21 = vrot.slane %v10400_v20, %v17138_v39  ;;  %v10415_v49 = vcombine.high %v10407_v37, %v10407_v37  ;;  %v10423_v52 = vrot.slane %v10407_v37, %v17138_v39  ;;  %v10699_v37 = vcombine.high %v10691_v15, %v10691_v15 }
0x3b9e   :  { %v10548_v16 = vrot.slane %v10423_v52, %v16734_v23  ;;  %v10437_v19 = vrot.slane %v10415_v49, %v17138_v39  ;;  %v10445_v45 = vcombine.high %v10423_v52, %v10423_v52  ;;  %v10416_v4 = vcombine.high %v10414_v21, %v10414_v21 }
0x3b9f   :  { %v10430_v14 = vrot.slane %v10414_v21, %v17138_v39  ;;  %v10707_v49 = vrot.slane %v10691_v15, %v17138_v39 }
0x3ba0   :  { %10577 = vrot.lane.b32.xlu0 %v10548_v16, %s16400_s23  ;;  %v10552_v25 = vrot.slane %v10437_v19, %v16734_v23  ;;  %v10447_v59 = vcombine.high %v10437_v19, %v10437_v19  ;;  %v10556_v2 = vrot.slane %v10445_v45, %v16734_v23  ;;  %v10444_v41 = vrot.slane %v10416_v4, %v17138_v39 }
0x3ba1   :  { %v10564_v22 = vrot.slane %v10430_v14, %v16734_v23  ;;  %v10446_v6 = vcombine.high %v10430_v14, %v10430_v14  ;;  %v10721_v16 = vrot.slane %v10699_v37, %v17138_v39  ;;  %v10791_v19 = vrot.slane %v19804_v54, %v17138_v39 }
0x3ba2   :  { %10579 = vrot.lane.b32.xlu1 %v10552_v25, %s16400_s23  ;;  %v10560_v1 = vrot.slane %v10447_v59, %v16734_v23  ;;  %v10568_v28 = vrot.slane %v10444_v41, %v16734_v23  ;;  %v10448_v20 = vcombine.high %v10444_v41, %v10444_v41  ;;  %v10836_v45 = vrot.slane %v10707_v49, %v16734_v23 }
0x3ba3   :  { %v10572_v21 = vrot.slane %v10446_v6, %v16734_v23  ;;  %v10729_v4 = vcombine.high %v10707_v49, %v10707_v49  ;;  %v10684_v25 = vcombine.high %v19742_v55, %v19742_v55  ;;  %v10840_v59 = vrot.slane %v10721_v16, %v16734_v23 }
0x3ba4   :  { %10581 = vrot.lane.b32.xlu0 %v10556_v2, %s16400_s23  ;;  %v10576_v52 = vrot.slane %v10448_v20, %v16734_v23  ;;  %v10731_v2 = vcombine.high %v10721_v16, %v10721_v16  ;;  %v10799_v14 = vcombine.high %v10791_v19, %v10791_v19  ;;  %v10807_v41 = vrot.slane %v10791_v19, %v17138_v39 }
0x3ba5   :  { %v10698_v6 = vrot.slane %v10684_v25, %v17138_v39  ;;  %v10784_v37 = vcombine.high %v19804_v54, %v19804_v54 }
0x3ba6   :  { %10583 = vrot.lane.b32.xlu1 %v10560_v1, %s16400_s23  ;;  %v10844_v1 = vrot.slane %v10729_v4, %v16734_v23  ;;  %v10848_v15 = vrot.slane %v10731_v2, %v16734_v23  ;;  %v10829_v20 = vcombine.high %v10807_v41, %v10807_v41 }
0x3ba7   :  { %v10714_v19 = vrot.slane %v10698_v6, %v17138_v39  ;;  %v10798_v25 = vrot.slane %v10784_v37, %v17138_v39 }
0x3ba8   :  { %10585 = vrot.lane.b32.xlu0 %v10564_v22, %s16400_s23  ;;  %v10821_v22 = vrot.slane %v10799_v14, %v17138_v39  ;;  %v10940_v16 = vrot.slane %v10829_v20, %v16734_v23 }
0x3ba9   :  { %v10730_v2 = vcombine.high %v10714_v19, %v10714_v19 }
0x3baa   :  { %10587 = vrot.lane.b32.xlu1 %v10568_v28, %s16400_s23  ;;  %v10932_v28 = vrot.slane %v10807_v41, %v16734_v23  ;;  %v10831_v49 = vcombine.high %v10821_v22, %v10821_v22  ;;  %v10800_v41 = vcombine.high %v10798_v25, %v10798_v25 }
0x3bac   :  { %10589 = vrot.lane.b32.xlu0 %v10572_v21, %s16400_s23  ;;  %v10936_v21 = vrot.slane %v10821_v22, %v16734_v23  ;;  %v10814_v22 = vrot.slane %v10798_v25, %v17138_v39  ;;  %v10482_v25 = vpop.permute.xlu0 %10481 }
0x3bae   :  { %10591 = vrot.lane.b32.xlu1 %v10576_v52, %s16400_s23  ;;  %v10700_v52 = vcombine.high %v10698_v6, %v10698_v6  ;;  %v10948_v20 = vrot.slane %v10814_v22, %v16734_v23  ;;  %v10830_v37 = vcombine.high %v10814_v22, %v10814_v22 }
0x3bb0   :  { %10865 = vrot.lane.b32.xlu0 %v10836_v45, %s16400_s23  ;;  %v10944_v45 = vrot.slane %v10831_v49, %v16734_v23  ;;  %v10728_v4 = vrot.slane %v10700_v52, %v17138_v39  ;;  %v10956_v52 = vrot.slane %v10830_v37, %v16734_v23 }
0x3bb2   :  { %10867 = vrot.lane.b32.xlu1 %v10840_v59, %s16400_s23  ;;  %v10852_v59 = vrot.slane %v10714_v19, %v16734_v23  ;;  %v10856_v14 = vrot.slane %v10728_v4, %v16734_v23  ;;  %v10484_v19 = vpop.permute.xlu1 %10483 }
0x3bb4   :  { %10869 = vrot.lane.b32.xlu0 %v10844_v1, %s16400_s23  ;;  %v10732_v1 = vcombine.high %v10728_v4, %v10728_v4 }
0x3bb6   :  { %10871 = vrot.lane.b32.xlu1 %v10848_v15, %s16400_s23  ;;  %v10860_v15 = vrot.slane %v10730_v2, %v16734_v23  ;;  %v10864_v6 = vrot.slane %v10732_v1, %v16734_v23 }
0x3bb8   :  { %10961 = vrot.lane.b32.xlu0 %v10932_v28, %s16400_s23  ;;  %v10828_v28 = vrot.slane %v10800_v41, %v17138_v39 }
0x3bba   :  { %10963 = vrot.lane.b32.xlu1 %v10936_v21, %s16400_s23  ;;  %v10952_v21 = vrot.slane %v10828_v28, %v16734_v23  ;;  %v10832_v49 = vcombine.high %v10828_v28, %v10828_v28 }
0x3bbc   :  { %10965 = vrot.lane.b32.xlu0 %v10940_v16, %s16400_s23  ;;  %v10960_v16 = vrot.slane %v10832_v49, %v16734_v23 }
0x3bbe   :  { %10967 = vrot.lane.b32.xlu1 %v10944_v45, %s16400_s23  ;;  %v10488_v45 = vpop.permute.xlu1 %10487 }
0x3bc0   :  { %10873 = vrot.lane.b32.xlu0 %v10852_v59, %s16400_s23 }
0x3bc2   :  { %10875 = vrot.lane.b32.xlu1 %v10856_v14, %s16400_s23  ;;  %v19900_v4 = vpop.permute.xlu1 %10491  ;;  %v10486_v14 = vpop.permute.xlu0 %10485 }
0x3bc4   :  { %10877 = vrot.lane.b32.xlu0 %v10860_v15, %s16400_s23 }
0x3bc6   :  { %10879 = vrot.lane.b32.xlu1 %v10864_v6, %s16400_s23  ;;  %v10232_v59 = vpop.permute.xlu1 %10231  ;;  %v10490_v22 = vpop.permute.xlu0 %10489  ;;  %v10250_v6 = vrot.slane %v19748_v51, %v17138_v39 }
0x3bc7   :  { %v19903_v2 = vmul.f32 %v19785_v9, %v10232_v59  ;;  %v10243_v9 = vcombine.high %v19748_v51, %v19748_v51 }
0x3bc8   :  { %10969 = vrot.lane.b32.xlu0 %v10948_v20, %s16400_s23  ;;  %v10266_v49 = vrot.slane %v10250_v6, %v17138_v39 }
0x3bc9   :  { %v10357_v1 = vrot.slane %v19903_v2, %v17138_v39  ;;  %v10350_v41 = vcombine.high %v19903_v2, %v19903_v2 }
0x3bca   :  { %10971 = vrot.lane.b32.xlu1 %v10952_v21, %s16400_s23  ;;  %v10258_v21 = vcombine.high %v10250_v6, %v10250_v6  ;;  %v10496_v17 = vpop.permute.xlu1 %10495  ;;  %v10288_v58 = vcombine.high %v10266_v49, %v10266_v49 }
0x3bcb   :  { %v10365_v15 = vcombine.high %v10357_v1, %v10357_v1  ;;  %v10373_v28 = vrot.slane %v10357_v1, %v17138_v39  ;;  %v10364_v20 = vrot.slane %v10350_v41, %v17138_v39  ;;  %v10257_v1 = vrot.slane %v10243_v9, %v17138_v39 }
0x3bcc   :  { %10973 = vrot.lane.b32.xlu0 %v10956_v52, %s16400_s23  ;;  %v10280_v41 = vrot.slane %v10258_v21, %v17138_v39  ;;  %v10603_v27 = vsel %vm1773_vm13, %v10288_v58, %v10486_v14 }
0x3bcd   :  { %v10387_v37 = vrot.slane %v10365_v15, %v17138_v39  ;;  %v10395_v52 = vcombine.high %v10373_v28, %v10373_v28  ;;  %v10508_v59 = vrot.slane %v10373_v28, %v16734_v23  ;;  %v10366_v48 = vcombine.high %v10364_v20, %v10364_v20 }
0x3bce   :  { %10975 = vrot.lane.b32.xlu1 %v10960_v16, %s16400_s23  ;;  %v10494_v16 = vpop.permute.xlu0 %10493  ;;  %v10601_v15 = vsel %vm1773_vm13, %v10266_v49, %v10482_v25  ;;  %v10602_v57 = vsel %vm1773_vm13, %v10280_v41, %v10484_v19  ;;  %v10380_v28 = vrot.slane %v10364_v20, %v17138_v39 }
0x3bcf   :  { %v10512_v0 = vrot.slane %v10387_v37, %v16734_v23  ;;  %v10397_v3 = vcombine.high %v10387_v37, %v10387_v37  ;;  %v10609_v43 = vsel %vm1782_vm14, %v10601_v15, %v10508_v59  ;;  %v10516_v6 = vrot.slane %v10395_v52, %v16734_v23 }
0x3bd0   :  { %v10394_v49 = vrot.slane %v10366_v48, %v17138_v39  ;;  %v10290_v59 = vcombine.high %v10280_v41, %v10280_v41  ;;  %v10259_v15 = vcombine.high %v10257_v1, %v10257_v1  ;;  %v10273_v52 = vrot.slane %v10257_v1, %v17138_v39 }
0x3bd1   :  { %v10610_v9 = vsel %vm1782_vm14, %v10602_v57, %v10512_v0  ;;  %v10520_v25 = vrot.slane %v10397_v3, %v16734_v23  ;;  %v10611_v58 = vsel %vm1782_vm14, %v10603_v27, %v10516_v6  ;;  %v10524_v3 = vrot.slane %v10380_v28, %v16734_v23 }
0x3bd2   :  { %v10605_v0 = vsel %vm1773_vm13, %v10273_v52, %v10490_v22  ;;  %v10528_v1 = vrot.slane %v10394_v49, %v16734_v23  ;;  %v10396_v41 = vcombine.high %v10380_v28, %v10380_v28  ;;  %v10287_v27 = vrot.slane %v10259_v15, %v17138_v39 }
0x3bd3   :  { %v10289_v6 = vcombine.high %v10273_v52, %v10273_v52  ;;  %v10613_v22 = vsel %vm1782_vm14, %v10605_v0, %v10524_v3 }
0x3bd4   :  { %v10291_v52 = vcombine.high %v10287_v27, %v10287_v27 }
0x3c12   :  { %v10578_v51 = vpop.permute.xlu0 %10577 }
0x3c13   :  { %v10617_v37 = vsel %vm1791_vm15, %v10609_v43, %v10578_v51  ;;  %v10604_v43 = vsel %vm1773_vm13, %v10290_v59, %v10488_v45  ;;  %v10398_v51 = vcombine.high %v10394_v49, %v10394_v49  ;;  %v10532_v59 = vrot.slane %v10396_v41, %v16734_v23 }
0x3c14   :  { %11017 = vrot.lane.b32.xlu0 %v10617_v37, %s16397_s5  ;;  %v10580_v21 = vpop.permute.xlu1 %10579  ;;  %v10612_v48 = vsel %vm1782_vm14, %v10604_v43, %v10520_v25 }
0x3c15   :  { %v10618_v19 = vsel %vm1791_vm15, %v10610_v9, %v10580_v21  ;;  %v10606_v9 = vsel %vm1773_vm13, %v10287_v27, %v19900_v4  ;;  %v10607_v21 = vsel %vm1773_vm13, %v10289_v6, %v10494_v16  ;;  %v10536_v15 = vrot.slane %v10398_v51, %v16734_v23 }
0x3c16   :  { %v10582_v20 = vpop.permute.xlu0 %10581  ;;  %11019 = vrot.lane.b32.xlu1 %v10618_v19, %s16397_s5  ;;  %v10614_v28 = vsel %vm1782_vm14, %v10606_v9, %v10528_v1  ;;  %v10608_v4 = vsel %vm1773_vm13, %v10291_v52, %v10496_v17  ;;  %v10741_v9 = vrot.slane %v19802_v44, %v17138_v39 }
0x3c17   :  { %v10619_v57 = vsel %vm1791_vm15, %v10611_v58, %v10582_v20  ;;  %v10615_v58 = vsel %vm1782_vm14, %v10607_v21, %v10532_v59  ;;  %v10616_v43 = vsel %vm1782_vm14, %v10608_v4, %v10536_v15  ;;  %v10633_v21 = vrot.slane %v19740_v18, %v17138_v39 }
0x3c18   :  { %11021 = vrot.lane.b32.xlu0 %v10619_v57, %s16397_s5  ;;  %v10584_v14 = vpop.permute.xlu1 %10583  ;;  %v10626_v15 = vcombine.high %v19740_v18, %v19740_v18 }
0x3c19   :  { %v10620_v45 = vsel %vm1791_vm15, %v10612_v48, %v10584_v14  ;;  %v10641_v59 = vcombine.high %v10633_v21, %v10633_v21  ;;  %v10649_v4 = vrot.slane %v10633_v21, %v17138_v39 }
0x3c1a   :  { %v10586_v37 = vpop.permute.xlu0 %10585  ;;  %11023 = vrot.lane.b32.xlu1 %v10620_v45, %s16397_s5 }
0x3c1b   :  { %v10621_v25 = vsel %vm1791_vm15, %v10613_v22, %v10586_v37  ;;  %v10671_v21 = vcombine.high %v10649_v4, %v10649_v4 }
0x3c1c   :  { %11025 = vrot.lane.b32.xlu0 %v10621_v25, %s16397_s5  ;;  %v10588_v49 = vpop.permute.xlu1 %10587 }
0x3c1d   :  { %v10622_v19 = vsel %vm1791_vm15, %v10614_v28, %v10588_v49  ;;  %v10734_v28 = vcombine.high %v19802_v44, %v19802_v44  ;;  %v10749_v49 = vcombine.high %v10741_v9, %v10741_v9 }
0x3c1e   :  { %v10590_v20 = vpop.permute.xlu0 %10589  ;;  %11027 = vrot.lane.b32.xlu1 %v10622_v19, %s16397_s5  ;;  %v10757_v19 = vrot.slane %v10741_v9, %v17138_v39 }
0x3c1f   :  { %v10623_v16 = vsel %vm1791_vm15, %v10615_v58, %v10590_v20  ;;  %v10771_v20 = vrot.slane %v10749_v49, %v17138_v39  ;;  %v10748_v58 = vrot.slane %v10734_v28, %v17138_v39 }
0x3c20   :  { %11029 = vrot.lane.b32.xlu0 %v10623_v16, %s16397_s5  ;;  %v10592_v0 = vpop.permute.xlu1 %10591  ;;  %v10663_v16 = vrot.slane %v10641_v59, %v17138_v39  ;;  %v10892_v9 = vrot.slane %v10757_v19, %v16734_v23 }
0x3c21   :  { %v10624_v57 = vsel %vm1791_vm15, %v10616_v43, %v10592_v0  ;;  %v10640_v43 = vrot.slane %v10626_v15, %v17138_v39  ;;  %v10896_v49 = vrot.slane %v10771_v20, %v16734_v23  ;;  %v10781_v28 = vcombine.high %v10771_v20, %v10771_v20 }
0x3c22   :  { %11031 = vrot.lane.b32.xlu1 %v10624_v57, %s16397_s5  ;;  %v10866_v3 = vpop.permute.xlu0 %10865  ;;  %v10779_v57 = vcombine.high %v10757_v19, %v10757_v19  ;;  %v10750_v54 = vcombine.high %v10748_v58, %v10748_v58  ;;  %v10673_v10 = vcombine.high %v10663_v16, %v10663_v16 }
0x3c23   :  { %v10985_v12 = vsel %vm1773_vm13, %v10649_v4, %v10866_v3  ;;  %v10642_v59 = vcombine.high %v10640_v43, %v10640_v43 }
0x3c24   :  { %v10868_v48 = vpop.permute.xlu1 %10867  ;;  %v10993_v15 = vsel %vm1782_vm14, %v10985_v12, %v10892_v9  ;;  %v10900_v3 = vrot.slane %v10779_v57, %v16734_v23  ;;  %v10778_v57 = vrot.slane %v10750_v54, %v17138_v39 }
0x3c25   :  { %v10986_v60 = vsel %vm1773_vm13, %v10663_v16, %v10868_v48  ;;  %v10764_v48 = vrot.slane %v10748_v58, %v17138_v39 }
0x3c26   :  { %v10870_v14 = vpop.permute.xlu0 %10869  ;;  %v10994_v5 = vsel %vm1782_vm14, %v10986_v60, %v10896_v49  ;;  %v10904_v60 = vrot.slane %v10781_v28, %v16734_v23 }
0x3c27   :  { %v10987_v19 = vsel %vm1773_vm13, %v10671_v21, %v10870_v14  ;;  %v10670_v14 = vrot.slane %v10642_v59, %v17138_v39  ;;  %v10908_v54 = vrot.slane %v10764_v48, %v16734_v23 }
0x3c28   :  { %v10872_v1 = vpop.permute.xlu1 %10871 }
0x3c29   :  { %v10988_v20 = vsel %vm1773_vm13, %v10673_v10, %v10872_v1  ;;  %v10656_v10 = vrot.slane %v10640_v43, %v17138_v39 }
0x3c2a   :  { %v10962_v41 = vpop.permute.xlu0 %10961 }
0x3c2b   :  { %v11001_v4 = vsel %vm1791_vm15, %v10993_v15, %v10962_v41  ;;  %v10995_v41 = vsel %vm1782_vm14, %v10987_v19, %v10900_v3  ;;  %v10912_v15 = vrot.slane %v10778_v57, %v16734_v23  ;;  %v10782_v3 = vcombine.high %v10778_v57, %v10778_v57 }
0x3c2c   :  { %v10964_v51 = vpop.permute.xlu1 %10963 }
0x3c2d   :  { %v11002_v16 = vsel %vm1791_vm15, %v10994_v5, %v10964_v51  ;;  %v10996_v51 = vsel %vm1782_vm14, %v10988_v20, %v10904_v60 }
0x3c2e   :  { %v10966_v27 = vpop.permute.xlu0 %10965 }
0x3c2f   :  { %v11003_v49 = vsel %vm1791_vm15, %v10995_v41, %v10966_v27  ;;  %v10672_v27 = vcombine.high %v10656_v10, %v10656_v10 }
0x3c30   :  { %v10968_v6 = vpop.permute.xlu1 %10967 }
0x3c31   :  { %v11004_v43 = vsel %vm1791_vm15, %v10996_v51, %v10968_v6  ;;  %v10674_v6 = vcombine.high %v10670_v14, %v10670_v14 }
0x3c32   :  { %v10874_v17 = vpop.permute.xlu0 %10873 }
0x3c33   :  { %v10989_v28 = vsel %vm1773_vm13, %v10656_v10, %v10874_v17  ;;  %v10920_v10 = vrot.slane %v10782_v3, %v16734_v23 }
0x3c34   :  { %v10876_v45 = vpop.permute.xlu1 %10875 }
0x3c35   :  { %v10990_v21 = vsel %vm1773_vm13, %v10670_v14, %v10876_v45  ;;  %v10997_v45 = vsel %vm1782_vm14, %v10989_v28, %v10908_v54 }
0x3c36   :  { %v19964_v37 = vpop.permute.xlu0 %10877 }
0x3c38   :  { %v19966_v22 = vpop.permute.xlu1 %10879 }
0x3c3a   :  { %v19972_v25 = vpop.permute.xlu0 %10969 }
0x3c3b   :  { %v11005_v60 = vsel %vm1791_vm15, %v10997_v45, %v19972_v25 }
0x3c3c   :  { %v19978_v52 = vpop.permute.xlu1 %10971 }
0x3c3e   :  { %v19986_v0 = vpop.permute.xlu0 %10973 }
0x3c40   :  { %v19990_v44 = vpop.permute.xlu1 %10975 }
0x3c86   :  { %v11018_v34 = vpop.permute.xlu0 %11017 }
0x3c87   :  { %14812 = vst.msk [vmem:[%s21219_s16 + $0xa0] sm:$0xf] %vm14771_vm12, %v11018_v34  ;;  %v11041_v58 = vsel %vm277_vm1, %v11018_v34, %v11001_v4  ;;  %v10780_v34 = vcombine.high %v10764_v48, %v10764_v48  ;;  %v10998_v4 = vsel %vm1782_vm14, %v10990_v21, %v10912_v15 }
0x3c88   :  { %v11020_v12 = vpop.permute.xlu1 %11019  ;;  %v11006_v57 = vsel %vm1791_vm15, %v10998_v4, %v19978_v52 }
0x3c89   :  { %v11042_v9 = vsel %vm277_vm1, %v11020_v12, %v11002_v16  ;;  %14813 = vst.msk [vmem:[%s21219_s16 + $0xa4] sm:$0xf] %vm14771_vm12, %v11020_v12  ;;  %v10991_v16 = vsel %vm1773_vm13, %v10672_v27, %v19964_v37  ;;  %v10992_v12 = vsel %vm1773_vm13, %v10674_v6, %v19966_v22  ;;  %v20061_v22 = vld [vmem:[%s21214_s9] sm:$0xff] }
0x3c8a   :  { %v11057_v1 = vcombine.low %v11041_v58, %v11042_v9  ;;  %v11022_v5 = vpop.permute.xlu0 %11021  ;;  %v10916_v9 = vrot.slane %v10780_v34, %v16734_v23 }
0x3c8b   :  { %14814 = vst.msk [vmem:[%s21219_s16 + $0xa8] sm:$0xf] %vm14771_vm12, %v11022_v5  ;;  %v11043_v48 = vsel %vm277_vm1, %v11022_v5, %v11003_v49  ;;  %v11000_v5 = vsel %vm1782_vm14, %v10992_v12, %v10920_v10 }
0x3c8c   :  { %15496 = vmatprep.mubr.msk.f32.mxu1 %vm298_vm2, %v11057_v1  ;;  %v11024_v59 = vpop.permute.xlu1 %11023  ;;  %v10999_v1 = vsel %vm1782_vm14, %v10991_v16, %v10916_v9  ;;  %v11008_v51 = vsel %vm1791_vm15, %v11000_v5, %v19990_v44 }
0x3c8d   :  { %v11044_v19 = vsel %vm277_vm1, %v11024_v59, %v11004_v43  ;;  %14815 = vst.msk [vmem:[%s21219_s16 + $0xac] sm:$0xf] %vm14771_vm12, %v11024_v59  ;;  %v11007_v41 = vsel %vm1791_vm15, %v10999_v1, %v19986_v0  ;;  %v16385_v1 = vld [vmem:[%s21211_s7] ss:$0 sm:$0xff] }
0x3c8e   :  { %v11058_v17 = vcombine.low %v11043_v48, %v11044_v19  ;;  %v11026_v20 = vpop.permute.xlu0 %11025 }
0x3c8f   :  { %14816 = vst.msk [vmem:[%s21219_s16 + $0xb0] sm:$0xf] %vm14771_vm12, %v11026_v20  ;;  %v11045_v14 = vsel %vm277_vm1, %v11026_v20, %v11005_v60 }
0x3c90   :  { %15497 = vmatmul.mubr.msk.f32.vlgmr.msra.gmra.mrb[40].mxu1 %vm298_vm2, %v11058_v17  ;;  %v11028_v58 = vpop.permute.xlu1 %11027 }
0x3c91   :  { %v11046_v37 = vsel %vm277_vm1, %v11028_v58, %v11006_v57  ;;  %14817 = vst.msk [vmem:[%s21219_s16 + $0xb4] sm:$0xf] %vm14771_vm12, %v11028_v58  ;;  %15514 = vmatpush3.msra.mxu1 %v20061_v22 }
0x3c92   :  { %v11059_v25 = vcombine.low %v11045_v14, %v11046_v37  ;;  %v11030_v52 = vpop.permute.xlu0 %11029  ;;  %15768 = vmatprep.subr.bf16.mxu1 %v21352_v50 }
0x3c93   :  { %14818 = vst.msk [vmem:[%s21219_s16 + $0xb8] sm:$0xf] %vm14771_vm12, %v11030_v52  ;;  %v11047_v34 = vsel %vm277_vm1, %v11030_v52, %v11007_v41 }
0x3c94   :  { %15499 = vmatprep.mubr.msk.f32.mxu1 %vm298_vm2, %v11059_v25  ;;  %v11032_v54 = vpop.permute.xlu1 %11031 }
0x3c95   :  { %v11048_v49 = vsel %vm277_vm1, %v11032_v54, %v11008_v51  ;;  %14819 = vst.msk [vmem:[%s21219_s16 + $0xbc] sm:$0xf] %vm14771_vm12, %v11032_v54 }
0x3c96   :  { %v11060_v43 = vcombine.low %v11047_v34, %v11048_v49 }
0x3c98   :  { %15500 = vmatmul.mubr.msk.f32.gmra.mrb[42].mxu1 %vm298_vm2, %v11060_v43 }
0x3c99   :  { %15515 = vmatprep.mubr.msk.f32.mxu1 %vm16394_vm11, %v21351_v56 }
0x3d63   :  { %v15498_v0 = vpop.f32.mrb[40].mxu1 }
0x3d64   :  { %v11159_v44 = vcombine.high %v15498_v0, %v15498_v0  ;;  %v11168_v28 = vcombine.low %v15498_v0, %v15498_v0  ;;  %v11135_v21 = vpop.f32.mrb[41].mxu1 }
0x3d65   :  { %v11158_v59 = vcombine.high %v11135_v21, %v11135_v21  ;;  %v11166_v15 = vcombine.low %v11135_v21, %v11135_v21 }
0x3d66   :  { %v11184_v3 = vsel %vm420_vm3, %v15498_v0, %v11168_v28  ;;  %v11193_v48 = vadd.f32 %v11159_v44, %v16663_v62 }
0x3d67   :  { %v11192_v19 = vadd.f32 %v11184_v3, %v16667_v7  ;;  %v11182_v27 = vsel %vm420_vm3, %v11135_v21, %v11166_v15  ;;  %v11191_v6 = vadd.f32 %v11158_v59, %v16665_v63 }
0x3d68   :  { %16222 = vtanh.f32 %v11193_v48  ;;  %v11190_v17 = vadd.f32 %v11182_v27, %v16669_v8 }
0x3d69   :  { %16224 = vtanh.f32 %v11192_v19 }
0x3d6a   :  { %16226 = vtanh.f32 %v11191_v6 }
0x3d6b   :  { %v15501_v20 = vpop.f32.mrb[42].mxu1  ;;  %16228 = vtanh.f32 %v11190_v17 }
0x3d6c   :  { %v11161_v45 = vcombine.high %v15501_v20, %v15501_v20  ;;  %v11172_v4 = vcombine.low %v15501_v20, %v15501_v20  ;;  %v11145_v16 = vpop.f32.mrb[43].mxu1 }
0x3d6d   :  { %v11160_v12 = vcombine.high %v11145_v16, %v11145_v16  ;;  %v11170_v60 = vcombine.low %v11145_v16, %v11145_v16 }
0x3d6e   :  { %v11188_v57 = vsel %vm420_vm3, %v15501_v20, %v11172_v4  ;;  %v11197_v14 = vadd.f32 %v11161_v45, %v16684_v40 }
0x3d6f   :  { %v11196_v58 = vadd.f32 %v11188_v57, %v16679_v30  ;;  %v11186_v9 = vsel %vm420_vm3, %v11145_v16, %v11170_v60  ;;  %v11195_v10 = vadd.f32 %v11160_v12, %v16677_v29 }
0x3d70   :  { %v11194_v37 = vadd.f32 %v11186_v9, %v16681_v36 }
0x3d71   :  { %16230 = vtanh.f32 %v11196_v58 }
0x3d72   :  { %v16223_v25 = vpop.eup %16222  ;;  %16232 = vtanh.f32 %v11194_v37 }
0x3d73   :  { %v16225_v52 = vpop.eup %16224  ;;  %16234 = vtanh.f32 %v11195_v10  ;;  %v11209_v5 = vmul.f32 %v16385_v1, %v16223_v25 }
0x3d74   :  { %16236 = vtanh.f32 %v11197_v14  ;;  %v16227_v41 = vpop.eup %16226  ;;  %v11208_v54 = vmul.f32 %v16385_v1, %v16225_v52 }
0x3d75   :  { %v11223_v51 = vsel %vm78_vm0, %v11209_v5, 0.0  ;;  %v16229_v34 = vpop.eup %16228  ;;  %v11207_v49 = vmul.f32 %v16385_v1, %v16227_v41 }
0x3d76   :  { %11224 = vadd.xlane.f32.xlu0 %v11223_v51  ;;  %v11220_v0 = vsel %vm78_vm0, %v11208_v54, 0.0  ;;  %v11206_v44 = vmul.f32 %v16385_v1, %v16229_v34 }
0x3d77   :  { %v11217_v43 = vsel %vm78_vm0, %v11207_v49, 0.0 }
0x3d78   :  { %11218 = vadd.xlane.f32.xlu1 %v11217_v43  ;;  %v11214_v15 = vsel %vm78_vm0, %v11206_v44, 0.0 }
0x3d7a   :  { %11221 = vadd.xlane.f32.xlu0 %v11220_v0 }
0x3d7b   :  { %v16231_v28 = vpop.eup %16230 }
0x3d7c   :  { %v16233_v21 = vpop.eup %16232  ;;  %v11212_v6 = vmul.f32 %v16385_v1, %v16231_v28 }
0x3d7d   :  { %v16235_v59 = vpop.eup %16234  ;;  %v11210_v3 = vmul.f32 %v16385_v1, %v16233_v21 }
0x3d7e   :  { %v16237_v48 = vpop.eup %16236  ;;  %11215 = vadd.xlane.f32.xlu0 %v11214_v15  ;;  %v11211_v19 = vmul.f32 %v16385_v1, %v16235_v59  ;;  %v11232_v45 = vsel %vm78_vm0, %v11212_v6, 0.0 }
0x3d7f   :  { %v11226_v27 = vsel %vm78_vm0, %v11210_v3, 0.0  ;;  %v11213_v20 = vmul.f32 %v16385_v1, %v16237_v48 }
0x3d80   :  { %11227 = vadd.xlane.f32.xlu1 %v11226_v27  ;;  %v11229_v17 = vsel %vm78_vm0, %v11211_v19, 0.0 }
0x3d81   :  { %v11235_v4 = vsel %vm78_vm0, %v11213_v20, 0.0 }
0x3d82   :  { %11230 = vadd.xlane.f32.xlu0 %v11229_v17 }
0x3d84   :  { %11233 = vadd.xlane.f32.xlu1 %v11232_v45 }
0x3d86   :  { %11236 = vadd.xlane.f32.xlu0 %v11235_v4 }
0x3e03   :  { %v11225_v16 = vpop.xlane.xlu0 %11224 }
0x3e04   :  { %v11241_v10 = vadd.f32 %v11225_v16, %v16707_v47 }
0x3e05   :  { %v11219_v12 = vpop.xlane.xlu1 %11218 }
0x3e06   :  { %v11239_v57 = vadd.f32 %v11219_v12, %v16707_v47  ;;  %v11269_v51 = vrot.slane %v11241_v10, %v16705_v46 }
0x3e07   :  { %v11222_v60 = vpop.xlane.xlu0 %11221 }
0x3e08   :  { %v11240_v58 = vadd.f32 %v11222_v60, %v16707_v47  ;;  %v11261_v25 = vrot.slane %v11239_v57, %v16705_v46 }
0x3e0a   :  { %v11265_v5 = vrot.slane %v11240_v58, %v16705_v46 }
0x3e0b   :  { %v11216_v9 = vpop.xlane.xlu0 %11215 }
0x3e0c   :  { %v11238_v14 = vadd.f32 %v11216_v9, %v16707_v47 }
0x3e0d   :  { %v11228_v37 = vpop.xlane.xlu1 %11227 }
0x3e0e   :  { %v11257_v52 = vrot.slane %v11238_v14, %v16705_v46  ;;  %v11242_v1 = vadd.f32 %v11228_v37, %v16707_v47 }
0x3e0f   :  { %v11231_v41 = vpop.xlane.xlu0 %11230 }
0x3e10   :  { %v11286_v54 = vsel %vm542_vm4, %v11261_v25, %v11257_v52  ;;  %v11273_v34 = vrot.slane %v11242_v1, %v16705_v46  ;;  %v11243_v49 = vadd.f32 %v11231_v41, %v16707_v47 }
0x3e11   :  { %v11287_v43 = vsel %vm544_vm5, %v11265_v5, %v11286_v54  ;;  %v11234_v0 = vpop.xlane.xlu1 %11233 }
0x3e12   :  { %v11288_v44 = vsel %vm546_vm6, %v11269_v51, %v11287_v43  ;;  %v11277_v28 = vrot.slane %v11243_v49, %v16705_v46  ;;  %v11244_v21 = vadd.f32 %v11234_v0, %v16707_v47 }
0x3e13   :  { %v11289_v59 = vsel %vm548_vm7, %v11273_v34, %v11288_v44  ;;  %v11237_v15 = vpop.xlane.xlu0 %11236 }
0x3e14   :  { %v11281_v3 = vrot.slane %v11244_v21, %v16705_v46  ;;  %v11245_v48 = vadd.f32 %v11237_v15, %v16707_v47  ;;  %v11290_v19 = vsel %vm550_vm8, %v11277_v28, %v11289_v59 }
0x3e16   :  { %v11285_v27 = vrot.slane %v11245_v48, %v16705_v46  ;;  %v11291_v6 = vsel %vm552_vm9, %v11281_v3, %v11290_v19 }
0x3e18   :  { %v11292_v17 = vsel %vm554_vm10, %v11285_v27, %v11291_v6 }
0x3e19   :  { %v11294_v20 = vsel %vm78_vm0, %v11292_v17, -inf }
0x3e1a   :  { %11295 = vmax.xlane.f32.xlu1 %v11294_v20  ;;  %v60_v20 = vld [vmem:[%s21212_s0 + $0x30] sm:$0xff] }
0x3ea7   :  { %v11296_v45 = vpop.xlane.xlu1 %11295 }
0x3ea8   :  { %v11301_v4 = vrot.slane %v11296_v45, %v16734_v23  ;;  %v11305_v16 = vrot.slane %v11296_v45, %v16737_v24  ;;  %v11309_v12 = vrot.slane %v11296_v45, %v16740_v31  ;;  %v11313_v60 = vrot.slane %v11296_v45, %v16743_v32 }
0x3ea9   :  { %v11321_v9 = vrot.slane %v11296_v45, %v16753_v61  ;;  %v11317_v5 = vrot.slane %v11296_v45, %v16749_v42  ;;  %v11329_v34 = vrot.slane %v11296_v45, %v21371_v53  ;;  %v11325_v44 = vrot.slane %v11296_v45, %v16757_v13 }
0x3eaa   :  { %v11338_v37 = vsub.f32 %v11238_v14, %v11301_v4  ;;  %v11339_v25 = vsub.f32 %v11239_v57, %v11305_v16  ;;  %v11341_v52 = vsub.f32 %v11241_v10, %v11313_v60  ;;  %v11340_v41 = vsub.f32 %v11240_v58, %v11309_v12 }
0x3eab   :  { %v11343_v43 = vsub.f32 %v11243_v49, %v11321_v9  ;;  %v11342_v28 = vsub.f32 %v11242_v1, %v11317_v5  ;;  %v11345_v15 = vsub.f32 %v11245_v48, %v11329_v34  ;;  %v11344_v57 = vsub.f32 %v11244_v21, %v11325_v44 }
0x3eac   :  { %v11346_v51 = vmul.f32 1.442695, %v11338_v37  ;;  %v11348_v54 = vmul.f32 1.442695, %v11339_v25  ;;  %v11352_v0 = vmul.f32 1.442695, %v11341_v52  ;;  %v11498_v45 = vrot.slane %v60_v20, %v16734_v23 }
0x3ead   :  { %v11350_v59 = vmul.f32 1.442695, %v11340_v41  ;;  %v11356_v14 = vmul.f32 1.442695, %v11343_v43  ;;  %v11354_v10 = vmul.f32 1.442695, %v11342_v28  ;;  %v11505_v4 = vrot.slane %v60_v20, %v16737_v24 }
0x3eae   :  { %16238 = vpow2.f32 %v11346_v51  ;;  %v11360_v58 = vmul.f32 1.442695, %v11345_v15  ;;  %v11358_v3 = vmul.f32 1.442695, %v11344_v57  ;;  %v11512_v16 = vrot.slane %v60_v20, %v16740_v31 }
0x3eaf   :  { %16240 = vpow2.f32 %v11348_v54  ;;  %v11519_v12 = vrot.slane %v60_v20, %v16743_v32  ;;  %v11526_v60 = vrot.slane %v60_v20, %v16749_v42  ;;  %v11533_v9 = vrot.slane %v60_v20, %v16753_v61 }
0x3eb0   :  { %16242 = vpow2.f32 %v11352_v0  ;;  %v11540_v37 = vrot.slane %v60_v20, %v16757_v13  ;;  %v11547_v25 = vrot.slane %v60_v20, %v21371_v53 }
0x3eb1   :  { %16244 = vpow2.f32 %v11350_v59 }
0x3eb2   :  { %16246 = vpow2.f32 %v11356_v14 }
0x3eb3   :  { %16248 = vpow2.f32 %v11354_v10 }
0x3eb4   :  { %16250 = vpow2.f32 %v11360_v58 }
0x3eb5   :  { %16252 = vpow2.f32 %v11358_v3 }
0x3eb8   :  { %v20140_v19 = vpop.eup %16238 }
0x3eb9   :  { %v20142_v49 = vpop.eup %16240  ;;  %11371 = vperm.xlu0 %15813, %v20140_v19  }
0x3eba   :  { %11374 = vperm.xlu1 %15812, %v20142_v49   ;;  %v20146_v1 = vpop.eup %16242 }
0x3ebb   :  { %v20148_v48 = vpop.eup %16244 }
0x3ebc   :  { %v20152_v21 = vpop.eup %16246 }
0x3ebd   :  { %11380 = vperm.xlu0 %15813, %v20146_v1   ;;  %v20154_v27 = vpop.eup %16248 }
0x3ebe   :  { %11377 = vperm.xlu1 %15812, %v20148_v48   ;;  %v20158_v6 = vpop.eup %16250 }
0x3ebf   :  { %v20160_v17 = vpop.eup %16252 }
0x3ec1   :  { %11386 = vperm.xlu0 %15813, %v20152_v21  }
0x3ec2   :  { %11383 = vperm.xlu1 %15812, %v20154_v27  }
0x3ec5   :  { %11392 = vperm.xlu0 %15813, %v20158_v6  }
0x3ec6   :  { %11389 = vperm.xlu1 %15812, %v20160_v17  }
0x3ec9   :  { %11500 = vbcast.lane.b32.xlu0 %v11498_v45, 256 }
0x3ecd   :  { %11507 = vbcast.lane.b32.xlu0 %v11505_v4, 256 }
0x3ed1   :  { %11514 = vbcast.lane.b32.xlu0 %v11512_v16, 256 }
0x3ed5   :  { %11521 = vbcast.lane.b32.xlu0 %v11519_v12, 256 }
0x3ed9   :  { %11528 = vbcast.lane.b32.xlu0 %v11526_v60, 256 }
0x3edd   :  { %11535 = vbcast.lane.b32.xlu0 %v11533_v9, 256 }
0x3ee1   :  { %11542 = vbcast.lane.b32.xlu0 %v11540_v37, 256 }
0x3ee5   :  { %11549 = vbcast.lane.b32.xlu0 %v11547_v25, 256 }
0x3f38   :  { %v11372_v52 = vpop.permute.xlu0 %11371 }
0x3f39   :  { %v11375_v5 = vpop.permute.xlu1 %11374  ;;  %v11397_v51 = vrot.slane %v11372_v52, %v16705_v46 }
0x3f3a   :  { %v11401_v41 = vrot.slane %v11375_v5, %v16705_v46 }
0x3f3c   :  { %v11381_v54 = vpop.permute.xlu0 %11380  ;;  %v11426_v0 = vsel %vm542_vm4, %v11401_v41, %v11397_v51 }
0x3f3d   :  { %v11378_v34 = vpop.permute.xlu1 %11377  ;;  %v11409_v44 = vrot.slane %v11381_v54, %v16705_v46 }
0x3f3e   :  { %v11405_v43 = vrot.slane %v11378_v34, %v16705_v46 }
0x3f40   :  { %v11427_v28 = vsel %vm544_vm5, %v11405_v43, %v11426_v0  ;;  %v11387_v59 = vpop.permute.xlu0 %11386 }
0x3f41   :  { %v11384_v15 = vpop.permute.xlu1 %11383  ;;  %v11428_v57 = vsel %vm546_vm6, %v11409_v44, %v11427_v28  ;;  %v11417_v10 = vrot.slane %v11387_v59, %v16705_v46 }
0x3f42   :  { %v11413_v14 = vrot.slane %v11384_v15, %v16705_v46 }
0x3f44   :  { %v11429_v58 = vsel %vm548_vm7, %v11413_v14, %v11428_v57  ;;  %v11393_v3 = vpop.permute.xlu0 %11392 }
0x3f45   :  { %v11390_v20 = vpop.permute.xlu1 %11389  ;;  %v11425_v45 = vrot.slane %v11393_v3, %v16705_v46  ;;  %v11430_v16 = vsel %vm550_vm8, %v11417_v10, %v11429_v58 }
0x3f46   :  { %v11421_v4 = vrot.slane %v11390_v20, %v16705_v46 }
0x3f48   :  { %v11431_v12 = vsel %vm552_vm9, %v11421_v4, %v11430_v16  ;;  %v11501_v37 = vpop.permute.xlu0 %11500 }
0x3f49   :  { %v11432_v60 = vsel %vm554_vm10, %v11425_v45, %v11431_v12 }
0x3f4a   :  { %v11434_v9 = vsel %vm78_vm0, %v11432_v60, 0.0 }
0x3f4b   :  { %11435 = vadd.xlane.f32.xlu1 %v11434_v9 }
0x3f4c   :  { %v11508_v25 = vpop.permute.xlu0 %11507 }
0x3f50   :  { %v11515_v52 = vpop.permute.xlu0 %11514 }
0x3f54   :  { %v11522_v43 = vpop.permute.xlu0 %11521 }
0x3f58   :  { %v11529_v28 = vpop.permute.xlu0 %11528 }
0x3f5c   :  { %v11536_v10 = vpop.permute.xlu0 %11535 }
0x3fd8   :  { %v11436_v5 = vpop.xlane.xlu1 %11435 }
0x3fd9   :  { %v11465_v41 = vrot.slane %v11436_v5, %v16757_v13  ;;  %v11441_v51 = vrot.slane %v11436_v5, %v16734_v23  ;;  %v11445_v54 = vrot.slane %v11436_v5, %v16737_v24  ;;  %v11449_v34 = vrot.slane %v11436_v5, %v16740_v31 }
0x3fda   :  { %v11453_v0 = vrot.slane %v11436_v5, %v16743_v32  ;;  %v11457_v44 = vrot.slane %v11436_v5, %v16749_v42  ;;  %v11461_v59 = vrot.slane %v11436_v5, %v16753_v61  ;;  %v11469_v20 = vrot.slane %v11436_v5, %v21371_v53 }
0x3fdb   :  { %16254 = vrcp.f32 %v11465_v41 }
0x3fdc   :  { %16256 = vrcp.f32 %v11441_v51 }
0x3fdd   :  { %16258 = vrcp.f32 %v11445_v54 }
0x3fde   :  { %16260 = vrcp.f32 %v11449_v34 }
0x3fdf   :  { %16262 = vrcp.f32 %v11453_v0 }
0x3fe0   :  { %16264 = vrcp.f32 %v11457_v44 }
0x3fe1   :  { %16266 = vrcp.f32 %v11461_v59 }
0x3fe2   :  { %16268 = vrcp.f32 %v11469_v20 }
0x3fe5   :  { %v16255_v15 = vpop.eup %16254 }
0x3fe6   :  { %v16257_v14 = vpop.eup %16256  ;;  %v20210_v60 = vmul.f32 %v16255_v15, %v20160_v17 }
0x3fe7   :  { %v16259_v57 = vpop.eup %16258  ;;  %v20199_v58 = vmul.f32 %v16257_v14, %v20140_v19  ;;  %v11543_v19 = vpop.permute.xlu0 %11542 }
0x3fe8   :  { %v16261_v3 = vpop.eup %16260  ;;  %v20203_v45 = vmul.f32 %v16259_v57, %v20142_v49  ;;  %21455 = vst [vmem:[#allocation61_spill] sm:$0xff] %v20210_v60 }
0x3fe9   :  { %21452 = vst [vmem:[#allocation19_spill] sm:$0xff] %v20199_v58  ;;  %v11559_v4 = vmul.f32 %v11501_v37, %v20199_v58  ;;  %v20207_v16 = vmul.f32 %v16261_v3, %v20148_v48  ;;  %v16263_v12 = vpop.eup %16262  ;;  %v11565_v37 = vmul.f32 %v11543_v19, %v20210_v60 }
0x3fea   :  { %21453 = vst [vmem:[#allocation59_spill] sm:$0xff] %v20203_v45  ;;  %v11560_v9 = vmul.f32 %v11508_v25, %v20203_v45  ;;  %v20215_v49 = vmul.f32 %v16263_v12, %v20146_v1  ;;  %v16265_v41 = vpop.eup %16264 }
0x3feb   :  { %21454 = vst [vmem:[#allocation60_spill] sm:$0xff] %v20207_v16  ;;  %11646 = vperm.xlu0 %15813, %v11559_v4   ;;  %v11561_v5 = vmul.f32 %v11515_v52, %v20207_v16  ;;  %v20219_v48 = vmul.f32 %v16265_v41, %v20154_v27  ;;  %v16267_v25 = vpop.eup %16266  ;;  %v11550_v0 = vpop.permute.xlu0 %11549 }
0x3fec   :  { %11649 = vperm.xlu1 %15812, %v11560_v9   ;;  %21456 = vst [vmem:[#allocation62_spill] sm:$0xff] %v20215_v49  ;;  %v11562_v17 = vmul.f32 %v11522_v43, %v20215_v49  ;;  %v20224_v54 = vmul.f32 %v16267_v25, %v20152_v21  ;;  %v16269_v52 = vpop.eup %16268 }
0x3fed   :  { %21457 = vst [vmem:[#allocation63_spill] sm:$0xff] %v20219_v48  ;;  %v11563_v51 = vmul.f32 %v11529_v28, %v20219_v48  ;;  %v20228_v34 = vmul.f32 %v16269_v52, %v20158_v6 }
0x3fee   :  { %21458 = vst [vmem:[#allocation64_spill] sm:$0xff] %v20224_v54  ;;  %v11564_v1 = vmul.f32 %v11536_v10, %v20224_v54 }
0x3fef   :  { %11652 = vperm.xlu0 %15813, %v11561_v5   ;;  %21459 = vst [vmem:[#allocation65_spill] sm:$0xff] %v20228_v34  ;;  %v11566_v27 = vmul.f32 %v11550_v0, %v20228_v34 }
0x3ff0   :  { %11664 = vperm.xlu1 %15812, %v11565_v37  }
0x3ff3   :  { %11655 = vperm.xlu0 %15813, %v11562_v17  }
0x3ff7   :  { %11658 = vperm.xlu0 %15813, %v11563_v51  }
0x3ffb   :  { %11661 = vperm.xlu0 %15813, %v11564_v1  }
0x3fff   :  { %11667 = vperm.xlu0 %15813, %v11566_v27  }
0x406a   :  { %v11647_v43 = vpop.permute.xlu0 %11646 }
0x406b   :  { %v11650_v59 = vpop.permute.xlu1 %11649  ;;  %v11672_v21 = vrot.slane %v11647_v43, %v16705_v46  ;;  %v16386_v43 = vld [vmem:[%s21215_s11] ss:$0 sm:$0xff] }
0x406c   :  { %v11676_v28 = vrot.slane %v11650_v59, %v16705_v46 }
0x406e   :  { %v11653_v44 = vpop.permute.xlu0 %11652  ;;  %v11701_v3 = vsel %vm542_vm4, %v11676_v28, %v11672_v21 }
0x406f   :  { %v11680_v14 = vrot.slane %v11653_v44, %v16705_v46  ;;  %v11665_v12 = vpop.permute.xlu1 %11664 }
0x4070   :  { %v11696_v37 = vrot.slane %v11665_v12, %v16705_v46 }
0x4071   :  { %v11702_v20 = vsel %vm544_vm5, %v11680_v14, %v11701_v3 }
0x4072   :  { %v11656_v15 = vpop.permute.xlu0 %11655 }
0x4073   :  { %v11684_v10 = vrot.slane %v11656_v15, %v16705_v46 }
0x4075   :  { %v11703_v9 = vsel %vm546_vm6, %v11684_v10, %v11702_v20 }
0x4076   :  { %v11659_v57 = vpop.permute.xlu0 %11658 }
0x4077   :  { %v11688_v6 = vrot.slane %v11659_v57, %v16705_v46 }
0x4079   :  { %v11704_v5 = vsel %vm548_vm7, %v11688_v6, %v11703_v9 }
0x407a   :  { %v11662_v4 = vpop.permute.xlu0 %11661 }
0x407b   :  { %v11692_v19 = vrot.slane %v11662_v4, %v16705_v46 }
0x407d   :  { %v11705_v41 = vsel %vm550_vm8, %v11692_v19, %v11704_v5 }
0x407e   :  { %v11668_v17 = vpop.permute.xlu0 %11667  ;;  %v11706_v51 = vsel %vm552_vm9, %v11696_v37, %v11705_v41 }
0x407f   :  { %v11700_v25 = vrot.slane %v11668_v17, %v16705_v46 }
0x4081   :  { %v11707_v52 = vsel %vm554_vm10, %v11700_v25, %v11706_v51 }
0x4082   :  { %15516 = vmatmul.mubr.msk.f32.vlgmr.msra.gmra.mrb[44].mxu1 %vm78_vm0, %v11707_v52 }
0x4083   :  { %15770 = vmatpush3.bf16.msra.mxu1 %v17088_v11  ;;  %15537 = vmatprep.mubr.msk.f32.mxu1 %vm16394_vm11, %v21351_v56 }
0x4084   :  { %15771 = vmatprep.subr.bf16.mxu1 %v21352_v50 }
0x4087   :  { %15773 = vmatpush3.bf16.msra.mxu1 %v17101_v26 }
0x4088   :  { %15782 = vmatprep.subr.bf16.mxu1 %v21352_v50 }
0x4155   :  { %v11776_v1 = vpop.f32.mrb[44].mxu1 }
0x4156   :  { %v11777_v0 = vadd.f32 %v11776_v1, %v19781_v38  ;;  %v15517_v27 = vpop.f32.mrb[45].mxu1  ;;  %v21461_v1 = vld [vmem:[#allocation3_spill] sm:$0xff] }
0x4158   :  { %v11780_v44 = vadd.f32 %v16386_v43, %v11777_v0  ;;  %v21462_v0 = vld [vmem:[#allocation4_spill] sm:$0xff] }
0x415a   :  { %16270 = vtanh.f32 %v11780_v44  ;;  %v11781_v15 = vsub.f32 0.0, %v11780_v44 }
0x415c   :  { %v11782_v28 = vmul.f32 1.442695, %v11781_v15  ;;  %v16387_v15 = vld [vmem:[%s21218_s14] ss:$0 sm:$0xff] }
0x415e   :  { %16272 = vpow2.f32 %v11782_v28 }
0x4164   :  { %v16271_v59 = vpop.eup %16270 }
0x4165   :  { %11790 = vrot.lane.b32.xlu1 %v16271_v59, %s16396_s22 }
0x4168   :  { %v16273_v21 = vpop.eup %16272 }
0x4169   :  { %v11784_v14 = vadd.f32 1.0, %v16273_v21 }
0x416b   :  { %16274 = vrcp.f32 %v11784_v14 }
0x4175   :  { %v16275_v57 = vpop.eup %16274 }
0x4176   :  { %v11805_v38 = vmul.f32 %v16275_v57, %v19742_v55  ;;  %v11788_v3 = vmul.f32 %v16275_v57, %v19740_v18 }
0x41d7   :  { %v11791_v10 = vpop.permute.xlu1 %11790 }
0x41d8   :  { %v11793_v6 = vmul.f32 %v16275_v57, %v11791_v10 }
0x41da   :  { %11795 = vrot.lane.b32.xlu0 %v11793_v6, %s16391_s26 }
0x424c   :  { %v11796_v20 = vpop.permute.xlu0 %11795 }
0x424d   :  { %v20261_v4 = vadd.f32 %v11796_v20, %v11788_v3  ;;  %v20263_v12 = vadd.f32 %v11805_v38, %v11796_v20 }
0x424f   :  { %16276 = vtanh.f32 %v20261_v4 }
0x4250   :  { %16278 = vtanh.f32 %v20263_v12 }
0x4259   :  { %v16277_v9 = vpop.eup %16276 }
0x425a   :  { %v16279_v19 = vpop.eup %16278  ;;  %11801 = vrot.lane.b32.xlu1 %v16277_v9, %s16398_s17 }
0x425b   :  { %11809 = vrot.lane.b32.xlu0 %v16279_v19, %s16398_s17 }
0x42cc   :  { %v11802_v5 = vpop.permute.xlu1 %11801 }
0x42cd   :  { %v11810_v41 = vpop.permute.xlu0 %11809  ;;  %v20269_v55 = vmul.f32 %v16275_v57, %v11802_v5 }
0x42ce   :  { %v11812_v18 = vmul.f32 %v16275_v57, %v11810_v41 }
0x42cf   :  { %11814 = vrot.lane.b32.xlu1 %v20269_v55, %s16397_s5 }
0x42d0   :  { %11818 = vrot.lane.b32.xlu0 %v11812_v18, %s16398_s17  ;;  %v12072_v3 = vrot.slane %v11812_v18, %v17138_v39  ;;  %v12065_v20 = vcombine.high %v11812_v18, %v11812_v18 }
0x42d2   :  { %v12080_v9 = vcombine.high %v12072_v3, %v12072_v3  ;;  %v12079_v41 = vrot.slane %v12065_v20, %v17138_v39 }
0x42d3   :  { %11822 = vrot.lane.b32.xlu1 %v19903_v2, %s16397_s5 }
0x42d4   :  { %11825 = vrot.lane.b32.xlu0 %v19823_v35, %s16398_s17  ;;  %v21460_v35 = vld [vmem:[#allocation15_spill] sm:$0xff]  ;;  %v12095_v20 = vrot.slane %v12079_v41, %v17138_v39 }
0x4341   :  { %v11815_v37 = vpop.permute.xlu1 %11814 }
0x4342   :  { %v11819_v17 = vpop.permute.xlu0 %11818 }
0x4343   :  { %v11821_v25 = vsel %vm277_vm1, %v11815_v37, %v11819_v17  ;;  %v12102_v17 = vrot.slane %v12080_v9, %v17138_v39  ;;  %v12111_v9 = vcombine.high %v12095_v20, %v12095_v20 }
0x4344   :  { %15538 = vmatmul.mubr.msk.f32.vlgmr.msra.gmra.mrb[46].mxu1 %vm298_vm2, %v11821_v25 }
0x4345   :  { %15784 = vmatpush3.bf16.msra.mxu1 %v21445_v33  ;;  %v11823_v51 = vpop.permute.xlu1 %11822  ;;  %15562 = vmatprep.mubr.msk.f32.mxu1 %vm16394_vm11, %v21351_v56 }
0x4346   :  { %v11826_v52 = vpop.permute.xlu0 %11825  ;;  %15785 = vmatprep.subr.bf16.mxu1 %v21352_v50 }
0x4347   :  { %v11828_v2 = vsel %vm277_vm1, %v11823_v51, %v11826_v52  ;;  %v12221_v51 = vrot.slane %v12102_v17, %v16734_v23  ;;  %v12112_v52 = vcombine.high %v12102_v17, %v12102_v17 }
0x4348   :  { %15527 = vmatmul.mubr.msk.f32.vlgmr.msra.gmra.mrb[42].mxu0 %vm298_vm2, %v11828_v2 }
0x4349   :  { %15787 = vmatpush3.bf16.msra.mxu1 %v21460_v35  ;;  %15777 = vmatpush3.bf16.msra.mxu0 %v21461_v1  ;;  %v12229_v18 = vrot.slane %v12112_v52, %v16734_v23  ;;  %v21463_v1 = vld [vmem:[#allocation20_spill] sm:$0xff] }
0x434a   :  { %15779 = vmatprep.subr.bf16.mxu0 %v21462_v0  ;;  %15565 = vmatprep.subr.mxu1 %v21351_v56 }
0x434c   :  { %15563 = vmatmul.mubr.msk.f32.vlgmr.msra.gmra.mrb[48].mxu1 %vm298_vm2, %v11821_v25  ;;  %v12081_v25 = vcombine.high %v12079_v41, %v12079_v41 }
0x434d   :  { %15781 = vmatpush3.bf16.msra.mxu0 %v21462_v0  ;;  %15566 = vmatpush3.msra.mxu1 %v20061_v22 }
0x434e   :  { %15567 = vmatprep.mubr.msk.f32.mxu1 %vm16394_vm11, %v21351_v56  ;;  %15794 = vmatprep.subr.bf16.mxu1 %v21352_v50  ;;  %v12109_v2 = vrot.slane %v12081_v25, %v17138_v39 }
0x434f   :  { %15788 = vmatprep.subr.bf16.mxu0 %v21352_v50 }
0x4350   :  { %v12237_v35 = vrot.slane %v12109_v2, %v16734_v23 }
0x4417   :  { %v11971_v33 = vpop.f32.mrb[46].mxu1 }
0x4418   :  { %v15539_v27 = vpop.f32.mrb[47].mxu1 }
0x441b   :  { %v11898_v43 = vpop.f32.mrb[42].mxu0 }
0x441c   :  { %v11972_v44 = vadd.f32 %v11971_v33, %v11898_v43  ;;  %v15528_v59 = vpop.f32.mrb[43].mxu0  ;;  %v21464_v33 = vld [vmem:[#allocation14_spill] sm:$0xff] }
0x441e   :  { %v11975_v28 = vadd.f32 %v16387_v15, %v11972_v44  ;;  %v12113_v15 = vcombine.high %v12109_v2, %v12109_v2 }
0x441f   :  { %v20300_v21 = vpop.f32.mrb[48].mxu1 }
0x4420   :  { %16280 = vtanh.f32 %v11975_v28  ;;  %v15564_v22 = vpop.f32.mrb[49].mxu1  ;;  %v11976_v57 = vsub.f32 0.0, %v11975_v28 }
0x4421   :  { %v12088_v22 = vrot.slane %v12072_v3, %v17138_v39  ;;  %v12233_v3 = vrot.slane %v12095_v20, %v16734_v23 }
0x4422   :  { %v11977_v10 = vmul.f32 1.442695, %v11976_v57  ;;  %v12245_v57 = vrot.slane %v12113_v15, %v16734_v23 }
0x4424   :  { %16282 = vpow2.f32 %v11977_v10  ;;  %v12217_v10 = vrot.slane %v12088_v22, %v16734_v23 }
0x442a   :  { %v16281_v14 = vpop.eup %16280 }
0x442b   :  { %11985 = vrot.lane.b32.xlu1 %v16281_v14, %s16396_s22 }
0x442e   :  { %v16283_v6 = vpop.eup %16282 }
0x442f   :  { %v11979_v38 = vadd.f32 1.0, %v16283_v6  ;;  %v12110_v6 = vcombine.high %v12088_v22, %v12088_v22 }
0x4431   :  { %16284 = vrcp.f32 %v11979_v38  ;;  %v12225_v38 = vrot.slane %v12110_v6, %v16734_v23 }
0x443b   :  { %v20304_v19 = vpop.eup %16284 }
0x443c   :  { %v12000_v0 = vmul.f32 %v20304_v19, %v21463_v1  ;;  %v11983_v27 = vmul.f32 %v20304_v19, %v21464_v33 }
0x449d   :  { %v11986_v5 = vpop.permute.xlu1 %11985 }
0x449e   :  { %v11988_v37 = vmul.f32 %v20304_v19, %v11986_v5  ;;  %v12241_v5 = vrot.slane %v12111_v9, %v16734_v23 }
0x44a0   :  { %11990 = vrot.lane.b32.xlu0 %v11988_v37, %s16391_s26 }
0x44a4   :  { %12248 = vrot.lane.b32.xlu0 %v12221_v51, %s16400_s23 }
0x44a8   :  { %12252 = vrot.lane.b32.xlu0 %v12229_v18, %s16400_s23 }
0x44ac   :  { %12256 = vrot.lane.b32.xlu0 %v12237_v35, %s16400_s23 }
0x4512   :  { %v11991_v43 = vpop.permute.xlu0 %11990 }
0x4513   :  { %v20321_v44 = vadd.f32 %v11991_v43, %v11983_v27  ;;  %v20323_v59 = vadd.f32 %v12000_v0, %v11991_v43 }
0x4515   :  { %21465 = vst [vmem:[#allocation15_spill] sm:$0xff] %v20321_v44  ;;  %16286 = vtanh.f32 %v20321_v44 }
0x4516   :  { %16288 = vtanh.f32 %v20323_v59 }
0x451f   :  { %v16287_v28 = vpop.eup %16286 }
0x4520   :  { %v16289_v14 = vpop.eup %16288  ;;  %11996 = vrot.lane.b32.xlu0 %v16287_v28, %s16398_s17 }
0x4521   :  { %12004 = vrot.lane.b32.xlu1 %v16289_v14, %s16398_s17  ;;  %v12456_v14 = vrot.slane %v20263_v12, %v17138_v39 }
0x4523   :  { %v12464_v20 = vcombine.high %v12456_v14, %v12456_v14  ;;  %v12472_v9 = vrot.slane %v12456_v14, %v17138_v39 }
0x4524   :  { %12260 = vrot.lane.b32.xlu0 %v12245_v57, %s16400_s23 }
0x4525   :  { %12246 = vrot.lane.b32.xlu1 %v12217_v10, %s16400_s23 }
0x4529   :  { %12250 = vrot.lane.b32.xlu1 %v12225_v38, %s16400_s23 }
0x452d   :  { %12254 = vrot.lane.b32.xlu1 %v12233_v3, %s16400_s23 }
0x4531   :  { %12258 = vrot.lane.b32.xlu1 %v12241_v5, %s16400_s23 }
0x4593   :  { %v12005_v37 = vpop.permute.xlu1 %12004 }
0x4594   :  { %v20342_v17 = vmul.f32 %v20304_v19, %v12005_v37  ;;  %v12486_v37 = vrot.slane %v12464_v20, %v17138_v39 }
0x4596   :  { %v12165_v25 = vcombine.high %v20342_v17, %v20342_v17  ;;  %v12172_v41 = vrot.slane %v20342_v17, %v17138_v39 }
0x4598   :  { %v12179_v51 = vrot.slane %v12165_v25, %v17138_v39  ;;  %v12180_v52 = vcombine.high %v12172_v41, %v12172_v41  ;;  %v12188_v18 = vrot.slane %v12172_v41, %v17138_v39  ;;  %v12556_v25 = vrot.slane %v20323_v59, %v17138_v39 }
0x4599   :  { %v12601_v41 = vrot.slane %v12472_v9, %v16734_v23 }
0x459a   :  { %v12313_v2 = vrot.slane %v12188_v18, %v16734_v23  ;;  %v12202_v35 = vrot.slane %v12180_v52, %v17138_v39  ;;  %v12210_v1 = vcombine.high %v12188_v18, %v12188_v18  ;;  %v12181_v0 = vcombine.high %v12179_v51, %v12179_v51 }
0x459b   :  { %v12195_v15 = vrot.slane %v12179_v51, %v17138_v39  ;;  %v12494_v51 = vcombine.high %v12472_v9, %v12472_v9  ;;  %v12449_v52 = vcombine.high %v20263_v12, %v20263_v12  ;;  %v12605_v18 = vrot.slane %v12486_v37, %v16734_v23 }
0x459c   :  { %12342 = vrot.lane.b32.xlu1 %v12313_v2, %s16400_s23  ;;  %v12317_v33 = vrot.slane %v12202_v35, %v16734_v23  ;;  %v12212_v27 = vcombine.high %v12202_v35, %v12202_v35  ;;  %v12321_v43 = vrot.slane %v12210_v1, %v16734_v23  ;;  %v12209_v22 = vrot.slane %v12181_v0, %v17138_v39 }
0x459d   :  { %v12329_v57 = vrot.slane %v12195_v15, %v16734_v23  ;;  %v12211_v10 = vcombine.high %v12195_v15, %v12195_v15  ;;  %v12496_v2 = vcombine.high %v12486_v37, %v12486_v37  ;;  %v12564_v35 = vcombine.high %v12556_v25, %v12556_v25 }
0x459e   :  { %12344 = vrot.lane.b32.xlu0 %v12317_v33, %s16400_s23  ;;  %v12325_v28 = vrot.slane %v12212_v27, %v16734_v23  ;;  %v12333_v6 = vrot.slane %v12209_v22, %v16734_v23  ;;  %v12213_v38 = vcombine.high %v12209_v22, %v12209_v22  ;;  %v12609_v1 = vrot.slane %v12494_v51, %v16734_v23 }
0x459f   :  { %v12337_v3 = vrot.slane %v12211_v10, %v16734_v23  ;;  %v12572_v0 = vrot.slane %v12556_v25, %v17138_v39  ;;  %v12613_v33 = vrot.slane %v12496_v2, %v16734_v23  ;;  %v12586_v27 = vrot.slane %v12564_v35, %v17138_v39 }
0x45a0   :  { %12346 = vrot.lane.b32.xlu1 %v12321_v43, %s16400_s23  ;;  %v12341_v5 = vrot.slane %v12213_v38, %v16734_v23  ;;  %v12463_v43 = vrot.slane %v12449_v52, %v17138_v39  ;;  %v12549_v22 = vcombine.high %v20323_v59, %v20323_v59 }
0x45a1   :  { %v12697_v15 = vrot.slane %v12572_v0, %v16734_v23  ;;  %v12701_v14 = vrot.slane %v12586_v27, %v16734_v23 }
0x45a2   :  { %12348 = vrot.lane.b32.xlu0 %v12325_v28, %s16400_s23  ;;  %v12594_v28 = vcombine.high %v12572_v0, %v12572_v0  ;;  %v12465_v10 = vcombine.high %v12463_v43, %v12463_v43  ;;  %v12479_v38 = vrot.slane %v12463_v43, %v17138_v39  ;;  %v12563_v9 = vrot.slane %v12549_v22, %v17138_v39 }
0x45a4   :  { %12350 = vrot.lane.b32.xlu1 %v12329_v57, %s16400_s23  ;;  %v12596_v57 = vcombine.high %v12586_v27, %v12586_v27  ;;  %v12495_v37 = vcombine.high %v12479_v38, %v12479_v38  ;;  %v12565_v51 = vcombine.high %v12563_v9, %v12563_v9 }
0x45a6   :  { %12352 = vrot.lane.b32.xlu0 %v12333_v6, %s16400_s23  ;;  %v12705_v6 = vrot.slane %v12594_v28, %v16734_v23  ;;  %v12709_v20 = vrot.slane %v12596_v57, %v16734_v23  ;;  %v12625_v52 = vrot.slane %v12495_v37, %v16734_v23  ;;  %v12593_v35 = vrot.slane %v12565_v51, %v17138_v39  ;;  %v12249_v28 = vpop.permute.xlu0 %12248  ;;  %v12247_v57 = vpop.permute.xlu1 %12246 }
0x45a7   :  { %v12015_v37 = vrot.slane %v20269_v55, %v17138_v39 }
0x45a8   :  { %12354 = vrot.lane.b32.xlu1 %v12337_v3, %s16400_s23  ;;  %v12493_v3 = vrot.slane %v12465_v10, %v17138_v39  ;;  %v12597_v27 = vcombine.high %v12593_v35, %v12593_v35 }
0x45aa   :  { %12356 = vrot.lane.b32.xlu0 %v12341_v5, %s16400_s23  ;;  %v12617_v5 = vrot.slane %v12479_v38, %v16734_v23  ;;  %v12621_v25 = vrot.slane %v12493_v3, %v16734_v23  ;;  %v12253_v22 = vpop.permute.xlu0 %12252  ;;  %v12251_v38 = vpop.permute.xlu1 %12250 }
0x45ac   :  { %12630 = vrot.lane.b32.xlu1 %v12601_v41, %s16400_s23  ;;  %v12497_v41 = vcombine.high %v12493_v3, %v12493_v3 }
0x45ae   :  { %12632 = vrot.lane.b32.xlu0 %v12605_v18, %s16400_s23  ;;  %v12579_v18 = vrot.slane %v12563_v9, %v17138_v39  ;;  %v12629_v2 = vrot.slane %v12497_v41, %v16734_v23 }
0x45b0   :  { %12634 = vrot.lane.b32.xlu1 %v12609_v1, %s16400_s23  ;;  %v12713_v1 = vrot.slane %v12579_v18, %v16734_v23  ;;  %v12595_v0 = vcombine.high %v12579_v18, %v12579_v18  ;;  %v12031_v18 = vrot.slane %v12015_v37, %v17138_v39 }
0x45b2   :  { %12636 = vrot.lane.b32.xlu0 %v12613_v33, %s16400_s23  ;;  %v12717_v33 = vrot.slane %v12593_v35, %v16734_v23  ;;  %v12721_v43 = vrot.slane %v12595_v0, %v16734_v23 }
0x45b4   :  { %12726 = vrot.lane.b32.xlu1 %v12697_v15, %s16400_s23  ;;  %v12725_v15 = vrot.slane %v12597_v27, %v16734_v23 }
0x45b6   :  { %12728 = vrot.lane.b32.xlu0 %v12701_v14, %s16400_s23  ;;  %v20419_v14 = vpop.permute.xlu0 %12256 }
0x45b8   :  { %12730 = vrot.lane.b32.xlu1 %v12705_v6, %s16400_s23 }
0x45ba   :  { %12732 = vrot.lane.b32.xlu0 %v12709_v20, %s16400_s23  ;;  %v11997_v10 = vpop.permute.xlu0 %11996 }
0x45bb   :  { %v20422_v6 = vmul.f32 %v20304_v19, %v11997_v10  ;;  %v12008_v19 = vcombine.high %v20269_v55, %v20269_v55 }
0x45bc   :  { %12638 = vrot.lane.b32.xlu1 %v12617_v5, %s16400_s23  ;;  %v12255_v5 = vpop.permute.xlu1 %12254 }
0x45bd   :  { %v12122_v20 = vrot.slane %v20422_v6, %v17138_v39  ;;  %v12115_v3 = vcombine.high %v20422_v6, %v20422_v6 }
0x45be   :  { %12640 = vrot.lane.b32.xlu0 %v12621_v25, %s16400_s23 }
0x45bf   :  { %v12130_v9 = vcombine.high %v12122_v20, %v12122_v20  ;;  %v12138_v25 = vrot.slane %v12122_v20, %v17138_v39  ;;  %v12129_v41 = vrot.slane %v12115_v3, %v17138_v39  ;;  %v12366_v20 = vsel %vm1773_vm13, %v12031_v18, %v12247_v57 }
0x45c0   :  { %12642 = vrot.lane.b32.xlu1 %v12625_v52, %s16400_s23  ;;  %v12023_v52 = vcombine.high %v12015_v37, %v12015_v37  ;;  %v12259_v35 = vpop.permute.xlu1 %12258  ;;  %v12053_v3 = vcombine.high %v12031_v18, %v12031_v18 }
0x45c1   :  { %v12152_v51 = vrot.slane %v12130_v9, %v17138_v39  ;;  %v12131_v0 = vcombine.high %v12129_v41, %v12129_v41 }
0x45c2   :  { %12644 = vrot.lane.b32.xlu0 %v12629_v2, %s16400_s23  ;;  %v12160_v2 = vcombine.high %v12138_v25, %v12138_v25  ;;  %v12045_v10 = vrot.slane %v12023_v52, %v17138_v39  ;;  %v12368_v60 = vsel %vm1773_vm13, %v12053_v3, %v12251_v38 }
0x45c3   :  { %v12277_v27 = vrot.slane %v12152_v51, %v16734_v23  ;;  %v12159_v18 = vrot.slane %v12131_v0, %v17138_v39 }
0x45c4   :  { %12734 = vrot.lane.b32.xlu1 %v12713_v1, %s16400_s23  ;;  %v12273_v1 = vrot.slane %v12138_v25, %v16734_v23  ;;  %v12281_v37 = vrot.slane %v12160_v2, %v16734_v23  ;;  %v12367_v34 = vsel %vm1773_vm13, %v12045_v10, %v12249_v28  ;;  %v12145_v25 = vrot.slane %v12129_v41, %v17138_v39 }
0x45c6   :  { %12736 = vrot.lane.b32.xlu0 %v12717_v33, %s16400_s23  ;;  %v12261_v33 = vpop.permute.xlu0 %12260  ;;  %v12374_v9 = vsel %vm1782_vm14, %v12366_v20, %v12273_v1  ;;  %v12055_v1 = vcombine.high %v12045_v10, %v12045_v10  ;;  %v12376_v38 = vsel %vm1782_vm14, %v12368_v60, %v12281_v37  ;;  %v12293_v10 = vrot.slane %v12159_v18, %v16734_v23 }
0x45c8   :  { %12738 = vrot.lane.b32.xlu1 %v12721_v43, %s16400_s23  ;;  %v12162_v43 = vcombine.high %v12152_v51, %v12152_v51  ;;  %v12369_v3 = vsel %vm1773_vm13, %v12055_v1, %v12253_v22 }
0x45ca   :  { %12740 = vrot.lane.b32.xlu0 %v12725_v15, %s16400_s23  ;;  %v12022_v15 = vrot.slane %v12008_v19, %v17138_v39  ;;  %v12375_v19 = vsel %vm1782_vm14, %v12367_v34, %v12277_v27  ;;  %v12285_v57 = vrot.slane %v12162_v43, %v16734_v23  ;;  %v12289_v43 = vrot.slane %v12145_v25, %v16734_v23 }
0x45cc   :  { %v12024_v20 = vcombine.high %v12022_v15, %v12022_v15  ;;  %v12038_v2 = vrot.slane %v12022_v15, %v17138_v39  ;;  %v12377_v0 = vsel %vm1782_vm14, %v12369_v3, %v12285_v57 }
0x45ce   :  { %v12370_v34 = vsel %vm1773_vm13, %v12038_v2, %v12255_v5  ;;  %v12052_v60 = vrot.slane %v12024_v20, %v17138_v39  ;;  %v12054_v37 = vcombine.high %v12038_v2, %v12038_v2 }
0x45cf   :  { %v12378_v5 = vsel %vm1782_vm14, %v12370_v34, %v12289_v43 }
0x45d0   :  { %v12056_v2 = vcombine.high %v12052_v60, %v12052_v60 }
0x460e   :  { %v12343_v55 = vpop.permute.xlu1 %12342 }
0x460f   :  { %v12382_v51 = vsel %vm1791_vm15, %v12374_v9, %v12343_v55  ;;  %v12161_v55 = vcombine.high %v12145_v25, %v12145_v25  ;;  %v12163_v9 = vcombine.high %v12159_v18, %v12159_v18 }
0x4610   :  { %12782 = vrot.lane.b32.xlu1 %v12382_v51, %s16397_s5  ;;  %v12345_v52 = vpop.permute.xlu0 %12344 }
0x4611   :  { %v12383_v28 = vsel %vm1791_vm15, %v12375_v19, %v12345_v52  ;;  %v12371_v19 = vsel %vm1773_vm13, %v12052_v60, %v20419_v14  ;;  %v12372_v52 = vsel %vm1773_vm13, %v12054_v37, %v12259_v35  ;;  %v12297_v1 = vrot.slane %v12161_v55, %v16734_v23 }
0x4612   :  { %v12347_v41 = vpop.permute.xlu1 %12346  ;;  %12784 = vrot.lane.b32.xlu0 %v12383_v28, %s16397_s5  ;;  %v12379_v25 = vsel %vm1782_vm14, %v12371_v19, %v12293_v10  ;;  %v12301_v20 = vrot.slane %v12163_v9, %v16734_v23  ;;  %v12373_v14 = vsel %vm1773_vm13, %v12056_v2, %v12261_v33  ;;  %v12506_v19 = vrot.slane %v20321_v44, %v17138_v39 }
0x4613   :  { %v12384_v27 = vsel %vm1791_vm15, %v12376_v38, %v12347_v41  ;;  %v12380_v38 = vsel %vm1782_vm14, %v12372_v52, %v12297_v1  ;;  %v12398_v52 = vrot.slane %v20261_v4, %v17138_v39 }
0x4614   :  { %12786 = vrot.lane.b32.xlu1 %v12384_v27, %s16397_s5  ;;  %v12349_v15 = vpop.permute.xlu0 %12348  ;;  %v12381_v3 = vsel %vm1782_vm14, %v12373_v14, %v12301_v20  ;;  %v12391_v20 = vcombine.high %v20261_v4, %v20261_v4 }
0x4615   :  { %v12385_v22 = vsel %vm1791_vm15, %v12377_v0, %v12349_v15  ;;  %v12406_v1 = vcombine.high %v12398_v52, %v12398_v52  ;;  %v12414_v14 = vrot.slane %v12398_v52, %v17138_v39 }
0x4616   :  { %v12351_v51 = vpop.permute.xlu1 %12350  ;;  %12788 = vrot.lane.b32.xlu0 %v12385_v22, %s16397_s5 }
0x4617   :  { %v12386_v57 = vsel %vm1791_vm15, %v12378_v5, %v12351_v51  ;;  %v12436_v52 = vcombine.high %v12414_v14, %v12414_v14 }
0x4618   :  { %12790 = vrot.lane.b32.xlu1 %v12386_v57, %s16397_s5  ;;  %v12353_v18 = vpop.permute.xlu0 %12352 }
0x4619   :  { %v12387_v28 = vsel %vm1791_vm15, %v12379_v25, %v12353_v18  ;;  %v12499_v25 = vcombine.high %v20321_v44, %v20321_v44  ;;  %v12514_v18 = vcombine.high %v12506_v19, %v12506_v19 }
0x461a   :  { %v12355_v41 = vpop.permute.xlu1 %12354  ;;  %12792 = vrot.lane.b32.xlu0 %v12387_v28, %s16397_s5  ;;  %v12522_v28 = vrot.slane %v12506_v19, %v17138_v39 }
0x461b   :  { %v12388_v35 = vsel %vm1791_vm15, %v12380_v38, %v12355_v41  ;;  %v12536_v41 = vrot.slane %v12514_v18, %v17138_v39  ;;  %v12513_v38 = vrot.slane %v12499_v25, %v17138_v39 }
0x461c   :  { %12794 = vrot.lane.b32.xlu1 %v12388_v35, %s16397_s5  ;;  %v12357_v34 = vpop.permute.xlu0 %12356  ;;  %v12428_v35 = vrot.slane %v12406_v1, %v17138_v39  ;;  %v12657_v19 = vrot.slane %v12522_v28, %v16734_v23 }
0x461d   :  { %v12389_v27 = vsel %vm1791_vm15, %v12381_v3, %v12357_v34  ;;  %v12405_v3 = vrot.slane %v12391_v20, %v17138_v39  ;;  %v12661_v18 = vrot.slane %v12536_v41, %v16734_v23  ;;  %v12546_v25 = vcombine.high %v12536_v41, %v12536_v41 }
0x461e   :  { %12796 = vrot.lane.b32.xlu0 %v12389_v27, %s16397_s5  ;;  %v12631_v43 = vpop.permute.xlu1 %12630  ;;  %v12544_v27 = vcombine.high %v12522_v28, %v12522_v28  ;;  %v12515_v16 = vcombine.high %v12513_v38, %v12513_v38  ;;  %v12438_v45 = vcombine.high %v12428_v35, %v12428_v35 }
0x461f   :  { %v12750_v54 = vsel %vm1773_vm13, %v12414_v14, %v12631_v43  ;;  %v12407_v1 = vcombine.high %v12405_v3, %v12405_v3 }
0x4620   :  { %v12633_v0 = vpop.permute.xlu0 %12632  ;;  %v12758_v20 = vsel %vm1782_vm14, %v12750_v54, %v12657_v19  ;;  %v12665_v43 = vrot.slane %v12544_v27, %v16734_v23  ;;  %v12543_v27 = vrot.slane %v12515_v16, %v17138_v39 }
0x4621   :  { %v12751_v48 = vsel %vm1773_vm13, %v12428_v35, %v12633_v0  ;;  %v12529_v0 = vrot.slane %v12513_v38, %v17138_v39 }
0x4622   :  { %v12635_v15 = vpop.permute.xlu1 %12634  ;;  %v12759_v44 = vsel %vm1782_vm14, %v12751_v48, %v12661_v18  ;;  %v12669_v48 = vrot.slane %v12546_v25, %v16734_v23 }
0x4623   :  { %v12752_v28 = vsel %vm1773_vm13, %v12436_v52, %v12635_v15  ;;  %v12435_v15 = vrot.slane %v12407_v1, %v17138_v39  ;;  %v12673_v16 = vrot.slane %v12529_v0, %v16734_v23 }
0x4624   :  { %v12637_v10 = vpop.permute.xlu0 %12636 }
0x4625   :  { %v12753_v41 = vsel %vm1773_vm13, %v12438_v45, %v12637_v10  ;;  %v12421_v45 = vrot.slane %v12405_v3, %v17138_v39 }
0x4626   :  { %v12727_v55 = vpop.permute.xlu1 %12726 }
0x4627   :  { %v12766_v14 = vsel %vm1791_vm15, %v12758_v20, %v12727_v55  ;;  %v12760_v55 = vsel %vm1782_vm14, %v12752_v28, %v12665_v43  ;;  %v12677_v20 = vrot.slane %v12543_v27, %v16734_v23  ;;  %v12547_v43 = vcombine.high %v12543_v27, %v12543_v27 }
0x4628   :  { %v12729_v9 = vpop.permute.xlu0 %12728 }
0x4629   :  { %v12767_v35 = vsel %vm1791_vm15, %v12759_v44, %v12729_v9  ;;  %v12761_v9 = vsel %vm1782_vm14, %v12753_v41, %v12669_v48 }
0x462a   :  { %v12731_v60 = vpop.permute.xlu1 %12730 }
0x462b   :  { %v12768_v18 = vsel %vm1791_vm15, %v12760_v55, %v12731_v60  ;;  %v12437_v60 = vcombine.high %v12421_v45, %v12421_v45 }
0x462c   :  { %v12733_v37 = vpop.permute.xlu0 %12732 }
0x462d   :  { %v12769_v3 = vsel %vm1791_vm15, %v12761_v9, %v12733_v37  ;;  %v12439_v37 = vcombine.high %v12435_v15, %v12435_v15 }
0x462e   :  { %v12639_v33 = vpop.permute.xlu1 %12638 }
0x462f   :  { %v12754_v25 = vsel %vm1773_vm13, %v12421_v45, %v12639_v33  ;;  %v12685_v45 = vrot.slane %v12547_v43, %v16734_v23 }
0x4630   :  { %v12641_v22 = vpop.permute.xlu0 %12640 }
0x4631   :  { %v12755_v52 = vsel %vm1773_vm13, %v12435_v15, %v12641_v22  ;;  %v12762_v22 = vsel %vm1782_vm14, %v12754_v25, %v12673_v16 }
0x4632   :  { %v20483_v51 = vpop.permute.xlu1 %12642 }
0x4634   :  { %v20485_v5 = vpop.permute.xlu0 %12644 }
0x4636   :  { %v20491_v57 = vpop.permute.xlu1 %12734 }
0x4637   :  { %v12770_v48 = vsel %vm1791_vm15, %v12762_v22, %v20491_v57 }
0x4638   :  { %v20497_v2 = vpop.permute.xlu0 %12736 }
0x463a   :  { %v20505_v34 = vpop.permute.xlu1 %12738 }
0x463c   :  { %v20509_v49 = vpop.permute.xlu0 %12740 }
0x4682   :  { %v12783_v58 = vpop.permute.xlu1 %12782 }
0x4683   :  { %14820 = vst.msk [vmem:[%s21219_s16 + $0xc0] sm:$0xf] %vm14771_vm12, %v12783_v58  ;;  %v12806_v38 = vsel %vm277_vm1, %v12783_v58, %v12766_v14  ;;  %v12545_v58 = vcombine.high %v12529_v0, %v12529_v0  ;;  %v12763_v14 = vsel %vm1782_vm14, %v12755_v52, %v12677_v20 }
0x4684   :  { %v12785_v54 = vpop.permute.xlu0 %12784  ;;  %v12771_v27 = vsel %vm1791_vm15, %v12763_v14, %v20497_v2 }
0x4685   :  { %v12807_v19 = vsel %vm277_vm1, %v12785_v54, %v12767_v35  ;;  %14821 = vst.msk [vmem:[%s21219_s16 + $0xc4] sm:$0xf] %vm14771_vm12, %v12785_v54  ;;  %v12756_v35 = vsel %vm1773_vm13, %v12437_v60, %v20483_v51  ;;  %v12757_v54 = vsel %vm1773_vm13, %v12439_v37, %v20485_v5  ;;  %v21466_v5 = vld [vmem:[#allocation16_spill] sm:$0xff] }
0x4686   :  { %v12822_v10 = vcombine.low %v12806_v38, %v12807_v19  ;;  %v12787_v44 = vpop.permute.xlu1 %12786  ;;  %v12681_v19 = vrot.slane %v12545_v58, %v16734_v23 }
0x4687   :  { %14822 = vst.msk [vmem:[%s21219_s16 + $0xc8] sm:$0xf] %vm14771_vm12, %v12787_v44  ;;  %v12808_v0 = vsel %vm277_vm1, %v12787_v44, %v12768_v18  ;;  %v12765_v44 = vsel %vm1782_vm14, %v12757_v54, %v12685_v45 }
0x4688   :  { %15548 = vmatprep.mubr.msk.f32.mxu0 %vm298_vm2, %v12822_v10  ;;  %v12789_v1 = vpop.permute.xlu0 %12788  ;;  %v12764_v10 = vsel %vm1782_vm14, %v12756_v35, %v12681_v19  ;;  %v12773_v9 = vsel %vm1791_vm15, %v12765_v44, %v20509_v49 }
0x4689   :  { %v12809_v28 = vsel %vm277_vm1, %v12789_v1, %v12769_v3  ;;  %14823 = vst.msk [vmem:[%s21219_s16 + $0xcc] sm:$0xf] %vm14771_vm12, %v12789_v1  ;;  %v12772_v55 = vsel %vm1791_vm15, %v12764_v10, %v20505_v34  ;;  %v21467_v3 = vld [vmem:[#allocation17_spill] sm:$0xff] }
0x468a   :  { %v12823_v33 = vcombine.low %v12808_v0, %v12809_v28  ;;  %v12791_v41 = vpop.permute.xlu1 %12790 }
0x468b   :  { %14824 = vst.msk [vmem:[%s21219_s16 + $0xd0] sm:$0xf] %vm14771_vm12, %v12791_v41  ;;  %v12810_v15 = vsel %vm277_vm1, %v12791_v41, %v12770_v48 }
0x468c   :  { %15549 = vmatmul.mubr.msk.f32.vlgmr.msra.gmra.mrb[44].mxu0 %vm298_vm2, %v12823_v33  ;;  %v12793_v38 = vpop.permute.xlu0 %12792 }
0x468d   :  { %v12811_v51 = vsel %vm277_vm1, %v12793_v38, %v12771_v27  ;;  %14825 = vst.msk [vmem:[%s21219_s16 + $0xd4] sm:$0xf] %vm14771_vm12, %v12793_v38  ;;  %15790 = vmatpush3.bf16.msra.mxu0 %v21466_v5 }
0x468e   :  { %v12824_v57 = vcombine.low %v12810_v15, %v12811_v51  ;;  %v12795_v2 = vpop.permute.xlu1 %12794  ;;  %15791 = vmatprep.subr.bf16.mxu0 %v21352_v50  ;;  %v16388_v15 = vld [vmem:[%s21211_s7] ss:$0 sm:$0xff] }
0x468f   :  { %14826 = vst.msk [vmem:[%s21219_s16 + $0xd8] sm:$0xf] %vm14771_vm12, %v12795_v2  ;;  %v12812_v58 = vsel %vm277_vm1, %v12795_v2, %v12772_v55 }
0x4690   :  { %15551 = vmatprep.mubr.msk.f32.mxu0 %vm298_vm2, %v12824_v57  ;;  %v12797_v16 = vpop.permute.xlu0 %12796 }
0x4691   :  { %v12813_v18 = vsel %vm277_vm1, %v12797_v16, %v12773_v9  ;;  %14827 = vst.msk [vmem:[%s21219_s16 + $0xdc] sm:$0xf] %vm14771_vm12, %v12797_v16  ;;  %15793 = vmatpush3.bf16.msra.mxu0 %v21467_v3 }
0x4692   :  { %v12825_v25 = vcombine.low %v12812_v58, %v12813_v18 }
0x4694   :  { %15552 = vmatmul.mubr.msk.f32.gmra.mrb[46].mxu0 %vm298_vm2, %v12825_v25 }
0x4695   :  { %15578 = vmatprep.mubr.msk.f32.mxu0 %vm16394_vm11, %v21351_v56 }
0x475f   :  { %v15550_v49 = vpop.f32.mrb[44].mxu0 }
0x4760   :  { %v12924_v34 = vcombine.high %v15550_v49, %v15550_v49  ;;  %v12933_v52 = vcombine.low %v15550_v49, %v15550_v49  ;;  %v12900_v1 = vpop.f32.mrb[45].mxu0 }
0x4761   :  { %v12923_v20 = vcombine.high %v12900_v1, %v12900_v1  ;;  %v12931_v43 = vcombine.low %v12900_v1, %v12900_v1 }
0x4762   :  { %v12949_v0 = vsel %vm420_vm3, %v15550_v49, %v12933_v52  ;;  %v12958_v28 = vadd.f32 %v12924_v34, %v16663_v62 }
0x4763   :  { %v12947_v60 = vsel %vm420_vm3, %v12900_v1, %v12931_v43  ;;  %v12956_v37 = vadd.f32 %v12923_v20, %v16665_v63  ;;  %v12957_v33 = vadd.f32 %v12949_v0, %v16667_v7 }
0x4764   :  { %16290 = vtanh.f32 %v12958_v28  ;;  %v12955_v41 = vadd.f32 %v12947_v60, %v16669_v8 }
0x4766   :  { %16292 = vtanh.f32 %v12955_v41 }
0x4767   :  { %16294 = vtanh.f32 %v12956_v37  ;;  %v15553_v22 = vpop.f32.mrb[46].mxu0 }
0x4768   :  { %16296 = vtanh.f32 %v12957_v33  ;;  %v12926_v14 = vcombine.high %v15553_v22, %v15553_v22  ;;  %v12937_v35 = vcombine.low %v15553_v22, %v15553_v22  ;;  %v12910_v54 = vpop.f32.mrb[47].mxu0 }
0x4769   :  { %v12925_v48 = vcombine.high %v12910_v54, %v12910_v54  ;;  %v12935_v27 = vcombine.low %v12910_v54, %v12910_v54 }
0x476a   :  { %v12953_v62 = vsel %vm420_vm3, %v15553_v22, %v12937_v35  ;;  %v12962_v19 = vadd.f32 %v12926_v14, %v16684_v40 }
0x476b   :  { %v12961_v38 = vadd.f32 %v12953_v62, %v16679_v30  ;;  %v12951_v63 = vsel %vm420_vm3, %v12910_v54, %v12935_v27  ;;  %v12960_v7 = vadd.f32 %v12925_v48, %v16677_v29 }
0x476c   :  { %v12959_v8 = vadd.f32 %v12951_v63, %v16681_v36 }
0x476d   :  { %16298 = vtanh.f32 %v12961_v38 }
0x476e   :  { %v16291_v45 = vpop.eup %16290  ;;  %16300 = vtanh.f32 %v12959_v8 }
0x476f   :  { %16302 = vtanh.f32 %v12960_v7  ;;  %v12974_v51 = vmul.f32 %v16388_v15, %v16291_v45 }
0x4770   :  { %v16293_v5 = vpop.eup %16292  ;;  %16304 = vtanh.f32 %v12962_v19 }
0x4771   :  { %v16295_v30 = vpop.eup %16294  ;;  %v12988_v57 = vsel %vm78_vm0, %v12974_v51, 0.0  ;;  %v12971_v2 = vmul.f32 %v16388_v15, %v16293_v5 }
0x4772   :  { %v16297_v29 = vpop.eup %16296  ;;  %12989 = vadd.xlane.f32.xlu0 %v12988_v57  ;;  %v12972_v40 = vmul.f32 %v16388_v15, %v16295_v30 }
0x4773   :  { %v12979_v36 = vsel %vm78_vm0, %v12971_v2, 0.0  ;;  %v12973_v44 = vmul.f32 %v16388_v15, %v16297_v29 }
0x4774   :  { %12980 = vadd.xlane.f32.xlu1 %v12979_v36  ;;  %v12982_v10 = vsel %vm78_vm0, %v12972_v40, 0.0 }
0x4775   :  { %v12985_v58 = vsel %vm78_vm0, %v12973_v44, 0.0 }
0x4776   :  { %12983 = vadd.xlane.f32.xlu0 %v12982_v10 }
0x4777   :  { %v16299_v55 = vpop.eup %16298 }
0x4778   :  { %v16301_v9 = vpop.eup %16300  ;;  %v12977_v34 = vmul.f32 %v16388_v15, %v16299_v55 }
0x4779   :  { %v16303_v16 = vpop.eup %16302  ;;  %v12975_v18 = vmul.f32 %v16388_v15, %v16301_v9 }
0x477a   :  { %v16305_v3 = vpop.eup %16304  ;;  %12986 = vadd.xlane.f32.xlu0 %v12985_v58  ;;  %v12976_v25 = vmul.f32 %v16388_v15, %v16303_v16  ;;  %v12997_v20 = vsel %vm78_vm0, %v12977_v34, 0.0 }
0x477b   :  { %v12991_v49 = vsel %vm78_vm0, %v12975_v18, 0.0  ;;  %v12978_v1 = vmul.f32 %v16388_v15, %v16305_v3 }
0x477c   :  { %12992 = vadd.xlane.f32.xlu1 %v12991_v49  ;;  %v12994_v52 = vsel %vm78_vm0, %v12976_v25, 0.0 }
0x477d   :  { %v13000_v43 = vsel %vm78_vm0, %v12978_v1, 0.0 }
0x477e   :  { %12995 = vadd.xlane.f32.xlu0 %v12994_v52 }
0x4780   :  { %12998 = vadd.xlane.f32.xlu1 %v12997_v20 }
0x4782   :  { %13001 = vadd.xlane.f32.xlu0 %v13000_v43 }
0x47ff   :  { %v12990_v0 = vpop.xlane.xlu0 %12989 }
0x4800   :  { %v13006_v41 = vadd.f32 %v12990_v0, %v16707_v47 }
0x4801   :  { %v12981_v28 = vpop.xlane.xlu1 %12980 }
0x4802   :  { %v13003_v33 = vadd.f32 %v12981_v28, %v16707_v47  ;;  %v13034_v38 = vrot.slane %v13006_v41, %v16705_v46 }
0x4803   :  { %v12984_v60 = vpop.xlane.xlu0 %12983 }
0x4804   :  { %v13004_v37 = vadd.f32 %v12984_v60, %v16707_v47  ;;  %v13022_v54 = vrot.slane %v13003_v33, %v16705_v46 }
0x4806   :  { %v13026_v22 = vrot.slane %v13004_v37, %v16705_v46 }
0x4807   :  { %v12987_v14 = vpop.xlane.xlu0 %12986 }
0x4808   :  { %v13005_v35 = vadd.f32 %v12987_v14, %v16707_v47  ;;  %v13051_v63 = vsel %vm542_vm4, %v13026_v22, %v13022_v54 }
0x4809   :  { %v12993_v48 = vpop.xlane.xlu1 %12992 }
0x480a   :  { %v13030_v27 = vrot.slane %v13005_v35, %v16705_v46  ;;  %v13007_v62 = vadd.f32 %v12993_v48, %v16707_v47 }
0x480b   :  { %v12996_v7 = vpop.xlane.xlu0 %12995 }
0x480c   :  { %v13052_v19 = vsel %vm544_vm5, %v13030_v27, %v13051_v63  ;;  %v13038_v8 = vrot.slane %v13007_v62, %v16705_v46  ;;  %v13008_v45 = vadd.f32 %v12996_v7, %v16707_v47 }
0x480d   :  { %v13053_v15 = vsel %vm546_vm6, %v13034_v38, %v13052_v19  ;;  %v12999_v51 = vpop.xlane.xlu1 %12998 }
0x480e   :  { %v13054_v5 = vsel %vm548_vm7, %v13038_v8, %v13053_v15  ;;  %v13042_v30 = vrot.slane %v13008_v45, %v16705_v46  ;;  %v13009_v57 = vadd.f32 %v12999_v51, %v16707_v47 }
0x480f   :  { %v13002_v2 = vpop.xlane.xlu0 %13001 }
0x4810   :  { %v13046_v29 = vrot.slane %v13009_v57, %v16705_v46  ;;  %v13010_v40 = vadd.f32 %v13002_v2, %v16707_v47  ;;  %v13055_v36 = vsel %vm550_vm8, %v13042_v30, %v13054_v5  ;;  %v61_v5 = vld [vmem:[%s21212_s0 + $0x38] sm:$0xff] }
0x4811   :  { %v13263_v30 = vrot.slane %v61_v5, %v16734_v23  ;;  %v13277_v2 = vrot.slane %v61_v5, %v16740_v31 }
0x4812   :  { %v13050_v10 = vrot.slane %v13010_v40, %v16705_v46  ;;  %v13056_v44 = vsel %vm552_vm9, %v13046_v29, %v13055_v36  ;;  %v13284_v29 = vrot.slane %v61_v5, %v16743_v32  ;;  %v13298_v36 = vrot.slane %v61_v5, %v16753_v61 }
0x4814   :  { %v13057_v55 = vsel %vm554_vm10, %v13050_v10, %v13056_v44  ;;  %v13305_v10 = vrot.slane %v61_v5, %v16757_v13 }
0x4815   :  { %v13059_v9 = vsel %vm78_vm0, %v13057_v55, -inf }
0x4816   :  { %13060 = vmax.xlane.f32.xlu1 %v13059_v9 }
0x48a3   :  { %v13061_v16 = vpop.xlane.xlu1 %13060 }
0x48a4   :  { %v13066_v58 = vrot.slane %v13061_v16, %v16734_v23  ;;  %v13070_v18 = vrot.slane %v13061_v16, %v16737_v24  ;;  %v13074_v3 = vrot.slane %v13061_v16, %v16740_v31  ;;  %v13082_v47 = vrot.slane %v13061_v16, %v16749_v42 }
0x48a5   :  { %v13090_v25 = vrot.slane %v13061_v16, %v16757_v13  ;;  %v13078_v52 = vrot.slane %v13061_v16, %v16743_v32  ;;  %v13086_v22 = vrot.slane %v13061_v16, %v16753_v61  ;;  %v13094_v27 = vrot.slane %v13061_v16, %v21371_v53 }
0x48a6   :  { %v13103_v49 = vsub.f32 %v13003_v33, %v13066_v58  ;;  %v13104_v34 = vsub.f32 %v13004_v37, %v13070_v18  ;;  %v13105_v1 = vsub.f32 %v13005_v35, %v13074_v3  ;;  %v13107_v20 = vsub.f32 %v13007_v62, %v13082_v47 }
0x48a7   :  { %v13109_v28 = vsub.f32 %v13009_v57, %v13090_v25  ;;  %v13106_v14 = vsub.f32 %v13006_v41, %v13078_v52  ;;  %v13108_v33 = vsub.f32 %v13008_v45, %v13086_v22  ;;  %v13110_v35 = vsub.f32 %v13010_v40, %v13094_v27 }
0x48a8   :  { %v13111_v43 = vmul.f32 1.442695, %v13103_v49  ;;  %v13113_v0 = vmul.f32 1.442695, %v13104_v34  ;;  %v13119_v60 = vmul.f32 1.442695, %v13107_v20  ;;  %v13270_v57 = vrot.slane %v61_v5, %v16737_v24 }
0x48a9   :  { %v13115_v54 = vmul.f32 1.442695, %v13105_v1  ;;  %v13123_v48 = vmul.f32 1.442695, %v13109_v28  ;;  %v13117_v37 = vmul.f32 1.442695, %v13106_v14  ;;  %v13291_v40 = vrot.slane %v61_v5, %v16749_v42 }
0x48aa   :  { %16306 = vpow2.f32 %v13111_v43  ;;  %v13121_v62 = vmul.f32 1.442695, %v13108_v33  ;;  %v13125_v41 = vmul.f32 1.442695, %v13110_v35 }
0x48ab   :  { %16308 = vpow2.f32 %v13113_v0 }
0x48ac   :  { %16310 = vpow2.f32 %v13119_v60 }
0x48ad   :  { %16312 = vpow2.f32 %v13115_v54 }
0x48ae   :  { %16314 = vpow2.f32 %v13123_v48 }
0x48af   :  { %16316 = vpow2.f32 %v13117_v37  ;;  %v13312_v37 = vrot.slane %v61_v5, %v21371_v53 }
0x48b0   :  { %16318 = vpow2.f32 %v13121_v62 }
0x48b1   :  { %16320 = vpow2.f32 %v13125_v41 }
0x48b4   :  { %v20655_v38 = vpop.eup %16306 }
0x48b5   :  { %v20657_v63 = vpop.eup %16308  ;;  %13136 = vperm.xlu0 %15813, %v20655_v38  }
0x48b6   :  { %13139 = vperm.xlu1 %15812, %v20657_v63   ;;  %v20661_v7 = vpop.eup %16310 }
0x48b7   :  { %v20663_v19 = vpop.eup %16312 }
0x48b8   :  { %v20667_v8 = vpop.eup %16314 }
0x48b9   :  { %13148 = vperm.xlu0 %15813, %v20661_v7   ;;  %v20669_v45 = vpop.eup %16316 }
0x48ba   :  { %13142 = vperm.xlu1 %15812, %v20663_v19   ;;  %v20673_v15 = vpop.eup %16318 }
0x48bb   :  { %v20676_v51 = vpop.eup %16320 }
0x48bd   :  { %13154 = vperm.xlu0 %15813, %v20667_v8  }
0x48be   :  { %13145 = vperm.xlu1 %15812, %v20669_v45  }
0x48c2   :  { %13151 = vperm.xlu1 %15812, %v20673_v15  }
0x48c6   :  { %13157 = vperm.xlu1 %15812, %v20676_v51  }
0x48ca   :  { %13265 = vbcast.lane.b32.xlu1 %v13263_v30, 256 }
0x48ce   :  { %13272 = vbcast.lane.b32.xlu1 %v13270_v57, 256 }
0x48d2   :  { %13279 = vbcast.lane.b32.xlu1 %v13277_v2, 256 }
0x48d6   :  { %13286 = vbcast.lane.b32.xlu1 %v13284_v29, 256 }
0x48da   :  { %13293 = vbcast.lane.b32.xlu1 %v13291_v40, 256 }
0x48de   :  { %13300 = vbcast.lane.b32.xlu1 %v13298_v36, 256 }
0x48e2   :  { %13307 = vbcast.lane.b32.xlu1 %v13305_v10, 256 }
0x4934   :  { %v13137_v55 = vpop.permute.xlu0 %13136 }
0x4935   :  { %v13140_v44 = vpop.permute.xlu1 %13139  ;;  %v13162_v58 = vrot.slane %v13137_v55, %v16705_v46 }
0x4936   :  { %v13166_v16 = vrot.slane %v13140_v44, %v16705_v46 }
0x4938   :  { %v13149_v3 = vpop.permute.xlu0 %13148  ;;  %v13191_v25 = vsel %vm542_vm4, %v13166_v16, %v13162_v58 }
0x4939   :  { %v13143_v9 = vpop.permute.xlu1 %13142  ;;  %v13178_v1 = vrot.slane %v13149_v3, %v16705_v46 }
0x493a   :  { %v13170_v18 = vrot.slane %v13143_v9, %v16705_v46 }
0x493c   :  { %v13192_v34 = vsel %vm544_vm5, %v13170_v18, %v13191_v25  ;;  %v13155_v43 = vpop.permute.xlu0 %13154 }
0x493d   :  { %v13146_v47 = vpop.permute.xlu1 %13145  ;;  %v13186_v22 = vrot.slane %v13155_v43, %v16705_v46 }
0x493e   :  { %v13174_v49 = vrot.slane %v13146_v47, %v16705_v46 }
0x4940   :  { %v13193_v52 = vsel %vm546_vm6, %v13174_v49, %v13192_v34 }
0x4941   :  { %v13152_v20 = vpop.permute.xlu1 %13151  ;;  %v13194_v28 = vsel %vm548_vm7, %v13178_v1, %v13193_v52 }
0x4942   :  { %v13182_v0 = vrot.slane %v13152_v20, %v16705_v46 }
0x4944   :  { %v13195_v60 = vsel %vm550_vm8, %v13182_v0, %v13194_v28 }
0x4945   :  { %v13158_v14 = vpop.permute.xlu1 %13157  ;;  %v13196_v48 = vsel %vm552_vm9, %v13186_v22, %v13195_v60 }
0x4946   :  { %v13190_v54 = vrot.slane %v13158_v14, %v16705_v46 }
0x4948   :  { %v13197_v27 = vsel %vm554_vm10, %v13190_v54, %v13196_v48 }
0x4949   :  { %v13199_v33 = vsel %vm78_vm0, %v13197_v27, 0.0  ;;  %v13266_v35 = vpop.permute.xlu1 %13265 }
0x494a   :  { %13200 = vadd.xlane.f32.xlu0 %v13199_v33 }
0x494d   :  { %v13273_v62 = vpop.permute.xlu1 %13272 }
0x4951   :  { %v13280_v41 = vpop.permute.xlu1 %13279 }
0x4955   :  { %v13287_v30 = vpop.permute.xlu1 %13286 }
0x4959   :  { %v13294_v29 = vpop.permute.xlu1 %13293 }
0x495d   :  { %v13301_v44 = vpop.permute.xlu1 %13300 }
0x4960   :  { %13314 = vbcast.lane.b32.xlu0 %v13312_v37, 256 }
0x4961   :  { %v13308_v16 = vpop.permute.xlu1 %13307 }
0x49d7   :  { %v13201_v57 = vpop.xlane.xlu0 %13200 }
0x49d8   :  { %v13230_v2 = vrot.slane %v13201_v57, %v16757_v13  ;;  %v13206_v40 = vrot.slane %v13201_v57, %v16734_v23  ;;  %v13210_v36 = vrot.slane %v13201_v57, %v16737_v24  ;;  %v13214_v10 = vrot.slane %v13201_v57, %v16740_v31 }
0x49d9   :  { %v13218_v5 = vrot.slane %v13201_v57, %v16743_v32  ;;  %v13222_v9 = vrot.slane %v13201_v57, %v16749_v42  ;;  %v13226_v31 = vrot.slane %v13201_v57, %v16753_v61 }
0x49da   :  { %16322 = vrcp.f32 %v13230_v2 }
0x49db   :  { %16324 = vrcp.f32 %v13206_v40  ;;  %v13315_v28 = vpop.permute.xlu0 %13314 }
0x49dc   :  { %16326 = vrcp.f32 %v13210_v36 }
0x49dd   :  { %16328 = vrcp.f32 %v13214_v10 }
0x49de   :  { %16330 = vrcp.f32 %v13218_v5 }
0x49df   :  { %16332 = vrcp.f32 %v13222_v9 }
0x49e0   :  { %16334 = vrcp.f32 %v13226_v31 }
0x49e4   :  { %v16323_v55 = vpop.eup %16322 }
0x49e5   :  { %v20713_v13 = vmul.f32 %v16323_v55, %v20667_v8  ;;  %v16325_v58 = vpop.eup %16324  ;;  %v13234_v8 = vrot.slane %v13201_v57, %v21371_v53 }
0x49e6   :  { %v16327_v18 = vpop.eup %16326  ;;  %v20717_v3 = vmul.f32 %v16325_v58, %v20655_v38 }
0x49e7   :  { %v13330_v24 = vmul.f32 %v13308_v16, %v20713_v13  ;;  %v20722_v47 = vmul.f32 %v16327_v18, %v20657_v63  ;;  %v16329_v42 = vpop.eup %16328  ;;  %16336 = vrcp.f32 %v13234_v8  ;;  %v16389_v18 = vld [vmem:[%s21215_s11] ss:$0 sm:$0xff] }
0x49e8   :  { %v13324_v32 = vmul.f32 %v13266_v35, %v20717_v3  ;;  %v20727_v49 = vmul.f32 %v16329_v42, %v20663_v19  ;;  %v16331_v38 = vpop.eup %16330 }
0x49e9   :  { %13429 = vperm.xlu0 %15813, %v13330_v24   ;;  %v13325_v25 = vmul.f32 %v13273_v62, %v20722_v47  ;;  %v20730_v61 = vmul.f32 %v16331_v38, %v20669_v45  ;;  %v16333_v63 = vpop.eup %16332 }
0x49ea   :  { %13411 = vperm.xlu1 %15812, %v13324_v32   ;;  %v13326_v34 = vmul.f32 %v13280_v41, %v20727_v49  ;;  %v20735_v1 = vmul.f32 %v16333_v63, %v20661_v7  ;;  %v16335_v53 = vpop.eup %16334 }
0x49eb   :  { %v13327_v52 = vmul.f32 %v13287_v30, %v20730_v61  ;;  %v20739_v20 = vmul.f32 %v16335_v53, %v20673_v15 }
0x49ec   :  { %v13328_v19 = vmul.f32 %v13294_v29, %v20735_v1 }
0x49ed   :  { %v13329_v45 = vmul.f32 %v13301_v44, %v20739_v20 }
0x49ee   :  { %13414 = vperm.xlu1 %15812, %v13325_v25  }
0x49f1   :  { %v16337_v43 = vpop.eup %16336 }
0x49f2   :  { %13417 = vperm.xlu1 %15812, %v13326_v34   ;;  %v20743_v0 = vmul.f32 %v16337_v43, %v20676_v51 }
0x49f4   :  { %v13331_v60 = vmul.f32 %v13315_v28, %v20743_v0 }
0x49f6   :  { %13420 = vperm.xlu1 %15812, %v13327_v52  }
0x49fa   :  { %13423 = vperm.xlu1 %15812, %v13328_v19  }
0x49fe   :  { %13426 = vperm.xlu1 %15812, %v13329_v45  }
0x4a02   :  { %13432 = vperm.xlu1 %15812, %v13331_v60  }
0x4a68   :  { %v13430_v30 = vpop.permute.xlu0 %13429 }
0x4a69   :  { %v13412_v7 = vpop.permute.xlu1 %13411  ;;  %v13461_v36 = vrot.slane %v13430_v30, %v16705_v46 }
0x4a6a   :  { %v13437_v33 = vrot.slane %v13412_v7, %v16705_v46 }
0x4a6d   :  { %v13415_v22 = vpop.permute.xlu1 %13414 }
0x4a6e   :  { %v13441_v48 = vrot.slane %v13415_v22, %v16705_v46 }
0x4a70   :  { %v13466_v35 = vsel %vm542_vm4, %v13441_v48, %v13437_v33 }
0x4a71   :  { %v13418_v14 = vpop.permute.xlu1 %13417 }
0x4a72   :  { %v13445_v15 = vrot.slane %v13418_v14, %v16705_v46 }
0x4a74   :  { %v13467_v62 = vsel %vm544_vm5, %v13445_v15, %v13466_v35 }
0x4a75   :  { %v13421_v54 = vpop.permute.xlu1 %13420 }
0x4a76   :  { %v13449_v37 = vrot.slane %v13421_v54, %v16705_v46 }
0x4a78   :  { %v13468_v57 = vsel %vm546_vm6, %v13449_v37, %v13467_v62 }
0x4a79   :  { %v13424_v27 = vpop.permute.xlu1 %13423 }
0x4a7a   :  { %v13453_v51 = vrot.slane %v13424_v27, %v16705_v46 }
0x4a7c   :  { %v13469_v29 = vsel %vm548_vm7, %v13453_v51, %v13468_v57 }
0x4a7d   :  { %v13427_v41 = vpop.permute.xlu1 %13426 }
0x4a7e   :  { %v13457_v2 = vrot.slane %v13427_v41, %v16705_v46 }
0x4a80   :  { %v13470_v40 = vsel %vm550_vm8, %v13457_v2, %v13469_v29 }
0x4a81   :  { %v13433_v10 = vpop.permute.xlu1 %13432  ;;  %v13471_v5 = vsel %vm552_vm9, %v13461_v36, %v13470_v40 }
0x4a82   :  { %v13465_v44 = vrot.slane %v13433_v10, %v16705_v46 }
0x4a84   :  { %v13472_v55 = vsel %vm554_vm10, %v13465_v44, %v13471_v5  ;;  %v21468_v44 = vld [vmem:[#allocation6_spill] sm:$0xff]  ;;  %v21469_v5 = vld [vmem:[#allocation9_spill] sm:$0xff] }
0x4a85   :  { %15568 = vmatmul.mubr.msk.f32.vlgmr.msra.gmra.mrb[50].mxu1 %vm78_vm0, %v13472_v55  ;;  %v21470_v55 = vld [vmem:[#allocation12_spill] sm:$0xff] }
0x4a86   :  { %15796 = vmatpush3.bf16.msra.mxu1 %v17088_v11  ;;  %15589 = vmatprep.mubr.msk.f32.mxu1 %vm16394_vm11, %v21351_v56 }
0x4a87   :  { %15797 = vmatprep.subr.bf16.mxu1 %v21352_v50 }
0x4a8a   :  { %15799 = vmatpush3.bf16.msra.mxu1 %v17101_v26 }
0x4b58   :  { %v13541_v9 = vpop.f32.mrb[50].mxu1 }
0x4b59   :  { %v13542_v16 = vadd.f32 %v13541_v9, %v20300_v21  ;;  %v15569_v58 = vpop.f32.mrb[51].mxu1  ;;  %v21471_v9 = vld [vmem:[#allocation13_spill] sm:$0xff] }
0x4b5a   :  { %v21473_v58 = vld [vmem:[#allocation23_spill] sm:$0xff] }
0x4b5b   :  { %v13545_v24 = vadd.f32 %v16389_v18, %v13542_v16  ;;  %v21472_v16 = vld [vmem:[#allocation21_spill] sm:$0xff] }
0x4b5c   :  { %v21474_v18 = vld [vmem:[#allocation25_spill] sm:$0xff] }
0x4b5d   :  { %16338 = vtanh.f32 %v13545_v24  ;;  %v13546_v11 = vsub.f32 0.0, %v13545_v24  ;;  %v21475_v24 = vld [vmem:[#allocation5_spill] sm:$0xff] }
0x4b5f   :  { %v13547_v32 = vmul.f32 1.442695, %v13546_v11 }
0x4b61   :  { %16340 = vpow2.f32 %v13547_v32 }
0x4b67   :  { %v16339_v31 = vpop.eup %16338 }
0x4b68   :  { %13555 = vrot.lane.b32.xlu0 %v16339_v31, %s16396_s22 }
0x4b6b   :  { %v16341_v56 = vpop.eup %16340 }
0x4b6c   :  { %v13549_v50 = vadd.f32 1.0, %v16341_v56 }
0x4b6e   :  { %16342 = vrcp.f32 %v13549_v50 }
0x4b78   :  { %v16343_v26 = vpop.eup %16342 }
0x4b79   :  { %v13570_v21 = vmul.f32 %v16343_v26, %v20263_v12  ;;  %v13553_v25 = vmul.f32 %v16343_v26, %v20261_v4 }
0x4bda   :  { %v13556_v42 = vpop.permute.xlu0 %13555 }
0x4bdb   :  { %v13558_v8 = vmul.f32 %v16343_v26, %v13556_v42 }
0x4bdd   :  { %13560 = vrot.lane.b32.xlu1 %v13558_v8, %s16391_s26 }
0x4c4f   :  { %v13561_v38 = vpop.permute.xlu1 %13560 }
0x4c50   :  { %v13563_v34 = vadd.f32 %v13561_v38, %v13553_v25  ;;  %v13571_v63 = vadd.f32 %v13570_v21, %v13561_v38 }
0x4c52   :  { %16344 = vtanh.f32 %v13563_v34 }
0x4c53   :  { %16346 = vtanh.f32 %v13571_v63 }
0x4c5c   :  { %v16345_v52 = vpop.eup %16344 }
0x4c5d   :  { %v16347_v53 = vpop.eup %16346  ;;  %13566 = vrot.lane.b32.xlu0 %v16345_v52, %s16398_s17 }
0x4c5e   :  { %13574 = vrot.lane.b32.xlu1 %v16347_v53, %s16398_s17 }
0x4ccf   :  { %v13567_v19 = vpop.permute.xlu0 %13566 }
0x4cd0   :  { %v13575_v43 = vpop.permute.xlu1 %13574  ;;  %v20777_v45 = vmul.f32 %v16343_v26, %v13567_v19 }
0x4cd1   :  { %v13577_v28 = vmul.f32 %v16343_v26, %v13575_v43 }
0x4cd2   :  { %13579 = vrot.lane.b32.xlu0 %v20777_v45, %s16397_s5  ;;  %v13780_v26 = vrot.slane %v20777_v45, %v17138_v39  ;;  %v13773_v38 = vcombine.high %v20777_v45, %v20777_v45 }
0x4cd3   :  { %13583 = vrot.lane.b32.xlu1 %v13577_v28, %s16398_s17  ;;  %v13837_v37 = vrot.slane %v13577_v28, %v17138_v39  ;;  %v13830_v51 = vcombine.high %v13577_v28, %v13577_v28 }
0x4cd4   :  { %v13796_v34 = vrot.slane %v13780_v26, %v17138_v39  ;;  %v13787_v28 = vrot.slane %v13773_v38, %v17138_v39  ;;  %v21485_v38 = vld [vmem:[#allocation27_spill] sm:$0xff] }
0x4cd5   :  { %v13853_v35 = vrot.slane %v13837_v37, %v17138_v39  ;;  %v13844_v41 = vrot.slane %v13830_v51, %v17138_v39  ;;  %v13845_v50 = vcombine.high %v13837_v37, %v13837_v37  ;;  %v21476_v37 = vld [vmem:[#allocation7_spill] sm:$0xff] }
0x4cd6   :  { %13587 = vrot.lane.b32.xlu0 %v20422_v6, %s16397_s5  ;;  %v21477_v51 = vld [vmem:[#allocation11_spill] sm:$0xff] }
0x4cd7   :  { %13590 = vrot.lane.b32.xlu1 %v20342_v17, %s16398_s17  ;;  %v16390_v17 = vld [vmem:[%s21218_s14] ss:$0 sm:$0xff]  ;;  %v13875_v30 = vcombine.high %v13853_v35, %v13853_v35  ;;  %v13982_v57 = vrot.slane %v13853_v35, %v16734_v23  ;;  %v13860_v2 = vrot.slane %v13844_v41, %v17138_v39  ;;  %v13867_v21 = vrot.slane %v13845_v50, %v17138_v39  ;;  %v21478_v35 = vld [vmem:[#allocation8_spill] sm:$0xff] }
0x4cd8   :  { %v13846_v52 = vcombine.high %v13844_v41, %v13844_v41  ;;  %v21480_v41 = vld [vmem:[#allocation22_spill] sm:$0xff] }
0x4cd9   :  { %v13990_v29 = vrot.slane %v13875_v30, %v16734_v23  ;;  %v13998_v40 = vrot.slane %v13860_v2, %v16734_v23  ;;  %v13876_v36 = vcombine.high %v13860_v2, %v13860_v2  ;;  %v13986_v19 = vrot.slane %v13867_v21, %v16734_v23  ;;  %v21481_v30 = vld [vmem:[#allocation24_spill] sm:$0xff] }
0x4cda   :  { %v13877_v43 = vcombine.high %v13867_v21, %v13867_v21  ;;  %v13788_v2 = vcombine.high %v13780_v26, %v13780_v26 }
0x4cdb   :  { %v14006_v10 = vrot.slane %v13876_v36, %v16734_v23 }
0x4d44   :  { %v13580_v4 = vpop.permute.xlu0 %13579 }
0x4d45   :  { %v13584_v12 = vpop.permute.xlu1 %13583 }
0x4d46   :  { %v13586_v60 = vsel %vm277_vm1, %v13580_v4, %v13584_v12  ;;  %v13818_v4 = vcombine.high %v13796_v34, %v13796_v34 }
0x4d47   :  { %15590 = vmatmul.mubr.msk.f32.vlgmr.msra.gmra.mrb[52].mxu1 %vm298_vm2, %v13586_v60  ;;  %v13994_v60 = vrot.slane %v13877_v43, %v16734_v23  ;;  %v21489_v43 = vld [vmem:[#allocation31_spill] sm:$0xff] }
0x4d48   :  { %v13588_v7 = vpop.permute.xlu0 %13587 }
0x4d49   :  { %v13591_v22 = vpop.permute.xlu1 %13590 }
0x4d4a   :  { %v13593_v14 = vsel %vm277_vm1, %v13588_v7, %v13591_v22  ;;  %v13874_v7 = vrot.slane %v13846_v52, %v17138_v39  ;;  %v13803_v22 = vrot.slane %v13787_v28, %v17138_v39 }
0x4d4b   :  { %15579 = vmatmul.mubr.msk.f32.vlgmr.msra.gmra.mrb[48].mxu0 %vm298_vm2, %v13593_v14 }
0x4e1a   :  { %v13736_v54 = vpop.f32.mrb[52].mxu1 }
0x4e1b   :  { %v15591_v48 = vpop.f32.mrb[53].mxu1 }
0x4e1c   :  { %v14002_v48 = vrot.slane %v13874_v7, %v16734_v23 }
0x4e1e   :  { %v13663_v15 = vpop.f32.mrb[48].mxu0 }
0x4e1f   :  { %v13737_v27 = vadd.f32 %v13736_v54, %v13663_v15  ;;  %v15580_v6 = vpop.f32.mrb[49].mxu0  ;;  %v13878_v15 = vcombine.high %v13874_v7, %v13874_v7 }
0x4e21   :  { %v13740_v33 = vadd.f32 %v16390_v17, %v13737_v27  ;;  %v13819_v27 = vcombine.high %v13803_v22, %v13803_v22 }
0x4e23   :  { %16348 = vtanh.f32 %v13740_v33  ;;  %v13741_v31 = vsub.f32 0.0, %v13740_v33  ;;  %v14010_v33 = vrot.slane %v13878_v15, %v16734_v23 }
0x4e25   :  { %v13742_v11 = vmul.f32 1.442695, %v13741_v31 }
0x4e27   :  { %16350 = vpow2.f32 %v13742_v11 }
0x4e2d   :  { %v16349_v62 = vpop.eup %16348 }
0x4e2e   :  { %13750 = vrot.lane.b32.xlu0 %v16349_v62, %s16396_s22  ;;  %v21479_v62 = vld [vmem:[#allocation10_spill] sm:$0xff] }
0x4e31   :  { %v16351_v32 = vpop.eup %16350 }
0x4e32   :  { %14011 = vrot.lane.b32.xlu0 %v13982_v57, %s16400_s23  ;;  %v13744_v56 = vadd.f32 1.0, %v16351_v32  ;;  %v21482_v57 = vld [vmem:[#allocation26_spill] sm:$0xff] }
0x4e34   :  { %16352 = vrcp.f32 %v13744_v56 }
0x4e36   :  { %14015 = vrot.lane.b32.xlu0 %v13990_v29, %s16400_s23 }
0x4e3a   :  { %14019 = vrot.lane.b32.xlu0 %v13998_v40, %s16400_s23  ;;  %v21483_v40 = vld [vmem:[#allocation15_spill] sm:$0xff] }
0x4e3e   :  { %14023 = vrot.lane.b32.xlu0 %v14006_v10, %s16400_s23  ;;  %v20816_v42 = vpop.eup %16352 }
0x4e3f   :  { %v13765_v29 = vmul.f32 %v20816_v42, %v20323_v59  ;;  %v13748_v36 = vmul.f32 %v20816_v42, %v21483_v40  ;;  %v21496_v40 = vld [vmem:[#allocation40_spill] sm:$0xff] }
0x4e42   :  { %14220 = vperm.xlu0 %15813, %v21468_v44  }
0x4e46   :  { %14226 = vperm.xlu0 %15813, %v21469_v5  }
0x4e4a   :  { %14232 = vperm.xlu0 %15813, %v21470_v55   ;;  %v13810_v55 = vrot.slane %v13788_v2, %v17138_v39 }
0x4e4e   :  { %14238 = vperm.xlu0 %15813, %v21471_v9  }
0x4e52   :  { %14244 = vperm.xlu0 %15813, %v21472_v16  }
0x4e56   :  { %14250 = vperm.xlu0 %15813, %v21473_v58   ;;  %v13820_v58 = vcombine.high %v13810_v55, %v13810_v55 }
0x4e5a   :  { %14256 = vperm.xlu0 %15813, %v21474_v18   ;;  %v13789_v18 = vcombine.high %v13787_v28, %v13787_v28 }
0x4e5c   :  { %v13817_v59 = vrot.slane %v13789_v18, %v17138_v39 }
0x4e5e   :  { %14262 = vperm.xlu0 %15813, %v21475_v24   ;;  %v13821_v26 = vcombine.high %v13817_v59, %v13817_v59 }
0x4ea0   :  { %v13751_v8 = vpop.permute.xlu0 %13750 }
0x4ea1   :  { %v13753_v25 = vmul.f32 %v20816_v42, %v13751_v8 }
0x4ea3   :  { %13755 = vrot.lane.b32.xlu1 %v13753_v25, %s16391_s26  ;;  %v21484_v25 = vld [vmem:[#allocation18_spill] sm:$0xff] }
0x4ea4   :  { %v14012_v63 = vpop.permute.xlu0 %14011 }
0x4ea5   :  { %v20825_v53 = vsel %vm1773_vm13, %v13796_v34, %v14012_v63  ;;  %v21486_v34 = vld [vmem:[#allocation29_spill] sm:$0xff]  ;;  %v21487_v63 = vld [vmem:[#allocation28_spill] sm:$0xff] }
0x4ea7   :  { %14013 = vrot.lane.b32.xlu1 %v13986_v19, %s16400_s23  ;;  %v21488_v19 = vld [vmem:[#allocation32_spill] sm:$0xff] }
0x4ea8   :  { %v14016_v12 = vpop.permute.xlu0 %14015 }
0x4ea9   :  { %v20831_v45 = vsel %vm1773_vm13, %v13818_v4, %v14016_v12  ;;  %v21490_v4 = vld [vmem:[#allocation30_spill] sm:$0xff]  ;;  %v21491_v12 = vld [vmem:[#allocation33_spill] sm:$0xff] }
0x4eab   :  { %14017 = vrot.lane.b32.xlu1 %v13994_v60, %s16400_s23 }
0x4eac   :  { %v14020_v14 = vpop.permute.xlu0 %14019 }
0x4ead   :  { %v20838_v54 = vsel %vm1773_vm13, %v13803_v22, %v14020_v14  ;;  %v21492_v14 = vld [vmem:[#allocation36_spill] sm:$0xff] }
0x4eaf   :  { %14021 = vrot.lane.b32.xlu1 %v14002_v48, %s16400_s23  ;;  %v21493_v48 = vld [vmem:[#allocation34_spill] sm:$0xff] }
0x4eb0   :  { %v14024_v6 = vpop.permute.xlu0 %14023 }
0x4eb1   :  { %v20843_v17 = vsel %vm1773_vm13, %v13819_v27, %v14024_v6 }
0x4eb3   :  { %14025 = vrot.lane.b32.xlu1 %v14010_v33, %s16400_s23 }
0x4eb7   :  { %14223 = vperm.xlu1 %15812, %v21476_v37  }
0x4ebb   :  { %14229 = vperm.xlu1 %15812, %v21477_v51   ;;  %v21494_v51 = vld [vmem:[#allocation38_spill] sm:$0xff] }
0x4ebf   :  { %14235 = vperm.xlu1 %15812, %v21478_v35  }
0x4ec1   :  { %v14221_v52 = vpop.permute.xlu0 %14220 }
0x4ec2   :  { %v14414_v7 = vrot.slane %v14221_v52, %v16705_v46  ;;  %v21509_v52 = vld [vmem:[#allocation50_spill] sm:$0xff] }
0x4ec3   :  { %14241 = vperm.xlu1 %15812, %v21479_v62   ;;  %v21495_v62 = vld [vmem:[#allocation37_spill] sm:$0xff] }
0x4ec5   :  { %v14227_v28 = vpop.permute.xlu0 %14226 }
0x4ec6   :  { %v14422_v6 = vrot.slane %v14227_v28, %v16705_v46 }
0x4ec7   :  { %14247 = vperm.xlu1 %15812, %v21480_v41  }
0x4ec9   :  { %v14233_v15 = vpop.permute.xlu0 %14232 }
0x4ecb   :  { %14253 = vperm.xlu1 %15812, %v21481_v30   ;;  %v14430_v30 = vrot.slane %v14233_v15, %v16705_v46 }
0x4ecd   :  { %v14239_v2 = vpop.permute.xlu0 %14238 }
0x4ecf   :  { %14259 = vperm.xlu1 %15812, %v21482_v57  }
0x4ed1   :  { %v14245_v28 = vpop.permute.xlu0 %14244 }
0x4f15   :  { %v13756_v10 = vpop.permute.xlu1 %13755 }
0x4f16   :  { %v13758_v44 = vadd.f32 %v13756_v10, %v13748_v36  ;;  %v13766_v5 = vadd.f32 %v13765_v29, %v13756_v10  ;;  %v21497_v10 = vld [vmem:[#allocation39_spill] sm:$0xff] }
0x4f18   :  { %16354 = vtanh.f32 %v13758_v44 }
0x4f19   :  { %16356 = vtanh.f32 %v13766_v5  ;;  %v14014_v9 = vpop.permute.xlu1 %14013  ;;  %v14438_v5 = vrot.slane %v14239_v2, %v16705_v46  ;;  %v14446_v2 = vrot.slane %v14245_v28, %v16705_v46 }
0x4f1a   :  { %v20860_v16 = vsel %vm1773_vm13, %v13810_v55, %v14014_v9 }
0x4f1d   :  { %v14018_v24 = vpop.permute.xlu1 %14017 }
0x4f1e   :  { %v20863_v31 = vsel %vm1773_vm13, %v13820_v58, %v14018_v24  ;;  %v21498_v58 = vld [vmem:[#allocation35_spill] sm:$0xff]  ;;  %v21499_v24 = vld [vmem:[#allocation41_spill] sm:$0xff] }
0x4f21   :  { %v14022_v11 = vpop.permute.xlu1 %14021 }
0x4f22   :  { %v16355_v32 = vpop.eup %16354  ;;  %v20867_v56 = vsel %vm1773_vm13, %v13817_v59, %v14022_v11  ;;  %v21500_v11 = vld [vmem:[#allocation43_spill] sm:$0xff] }
0x4f23   :  { %v16357_v50 = vpop.eup %16356  ;;  %13761 = vrot.lane.b32.xlu0 %v16355_v32, %s16398_s17  ;;  %v21501_v32 = vld [vmem:[#allocation42_spill] sm:$0xff] }
0x4f24   :  { %13769 = vrot.lane.b32.xlu1 %v16357_v50, %s16398_s17  ;;  %v21502_v50 = vld [vmem:[#allocation45_spill] sm:$0xff] }
0x4f25   :  { %v14026_v8 = vpop.permute.xlu1 %14025 }
0x4f26   :  { %v20872_v21 = vsel %vm1773_vm13, %v13821_v26, %v14026_v8  ;;  %v21503_v26 = vld [vmem:[#allocation44_spill] sm:$0xff] }
0x4f27   :  { %14268 = vperm.xlu0 %15813, %v21484_v25   ;;  %v21504_v8 = vld [vmem:[#allocation48_spill] sm:$0xff]  ;;  %v21505_v25 = vld [vmem:[#allocation47_spill] sm:$0xff] }
0x4f28   :  { %14265 = vperm.xlu1 %15812, %v21485_v38   ;;  %v21506_v38 = vld [vmem:[#allocation46_spill] sm:$0xff] }
0x4f2b   :  { %14274 = vperm.xlu0 %15813, %v21486_v34   ;;  %v21507_v34 = vld [vmem:[#allocation49_spill] sm:$0xff] }
0x4f2c   :  { %14271 = vperm.xlu1 %15812, %v21487_v63   ;;  %v21508_v63 = vld [vmem:[#allocation52_spill] sm:$0xff] }
0x4f2f   :  { %14280 = vperm.xlu0 %15813, %v21488_v19   ;;  %v21510_v19 = vld [vmem:[#allocation54_spill] sm:$0xff] }
0x4f30   :  { %14277 = vperm.xlu1 %15812, %v21489_v43   ;;  %v21511_v43 = vld [vmem:[#allocation53_spill] sm:$0xff] }
0x4f33   :  { %14286 = vperm.xlu0 %15813, %v21490_v4   ;;  %v14251_v4 = vpop.permute.xlu0 %14250 }
0x4f34   :  { %14283 = vperm.xlu1 %15812, %v21491_v12  }
0x4f36   :  { %v14224_v60 = vpop.permute.xlu1 %14223 }
0x4f37   :  { %v14418_v22 = vrot.slane %v14224_v60, %v16705_v46  ;;  %14292 = vperm.xlu0 %15813, %v21492_v14   ;;  %v14257_v60 = vpop.permute.xlu0 %14256 }
0x4f38   :  { %14289 = vperm.xlu1 %15812, %v21493_v48  }
0x4f39   :  { %v14667_v27 = vsel %vm542_vm4, %v14418_v22, %v14414_v7 }
0x4f3a   :  { %v14230_v33 = vpop.permute.xlu1 %14229  ;;  %v14668_v35 = vsel %vm544_vm5, %v14422_v6, %v14667_v27 }
0x4f3b   :  { %v14426_v37 = vrot.slane %v14230_v33, %v16705_v46  ;;  %14298 = vperm.xlu0 %15813, %v21494_v51   ;;  %v20921_v22 = vpop.permute.xlu0 %14262 }
0x4f3c   :  { %14295 = vperm.xlu1 %15812, %v21495_v62  }
0x4f3d   :  { %v14669_v41 = vsel %vm546_vm6, %v14426_v37, %v14668_v35 }
0x4f3e   :  { %v14236_v57 = vpop.permute.xlu1 %14235  ;;  %v14670_v36 = vsel %vm548_vm7, %v14430_v30, %v14669_v41 }
0x4f3f   :  { %v14434_v29 = vrot.slane %v14236_v57, %v16705_v46  ;;  %14304 = vperm.xlu0 %15813, %v21496_v40  }
0x4f40   :  { %14301 = vperm.xlu1 %15812, %v21497_v10  }
0x4f41   :  { %v14671_v44 = vsel %vm550_vm8, %v14434_v29, %v14670_v36  ;;  %v14454_v36 = vrot.slane %v14251_v4, %v16705_v46 }
0x4f42   :  { %v14242_v55 = vpop.permute.xlu1 %14241  ;;  %v14672_v18 = vsel %vm552_vm9, %v14438_v5, %v14671_v44 }
0x4f43   :  { %v14442_v9 = vrot.slane %v14242_v55, %v16705_v46  ;;  %14310 = vperm.xlu0 %15813, %v21498_v58  }
0x4f44   :  { %14307 = vperm.xlu1 %15812, %v21499_v24   ;;  %v14462_v24 = vrot.slane %v14257_v60, %v16705_v46 }
0x4f45   :  { %v14673_v59 = vsel %vm554_vm10, %v14442_v9, %v14672_v18 }
0x4f46   :  { %14731 = vst.msk [vmem:[%s21220_s15] sm:$0xff] %vm78_vm0, %v14673_v59  ;;  %v14248_v12 = vpop.permute.xlu1 %14247 }
0x4f47   :  { %14316 = vperm.xlu0 %15813, %v21500_v11   ;;  %v14450_v51 = vrot.slane %v14248_v12, %v16705_v46 }
0x4f48   :  { %14313 = vperm.xlu1 %15812, %v21501_v32  }
0x4f49   :  { %v14674_v55 = vsel %vm542_vm4, %v14450_v51, %v14446_v2 }
0x4f4a   :  { %v14254_v7 = vpop.permute.xlu1 %14253 }
0x4f4b   :  { %14322 = vperm.xlu0 %15813, %v21502_v50   ;;  %v14458_v9 = vrot.slane %v14254_v7, %v16705_v46 }
0x4f4c   :  { %14319 = vperm.xlu1 %15812, %v21503_v26  }
0x4f4e   :  { %v14260_v14 = vpop.permute.xlu1 %14259 }
0x4f4f   :  { %14328 = vperm.xlu0 %15813, %v21504_v8  }
0x4f50   :  { %14325 = vperm.xlu1 %15812, %v21505_v25  }
0x4f53   :  { %14334 = vperm.xlu0 %15813, %v21506_v38   ;;  %v14675_v38 = vsel %vm544_vm5, %v14454_v36, %v14674_v55 }
0x4f54   :  { %14331 = vperm.xlu1 %15812, %v21507_v34  }
0x4f57   :  { %14340 = vperm.xlu0 %15813, %v21508_v63  }
0x4f58   :  { %14337 = vperm.xlu1 %15812, %v21509_v52  }
0x4f5b   :  { %14346 = vperm.xlu0 %15813, %v21510_v19   ;;  %v14676_v19 = vsel %vm546_vm6, %v14458_v9, %v14675_v38 }
0x4f5c   :  { %14343 = vperm.xlu1 %15812, %v21511_v43   ;;  %v14466_v43 = vrot.slane %v14260_v14, %v16705_v46 }
0x4f95   :  { %v13762_v48 = vpop.permute.xlu0 %13761 }
0x4f96   :  { %v13770_v15 = vpop.permute.xlu1 %13769  ;;  %v13764_v27 = vmul.f32 %v20816_v42, %v13762_v48 }
0x4f97   :  { %v13772_v6 = vmul.f32 %v20816_v42, %v13770_v15 }
0x4f98   :  { %v13880_v33 = vcombine.high %v13764_v27, %v13764_v27  ;;  %v13887_v37 = vrot.slane %v13764_v27, %v17138_v39 }
0x4f99   :  { %v13930_v35 = vcombine.high %v13772_v6, %v13772_v6  ;;  %v13937_v62 = vrot.slane %v13772_v6, %v17138_v39 }
0x4f9a   :  { %v13894_v41 = vrot.slane %v13880_v33, %v17138_v39  ;;  %v13895_v30 = vcombine.high %v13887_v37, %v13887_v37  ;;  %v13903_v57 = vrot.slane %v13887_v37, %v17138_v39 }
0x4f9b   :  { %v13944_v29 = vrot.slane %v13930_v35, %v17138_v39  ;;  %v13945_v40 = vcombine.high %v13937_v62, %v13937_v62  ;;  %v13953_v42 = vrot.slane %v13937_v62, %v17138_v39 }
0x4f9c   :  { %v13896_v10 = vcombine.high %v13894_v41, %v13894_v41  ;;  %v13910_v44 = vrot.slane %v13894_v41, %v17138_v39  ;;  %v13917_v5 = vrot.slane %v13895_v30, %v17138_v39  ;;  %v13925_v11 = vcombine.high %v13903_v57, %v13903_v57 }
0x4f9d   :  { %v13967_v58 = vrot.slane %v13945_v40, %v17138_v39  ;;  %v13975_v18 = vcombine.high %v13953_v42, %v13953_v42  ;;  %v14078_v59 = vrot.slane %v13953_v42, %v16734_v23  ;;  %v13946_v50 = vcombine.high %v13944_v29, %v13944_v29 }
0x4f9e   :  { %v13927_v32 = vcombine.high %v13917_v5, %v13917_v5  ;;  %v13924_v26 = vrot.slane %v13896_v10, %v17138_v39  ;;  %v13926_v8 = vcombine.high %v13910_v44, %v13910_v44  ;;  %v14038_v25 = vrot.slane %v13903_v57, %v16734_v23 }
0x4f9f   :  { %v13977_v34 = vcombine.high %v13967_v58, %v13967_v58  ;;  %14107 = vrot.lane.b32.xlu0 %v14078_v59, %s16400_s23  ;;  %v14082_v63 = vrot.slane %v13967_v58, %v16734_v23  ;;  %v14042_v52 = vrot.slane %v13917_v5, %v16734_v23  ;;  %v13960_v28 = vrot.slane %v13944_v29, %v17138_v39 }
0x4fa0   :  { %v14086_v4 = vrot.slane %v13975_v18, %v16734_v23  ;;  %v20954_v12 = vsel %vm1782_vm14, %v20825_v53, %v14038_v25  ;;  %v14046_v7 = vrot.slane %v13925_v11, %v16734_v23  ;;  %v14050_v48 = vrot.slane %v13927_v32, %v16734_v23  ;;  %v21512_v11 = vld [vmem:[#allocation56_spill] sm:$0xff] }
0x4fa1   :  { %14109 = vrot.lane.b32.xlu1 %v14082_v63, %s16400_s23  ;;  %v20958_v60 = vsel %vm1782_vm14, %v20860_v16, %v14042_v52  ;;  %v13974_v14 = vrot.slane %v13946_v50, %v17138_v39  ;;  %v14054_v15 = vrot.slane %v13910_v44, %v16734_v23  ;;  %v14058_v27 = vrot.slane %v13924_v26, %v16734_v23 }
0x4fa2   :  { %v14062_v6 = vrot.slane %v13926_v8, %v16734_v23  ;;  %v14090_v53 = vrot.slane %v13977_v34, %v16734_v23  ;;  %v20970_v16 = vsel %vm1782_vm14, %v20831_v45, %v14046_v7  ;;  %v20974_v33 = vsel %vm1782_vm14, %v20863_v31, %v14050_v48  ;;  %v21513_v8 = vld [vmem:[#allocation55_spill] sm:$0xff] }
0x4fa3   :  { %14111 = vrot.lane.b32.xlu0 %v14086_v4, %s16400_s23  ;;  %v13928_v37 = vcombine.high %v13924_v26, %v13924_v26  ;;  %v14677_v39 = vsel %vm548_vm7, %v14462_v24, %v14676_v19  ;;  %v20979_v51 = vsel %vm1782_vm14, %v20838_v54, %v14054_v15  ;;  %v20983_v35 = vsel %vm1782_vm14, %v20867_v56, %v14058_v27  ;;  %v21514_v34 = vld [vmem:[#allocation51_spill] sm:$0xff]  ;;  %v21517_v27 = vld [vmem:[#allocation58_spill] sm:$0xff] }
0x4fa4   :  { %v20987_v62 = vsel %vm1782_vm14, %v20843_v17, %v14062_v6  ;;  %v14678_v45 = vsel %vm550_vm8, %v14466_v43, %v14677_v39  ;;  %v13976_v41 = vcombine.high %v13960_v28, %v13960_v28  ;;  %v14094_v31 = vrot.slane %v13960_v28, %v16734_v23  ;;  %v21515_v43 = vld [vmem:[#allocation57_spill] sm:$0xff]  ;;  %v21516_v48 = vld [vmem:[#allocation19_spill] sm:$0xff] }
0x4fa5   :  { %14113 = vrot.lane.b32.xlu1 %v14090_v53, %s16400_s23  ;;  %v14066_v57 = vrot.slane %v13928_v37, %v16734_v23  ;;  %v14470_v54 = vrot.slane %v20921_v22, %v16705_v46  ;;  %v14098_v17 = vrot.slane %v13974_v14, %v16734_v23  ;;  %v13978_v29 = vcombine.high %v13974_v14, %v13974_v14 }
0x4fa6   :  { %v14269_v30 = vpop.permute.xlu0 %14268  ;;  %v14102_v22 = vrot.slane %v13976_v41, %v16734_v23 }
0x4fa7   :  { %v14266_v2 = vpop.permute.xlu1 %14265  ;;  %14115 = vrot.lane.b32.xlu0 %v14094_v31, %s16400_s23  ;;  %v21000_v40 = vsel %vm1782_vm14, %v20872_v21, %v14066_v57  ;;  %v14679_v42 = vsel %vm552_vm9, %v14470_v54, %v14678_v45  ;;  %v14478_v5 = vrot.slane %v14269_v30, %v16705_v46  ;;  %v14106_v55 = vrot.slane %v13978_v29, %v16734_v23  ;;  %v21518_v31 = vld [vmem:[#allocation59_spill] sm:$0xff] }
0x4fa8   :  { %v14474_v56 = vrot.slane %v14266_v2, %v16705_v46  ;;  %v21519_v2 = vld [vmem:[#allocation60_spill] sm:$0xff] }
0x4fa9   :  { %14117 = vrot.lane.b32.xlu1 %v14098_v17, %s16400_s23 }
0x4faa   :  { %v14680_v36 = vsel %vm554_vm10, %v14474_v56, %v14679_v42  ;;  %v14275_v10 = vpop.permute.xlu0 %14274 }
0x4fab   :  { %14732 = vst.msk [vmem:[%s21220_s15 + $0x8] sm:$0xff] %vm78_vm0, %v14680_v36  ;;  %v14272_v44 = vpop.permute.xlu1 %14271  ;;  %14119 = vrot.lane.b32.xlu0 %v14102_v22, %s16400_s23  ;;  %v14486_v9 = vrot.slane %v14275_v10, %v16705_v46  ;;  %v21520_v22 = vld [vmem:[#allocation62_spill] sm:$0xff] }
0x4fac   :  { %v14482_v21 = vrot.slane %v14272_v44, %v16705_v46 }
0x4fad   :  { %14121 = vrot.lane.b32.xlu1 %v14106_v55, %s16400_s23 }
0x4fae   :  { %v14681_v58 = vsel %vm542_vm4, %v14482_v21, %v14478_v5  ;;  %v14281_v18 = vpop.permute.xlu0 %14280 }
0x4faf   :  { %v14278_v24 = vpop.permute.xlu1 %14277  ;;  %14352 = vperm.xlu0 %15813, %v21512_v11   ;;  %v14682_v32 = vsel %vm544_vm5, %v14486_v9, %v14681_v58  ;;  %v14494_v50 = vrot.slane %v14281_v18, %v16705_v46  ;;  %v21521_v58 = vld [vmem:[#allocation63_spill] sm:$0xff] }
0x4fb0   :  { %v14490_v59 = vrot.slane %v14278_v24, %v16705_v46 }
0x4fb1   :  { %14349 = vperm.xlu1 %15812, %v21513_v8  }
0x4fb2   :  { %v14683_v26 = vsel %vm546_vm6, %v14490_v59, %v14682_v32  ;;  %v14287_v23 = vpop.permute.xlu0 %14286  ;;  %v21522_v32 = vld [vmem:[#allocation64_spill] sm:$0xff] }
0x4fb3   :  { %v14284_v25 = vpop.permute.xlu1 %14283  ;;  %14358 = vperm.xlu0 %15813, %v21514_v34   ;;  %v14684_v63 = vsel %vm548_vm7, %v14494_v50, %v14683_v26  ;;  %v14502_v52 = vrot.slane %v14287_v23, %v16705_v46 }
0x4fb4   :  { %v14498_v38 = vrot.slane %v14284_v25, %v16705_v46  ;;  %v21523_v25 = vld [vmem:[#allocation61_spill] sm:$0xff] }
0x4fb5   :  { %14355 = vperm.xlu1 %15812, %v21515_v43  }
0x4fb6   :  { %v14685_v19 = vsel %vm550_vm8, %v14498_v38, %v14684_v63  ;;  %v14293_v28 = vpop.permute.xlu0 %14292 }
0x4fb7   :  { %v14290_v4 = vpop.permute.xlu1 %14289  ;;  %14364 = vperm.xlu0 %15813, %v21516_v48   ;;  %v14686_v14 = vsel %vm552_vm9, %v14502_v52, %v14685_v19  ;;  %v14510_v37 = vrot.slane %v14293_v28, %v16705_v46  ;;  %v21524_v28 = vld [vmem:[#allocation65_spill] sm:$0xff] }
0x4fb8   :  { %v14506_v7 = vrot.slane %v14290_v4, %v16705_v46 }
0x4fb9   :  { %14361 = vperm.xlu1 %15812, %v21517_v27  }
0x4fba   :  { %v14687_v15 = vsel %vm554_vm10, %v14506_v7, %v14686_v14  ;;  %v14299_v6 = vpop.permute.xlu0 %14298 }
0x4fbb   :  { %14733 = vst.msk [vmem:[%s21220_s15 + $0x10] sm:$0xff] %vm78_vm0, %v14687_v15  ;;  %v14296_v53 = vpop.permute.xlu1 %14295  ;;  %14388 = vperm.xlu0 %15813, %v20717_v3   ;;  %v14518_v45 = vrot.slane %v14299_v6, %v16705_v46 }
0x4fbc   :  { %v14514_v39 = vrot.slane %v14296_v53, %v16705_v46 }
0x4fbd   :  { %14367 = vperm.xlu1 %15812, %v21518_v31  }
0x4fbe   :  { %v14688_v41 = vsel %vm542_vm4, %v14514_v39, %v14510_v37  ;;  %v14305_v30 = vpop.permute.xlu0 %14304 }
0x4fbf   :  { %v14302_v57 = vpop.permute.xlu1 %14301  ;;  %14370 = vperm.xlu0 %15813, %v21519_v2   ;;  %v14689_v56 = vsel %vm544_vm5, %v14518_v45, %v14688_v41  ;;  %v14526_v17 = vrot.slane %v14305_v30, %v16705_v46 }
0x4fc0   :  { %v14522_v54 = vrot.slane %v14302_v57, %v16705_v46 }
0x4fc1   :  { %14391 = vperm.xlu1 %15812, %v20722_v47  }
0x4fc2   :  { %v14690_v29 = vsel %vm546_vm6, %v14522_v54, %v14689_v56  ;;  %v14311_v3 = vpop.permute.xlu0 %14310 }
0x4fc3   :  { %v14308_v42 = vpop.permute.xlu1 %14307  ;;  %14373 = vperm.xlu0 %15813, %v21520_v22   ;;  %v14691_v10 = vsel %vm548_vm7, %v14526_v17, %v14690_v29  ;;  %v14534_v44 = vrot.slane %v14311_v3, %v16705_v46 }
0x4fc4   :  { %v14530_v36 = vrot.slane %v14308_v42, %v16705_v46 }
0x4fc5   :  { %14394 = vperm.xlu1 %15812, %v20727_v49  }
0x4fc6   :  { %v14692_v5 = vsel %vm550_vm8, %v14530_v36, %v14691_v10  ;;  %v14317_v21 = vpop.permute.xlu0 %14316 }
0x4fc7   :  { %v14314_v55 = vpop.permute.xlu1 %14313  ;;  %14376 = vperm.xlu0 %15813, %v21521_v58   ;;  %v14693_v47 = vsel %vm552_vm9, %v14534_v44, %v14692_v5  ;;  %v14542_v49 = vrot.slane %v14317_v21, %v16705_v46 }
0x4fc8   :  { %v14538_v9 = vrot.slane %v14314_v55, %v16705_v46 }
0x4fc9   :  { %14397 = vperm.xlu1 %15812, %v20730_v61  }
0x4fca   :  { %v14694_v18 = vsel %vm554_vm10, %v14538_v9, %v14693_v47  ;;  %v14323_v24 = vpop.permute.xlu0 %14322 }
0x4fcb   :  { %14734 = vst.msk [vmem:[%s21220_s15 + $0x18] sm:$0xff] %vm78_vm0, %v14694_v18  ;;  %v14320_v59 = vpop.permute.xlu1 %14319  ;;  %14379 = vperm.xlu0 %15813, %v21522_v32   ;;  %v14550_v50 = vrot.slane %v14323_v24, %v16705_v46 }
0x4fcc   :  { %v14546_v11 = vrot.slane %v14320_v59, %v16705_v46 }
0x4fcd   :  { %14400 = vperm.xlu1 %15812, %v20735_v1  }
0x4fce   :  { %v14695_v26 = vsel %vm542_vm4, %v14546_v11, %v14542_v49  ;;  %v14329_v61 = vpop.permute.xlu0 %14328 }
0x4fcf   :  { %v14326_v8 = vpop.permute.xlu1 %14325  ;;  %14382 = vperm.xlu0 %15813, %v21523_v25   ;;  %v14696_v38 = vsel %vm544_vm5, %v14550_v50, %v14695_v26  ;;  %v14558_v34 = vrot.slane %v14329_v61, %v16705_v46 }
0x4fd0   :  { %v14554_v23 = vrot.slane %v14326_v8, %v16705_v46 }
0x4fd1   :  { %14403 = vperm.xlu1 %15812, %v20739_v20  }
0x4fd2   :  { %v14697_v63 = vsel %vm546_vm6, %v14554_v23, %v14696_v38  ;;  %v14335_v52 = vpop.permute.xlu0 %14334 }
0x4fd3   :  { %v14332_v19 = vpop.permute.xlu1 %14331  ;;  %14385 = vperm.xlu0 %15813, %v21524_v28   ;;  %v14698_v1 = vsel %vm548_vm7, %v14558_v34, %v14697_v63  ;;  %v14566_v4 = vrot.slane %v14335_v52, %v16705_v46 }
0x4fd4   :  { %v14562_v43 = vrot.slane %v14332_v19, %v16705_v46 }
0x4fd5   :  { %14406 = vperm.xlu1 %15812, %v20713_v13  }
0x4fd6   :  { %v14699_v7 = vsel %vm550_vm8, %v14562_v43, %v14698_v1  ;;  %v14341_v27 = vpop.permute.xlu0 %14340 }
0x4fd7   :  { %v14338_v48 = vpop.permute.xlu1 %14337  ;;  %v14700_v15 = vsel %vm552_vm9, %v14566_v4, %v14699_v7  ;;  %v14574_v17 = vrot.slane %v14341_v27, %v16705_v46 }
0x4fd8   :  { %v14570_v14 = vrot.slane %v14338_v48, %v16705_v46 }
0x4fd9   :  { %14409 = vperm.xlu1 %15812, %v20743_v0  }
0x4fda   :  { %v14701_v20 = vsel %vm554_vm10, %v14570_v14, %v14700_v15  ;;  %v14347_v6 = vpop.permute.xlu0 %14346 }
0x4fdb   :  { %14735 = vst.msk [vmem:[%s21220_s15 + $0x20] sm:$0xff] %vm78_vm0, %v14701_v20  ;;  %v14344_v53 = vpop.permute.xlu1 %14343 }
0x5011   :  { %v14108_v37 = vpop.permute.xlu0 %14107 }
0x5012   :  { %v14147_v13 = vsel %vm1791_vm15, %v20954_v12, %v14108_v37 }
0x5013   :  { %v14110_v39 = vpop.permute.xlu1 %14109  ;;  %14747 = vrot.lane.b32.xlu0 %v14147_v13, %s16397_s5 }
0x5014   :  { %v14148_v45 = vsel %vm1791_vm15, %v20958_v60, %v14110_v39 }
0x5015   :  { %14749 = vrot.lane.b32.xlu1 %v14148_v45, %s16397_s5  ;;  %v14112_v0 = vpop.permute.xlu0 %14111 }
0x5016   :  { %v14149_v41 = vsel %vm1791_vm15, %v20970_v16, %v14112_v0 }
0x5017   :  { %v14114_v31 = vpop.permute.xlu1 %14113  ;;  %14751 = vrot.lane.b32.xlu0 %v14149_v41, %s16397_s5 }
0x5018   :  { %v14150_v30 = vsel %vm1791_vm15, %v20974_v33, %v14114_v31 }
0x5019   :  { %14753 = vrot.lane.b32.xlu1 %v14150_v30, %s16397_s5  ;;  %v14116_v12 = vpop.permute.xlu0 %14115 }
0x501a   :  { %v14151_v57 = vsel %vm1791_vm15, %v20979_v51, %v14116_v12  ;;  %v14578_v51 = vrot.slane %v14344_v53, %v16705_v46 }
0x501b   :  { %v14118_v54 = vpop.permute.xlu1 %14117  ;;  %14755 = vrot.lane.b32.xlu0 %v14151_v57, %s16397_s5 }
0x501c   :  { %v14152_v60 = vsel %vm1791_vm15, %v20983_v35, %v14118_v54  ;;  %v14582_v35 = vrot.slane %v14347_v6, %v16705_v46  ;;  %v14702_v3 = vsel %vm542_vm4, %v14578_v51, %v14574_v17 }
0x501d   :  { %14757 = vrot.lane.b32.xlu1 %v14152_v60, %s16397_s5  ;;  %v14120_v16 = vpop.permute.xlu0 %14119 }
0x501e   :  { %v14153_v2 = vsel %vm1791_vm15, %v20987_v62, %v14120_v16  ;;  %v14703_v36 = vsel %vm544_vm5, %v14582_v35, %v14702_v3 }
0x501f   :  { %v14122_v56 = vpop.permute.xlu1 %14121  ;;  %14759 = vrot.lane.b32.xlu0 %v14153_v2, %s16397_s5 }
0x5020   :  { %v14154_v33 = vsel %vm1791_vm15, %v21000_v40, %v14122_v56 }
0x5021   :  { %14761 = vrot.lane.b32.xlu1 %v14154_v33, %s16397_s5 }
0x502e   :  { %v14353_v29 = vpop.permute.xlu0 %14352 }
0x502f   :  { %v14590_v40 = vrot.slane %v14353_v29, %v16705_v46 }
0x5030   :  { %v14350_v42 = vpop.permute.xlu1 %14349 }
0x5031   :  { %v14586_v62 = vrot.slane %v14350_v42, %v16705_v46 }
0x5032   :  { %v14359_v22 = vpop.permute.xlu0 %14358 }
0x5033   :  { %v14704_v10 = vsel %vm546_vm6, %v14586_v62, %v14703_v36  ;;  %v14598_v58 = vrot.slane %v14359_v22, %v16705_v46 }
0x5034   :  { %v14356_v44 = vpop.permute.xlu1 %14355  ;;  %v14705_v21 = vsel %vm548_vm7, %v14590_v40, %v14704_v10 }
0x5035   :  { %v14594_v5 = vrot.slane %v14356_v44, %v16705_v46 }
0x5036   :  { %v14365_v55 = vpop.permute.xlu0 %14364 }
0x5037   :  { %v14706_v9 = vsel %vm550_vm8, %v14594_v5, %v14705_v21  ;;  %v14606_v34 = vrot.slane %v14365_v55, %v16705_v46 }
0x5038   :  { %v14362_v47 = vpop.permute.xlu1 %14361  ;;  %v14707_v24 = vsel %vm552_vm9, %v14598_v58, %v14706_v9 }
0x5039   :  { %v14602_v18 = vrot.slane %v14362_v47, %v16705_v46 }
0x503a   :  { %v14389_v59 = vpop.permute.xlu0 %14388 }
0x503b   :  { %v14708_v49 = vsel %vm554_vm10, %v14602_v18, %v14707_v24  ;;  %v14638_v37 = vrot.slane %v14389_v59, %v16705_v46 }
0x503c   :  { %14736 = vst.msk [vmem:[%s21220_s15 + $0x28] sm:$0xff] %vm78_vm0, %v14708_v49  ;;  %v14368_v11 = vpop.permute.xlu1 %14367 }
0x503d   :  { %v14610_v25 = vrot.slane %v14368_v11, %v16705_v46 }
0x503e   :  { %v14371_v32 = vpop.permute.xlu0 %14370 }
0x503f   :  { %v14614_v63 = vrot.slane %v14371_v32, %v16705_v46  ;;  %v14709_v19 = vsel %vm542_vm4, %v14610_v25, %v14606_v34 }
0x5040   :  { %v14392_v50 = vpop.permute.xlu1 %14391 }
0x5041   :  { %v14710_v7 = vsel %vm544_vm5, %v14614_v63, %v14709_v19  ;;  %v14642_v15 = vrot.slane %v14392_v50, %v16705_v46 }
0x5042   :  { %v14374_v26 = vpop.permute.xlu0 %14373 }
0x5043   :  { %v14618_v43 = vrot.slane %v14374_v26, %v16705_v46  ;;  %v14716_v30 = vsel %vm542_vm4, %v14642_v15, %v14638_v37 }
0x5044   :  { %v14395_v61 = vpop.permute.xlu1 %14394 }
0x5045   :  { %v14711_v20 = vsel %vm546_vm6, %v14618_v43, %v14710_v7  ;;  %v14646_v27 = vrot.slane %v14395_v61, %v16705_v46 }
0x5046   :  { %v14377_v8 = vpop.permute.xlu0 %14376 }
0x5047   :  { %v14622_v28 = vrot.slane %v14377_v8, %v16705_v46  ;;  %v14717_v54 = vsel %vm544_vm5, %v14646_v27, %v14716_v30 }
0x5048   :  { %v14398_v23 = vpop.permute.xlu1 %14397 }
0x5049   :  { %v14712_v6 = vsel %vm548_vm7, %v14622_v28, %v14711_v20  ;;  %v14650_v13 = vrot.slane %v14398_v23, %v16705_v46 }
0x504a   :  { %v14380_v38 = vpop.permute.xlu0 %14379 }
0x504b   :  { %v14626_v4 = vrot.slane %v14380_v38, %v16705_v46  ;;  %v14718_v16 = vsel %vm546_vm6, %v14650_v13, %v14717_v54 }
0x504c   :  { %v14401_v52 = vpop.permute.xlu1 %14400 }
0x504d   :  { %v14713_v39 = vsel %vm550_vm8, %v14626_v4, %v14712_v6  ;;  %v14654_v0 = vrot.slane %v14401_v52, %v16705_v46 }
0x504e   :  { %v14383_v1 = vpop.permute.xlu0 %14382 }
0x504f   :  { %v14630_v48 = vrot.slane %v14383_v1, %v16705_v46  ;;  %v14719_v2 = vsel %vm548_vm7, %v14654_v0, %v14718_v16 }
0x5050   :  { %v14404_v14 = vpop.permute.xlu1 %14403 }
0x5051   :  { %v14714_v41 = vsel %vm552_vm9, %v14630_v48, %v14713_v39  ;;  %v14658_v12 = vrot.slane %v14404_v14, %v16705_v46 }
0x5052   :  { %v14386_v53 = vpop.permute.xlu0 %14385 }
0x5053   :  { %v14634_v45 = vrot.slane %v14386_v53, %v16705_v46  ;;  %v14720_v33 = vsel %vm550_vm8, %v14658_v12, %v14719_v2 }
0x5054   :  { %v14407_v31 = vpop.permute.xlu1 %14406 }
0x5055   :  { %v14715_v57 = vsel %vm554_vm10, %v14634_v45, %v14714_v41  ;;  %v14662_v60 = vrot.slane %v14407_v31, %v16705_v46 }
0x5056   :  { %14737 = vst.msk [vmem:[%s21220_s15 + $0x30] sm:$0xff] %vm78_vm0, %v14715_v57 }
0x5057   :  { %v14721_v17 = vsel %vm552_vm9, %v14662_v60, %v14720_v33 }
0x5058   :  { %v14410_v56 = vpop.permute.xlu1 %14409 }
0x5059   :  { %v14666_v51 = vrot.slane %v14410_v56, %v16705_v46 }
0x505b   :  { %v14722_v35 = vsel %vm554_vm10, %v14666_v51, %v14721_v17 }
0x505c   :  { %14738 = vst.msk [vmem:[%s21220_s15 + $0x38] sm:$0xff] %vm78_vm0, %v14722_v35 }
0x5085   :  { %v14748_v29 = vpop.permute.xlu0 %14747 }
0x5086   :  { %14828 = vst.msk [vmem:[%s21219_s16 + $0xe0] sm:$0xf] %vm14771_vm12, %v14748_v29 }
0x5087   :  { %v14750_v3 = vpop.permute.xlu1 %14749 }
0x5088   :  { %14829 = vst.msk [vmem:[%s21219_s16 + $0xe4] sm:$0xf] %vm14771_vm12, %v14750_v3 }
0x5089   :  { %v14752_v46 = vpop.permute.xlu0 %14751 }
0x508a   :  { %14830 = vst.msk [vmem:[%s21219_s16 + $0xe8] sm:$0xf] %vm14771_vm12, %v14752_v46 }
0x508b   :  { %v14754_v42 = vpop.permute.xlu1 %14753 }
0x508c   :  { %14831 = vst.msk [vmem:[%s21219_s16 + $0xec] sm:$0xf] %vm14771_vm12, %v14754_v42 }
0x508d   :  { %v14756_v62 = vpop.permute.xlu0 %14755 }
0x508e   :  { %14832 = vst.msk [vmem:[%s21219_s16 + $0xf0] sm:$0xf] %vm14771_vm12, %v14756_v62 }
0x508f   :  { %v14758_v36 = vpop.permute.xlu1 %14757 }
0x5090   :  { %14833 = vst.msk [vmem:[%s21219_s16 + $0xf4] sm:$0xf] %vm14771_vm12, %v14758_v36 }
0x5091   :  { %v14760_v22 = vpop.permute.xlu0 %14759 }
0x5092   :  { %14834 = vst.msk [vmem:[%s21219_s16 + $0xf8] sm:$0xf] %vm14771_vm12, %v14760_v22 }
0x5093   :  { %v14762_v10 = vpop.permute.xlu1 %14761 }
0x5094   :  { %14835 = vst.msk [vmem:[%s21219_s16 + $0xfc] sm:$0xf] %vm14771_vm12, %v14762_v10 }

</bundles_post_ra>
